<compile_context>
chip_gen: v7x
topology: tpu7x:2x2x1
jax: 0.10.0
libtpu: 0.0.40
codegen_flags: <defaults>
</compile_context>

<pallas_src>
import functools

import jax
import jax.numpy as jnp
from jax.experimental import pallas as pl
from jax.experimental.pallas import tpu as pltpu


# ----------------------------------------------------------------------------
# Pallas kernel: WB windows (one grid step) at a time.
# ----------------------------------------------------------------------------
def _window_attn_kernel(x_ref, mask_ref, bias_ref, w_all_ref, bqkv_ref,
                        lb_ref, wproj_t_ref, bproj_ref, o_ref,
                        *, num_heads, head_dim, wb, n_tok):
    H, d, N = num_heads, head_dim, n_tok
    C = H * d
    M = wb * N

    x = x_ref[...]                                   # (M, C) bf16 slab of WB windows
    cdt = x.dtype                                    # bf16 MXU-operand dtype

    # One fused (M, C) @ (C, 3C + 2r) pass: frozen QKV (qk_scale pre-folded into the
    # Q columns / bias) and LoRA-A share the single x multiply.
    xw = jnp.dot(x, w_all_ref[...], preferred_element_type=jnp.float32)  # (M, 3C+2r)
    qkv = xw[:, :3 * C] + bqkv_ref[0]                # (M, 3C) f32
    after_a = xw[:, 3 * C:]                          # (M, 2r) f32 (LoRA-A output)

    # LoRA-B: block-diagonal (q group | v group); LoRA scaling (+ qk_scale for the q
    # block) folded in -> both deltas from one tiny matmul.
    lora_qv = jnp.dot(after_a.astype(cdt), lb_ref[...],
                      preferred_element_type=jnp.float32)                # (M, 2C) f32

    q = qkv[:, :C] + lora_qv[:, :C]                  # (M, C) f32, already qk-scaled
    k = qkv[:, C:2 * C]
    v = qkv[:, 2 * C:] + lora_qv[:, C:]

    # (M, C) -> (WB*H, N, d) head-major batch.  Only tile-aligned reshapes
    # (N % 8 == 0, d % 8 == 0 here) and last-two-dim transposes (f32, the
    # well-supported transpose class); bf16 cast happens exactly once at the end.
    def to_heads(t):
        t = t.reshape(wb, N, C)                      # leading split
        t = jnp.transpose(t, (0, 2, 1))              # (wb, C, N)  minor-dim swap
        t = t.reshape(wb * H, d, N)                  # sublane-aligned split + merge
        return jnp.transpose(t, (0, 2, 1)).astype(cdt)   # (wb*H, N, d) bf16

    qh, kh, vh = to_heads(q), to_heads(k), to_heads(v)

    # Attention scores for ALL (window, head) pairs in one batched matmul.
    s = jnp.einsum('bqd,bkd->bqk', qh, kh,
                   preferred_element_type=jnp.float32)                   # (wb*H, N, N)
    s = s.reshape(wb, H, N, N)
    # Relative-position bias (per head) + additive window mask (per window), added
    # directly to the batched scores (no materialized (H, WB, N, N) tensor).
    s = s + bias_ref[...][None, :, :, :] + mask_ref[...][:, None, :, :]
    s = s - jnp.max(s, axis=-1, keepdims=True)
    p = jnp.exp(s)
    p = p * pl.reciprocal(jnp.sum(p, axis=-1, keepdims=True), approx=True)
    p = p.reshape(wb * H, N, N).astype(cdt)

    ctx = jnp.einsum('bqk,bkd->bqd', p, vh,
                     preferred_element_type=jnp.float32)                 # (wb*H, N, d)

    # Back to token-major (M, C) so the output projection is ONE K=C matmul.
    ctx = jnp.transpose(ctx, (0, 2, 1))              # (wb*H, d, N)
    ctx = ctx.reshape(wb, C, N)                      # merge heads back into channels
    ctx = jnp.transpose(ctx, (0, 2, 1)).reshape(M, C).astype(cdt)

    out = jnp.dot(ctx, wproj_t_ref[...], preferred_element_type=jnp.float32)
    out = out + bproj_ref[0]
    o_ref[...] = out.astype(o_ref.dtype)


# ----------------------------------------------------------------------------
# Wrapper
# ----------------------------------------------------------------------------
def _pick_block_windows(B_, N, nW, target_rows=256):
    """Pick windows-per-grid-step WB such that:
      * WB divides B_ and is a multiple of nW (so the (WB, N, N) mask tile is
        exact and can stay resident in VMEM),
      * the x/out block's sublane dim WB*N is a multiple of 8 (the (8,128) rule),
      * WB*N >= target_rows to fill the MXU, taking the smallest such WB so the
        grid keeps several steps for DMA/compute overlap (and megacore sharding).
    """
    cands = [wb for wb in range(nW, B_ + 1, nW)
             if B_ % wb == 0 and ((wb * N) % 8 == 0 or wb == B_)]
    if not cands:
        return B_
    for wb in cands:
        if wb * N >= target_rows:
            return wb
    return cands[-1]


def window_attention_pallas(x, mask, rel_bias, wqkv, bqkv, lora_A, lora_B,
                            wproj, bproj, *, num_heads, r, lora_alpha=1,
                            block_windows=None, out_dtype=None,
                            vmem_limit_bytes=48 * 1024 * 1024):
    B_, N, C = x.shape
    head_dim = C // num_heads
    qk_scale = head_dim ** -0.5
    lora_scaling = lora_alpha / r
    f32 = jnp.float32
    cdt = jnp.bfloat16
    # Output dtype defaults to x.dtype (module semantics); pass jnp.bfloat16 to halve
    # writeback bytes if downstream consumers accept it.
    out_dtype = out_dtype if out_dtype is not None else x.dtype

    if mask is None:
        mask = jnp.zeros((1, N, N), f32)
    nW = mask.shape[0]
    assert B_ % nW == 0

    WB = block_windows if block_windows is not None else _pick_block_windows(B_, N, nW)
    assert B_ % WB == 0 and WB % nW == 0
    assert (WB * N) % 8 == 0 or WB == B_, "x/out block sublane dim must be %8"
    M = WB * N

    # --- one-time constant parameter folds (glue, not per-token work) --------
    wqkv_t = wqkv.T.astype(f32)                                   # (C, 3C)
    wqkv_t = wqkv_t.at[:, :C].multiply(qk_scale)                  # fold qk_scale into Q
    bqkv_s = bqkv.astype(f32).at[:C].multiply(qk_scale).reshape(1, 3 * C)
    la_t = lora_A.T.astype(f32)                                   # (C, 2r)
    w_all = jnp.concatenate([wqkv_t, la_t], axis=1)               # (C, 3C + 2r)
    lb_blk = jnp.zeros((2 * r, 2 * C), f32)                       # block-diag LoRA-B
    lb_blk = lb_blk.at[:r, :C].set(lora_B[:C].T.astype(f32) * (lora_scaling * qk_scale))
    lb_blk = lb_blk.at[r:, C:].set(lora_B[C:].T.astype(f32) * lora_scaling)
    wproj_t = wproj.T.astype(f32)                                 # (C, C)
    bproj_s = bproj.astype(f32).reshape(1, C)

    # bf16 MXU operands (accumulation stays f32 inside the kernel).
    x2d = x.reshape(B_ * N, C).astype(cdt)
    w_all = w_all.astype(cdt)
    lb_blk = lb_blk.astype(cdt)
    wproj_t = wproj_t.astype(cdt)

    # Single (WB, N, N) mask tile, constant index map -> resident in VMEM, no per-step
    # DMA and no B_-sized duplication in HBM.  mask_blk[j] == mask[j % nW], which is
    # correct for any block start because WB % nW == 0.
    mask_blk = jnp.tile(mask.astype(f32), (WB // nW, 1, 1))
    bias_f = rel_bias.astype(f32)                                 # (H, N, N)

    kernel = functools.partial(_window_attn_kernel, num_heads=num_heads,
                               head_dim=head_dim, wb=WB, n_tok=N)

    def _resident(shape):
        """Constant-index operand: single resident VMEM copy (no double buffer)."""
        index_map = lambda b: (0,) * len(shape)
        if hasattr(pl, "Buffered"):
            try:
                return pl.BlockSpec(shape, index_map, pipeline_mode=pl.Buffered(1))
            except TypeError:  # older JAX without pipeline_mode kwarg
                pass
        return pl.BlockSpec(shape, index_map)

    in_specs = [
        pl.BlockSpec((M, C), lambda b: (b, 0)),        # x slab (pipelined)
        _resident((WB, N, N)),                         # window mask tile
        _resident((num_heads, N, N)),                  # relative position bias
        _resident((C, 3 * C + 2 * r)),                 # [wqkv^T (scaled) | lora_A^T]
        _resident((1, 3 * C)),                         # qkv bias (scaled)
        _resident((2 * r, 2 * C)),                     # lora_B block-diag (scaled)
        _resident((C, C)),                             # wproj^T
        _resident((1, C)),                             # proj bias
    ]
    out_spec = pl.BlockSpec((M, C), lambda b: (b, 0))

    out = pl.pallas_call(
        kernel,
        out_shape=jax.ShapeDtypeStruct((B_ * N, C), out_dtype),
        grid=(B_ // WB,),
        in_specs=in_specs,
        out_specs=out_spec,
        compiler_params=pltpu.CompilerParams(
            dimension_semantics=("parallel",),         # shard grid across TCs (v7x)
            vmem_limit_bytes=vmem_limit_bytes),        # <=48 MiB: fits v7x, lifts v5e/v6e defaults
    )(x2d, mask_blk, bias_f, w_all, bqkv_s, lb_blk, wproj_t, bproj_s)
    return out.reshape(B_, N, C)


# ----------------------------------------------------------------------------
# Glue: relative position index / bias (mirrors the PyTorch __init__ buffer)
# ----------------------------------------------------------------------------
def make_relative_position_index(Wh, Ww):
    coords = jnp.stack(jnp.meshgrid(jnp.arange(Wh), jnp.arange(Ww), indexing="ij"))
    coords_flat = coords.reshape(2, -1)                             # (2, N)
    rel = coords_flat[:, :, None] - coords_flat[:, None, :]         # (2, N, N)
    rel = rel.transpose(1, 2, 0)                                    # (N, N, 2)
    rel = rel.at[:, :, 0].add(Wh - 1)
    rel = rel.at[:, :, 1].add(Ww - 1)
    rel = rel.at[:, :, 0].multiply(2 * Ww - 1)
    return rel.sum(-1)                                              # (N, N)


# ----------------------------------------------------------------------------
# Pure-JAX reference (matches PyTorch forward semantics, un-merged LoRA path)
# ----------------------------------------------------------------------------
def window_attention_ref(x, mask, rel_bias, wqkv, bqkv, lora_A, lora_B,
                         wproj, bproj, *, num_heads, r, lora_alpha=1):
    B_, N, C = x.shape
    nW = mask.shape[0]
    head_dim = C // num_heads
    scale = head_dim ** -0.5
    scaling = lora_alpha / r

    result = x @ wqkv.T + bqkv
    after_A = x @ lora_A.T                                          # (B_, N, 2r)
    after_B_q = after_A[..., :r] @ lora_B[:C].T                     # grouped conv1d, k=1
    after_B_v = after_A[..., r:] @ lora_B[C:].T
    zeros_k = jnp.zeros((B_, N, C), x.dtype)
    qkv = result + jnp.concatenate([after_B_q, zeros_k, after_B_v], -1) * scaling

    qkv = qkv.reshape(B_, N, 3, num_heads, head_dim).transpose(2, 0, 3, 1, 4)
    q, k, v = qkv[0] * scale, qkv[1], qkv[2]
    attn = q @ jnp.swapaxes(k, -2, -1)                              # (B_, H, N, N)
    attn = attn + rel_bias[None]
    attn = attn.reshape(B_ // nW, nW, num_heads, N, N) + mask[None, :, None]
    attn = attn.reshape(B_, num_heads, N, N)
    attn = jax.nn.softmax(attn, axis=-1)
    out = (attn @ v).transpose(0, 2, 1, 3).reshape(B_, N, C)
    return out @ wproj.T + bproj


# ----------------------------------------------------------------------------
if __name__ == "__main__":
    # Small synthetic config consistent with the module.
    dim = 32
    window_size = (4, 4)
    num_heads = 4
    r = 8                      # MergedLinear r=8, enable_lora=[True, False, True]
    lora_alpha = 1
    Wh, Ww = window_size
    N = Wh * Ww                # 16 tokens per window
    nW = 4                     # number of windows
    B = 8                      # batch
    B_ = nW * B                # 32

    key = jax.random.PRNGKey(0)
    keys = jax.random.split(key, 10)

    x = jax.random.normal(keys[0], (B_, N, dim), jnp.float32)

    # Parameters (deterministic synthetic init; LoRA B nonzero so the low-rank
    # path is actually exercised).
    wqkv = jax.random.normal(keys[1], (3 * dim, dim), jnp.float32) * 0.05
    bqkv = jax.random.normal(keys[2], (3 * dim,), jnp.float32) * 0.02
    lora_A = jax.random.normal(keys[3], (2 * r, dim), jnp.float32) * 0.05
    lora_B = jax.random.normal(keys[4], (2 * dim, r), jnp.float32) * 0.05
    wproj = jax.random.normal(keys[5], (dim, dim), jnp.float32) * 0.05
    bproj = jax.random.normal(keys[6], (dim,), jnp.float32) * 0.02
    rpb_table = jax.random.normal(
        keys[7], ((2 * Wh - 1) * (2 * Ww - 1), num_heads), jnp.float32) * 0.02

    # Relative position bias (H, N, N) gathered outside the kernel (glue).
    rel_idx = make_relative_position_index(Wh, Ww)
    rel_bias = rpb_table[rel_idx.reshape(-1)].reshape(N, N, num_heads)
    rel_bias = jnp.transpose(rel_bias, (2, 0, 1)).astype(jnp.float32)

    # Additive 0 / -100 shifted-window style mask, shape (nW, N, N).
    mask_bits = jax.random.bernoulli(keys[8], 0.85, (nW, N, N))
    mask = jnp.where(mask_bits, 0.0, -100.0).astype(jnp.float32)

    out = window_attention_pallas(
        x, mask, rel_bias, wqkv, bqkv, lora_A, lora_B, wproj, bproj,
        num_heads=num_heads, r=r, lora_alpha=lora_alpha)
    out = jax.block_until_ready(out)

    ref = window_attention_ref(
        x, mask, rel_bias, wqkv, bqkv, lora_A, lora_B, wproj, bproj,
        num_heads=num_heads, r=r, lora_alpha=lora_alpha)

    assert out.shape == (B_, N, dim)
    max_err = float(jnp.max(jnp.abs(out - ref)))
    # bf16 matmul operands + approx reciprocal softmax -> relaxed tolerance.
    assert jnp.allclose(out, ref, atol=5e-2, rtol=5e-2), max_err

    print("KERNEL_OK")
</pallas_src>

<mosaic_0001>
module attributes {stable_mosaic.version = 11 : i64} {
  func.func @_window_attn_kernel(%arg0: i32, %arg1: memref<256x32xbf16, #tpu.memory_space<vmem>>, %arg2: memref<16x16x16xf32, #tpu.memory_space<vmem>>, %arg3: memref<4x16x16xf32, #tpu.memory_space<vmem>>, %arg4: memref<32x112xbf16, #tpu.memory_space<vmem>>, %arg5: memref<1x96xf32, #tpu.memory_space<vmem>>, %arg6: memref<16x64xbf16, #tpu.memory_space<vmem>>, %arg7: memref<32x32xbf16, #tpu.memory_space<vmem>>, %arg8: memref<1x32xf32, #tpu.memory_space<vmem>>, %arg9: memref<256x32xf32, #tpu.memory_space<vmem>>) attributes {dimension_semantics = [#tpu.dimension_semantics<parallel>], iteration_bounds = array<i64: 2>, scalar_prefetch = 0 : i64, scratch_operands = 0 : i64, tpu.core_type = #tpu.core_type<tc>, window_params = [{transform_indices = @transform_0, window_bounds = array<i64: 256, 32>}, {pipeline_mode = #tpu.pipeline_mode<synchronous>, transform_indices = @transform_1, window_bounds = array<i64: 16, 16, 16>}, {pipeline_mode = #tpu.pipeline_mode<synchronous>, transform_indices = @transform_2, window_bounds = array<i64: 4, 16, 16>}, {pipeline_mode = #tpu.pipeline_mode<synchronous>, transform_indices = @transform_3, window_bounds = array<i64: 32, 112>}, {pipeline_mode = #tpu.pipeline_mode<synchronous>, transform_indices = @transform_4, window_bounds = array<i64: 1, 96>}, {pipeline_mode = #tpu.pipeline_mode<synchronous>, transform_indices = @transform_5, window_bounds = array<i64: 16, 64>}, {pipeline_mode = #tpu.pipeline_mode<synchronous>, transform_indices = @transform_6, window_bounds = array<i64: 32, 32>}, {pipeline_mode = #tpu.pipeline_mode<synchronous>, transform_indices = @transform_7, window_bounds = array<i64: 1, 32>}, {transform_indices = @transform_8, window_bounds = array<i64: 256, 32>}]} {
    %c0 = arith.constant 0 : index
    %c0_0 = arith.constant 0 : index
    %0 = vector.load %arg1[%c0, %c0_0] : memref<256x32xbf16, #tpu.memory_space<vmem>>, vector<256x32xbf16>
    %c0_1 = arith.constant 0 : index
    %c0_2 = arith.constant 0 : index
    %1 = vector.load %arg4[%c0_1, %c0_2] : memref<32x112xbf16, #tpu.memory_space<vmem>>, vector<32x112xbf16>
    %cst = arith.constant dense<0.000000e+00> : vector<256x112xf32>
    %2 = tpu.matmul %0, %1, %cst {dimension_numbers = #tpu.dot_dimension_numbers<[1], [0], [0], [1], [0, 0, 1, 1], [], []>} : vector<256x32xbf16>, vector<32x112xbf16>, vector<256x112xf32> -> vector<256x112xf32>
    %3 = vector.extract_strided_slice %2 {offsets = [0, 0], sizes = [256, 96], strides = [1, 1]} : vector<256x112xf32> to vector<256x96xf32>
    %c0_3 = arith.constant 0 : index
    %c0_4 = arith.constant 0 : index
    %4 = vector.load %arg5[%c0_3, %c0_4] : memref<1x96xf32, #tpu.memory_space<vmem>>, vector<1x96xf32>
    %5 = vector.shape_cast %4 : vector<1x96xf32> to vector<96xf32>
    %6 = vector.shape_cast %5 : vector<96xf32> to vector<1x96xf32>
    %7 = vector.broadcast %6 : vector<1x96xf32> to vector<256x96xf32>
    %8 = arith.addf %3, %7 : vector<256x96xf32>
    %9 = vector.extract_strided_slice %2 {offsets = [0, 96], sizes = [256, 16], strides = [1, 1]} : vector<256x112xf32> to vector<256x16xf32>
    %10 = arith.truncf %9 : vector<256x16xf32> to vector<256x16xbf16>
    %c0_5 = arith.constant 0 : index
    %c0_6 = arith.constant 0 : index
    %11 = vector.load %arg6[%c0_5, %c0_6] : memref<16x64xbf16, #tpu.memory_space<vmem>>, vector<16x64xbf16>
    %cst_7 = arith.constant dense<0.000000e+00> : vector<256x64xf32>
    %12 = tpu.matmul %10, %11, %cst_7 {dimension_numbers = #tpu.dot_dimension_numbers<[1], [0], [0], [1], [0, 0, 1, 1], [], []>} : vector<256x16xbf16>, vector<16x64xbf16>, vector<256x64xf32> -> vector<256x64xf32>
    %13 = vector.extract_strided_slice %8 {offsets = [0, 0], sizes = [256, 32], strides = [1, 1]} : vector<256x96xf32> to vector<256x32xf32>
    %14 = vector.extract_strided_slice %12 {offsets = [0, 0], sizes = [256, 32], strides = [1, 1]} : vector<256x64xf32> to vector<256x32xf32>
    %15 = arith.addf %13, %14 : vector<256x32xf32>
    %16 = vector.extract_strided_slice %8 {offsets = [0, 32], sizes = [256, 32], strides = [1, 1]} : vector<256x96xf32> to vector<256x32xf32>
    %17 = vector.extract_strided_slice %8 {offsets = [0, 64], sizes = [256, 32], strides = [1, 1]} : vector<256x96xf32> to vector<256x32xf32>
    %18 = vector.extract_strided_slice %12 {offsets = [0, 32], sizes = [256, 32], strides = [1, 1]} : vector<256x64xf32> to vector<256x32xf32>
    %19 = arith.addf %17, %18 : vector<256x32xf32>
    %20 = vector.shape_cast %15 : vector<256x32xf32> to vector<16x16x32xf32>
    %21 = tpu.transpose %20, [0, 2, 1] : vector<16x16x32xf32> -> vector<16x32x16xf32>
    %22 = vector.shape_cast %21 : vector<16x32x16xf32> to vector<64x8x16xf32>
    %23 = tpu.transpose %22, [0, 2, 1] : vector<64x8x16xf32> -> vector<64x16x8xf32>
    %24 = arith.truncf %23 : vector<64x16x8xf32> to vector<64x16x8xbf16>
    %25 = vector.shape_cast %16 : vector<256x32xf32> to vector<16x16x32xf32>
    %26 = tpu.transpose %25, [0, 2, 1] : vector<16x16x32xf32> -> vector<16x32x16xf32>
    %27 = vector.shape_cast %26 : vector<16x32x16xf32> to vector<64x8x16xf32>
    %28 = tpu.transpose %27, [0, 2, 1] : vector<64x8x16xf32> -> vector<64x16x8xf32>
    %29 = arith.truncf %28 : vector<64x16x8xf32> to vector<64x16x8xbf16>
    %30 = vector.shape_cast %19 : vector<256x32xf32> to vector<16x16x32xf32>
    %31 = tpu.transpose %30, [0, 2, 1] : vector<16x16x32xf32> -> vector<16x32x16xf32>
    %32 = vector.shape_cast %31 : vector<16x32x16xf32> to vector<64x8x16xf32>
    %33 = tpu.transpose %32, [0, 2, 1] : vector<64x8x16xf32> -> vector<64x16x8xf32>
    %34 = arith.truncf %33 : vector<64x16x8xf32> to vector<64x16x8xbf16>
    "tpu.trace_start"() <{level = 10 : i32, message = "bqd,bkd->bqk"}> : () -> ()
    %cst_8 = arith.constant dense<0.000000e+00> : vector<64x16x16xf32>
    %35 = tpu.matmul %24, %29, %cst_8 {dimension_numbers = #tpu.dot_dimension_numbers<[2], [2], [1], [1], [0, 0, 0, 1, 1, 1], [0], [0]>} : vector<64x16x8xbf16>, vector<64x16x8xbf16>, vector<64x16x16xf32> -> vector<64x16x16xf32>
    "tpu.trace_stop"() : () -> ()
    %36 = vector.shape_cast %35 : vector<64x16x16xf32> to vector<16x4x16x16xf32>
    %c0_9 = arith.constant 0 : index
    %c0_10 = arith.constant 0 : index
    %c0_11 = arith.constant 0 : index
    %37 = vector.load %arg3[%c0_9, %c0_10, %c0_11] : memref<4x16x16xf32, #tpu.memory_space<vmem>>, vector<4x16x16xf32>
    %38 = vector.shape_cast %37 : vector<4x16x16xf32> to vector<1x4x16x16xf32>
    %39 = vector.broadcast %38 : vector<1x4x16x16xf32> to vector<16x4x16x16xf32>
    %40 = arith.addf %36, %39 : vector<16x4x16x16xf32>
    %c0_12 = arith.constant 0 : index
    %c0_13 = arith.constant 0 : index
    %c0_14 = arith.constant 0 : index
    %41 = vector.load %arg2[%c0_12, %c0_13, %c0_14] : memref<16x16x16xf32, #tpu.memory_space<vmem>>, vector<16x16x16xf32>
    %42 = vector.shape_cast %41 : vector<16x16x16xf32> to vector<16x1x16x16xf32>
    %43 = vector.broadcast %42 : vector<16x1x16x16xf32> to vector<16x4x16x16xf32>
    %44 = arith.addf %40, %43 : vector<16x4x16x16xf32>
    %cst_15 = arith.constant dense<0xFF800000> : vector<16x4x16xf32>
    %45 = vector.multi_reduction <maximumf>, %44, %cst_15 [3] : vector<16x4x16x16xf32> to vector<16x4x16xf32>
    %46 = vector.shape_cast %45 : vector<16x4x16xf32> to vector<16x4x16x1xf32>
    %47 = vector.broadcast %46 : vector<16x4x16x1xf32> to vector<16x4x16x16xf32>
    %48 = arith.subf %44, %47 : vector<16x4x16x16xf32>
    %49 = math.exp %48 : vector<16x4x16x16xf32>
    %cst_16 = arith.constant dense<0.000000e+00> : vector<16x4x16xf32>
    %50 = vector.multi_reduction <add>, %49, %cst_16 [3] : vector<16x4x16x16xf32> to vector<16x4x16xf32>
    %51 = vector.shape_cast %50 : vector<16x4x16xf32> to vector<16x4x16x1xf32>
    %52 = tpu.reciprocal %51 {approx = true} : vector<16x4x16x1xf32> -> vector<16x4x16x1xf32>
    %53 = vector.broadcast %52 : vector<16x4x16x1xf32> to vector<16x4x16x16xf32>
    %54 = arith.mulf %49, %53 : vector<16x4x16x16xf32>
    %55 = vector.shape_cast %54 : vector<16x4x16x16xf32> to vector<64x16x16xf32>
    %56 = arith.truncf %55 : vector<64x16x16xf32> to vector<64x16x16xbf16>
    "tpu.trace_start"() <{level = 10 : i32, message = "bqk,bkd->bqd"}> : () -> ()
    %cst_17 = arith.constant dense<0.000000e+00> : vector<64x16x8xf32>
    %57 = tpu.matmul %56, %34, %cst_17 {dimension_numbers = #tpu.dot_dimension_numbers<[2], [1], [1], [2], [0, 0, 0, 1, 1, 2], [0], [0]>} : vector<64x16x16xbf16>, vector<64x16x8xbf16>, vector<64x16x8xf32> -> vector<64x16x8xf32>
    "tpu.trace_stop"() : () -> ()
    %58 = tpu.transpose %57, [0, 2, 1] : vector<64x16x8xf32> -> vector<64x8x16xf32>
    %59 = vector.shape_cast %58 : vector<64x8x16xf32> to vector<16x32x16xf32>
    %60 = tpu.transpose %59, [0, 2, 1] : vector<16x32x16xf32> -> vector<16x16x32xf32>
    %61 = vector.shape_cast %60 : vector<16x16x32xf32> to vector<256x32xf32>
    %62 = arith.truncf %61 : vector<256x32xf32> to vector<256x32xbf16>
    %c0_18 = arith.constant 0 : index
    %c0_19 = arith.constant 0 : index
    %63 = vector.load %arg7[%c0_18, %c0_19] : memref<32x32xbf16, #tpu.memory_space<vmem>>, vector<32x32xbf16>
    %cst_20 = arith.constant dense<0.000000e+00> : vector<256x32xf32>
    %64 = tpu.matmul %62, %63, %cst_20 {dimension_numbers = #tpu.dot_dimension_numbers<[1], [0], [0], [1], [0, 0, 1, 1], [], []>} : vector<256x32xbf16>, vector<32x32xbf16>, vector<256x32xf32> -> vector<256x32xf32>
    %c0_21 = arith.constant 0 : index
    %c0_22 = arith.constant 0 : index
    %65 = vector.load %arg8[%c0_21, %c0_22] : memref<1x32xf32, #tpu.memory_space<vmem>>, vector<1x32xf32>
    %66 = vector.shape_cast %65 : vector<1x32xf32> to vector<32xf32>
    %67 = vector.shape_cast %66 : vector<32xf32> to vector<1x32xf32>
    %68 = vector.broadcast %67 : vector<1x32xf32> to vector<256x32xf32>
    %69 = arith.addf %64, %68 : vector<256x32xf32>
    %c0_23 = arith.constant 0 : index
    %c0_24 = arith.constant 0 : index
    %70 = vector.load %arg9[%c0_23, %c0_24] : memref<256x32xf32, #tpu.memory_space<vmem>>, vector<256x32xf32>
    tpu.vector_store %arg9[%c0_23, %c0_24], %69 {strides = array<i32>} : memref<256x32xf32, #tpu.memory_space<vmem>>, vector<256x32xf32>,
    return
  }
  func.func @transform_0(%arg0: i32) -> (i32, i32) {
    %c0_i32 = arith.constant 0 : i32
    %c0_i32_0 = arith.constant 0 : i32
    return %arg0, %c0_i32 : i32, i32
  }
  func.func @transform_1(%arg0: i32) -> (i32, i32, i32) {
    %c0_i32 = arith.constant 0 : i32
    %c0_i32_0 = arith.constant 0 : i32
    %c0_i32_1 = arith.constant 0 : i32
    %c0_i32_2 = arith.constant 0 : i32
    return %c0_i32, %c0_i32_0, %c0_i32_1 : i32, i32, i32
  }
  func.func @transform_2(%arg0: i32) -> (i32, i32, i32) {
    %c0_i32 = arith.constant 0 : i32
    %c0_i32_0 = arith.constant 0 : i32
    %c0_i32_1 = arith.constant 0 : i32
    %c0_i32_2 = arith.constant 0 : i32
    return %c0_i32, %c0_i32_0, %c0_i32_1 : i32, i32, i32
  }
  func.func @transform_3(%arg0: i32) -> (i32, i32) {
    %c0_i32 = arith.constant 0 : i32
    %c0_i32_0 = arith.constant 0 : i32
    %c0_i32_1 = arith.constant 0 : i32
    return %c0_i32, %c0_i32_0 : i32, i32
  }
  func.func @transform_4(%arg0: i32) -> (i32, i32) {
    %c0_i32 = arith.constant 0 : i32
    %c0_i32_0 = arith.constant 0 : i32
    %c0_i32_1 = arith.constant 0 : i32
    return %c0_i32, %c0_i32_0 : i32, i32
  }
  func.func @transform_5(%arg0: i32) -> (i32, i32) {
    %c0_i32 = arith.constant 0 : i32
    %c0_i32_0 = arith.constant 0 : i32
    %c0_i32_1 = arith.constant 0 : i32
    return %c0_i32, %c0_i32_0 : i32, i32
  }
  func.func @transform_6(%arg0: i32) -> (i32, i32) {
    %c0_i32 = arith.constant 0 : i32
    %c0_i32_0 = arith.constant 0 : i32
    %c0_i32_1 = arith.constant 0 : i32
    return %c0_i32, %c0_i32_0 : i32, i32
  }
  func.func @transform_7(%arg0: i32) -> (i32, i32) {
    %c0_i32 = arith.constant 0 : i32
    %c0_i32_0 = arith.constant 0 : i32
    %c0_i32_1 = arith.constant 0 : i32
    return %c0_i32, %c0_i32_0 : i32, i32
  }
  func.func @transform_8(%arg0: i32) -> (i32, i32) {
    %c0_i32 = arith.constant 0 : i32
    %c0_i32_0 = arith.constant 0 : i32
    return %arg0, %c0_i32 : i32, i32
  }
}

</mosaic_0001>

<bundles_post_ra>
// kernel: tpu_custom_call.1
= control target key start
LH: loop header
LB: loop body
LE: loop exit
PB: predicated region body
PF: predicated region fallthrough
CT: control target
= control target key end

     0   :  { %13 = vsyncpa [#allocation3], 0  ;;  %s29292_s0 = inlined_call_operand.vmem [shape: bf16[512,32], index: 0, kind: input, shape index: {}]   ;;  %s29293_s1 = inlined_call_operand.vmem [shape: f32[16,16,16], index: 1, kind: input, shape index: {}]   ;;  %s29294_s2 = inlined_call_operand.vmem [shape: f32[4,16,16], index: 2, kind: input, shape index: {}]   ;;  %s29295_s3 = inlined_call_operand.hbm [shape: bf16[32,112], index: 3, kind: input, shape index: {}]   ;;  %s29296_s4 = inlined_call_operand.vmem [shape: f32[1,96], index: 4, kind: input, shape index: {}]   ;;  %s29297_s5 = inlined_call_operand.hbm [shape: bf16[16,64], index: 5, kind: input, shape index: {}]   ;;  %s29298_s6 = inlined_call_operand.vmem [shape: bf16[32,32], index: 6, kind: input, shape index: {}]   ;;  %s29299_s7 = inlined_call_operand.vmem [shape: f32[1,32], index: 7, kind: input, shape index: {}]   ;;  %s29300_s8 = inlined_call_operand.vmem [shape: f32[512,32], index: 8, kind: output, shape index: {}]  }
   0x1   :  { %14 = vsyncpa [#allocation5], 0  ;;  %s24257_s27 = smov 0  }
   0x2 LB: > { %s19830_s28 = sadd.s32 4294967295, %s24201_s27   ;;  %p19832_p0 = scmp.ge.s32.totalorder %s24201_s27, 1  ;;  %s24201_s27 = sphi %s24257_s27, %s20_s27  }
   0x3   : > { %p224_p1 = scmp.lt.s32.totalorder %s24201_s27, 3  ;;  %s24203_s29 = smov [#allocation2]  }
   0x4   : > { %s242_s30 = sshll.u32 %s24203_s29, 4  ;;  %p24271_p3 = scmp.eq.s32.totalorder %s19830_s28, 0  ;;  %s243_s30 = int_to_ptr.vmem [resolvable:$true] %s242_s30 }
   0x5   : > { %p24265_p2 = pnand %p19832_p0, %p224_p1  ;;  %s24204_s11 = smov [#allocation4]  }
   0x6   : > { %s29658_s10 = scalar_select %p24271_p3, 1, 0 }
   0x7   : > { %s29657_s9 = scalar_select %p24265_p2, 1, 0 }
   0x8   : > { %p21237_p4 = pneg %p24265_p2  ;;  %s258_s12 = sshll.u32 %s24204_s11, 4  ;;  %s24283_s12 = int_to_ptr.vmem [resolvable:$true] %s258_s12 }
   0x9   : > { %s24131_s16 = scalar_lea.hbm %s29295_s3, 256 }
   0xa   : > { %p24279_p5 = pnand %p24271_p3, %p21237_p4  ;;  %p24132_p6 = scmp.ne.s32.totalorder %s29295_s3, %s24131_s16 }
   0xb   : > { %p24138_p10 = scmp.lt.u32.totalorder %s24131_s16, %s29295_s3 }
   0xc   : > { %p24133_p7 = pneg %p24279_p5 }
   0xe   : > { %p24134_p8 = pnand %p24133_p7, %p24132_p6 }
  0x10   : > { %p24135_p9 = pneg %p24134_p8 }
  0x12   : > { %p24140_p11 = pnand %p24138_p10, %p24135_p9 }
  0x14   : > { %24143 = shalt.err (!%p24140_p11)
}
  0x15   : > { %s24144_s21 = scalar_lea.vmem %s243_s30, 256  ;;  %p24152_p1 = scmp.lt.s32.totalorder %s243_s30, %s243_s30 }
  0x16   : > { %p24145_p12 = scmp.ne.s32.totalorder %s243_s30, %s24144_s21  ;;  %p24153_p4 = scmp.lt.s32.totalorder %s24144_s21, %s24144_s21 }
  0x18   : > { %p24147_p13 = pnand %p24145_p12, %p24133_p7  ;;  %p24154_p3 = por %p24153_p4, %p24152_p1 }
  0x1a   : > { %p24148_p0 = pneg %p24147_p13 }
  0x1c   : > { %p24155_p2 = pnand %p24154_p3, %p24148_p0 }
  0x1e   : > { %24158 = shalt.err (!%p24155_p2)
}
  0x1f   : > { %s24205_s22 = smov 64   ;;  %s24206_s23 = smov 4  }
  0x20   : > { %21240 = dma.hbm_to_vmem [thread:$0]  (!%p24279_p5), %s29295_s3, 256, %s243_s30, [#allocation3], %s24205_s22, %s24205_s22, %s24206_s23  }
  0x21   : > { %s24159_s11 = scalar_lea.hbm %s29297_s5, 128 }
  0x22   : > { %p24160_p6 = scmp.ne.s32.totalorder %s29297_s5, %s24159_s11  ;;  %p24166_p8 = scmp.lt.u32.totalorder %s24159_s11, %s29297_s5 }
  0x24   : > { %p24162_p2 = pnand %p24160_p6, %p24133_p7 }
  0x26   : > { %p24163_p3 = pneg %p24162_p2 }
  0x28   : > { %p24168_p9 = pnand %p24166_p8, %p24163_p3 }
  0x2a   : > { %24171 = shalt.err (!%p24168_p9)
}
  0x2b   : > { %s24172_s30 = scalar_lea.vmem %s24283_s12, 128  ;;  %p24180_p13 = scmp.lt.s32.totalorder %s24283_s12, %s24283_s12 }
  0x2c   : > { %p24173_p10 = scmp.ne.s32.totalorder %s24283_s12, %s24172_s30  ;;  %p24181_p0 = scmp.lt.s32.totalorder %s24172_s30, %s24172_s30 }
  0x2e   : > { %p24175_p11 = pnand %p24173_p10, %p24133_p7  ;;  %p24182_p1 = por %p24181_p0, %p24180_p13 }
  0x30   : > { %p24176_p12 = pneg %p24175_p11 }
  0x32   : > { %p24183_p4 = pnand %p24182_p1, %p24176_p12 }
  0x34   : > { %24186 = shalt.err (!%p24183_p4)
}
  0x35   : > { %21243 = dma.hbm_to_vmem [thread:$0]  (!%p24279_p5), %s29297_s5, 128, %s24283_s12, [#allocation5], %s24205_s22, %s24205_s22, %s24206_s23  }
  0x36   : > { %p29660_p6 = scmp.ne.s32.totalorder %s29657_s9, 0 }
  0x38   : > { %289 = sbr.rel (%p29660_p6) target bundleno = 3211 (0xc8b), region = 52 }
  0x3f   : > { %p29661_p2 = scmp.ne.s32.totalorder %s29658_s10, 0 }
  0x41   : > { %24192 = dma.done.wait (%p29661_p2), [#allocation3], 256  }
  0x42   : > { %24194 = vsyncadd (%p29661_p2), [#allocation3], 4294967040 }
  0x43   : > { %24196 = dma.done.wait (%p29661_p2), [#allocation5], 128  }
  0x44   : > { %24198 = vsyncadd (%p29661_p2), [#allocation5], 4294967168  ;;  %s19839_s13 = sshll.u32 %s19830_s28, 5  ;;  %v23585_v0 = vld [vmem:[#allocation2] sm:$0xff]   ;;  %v23586_v1 = vld [vmem:[#allocation2 + $0x8] sm:$0xff]   ;;  %vm468_vm0 = vcmask 261120  }
  0x45   : > { %p328_p7 = scmp.lt.s32.totalorder %s19839_s13, 63  ;;  %20353 = vmatprep.subr.bf16.mxu0 %v23585_v0  ;;  %v23603_v18 = vld [vmem:[#allocation4] sm:$0xff]   ;;  %v24387_v20 = vld [vmem:[%s29296_s4] ss:$0 sm:$0xff]  ;;  %s24207_s22 = smov 32   ;;  %vm789_vm1 = vcmask 130048  }
  0x46   : > { %20354 = vmatpush3.bf16.msra.mxu0 %v23585_v0  ;;  %21227 = vmatprep.subr.bf16.mxu1 %v23603_v18  ;;  %s24208_s23 = smov 96   ;;  %vm9319_vm2 = vcmask 64512   ;;  %s24210_s24 = smov 64   ;;  %vm24211_vm3 = vmmov 0  }
  0x47   : > { %s30607_s13 = smov (!%p328_p7, %s19839_s13), 63  ;;  %20355 = vmatprep.subr.bf16.mxu0 %v23586_v1  ;;  %21228 = vmatpush3.bf16.msra.mxu1 %v23603_v18 }
  0x48   : > { %s19840_s9 = sshll.u32 %s30607_s13, 2  ;;  %s19842_s19 = sshll.u32 %s30607_s13, 3 }
  0x49   : > { %s24350_s21 = scalar_lea.vmem %s29292_s0, %s19840_s9  ;;  %s29185_s28 = scalar_lea.vmem %s29300_s8, %s19842_s19 }
  0x4a   : > { %v23587_v2 = vld [vmem:[%s24350_s21] sm:$0xff]   ;;  %v23588_v3 = vld [vmem:[%s24350_s21 + $0x8] sm:$0xff]   ;;  %20356 = vmatpush3.bf16.msra.mxu0 %v23586_v1  ;;  %v23589_v4 = vld [vmem:[%s24350_s21 + $0x10] sm:$0xff]  }
  0x4b   : > { %20357 = vmatprep.mubr.msk.bf16.mxu0 %vm468_vm0, %v23587_v2  ;;  %v23590_v5 = vld [vmem:[%s24350_s21 + $0x18] sm:$0xff]   ;;  %v23591_v6 = vld [vmem:[%s24350_s21 + $0x20] sm:$0xff]   ;;  %v23592_v7 = vld [vmem:[%s24350_s21 + $0x28] sm:$0xff]   ;;  %20389 = vmatprep.subr.bf16.mxu0 %v23603_v18 }
  0x4c   : > { %v23593_v8 = vld [vmem:[%s24350_s21 + $0x30] sm:$0xff]   ;;  %v23594_v9 = vld [vmem:[%s24350_s21 + $0x38] sm:$0xff]   ;;  %v23595_v10 = vld [vmem:[%s24350_s21 + $0x40] sm:$0xff]  }
  0x4d   : > { %20358 = vmatmul.mubr.msk.bf16.vlgmr.msra.gmra.mrb[0].mxu0 %vm468_vm0, %v23588_v3  ;;  %v23596_v11 = vld [vmem:[%s24350_s21 + $0x48] sm:$0xff]   ;;  %v23597_v12 = vld [vmem:[%s24350_s21 + $0x50] sm:$0xff]   ;;  %v23598_v13 = vld [vmem:[%s24350_s21 + $0x58] sm:$0xff]  }
  0x4e   : > { %20361 = vmatprep.mubr.msk.bf16.mxu0 %vm468_vm0, %v23589_v4  ;;  %v23599_v14 = vld [vmem:[%s24350_s21 + $0x60] sm:$0xff]   ;;  %v23600_v15 = vld [vmem:[%s24350_s21 + $0x68] sm:$0xff]   ;;  %v23601_v16 = vld [vmem:[%s24350_s21 + $0x70] sm:$0xff]   ;;  %20390 = vmatpush3.bf16.msra.mxu0 %v23603_v18 }
  0x4f   : > { %v23602_v17 = vld [vmem:[%s24350_s21 + $0x78] sm:$0xff]  }
  0x55   : > { %20362 = vmatmul.mubr.msk.bf16.gmra.mrb[4].mxu0 %vm468_vm0, %v23590_v5 }
  0x56   : > { %20365 = vmatprep.mubr.msk.bf16.mxu0 %vm468_vm0, %v23591_v6 }
  0x5d   : > { %20366 = vmatmul.mubr.msk.bf16.gmra.mrb[8].mxu0 %vm468_vm0, %v23592_v7 }
  0x5e   : > { %20369 = vmatprep.mubr.msk.bf16.mxu0 %vm468_vm0, %v23593_v8 }
  0x65   : > { %20370 = vmatmul.mubr.msk.bf16.gmra.mrb[12].mxu0 %vm468_vm0, %v23594_v9 }
  0x66   : > { %20373 = vmatprep.mubr.msk.bf16.mxu0 %vm468_vm0, %v23595_v10 }
  0x6d   : > { %20374 = vmatmul.mubr.msk.bf16.gmra.mrb[16].mxu0 %vm468_vm0, %v23596_v11 }
  0x6e   : > { %20377 = vmatprep.mubr.msk.bf16.mxu0 %vm468_vm0, %v23597_v12 }
  0x75   : > { %20378 = vmatmul.mubr.msk.bf16.gmra.mrb[20].mxu0 %vm468_vm0, %v23598_v13 }
  0x76   : > { %20381 = vmatprep.mubr.msk.bf16.mxu0 %vm468_vm0, %v23599_v14 }
  0x7d   : > { %20382 = vmatmul.mubr.msk.bf16.gmra.mrb[24].mxu0 %vm468_vm0, %v23600_v15 }
  0x7e   : > { %20385 = vmatprep.mubr.msk.bf16.mxu0 %vm468_vm0, %v23601_v16 }
  0x85   : > { %20386 = vmatmul.mubr.msk.bf16.gmra.mrb[28].mxu0 %vm468_vm0, %v23602_v17 }
 0x120   : > { %v20359_v19 = vpop.f32.mrb[0].mxu0 }
 0x121   : > { %v551_v21 = vpop.f32.mrb[1].mxu0  ;;  %v24390_v23 = vadd.f32 %v20359_v19, %v24387_v20 }
 0x122   : > { %v20360_v22 = vpop.f32.mrb[2].mxu0  ;;  %v24403_v31 = vadd.f32 %v24387_v20, %v551_v21 }
 0x123   : > { %29662 = vst [vmem:[#allocation8_spill] sm:$0xff] %v24390_v23  ;;  %v24393_v24 = vadd.f32 %v20360_v22, %v24387_v20  ;;  %v554_v25 = vpop.f32.mrb[3].mxu0  ;;  %v718_v26 = vpack.c.bf16 %v20360_v22, %v20359_v19 }
 0x124   : > { %v717_v27 = vpack.c.bf16 %v554_v25, %v551_v21  ;;  %v24399_v29 = vadd.f32 %v24387_v20, %v554_v25  ;;  %29665 = vst [vmem:[#allocation11_spill] sm:$0xff] %v24403_v31 }
 0x125   : > { %29663 = vst [vmem:[#allocation9_spill] sm:$0xff] %v24393_v24  ;;  %753 = vrot.lane.b32.xlu0 %v718_v26, %s24207_s22  ;;  %v21265_v28 = vpack.i.bf16 %v24393_v24, %v24390_v23 }
 0x126   : > { %29664 = vst [vmem:[#allocation10_spill] sm:$0xff] %v24399_v29  ;;  %v21270_v36 = vpack.i.bf16 %v24399_v29, %v24403_v31 }
 0x127   : > { %21266 = vrot.lane.b32.xlu1 %v21265_v28, %s24208_s23 }
 0x128   : > { %v20363_v30 = vpop.f32.mrb[4].mxu0 }
 0x129   : > { %751 = vrot.lane.b32.xlu0 %v717_v27, %s24207_s22  ;;  %v567_v32 = vpop.f32.mrb[5].mxu0  ;;  %v24412_v39 = vadd.f32 %v20363_v30, %v24387_v20 }
 0x12a   : > { %v20364_v33 = vpop.f32.mrb[6].mxu0  ;;  %v24429_v50 = vadd.f32 %v24387_v20, %v567_v32 }
 0x12b   : > { %v24407_v34 = vadd.f32 %v20364_v33, %v24387_v20  ;;  %v570_v35 = vpop.f32.mrb[7].mxu0  ;;  %v720_v37 = vpack.c.bf16 %v20364_v33, %v20363_v30  ;;  %29667 = vst [vmem:[#allocation13_spill] sm:$0xff] %v24412_v39 }
 0x12c   : > { %v719_v38 = vpack.c.bf16 %v570_v35, %v567_v32  ;;  %v24423_v45 = vadd.f32 %v24387_v20, %v570_v35  ;;  %29669 = vst [vmem:[#allocation15_spill] sm:$0xff] %v24429_v50 }
 0x12d   : > { %29666 = vst [vmem:[#allocation12_spill] sm:$0xff] %v24407_v34  ;;  %21271 = vrot.lane.b32.xlu0 %v21270_v36, %s24208_s23  ;;  %757 = vrot.lane.b32.xlu1 %v720_v37, %s24207_s22  ;;  %v21275_v40 = vpack.i.bf16 %v24407_v34, %v24412_v39 }
 0x12e   : > { %29668 = vst [vmem:[#allocation14_spill] sm:$0xff] %v24423_v45  ;;  %v21280_v52 = vpack.i.bf16 %v24423_v45, %v24429_v50 }
 0x130   : > { %v20367_v41 = vpop.f32.mrb[8].mxu0 }
 0x131   : > { %21276 = vrot.lane.b32.xlu1 %v21275_v40, %s24208_s23  ;;  %v24420_v42 = vadd.f32 %v20367_v41, %v24387_v20  ;;  %v583_v43 = vpop.f32.mrb[9].mxu0 }
 0x132   : > { %v20368_v44 = vpop.f32.mrb[10].mxu0  ;;  %v24438_v54 = vadd.f32 %v24387_v20, %v583_v43 }
 0x133   : > { %v24426_v46 = vadd.f32 %v20368_v44, %v24387_v20  ;;  %v586_v47 = vpop.f32.mrb[11].mxu0  ;;  %v722_v48 = vpack.c.bf16 %v20368_v44, %v20367_v41 }
 0x134   : > { %v721_v49 = vpack.c.bf16 %v586_v47, %v583_v43  ;;  %29670 = vst [vmem:[#allocation16_spill] sm:$0xff] %v24438_v54  ;;  %v24441_v55 = vadd.f32 %v24387_v20, %v586_v47 }
 0x135   : > { %755 = vrot.lane.b32.xlu1 %v719_v38, %s24207_s22  ;;  %v21285_v51 = vpack.i.bf16 %v24426_v46, %v24420_v42 }
 0x136   : > { %29671 = vst [vmem:[#allocation17_spill] sm:$0xff] %v24441_v55  ;;  %v21290_v0 = vpack.i.bf16 %v24441_v55, %v24438_v54 }
 0x137   : > { %21286 = vrot.lane.b32.xlu0 %v21285_v51, %s24208_s23 }
 0x138   : > { %v20371_v53 = vpop.f32.mrb[12].mxu0 }
 0x139   : > { %21281 = vrot.lane.b32.xlu1 %v21280_v52, %s24208_s23  ;;  %v24445_v56 = vadd.f32 %v20371_v53, %v24387_v20  ;;  %v599_v57 = vpop.f32.mrb[13].mxu0 }
 0x13a   : > { %v20372_v58 = vpop.f32.mrb[14].mxu0  ;;  %v24458_v2 = vadd.f32 %v24387_v20, %v599_v57 }
 0x13b   : > { %29672 = vst [vmem:[#allocation18_spill] sm:$0xff] %v24445_v56  ;;  %v24448_v59 = vadd.f32 %v20372_v58, %v24387_v20  ;;  %759 = vrot.lane.b32.xlu0 %v721_v49, %s24207_s22  ;;  %v602_v60 = vpop.f32.mrb[15].mxu0  ;;  %v724_v61 = vpack.c.bf16 %v20372_v58, %v20371_v53 }
 0x13c   : > { %v723_v62 = vpack.c.bf16 %v602_v60, %v599_v57  ;;  %29674 = vst [vmem:[#allocation20_spill] sm:$0xff] %v24458_v2  ;;  %v24461_v3 = vadd.f32 %v24387_v20, %v602_v60 }
 0x13d   : > { %29673 = vst [vmem:[#allocation19_spill] sm:$0xff] %v24448_v59  ;;  %761 = vrot.lane.b32.xlu1 %v722_v48, %s24207_s22  ;;  %v21295_v63 = vpack.i.bf16 %v24448_v59, %v24445_v56 }
 0x13e   : > { %29675 = vst [vmem:[#allocation21_spill] sm:$0xff] %v24461_v3  ;;  %v21300_v12 = vpack.i.bf16 %v24461_v3, %v24458_v2 }
 0x13f   : > { %21296 = vrot.lane.b32.xlu0 %v21295_v63, %s24208_s23 }
 0x140   : > { %v20375_v1 = vpop.f32.mrb[16].mxu0 }
 0x141   : > { %21291 = vrot.lane.b32.xlu1 %v21290_v0, %s24208_s23  ;;  %v24465_v4 = vadd.f32 %v20375_v1, %v24387_v20  ;;  %v615_v5 = vpop.f32.mrb[17].mxu0 }
 0x142   : > { %v20376_v6 = vpop.f32.mrb[18].mxu0  ;;  %v24478_v14 = vadd.f32 %v24387_v20, %v615_v5 }
 0x143   : > { %29676 = vst [vmem:[#allocation22_spill] sm:$0xff] %v24465_v4  ;;  %v24468_v7 = vadd.f32 %v20376_v6, %v24387_v20  ;;  %763 = vrot.lane.b32.xlu0 %v723_v62, %s24207_s22  ;;  %v618_v8 = vpop.f32.mrb[19].mxu0  ;;  %v726_v9 = vpack.c.bf16 %v20376_v6, %v20375_v1 }
 0x144   : > { %v725_v10 = vpack.c.bf16 %v618_v8, %v615_v5  ;;  %29678 = vst [vmem:[#allocation24_spill] sm:$0xff] %v24478_v14  ;;  %v24481_v15 = vadd.f32 %v24387_v20, %v618_v8 }
 0x145   : > { %29677 = vst [vmem:[#allocation23_spill] sm:$0xff] %v24468_v7  ;;  %765 = vrot.lane.b32.xlu1 %v724_v61, %s24207_s22  ;;  %v21305_v11 = vpack.i.bf16 %v24468_v7, %v24465_v4 }
 0x146   : > { %29679 = vst [vmem:[#allocation25_spill] sm:$0xff] %v24481_v15  ;;  %v21310_v27 = vpack.i.bf16 %v24481_v15, %v24478_v14 }
 0x147   : > { %21306 = vrot.lane.b32.xlu0 %v21305_v11, %s24208_s23 }
 0x148   : > { %v20379_v13 = vpop.f32.mrb[20].mxu0 }
 0x149   : > { %21301 = vrot.lane.b32.xlu1 %v21300_v12, %s24208_s23  ;;  %v24485_v16 = vadd.f32 %v20379_v13, %v24387_v20  ;;  %v631_v17 = vpop.f32.mrb[21].mxu0 }
 0x14a   : > { %v20380_v18 = vpop.f32.mrb[22].mxu0  ;;  %v24498_v30 = vadd.f32 %v24387_v20, %v631_v17 }
 0x14b   : > { %29680 = vst [vmem:[#allocation26_spill] sm:$0xff] %v24485_v16  ;;  %v24488_v19 = vadd.f32 %v20380_v18, %v24387_v20  ;;  %767 = vrot.lane.b32.xlu0 %v725_v10, %s24207_s22  ;;  %v634_v21 = vpop.f32.mrb[23].mxu0  ;;  %v728_v22 = vpack.c.bf16 %v20380_v18, %v20379_v13 }
 0x14c   : > { %v727_v25 = vpack.c.bf16 %v634_v21, %v631_v17  ;;  %29682 = vst [vmem:[#allocation28_spill] sm:$0xff] %v24498_v30  ;;  %v24501_v32 = vadd.f32 %v24387_v20, %v634_v21 }
 0x14d   : > { %29681 = vst [vmem:[#allocation27_spill] sm:$0xff] %v24488_v19  ;;  %769 = vrot.lane.b32.xlu1 %v726_v9, %s24207_s22  ;;  %v21315_v26 = vpack.i.bf16 %v24488_v19, %v24485_v16 }
 0x14e   : > { %29683 = vst [vmem:[#allocation29_spill] sm:$0xff] %v24501_v32  ;;  %v21320_v44 = vpack.i.bf16 %v24501_v32, %v24498_v30 }
 0x14f   : > { %21316 = vrot.lane.b32.xlu0 %v21315_v26, %s24208_s23 }
 0x150   : > { %v20383_v28 = vpop.f32.mrb[24].mxu0 }
 0x151   : > { %21311 = vrot.lane.b32.xlu1 %v21310_v27, %s24208_s23  ;;  %v24505_v33 = vadd.f32 %v20383_v28, %v24387_v20  ;;  %v647_v35 = vpop.f32.mrb[25].mxu0 }
 0x152   : > { %v20384_v36 = vpop.f32.mrb[26].mxu0  ;;  %v24518_v48 = vadd.f32 %v24387_v20, %v647_v35 }
 0x153   : > { %29684 = vst [vmem:[#allocation30_spill] sm:$0xff] %v24505_v33  ;;  %v24508_v37 = vadd.f32 %v20384_v36, %v24387_v20  ;;  %771 = vrot.lane.b32.xlu0 %v727_v25, %s24207_s22  ;;  %v650_v38 = vpop.f32.mrb[27].mxu0  ;;  %v730_v40 = vpack.c.bf16 %v20384_v36, %v20383_v28 }
 0x154   : > { %v729_v41 = vpack.c.bf16 %v650_v38, %v647_v35  ;;  %29686 = vst [vmem:[#allocation32_spill] sm:$0xff] %v24518_v48  ;;  %v24521_v49 = vadd.f32 %v24387_v20, %v650_v38 }
 0x155   : > { %29685 = vst [vmem:[#allocation31_spill] sm:$0xff] %v24508_v37  ;;  %773 = vrot.lane.b32.xlu1 %v728_v22, %s24207_s22  ;;  %v21325_v43 = vpack.i.bf16 %v24508_v37, %v24505_v33 }
 0x156   : > { %29687 = vst [vmem:[#allocation33_spill] sm:$0xff] %v24521_v49  ;;  %v21330_v1 = vpack.i.bf16 %v24521_v49, %v24518_v48 }
 0x157   : > { %21326 = vrot.lane.b32.xlu0 %v21325_v43, %s24208_s23 }
 0x158   : > { %v20387_v47 = vpop.f32.mrb[28].mxu0 }
 0x159   : > { %21321 = vrot.lane.b32.xlu1 %v21320_v44, %s24208_s23  ;;  %v24525_v51 = vadd.f32 %v20387_v47, %v24387_v20  ;;  %v663_v52 = vpop.f32.mrb[29].mxu0 }
 0x15a   : > { %v24528_v53 = vadd.f32 %v24387_v20, %v663_v52  ;;  %v20388_v57 = vpop.f32.mrb[30].mxu0 }
 0x15b   : > { %29688 = vst [vmem:[#allocation34_spill] sm:$0xff] %v24525_v51  ;;  %v24531_v58 = vadd.f32 %v20388_v57, %v24387_v20  ;;  %775 = vrot.lane.b32.xlu0 %v729_v41, %s24207_s22  ;;  %v666_v60 = vpop.f32.mrb[31].mxu0  ;;  %v732_v61 = vpack.c.bf16 %v20388_v57, %v20387_v47 }
 0x15c   : > { %29689 = vst [vmem:[#allocation35_spill] sm:$0xff] %v24528_v53  ;;  %v24535_v62 = vadd.f32 %v24387_v20, %v666_v60  ;;  %v731_v63 = vpack.c.bf16 %v666_v60, %v663_v52 }
 0x15d   : > { %29690 = vst [vmem:[#allocation36_spill] sm:$0xff] %v24531_v58  ;;  %777 = vrot.lane.b32.xlu1 %v730_v40, %s24207_s22  ;;  %v21335_v0 = vpack.i.bf16 %v24531_v58, %v24525_v51 }
 0x15e   : > { %29691 = vst [vmem:[#allocation37_spill] sm:$0xff] %v24535_v62  ;;  %v21340_v20 = vpack.i.bf16 %v24535_v62, %v24528_v53 }
 0x15f   : > { %21336 = vrot.lane.b32.xlu0 %v21335_v0, %s24208_s23 }
 0x161   : > { %21331 = vrot.lane.b32.xlu1 %v21330_v1, %s24208_s23 }
 0x163   : > { %779 = vrot.lane.b32.xlu0 %v731_v63, %s24207_s22 }
 0x165   : > { %781 = vrot.lane.b32.xlu1 %v732_v61, %s24207_s22 }
 0x169   : > { %21341 = vrot.lane.b32.xlu1 %v21340_v20, %s24208_s23 }
 0x197   : > { %v754_v5 = vpop.permute.xlu0 %753 }
 0x199   : > { %v21267_v6 = vpop.permute.xlu1 %21266 }
 0x19a   : > { %v21268_v11 = vunpack.i.l.bf16 %v21267_v6  ;;  %v21269_v21 = vunpack.i.h.bf16 %v21267_v6 }
 0x19b   : > { %v752_v8 = vpop.permute.xlu0 %751 }
 0x19c   : > { %20391 = vmatprep.mubr.msk.bf16.mxu0 %vm789_vm1, %v752_v8 }
 0x19d   : > { %20392 = vmatmul.mubr.msk.bf16.vlgmr.msra.gmra.mrb[32].mxu0 %vm789_vm1, %v754_v5 }
 0x19f   : > { %v21272_v9 = vpop.permute.xlu0 %21271  ;;  %v758_v10 = vpop.permute.xlu1 %757 }
 0x1a0   : > { %v21273_v12 = vunpack.i.l.bf16 %v21272_v9  ;;  %v21274_v13 = vunpack.i.h.bf16 %v21272_v9 }
 0x1a2   : > { %v21345_v17 = vpack.i.bf16 %v21268_v11, %v21273_v12  ;;  %v21347_v22 = vpack.i.bf16 %v21269_v21, %v21274_v13 }
 0x1a3   : > { %v21277_v18 = vpop.permute.xlu1 %21276 }
 0x1a4   : > { %21346 = vxpose.xlu1.b32.start [1/2] (short) (narrow) %v21345_v17, 32  ;;  %v21278_v28 = vunpack.i.l.bf16 %v21277_v18  ;;  %v21279_v43 = vunpack.i.h.bf16 %v21277_v18 }
 0x1a7   : > { %v756_v25 = vpop.permute.xlu1 %755 }
 0x1a8   : > { %20395 = vmatprep.mubr.msk.bf16.mxu0 %vm789_vm1, %v756_v25  ;;  %21348 = vxpose.xlu1.b32.end [2/2] (short) (narrow) %v21347_v22, 32 }
 0x1a9   : > { %20396 = vmatmul.mubr.msk.bf16.gmra.mrb[36].mxu0 %vm789_vm1, %v758_v10  ;;  %v21287_v26 = vpop.permute.xlu0 %21286 }
 0x1aa   : > { %v21288_v61 = vunpack.i.l.bf16 %v21287_v26  ;;  %v21289_v5 = vunpack.i.h.bf16 %v21287_v26 }
 0x1ab   : > { %v21282_v27 = vpop.permute.xlu1 %21281 }
 0x1ac   : > { %v21283_v35 = vunpack.i.l.bf16 %v21282_v27  ;;  %v21284_v38 = vunpack.i.h.bf16 %v21282_v27 }
 0x1ad   : > { %v760_v36 = vpop.permute.xlu0 %759 }
 0x1ae   : > { %20399 = vmatprep.mubr.msk.bf16.mxu0 %vm789_vm1, %v760_v36  ;;  %v21369_v40 = vpack.i.bf16 %v21278_v28, %v21283_v35  ;;  %v21371_v47 = vpack.i.bf16 %v21279_v43, %v21284_v38 }
 0x1af   : > { %v762_v41 = vpop.permute.xlu1 %761 }
 0x1b0   : > { %21370 = vxpose.xlu0.b32.start [1/2] (short) (narrow) %v21369_v40, 32 }
 0x1b1   : > { %20400 = vmatmul.mubr.msk.bf16.gmra.mrb[40].mxu0 %vm789_vm1, %v762_v41  ;;  %v21297_v44 = vpop.permute.xlu0 %21296 }
 0x1b2   : > { %v21298_v20 = vunpack.i.l.bf16 %v21297_v44  ;;  %v21299_v9 = vunpack.i.h.bf16 %v21297_v44 }
 0x1b3   : > { %v21292_v52 = vpop.permute.xlu1 %21291 }
 0x1b4   : > { %21372 = vxpose.xlu0.b32.end [2/2] (short) (narrow) %v21371_v47, 32  ;;  %v21293_v57 = vunpack.i.l.bf16 %v21292_v52  ;;  %v21294_v6 = vunpack.i.h.bf16 %v21292_v52 }
 0x1b5   : > { %v764_v60 = vpop.permute.xlu0 %763 }
 0x1b6   : > { %20403 = vmatprep.mubr.msk.bf16.mxu1 %vm789_vm1, %v764_v60  ;;  %v21393_v1 = vpack.i.bf16 %v21288_v61, %v21293_v57  ;;  %v21395_v17 = vpack.i.bf16 %v21289_v5, %v21294_v6 }
 0x1b7   : > { %v766_v63 = vpop.permute.xlu1 %765 }
 0x1b8   : > { %20404 = vmatmul.mubr.msk.bf16.vlgmr.msra.gmra.mrb[0].mxu1 %vm789_vm1, %v766_v63 }
 0x1b9   : > { %v21307_v0 = vpop.permute.xlu0 %21306 }
 0x1ba   : > { %v21308_v25 = vunpack.i.l.bf16 %v21307_v0  ;;  %v21309_v35 = vunpack.i.h.bf16 %v21307_v0 }
 0x1bb   : > { %v21302_v8 = vpop.permute.xlu1 %21301 }
 0x1bc   : > { %v21304_v10 = vunpack.i.h.bf16 %v21302_v8  ;;  %v21303_v11 = vunpack.i.l.bf16 %v21302_v8 }
 0x1bd   : > { %21394 = vxpose.xlu0.b32.start [1/2] (short) (narrow) %v21393_v1, 32  ;;  %v768_v12 = vpop.permute.xlu0 %767 }
 0x1be   : > { %20407 = vmatprep.mubr.msk.bf16.mxu1 %vm789_vm1, %v768_v12  ;;  %v21417_v13 = vpack.i.bf16 %v21298_v20, %v21303_v11  ;;  %v21419_v21 = vpack.i.bf16 %v21299_v9, %v21304_v10 }
 0x1bf   : > { %v770_v18 = vpop.permute.xlu1 %769 }
 0x1c0   : > { %20408 = vmatmul.mubr.msk.bf16.gmra.mrb[4].mxu1 %vm789_vm1, %v770_v18  ;;  %21418 = vxpose.xlu1.b32.start [1/2] (short) (narrow) %v21417_v13, 32 }
 0x1c1   : > { %21396 = vxpose.xlu0.b32.end [2/2] (short) (narrow) %v21395_v17, 32  ;;  %v21317_v22 = vpop.permute.xlu0 %21316 }
 0x1c2   : > { %v21318_v44 = vunpack.i.l.bf16 %v21317_v22  ;;  %v21319_v52 = vunpack.i.h.bf16 %v21317_v22 }
 0x1c3   : > { %v21312_v26 = vpop.permute.xlu1 %21311 }
 0x1c4   : > { %v21313_v27 = vunpack.i.l.bf16 %v21312_v26  ;;  %21420 = vxpose.xlu1.b32.end [2/2] (short) (narrow) %v21419_v21, 32  ;;  %v21314_v36 = vunpack.i.h.bf16 %v21312_v26 }
 0x1c5   : > { %v772_v28 = vpop.permute.xlu0 %771 }
 0x1c6   : > { %20411 = vmatprep.mubr.msk.bf16.mxu1 %vm789_vm1, %v772_v28  ;;  %v21441_v38 = vpack.i.bf16 %v21308_v25, %v21313_v27  ;;  %v21443_v43 = vpack.i.bf16 %v21309_v35, %v21314_v36 }
 0x1c7   : > { %v774_v40 = vpop.permute.xlu1 %773 }
 0x1c8   : > { %20412 = vmatmul.mubr.msk.bf16.gmra.mrb[8].mxu1 %vm789_vm1, %v774_v40 }
 0x1c9   : > { %v21327_v41 = vpop.permute.xlu0 %21326 }
 0x1ca   : > { %21442 = vxpose.xlu0.b32.start [1/2] (short) (narrow) %v21441_v38, 32  ;;  %v21328_v5 = vunpack.i.l.bf16 %v21327_v41  ;;  %v21329_v8 = vunpack.i.h.bf16 %v21327_v41 }
 0x1cb   : > { %v21322_v47 = vpop.permute.xlu1 %21321 }
 0x1cc   : > { %v21324_v57 = vunpack.i.h.bf16 %v21322_v47  ;;  %v21323_v60 = vunpack.i.l.bf16 %v21322_v47 }
 0x1cd   : > { %v776_v61 = vpop.permute.xlu0 %775 }
 0x1ce   : > { %20415 = vmatprep.mubr.msk.bf16.mxu1 %vm789_vm1, %v776_v61  ;;  %21444 = vxpose.xlu0.b32.end [2/2] (short) (narrow) %v21443_v43, 32  ;;  %v21465_v63 = vpack.i.bf16 %v21318_v44, %v21323_v60  ;;  %v21467_v1 = vpack.i.bf16 %v21319_v52, %v21324_v57 }
 0x1cf   : > { %v778_v0 = vpop.permute.xlu1 %777 }
 0x1d0   : > { %20416 = vmatmul.mubr.msk.bf16.gmra.mrb[12].mxu1 %vm789_vm1, %v778_v0  ;;  %21466 = vxpose.xlu1.b32.start [1/2] (short) (narrow) %v21465_v63, 32 }
 0x1d1   : > { %v21337_v20 = vpop.permute.xlu0 %21336 }
 0x1d2   : > { %v21338_v18 = vunpack.i.l.bf16 %v21337_v20  ;;  %v21339_v22 = vunpack.i.h.bf16 %v21337_v20 }
 0x1d3   : > { %v21332_v6 = vpop.permute.xlu1 %21331 }
 0x1d4   : > { %v21334_v9 = vunpack.i.h.bf16 %v21332_v6  ;;  %21468 = vxpose.xlu1.b32.end [2/2] (short) (narrow) %v21467_v1, 32  ;;  %v21333_v10 = vunpack.i.l.bf16 %v21332_v6 }
 0x1d5   : > { %v780_v11 = vpop.permute.xlu0 %779 }
 0x1d6   : > { %20419 = vmatprep.mubr.msk.bf16.mxu1 %vm789_vm1, %v780_v11  ;;  %v21489_v12 = vpack.i.bf16 %v21328_v5, %v21333_v10  ;;  %v21491_v17 = vpack.i.bf16 %v21329_v8, %v21334_v9 }
 0x1d7   : > { %v782_v13 = vpop.permute.xlu1 %781 }
 0x1d8   : > { %20420 = vmatmul.mubr.msk.bf16.gmra.mrb[16].mxu1 %vm789_vm1, %v782_v13  ;;  %21490 = vxpose.xlu0.b32.start [1/2] (short) (narrow) %v21489_v12, 32 }
 0x1db   : > { %v21342_v21 = vpop.permute.xlu1 %21341 }
 0x1dc   : > { %21492 = vxpose.xlu0.b32.end [2/2] (short) (narrow) %v21491_v17, 32  ;;  %v21344_v25 = vunpack.i.h.bf16 %v21342_v21  ;;  %v21343_v26 = vunpack.i.l.bf16 %v21342_v21 }
 0x1de   : > { %v21513_v27 = vpack.i.bf16 %v21338_v18, %v21343_v26  ;;  %v21515_v28 = vpack.i.bf16 %v21339_v22, %v21344_v25 }
 0x1e0   : > { %21514 = vxpose.xlu1.b32.start [1/2] (short) (narrow) %v21513_v27, 32 }
 0x1e4   : > { %21516 = vxpose.xlu1.b32.end [2/2] (short) (narrow) %v21515_v28, 32 }
 0x224   : > { %v21349_v35 = vpop.trf.xlu1 }
 0x225   : > { %v21350_v36 = vunpack.i.l.bf16 %v21349_v35  ;;  %v21353_v38 = vunpack.i.h.bf16 %v21349_v35 }
 0x228   : > { %v21354_v40 = vpop.trf.xlu1 }
 0x229   : > { %v21355_v41 = vunpack.i.l.bf16 %v21354_v40  ;;  %v21358_v43 = vunpack.i.h.bf16 %v21354_v40 }
 0x22b   : > { %v21549_v44 = vpack.i.bf16 %v21355_v41, %v21350_v36  ;;  %v21537_v47 = vpack.i.bf16 %v21358_v43, %v21353_v38 }
 0x22c   : > { %v21359_v52 = vpop.trf.xlu1 }
 0x22d   : > { %21550 = vxpose.xlu0.b32.start.end [1/1] (short) (narrow) %v21549_v44, 16  ;;  %21538 = vxpose.xlu1.b32.start.end [1/1] (short) (narrow) %v21537_v47, 16  ;;  %v21363_v61 = vunpack.i.h.bf16 %v21359_v52  ;;  %v21360_v1 = vunpack.i.l.bf16 %v21359_v52 }
 0x230   : > { %v21373_v57 = vpop.trf.xlu0  ;;  %v21364_v60 = vpop.trf.xlu1 }
 0x231   : > { %v21368_v63 = vunpack.i.h.bf16 %v21364_v60  ;;  %v21365_v0 = vunpack.i.l.bf16 %v21364_v60  ;;  %v21377_v8 = vunpack.i.h.bf16 %v21373_v57  ;;  %v21374_v13 = vunpack.i.l.bf16 %v21373_v57 }
 0x233   : > { %v21561_v5 = vpack.i.bf16 %v21368_v63, %v21363_v61  ;;  %v21585_v10 = vpack.i.bf16 %v21365_v0, %v21360_v1 }
 0x234   : > { %v21378_v20 = vpop.trf.xlu0 }
 0x235   : > { %v21382_v6 = vunpack.i.h.bf16 %v21378_v20  ;;  %21562 = vxpose.xlu0.b32.start.end [1/1] (short) (narrow) %v21561_v5, 16  ;;  %v21379_v12 = vunpack.i.l.bf16 %v21378_v20 }
 0x237   : > { %v21573_v9 = vpack.i.bf16 %v21382_v6, %v21377_v8  ;;  %v21597_v18 = vpack.i.bf16 %v21379_v12, %v21374_v13 }
 0x238   : > { %v21383_v11 = vpop.trf.xlu0 }
 0x239   : > { %21574 = vxpose.xlu1.b32.start.end [1/1] (short) (narrow) %v21573_v9, 16  ;;  %v21387_v22 = vunpack.i.h.bf16 %v21383_v11  ;;  %v21384_v35 = vunpack.i.l.bf16 %v21383_v11 }
 0x23a   : > { %21586 = vxpose.xlu0.b32.start.end [1/1] (short) (narrow) %v21585_v10, 16 }
 0x23c   : > { %v21388_v17 = vpop.trf.xlu0 }
 0x23d   : > { %v21392_v21 = vunpack.i.h.bf16 %v21388_v17  ;;  %v21389_v28 = vunpack.i.l.bf16 %v21388_v17 }
 0x23e   : > { %21598 = vxpose.xlu1.b32.start.end [1/1] (short) (narrow) %v21597_v18, 16 }
 0x23f   : > { %v21609_v25 = vpack.i.bf16 %v21392_v21, %v21387_v22  ;;  %v21633_v38 = vpack.i.bf16 %v21389_v28, %v21384_v35 }
 0x240   : > { %v21397_v26 = vpop.trf.xlu0  ;;  %v21421_v27 = vpop.trf.xlu1 }
 0x241   : > { %21610 = vxpose.xlu0.b32.start.end [1/1] (short) (narrow) %v21609_v25, 16  ;;  %v21401_v40 = vunpack.i.h.bf16 %v21397_v26  ;;  %v21398_v60 = vunpack.i.l.bf16 %v21397_v26  ;;  %v21425_v5 = vunpack.i.h.bf16 %v21421_v27  ;;  %v21422_v18 = vunpack.i.l.bf16 %v21421_v27 }
 0x244   : > { %v21402_v36 = vpop.trf.xlu0  ;;  %v21426_v41 = vpop.trf.xlu1 }
 0x245   : > { %v21406_v43 = vunpack.i.h.bf16 %v21402_v36  ;;  %v21403_v57 = vunpack.i.l.bf16 %v21402_v36  ;;  %v21430_v20 = vunpack.i.h.bf16 %v21426_v41  ;;  %v21427_v17 = vunpack.i.l.bf16 %v21426_v41 }
 0x246   : > { %21634 = vxpose.xlu0.b32.start.end [1/1] (short) (narrow) %v21633_v38, 16 }
 0x247   : > { %v21621_v44 = vpack.i.bf16 %v21406_v43, %v21401_v40  ;;  %v21645_v63 = vpack.i.bf16 %v21403_v57, %v21398_v60  ;;  %v21669_v10 = vpack.i.bf16 %v21430_v20, %v21425_v5  ;;  %v21693_v35 = vpack.i.bf16 %v21427_v17, %v21422_v18 }
 0x248   : > { %v21407_v47 = vpop.trf.xlu0  ;;  %v21431_v52 = vpop.trf.xlu1 }
 0x249   : > { %21622 = vxpose.xlu1.b32.start.end [1/1] (short) (narrow) %v21621_v44, 16  ;;  %v21411_v0 = vunpack.i.h.bf16 %v21407_v47  ;;  %v21408_v13 = vunpack.i.l.bf16 %v21407_v47  ;;  %v21435_v28 = vunpack.i.h.bf16 %v21431_v52  ;;  %v21432_v60 = vunpack.i.l.bf16 %v21431_v52 }
 0x24c   : > { %v21412_v61 = vpop.trf.xlu0  ;;  %v21436_v1 = vpop.trf.xlu1 }
 0x24d   : > { %v21416_v6 = vunpack.i.h.bf16 %v21412_v61  ;;  %v21413_v11 = vunpack.i.l.bf16 %v21412_v61  ;;  %v21440_v26 = vunpack.i.h.bf16 %v21436_v1  ;;  %v21437_v57 = vunpack.i.l.bf16 %v21436_v1 }
 0x24e   : > { %21646 = vxpose.xlu1.b32.start.end [1/1] (short) (narrow) %v21645_v63, 16 }
 0x24f   : > { %v21657_v8 = vpack.i.bf16 %v21416_v6, %v21411_v0  ;;  %v21681_v22 = vpack.i.bf16 %v21413_v11, %v21408_v13  ;;  %v21705_v44 = vpack.i.bf16 %v21440_v26, %v21435_v28  ;;  %v21729_v0 = vpack.i.bf16 %v21437_v57, %v21432_v60 }
 0x250   : > { %v21445_v9 = vpop.trf.xlu0  ;;  %v21469_v12 = vpop.trf.xlu1 }
 0x251   : > { %21658 = vxpose.xlu0.b32.start.end [1/1] (short) (narrow) %v21657_v8, 16  ;;  %v21449_v38 = vunpack.i.h.bf16 %v21445_v9  ;;  %v21446_v61 = vunpack.i.l.bf16 %v21445_v9  ;;  %v21473_v13 = vunpack.i.h.bf16 %v21469_v12  ;;  %v21470_v26 = vunpack.i.l.bf16 %v21469_v12 }
 0x253   : > { %21670 = vxpose.xlu1.b32.start.end [1/1] (short) (narrow) %v21669_v10, 16 }
 0x254   : > { %v21450_v21 = vpop.trf.xlu0  ;;  %v21474_v25 = vpop.trf.xlu1 }
 0x255   : > { %v21454_v36 = vunpack.i.h.bf16 %v21450_v21  ;;  %v21451_v27 = vunpack.i.l.bf16 %v21450_v21  ;;  %v21478_v11 = vunpack.i.h.bf16 %v21474_v25  ;;  %v21475_v21 = vunpack.i.l.bf16 %v21474_v25 }
 0x256   : > { %21682 = vxpose.xlu0.b32.start.end [1/1] (short) (narrow) %v21681_v22, 16 }
 0x257   : > { %v21717_v47 = vpack.i.bf16 %v21454_v36, %v21449_v38  ;;  %v21741_v6 = vpack.i.bf16 %v21451_v27, %v21446_v61  ;;  %v21765_v9 = vpack.i.bf16 %v21478_v11, %v21473_v13  ;;  %v21789_v57 = vpack.i.bf16 %v21475_v21, %v21470_v26 }
 0x258   : > { %v21455_v40 = vpop.trf.xlu0  ;;  %21694 = vxpose.xlu1.b32.start.end [1/1] (short) (narrow) %v21693_v35, 16  ;;  %v21479_v43 = vpop.trf.xlu1 }
 0x259   : > { %v21459_v5 = vunpack.i.h.bf16 %v21455_v40  ;;  %v21456_v18 = vunpack.i.l.bf16 %v21455_v40  ;;  %v21483_v28 = vunpack.i.h.bf16 %v21479_v43  ;;  %v21480_v61 = vunpack.i.l.bf16 %v21479_v43 }
 0x25b   : > { %21706 = vxpose.xlu0.b32.start.end [1/1] (short) (narrow) %v21705_v44, 16 }
 0x25c   : > { %v21460_v41 = vpop.trf.xlu0  ;;  %v21484_v63 = vpop.trf.xlu1 }
 0x25d   : > { %21718 = vxpose.xlu1.b32.start.end [1/1] (short) (narrow) %v21717_v47, 16  ;;  %v21464_v20 = vunpack.i.h.bf16 %v21460_v41  ;;  %v21461_v52 = vunpack.i.l.bf16 %v21460_v41  ;;  %v21488_v35 = vunpack.i.h.bf16 %v21484_v63 }
 0x25f   : > { %v21753_v1 = vpack.i.bf16 %v21464_v20, %v21459_v5  ;;  %v21777_v36 = vpack.i.bf16 %v21461_v52, %v21456_v18  ;;  %v21801_v40 = vpack.i.bf16 %v21488_v35, %v21483_v28 }
 0x260   : > { %21730 = vxpose.xlu0.b32.start.end [1/1] (short) (narrow) %v21729_v0, 16  ;;  %v21493_v8 = vpop.trf.xlu0  ;;  %v24565_v10 = vpop.trf.xlu1  ;;  %v21485_v0 = vunpack.i.l.bf16 %v21484_v63 }
 0x261   : > { %v21497_v60 = vunpack.i.h.bf16 %v21493_v8  ;;  %v21494_v12 = vunpack.i.l.bf16 %v21493_v8  ;;  %v21521_v28 = vunpack.i.h.bf16 %v24565_v10 }
 0x262   : > { %21742 = vxpose.xlu1.b32.start.end [1/1] (short) (narrow) %v21741_v6, 16  ;;  %v21825_v43 = vpack.i.bf16 %v21485_v0, %v21480_v61  ;;  %v21518_v61 = vunpack.i.l.bf16 %v24565_v10 }
 0x264   : > { %v21498_v17 = vpop.trf.xlu0  ;;  %v21522_v22 = vpop.trf.xlu1 }
 0x265   : > { %21754 = vxpose.xlu0.b32.start.end [1/1] (short) (narrow) %v21753_v1, 16  ;;  %v21502_v47 = vunpack.i.h.bf16 %v21498_v17  ;;  %v21499_v20 = vunpack.i.l.bf16 %v21498_v17  ;;  %v21526_v26 = vunpack.i.h.bf16 %v21522_v22 }
 0x267   : > { %21766 = vxpose.xlu1.b32.start.end [1/1] (short) (narrow) %v21765_v9, 16  ;;  %v21813_v25 = vpack.i.bf16 %v21502_v47, %v21497_v60  ;;  %v21837_v9 = vpack.i.bf16 %v21499_v20, %v21494_v12  ;;  %v21861_v47 = vpack.i.bf16 %v21526_v26, %v21521_v28 }
 0x268   : > { %v21503_v38 = vpop.trf.xlu0  ;;  %v24567_v44 = vpop.trf.xlu1 }
 0x269   : > { %v21507_v17 = vunpack.i.h.bf16 %v21503_v38  ;;  %v21504_v60 = vunpack.i.l.bf16 %v21503_v38 }
 0x26a   : > { %21778 = vxpose.xlu0.b32.start.end [1/1] (short) (narrow) %v21777_v36, 16 }
 0x26c   : > { %21790 = vxpose.xlu1.b32.start.end [1/1] (short) (narrow) %v21789_v57, 16  ;;  %v21508_v41 = vpop.trf.xlu0  ;;  %v21532_v27 = vpop.trf.xlu1 }
 0x26d   : > { %v21512_v52 = vunpack.i.h.bf16 %v21508_v41  ;;  %v21509_v57 = vunpack.i.l.bf16 %v21508_v41 }
 0x26f   : > { %21802 = vxpose.xlu0.b32.start.end [1/1] (short) (narrow) %v21801_v40, 16  ;;  %v21849_v36 = vpack.i.bf16 %v21512_v52, %v21507_v17  ;;  %v21523_v40 = vunpack.i.l.bf16 %v21522_v22  ;;  %v21531_v52 = vunpack.i.h.bf16 %v24567_v44 }
 0x270   : > { %v24569_v5 = vpop.f32.mrb[32].mxu0 }
 0x271   : > { %v24573_v6 = vadd.f32 %v24569_v5, %v24390_v23  ;;  %v24575_v11 = vpop.f32.mrb[33].mxu0  ;;  %21814 = vxpose.xlu1.b32.start.end [1/1] (short) (narrow) %v21813_v25, 16  ;;  %v21873_v25 = vpack.i.bf16 %v21509_v57, %v21504_v60  ;;  %v21885_v10 = vpack.i.bf16 %v21523_v40, %v21518_v61  ;;  %v21528_v57 = vunpack.i.l.bf16 %v24567_v44 }
 0x272   : > { %v24579_v13 = vadd.f32 %v24575_v11, %v24403_v31  ;;  %v24581_v1 = vpop.f32.mrb[34].mxu0 }
 0x273   : > { %v24585_v63 = vadd.f32 %v24581_v1, %v24393_v24  ;;  %v24587_v8 = vpop.f32.mrb[35].mxu0 }
 0x274   : > { %v24591_v18 = vadd.f32 %v24587_v8, %v24399_v29  ;;  %21826 = vxpose.xlu0.b32.start.end [1/1] (short) (narrow) %v21825_v43, 16  ;;  %v21536_v43 = vunpack.i.h.bf16 %v21532_v27 }
 0x276   : > { %21838 = vxpose.xlu1.b32.start.end [1/1] (short) (narrow) %v21837_v9, 16  ;;  %v21897_v28 = vpack.i.bf16 %v21536_v43, %v21531_v52 }
 0x279   : > { %21850 = vxpose.xlu0.b32.start.end [1/1] (short) (narrow) %v21849_v36, 16  ;;  %v21533_v36 = vunpack.i.l.bf16 %v21532_v27 }
 0x27b   : > { %21862 = vxpose.xlu1.b32.start.end [1/1] (short) (narrow) %v21861_v47, 16  ;;  %v21909_v27 = vpack.i.bf16 %v21533_v36, %v21528_v57 }
 0x27c   : > { %v24599_v0 = vpop.f32.mrb[36].mxu0 }
 0x27d   : > { %v24603_v12 = vadd.f32 %v24599_v0, %v24412_v39  ;;  %v24605_v20 = vpop.f32.mrb[37].mxu0 }
 0x27e   : > { %v24610_v38 = vadd.f32 %v24605_v20, %v24429_v50  ;;  %v24612_v22 = vpop.f32.mrb[38].mxu0  ;;  %21874 = vxpose.xlu0.b32.start.end [1/1] (short) (narrow) %v21873_v25, 16 }
 0x27f   : > { %v24616_v41 = vadd.f32 %v24612_v22, %v24407_v34  ;;  %v24618_v17 = vpop.f32.mrb[39].mxu0 }
 0x280   : > { %v24622_v9 = vadd.f32 %v24618_v17, %v24423_v45  ;;  %21886 = vxpose.xlu1.b32.start.end [1/1] (short) (narrow) %v21885_v10, 16 }
 0x283   : > { %21898 = vxpose.xlu0.b32.start.end [1/1] (short) (narrow) %v21897_v28, 16 }
 0x284   : > { %v24629_v47 = vpop.f32.mrb[40].mxu0 }
 0x285   : > { %v24633_v40 = vadd.f32 %v24629_v47, %v24420_v42  ;;  %v24635_v61 = vpop.f32.mrb[41].mxu0 }
 0x286   : > { %v24639_v25 = vadd.f32 %v24635_v61, %v24438_v54  ;;  %v24641_v43 = vpop.f32.mrb[42].mxu0 }
 0x287   : > { %v24645_v44 = vadd.f32 %v24641_v43, %v24426_v46  ;;  %v24647_v52 = vpop.f32.mrb[43].mxu0 }
 0x288   : > { %v24651_v10 = vadd.f32 %v24647_v52, %v24441_v55  ;;  %21910 = vxpose.xlu0.b32.start.end [1/1] (short) (narrow) %v21909_v27, 16 }
 0x28b   : > { %v24657_v35 = vpop.f32.mrb[0].mxu1 }
 0x28c   : > { %v24661_v36 = vadd.f32 %v24657_v35, %v24445_v56  ;;  %v24663_v57 = vpop.f32.mrb[1].mxu1 }
 0x28d   : > { %v24667_v26 = vadd.f32 %v24663_v57, %v24458_v2  ;;  %v24669_v21 = vpop.f32.mrb[2].mxu1 }
 0x28e   : > { %v24673_v27 = vadd.f32 %v24669_v21, %v24448_v59  ;;  %v24675_v28 = vpop.f32.mrb[3].mxu1 }
 0x28f   : > { %v24679_v60 = vadd.f32 %v24675_v28, %v24461_v3 }
 0x293   : > { %v24685_v2 = vpop.f32.mrb[4].mxu1 }
 0x294   : > { %v24689_v45 = vadd.f32 %v24685_v2, %v24465_v4  ;;  %v24691_v50 = vpop.f32.mrb[5].mxu1 }
 0x295   : > { %v24695_v24 = vadd.f32 %v24691_v50, %v24478_v14  ;;  %v24697_v3 = vpop.f32.mrb[6].mxu1 }
 0x296   : > { %v24701_v55 = vadd.f32 %v24697_v3, %v24468_v7  ;;  %v24703_v23 = vpop.f32.mrb[7].mxu1 }
 0x297   : > { %v24707_v54 = vadd.f32 %v24703_v23, %v24481_v15 }
 0x29b   : > { %v24713_v14 = vpop.f32.mrb[8].mxu1 }
 0x29c   : > { %v24717_v39 = vadd.f32 %v24713_v14, %v24485_v16  ;;  %v24719_v7 = vpop.f32.mrb[9].mxu1 }
 0x29d   : > { %29692 = vst [vmem:[#allocation38_spill] sm:$0xff] %v24719_v7  ;;  %v24723_v29 = vadd.f32 %v24719_v7, %v24498_v30  ;;  %v24725_v15 = vpop.f32.mrb[10].mxu1 }
 0x29e   : > { %v24729_v4 = vadd.f32 %v24725_v15, %v24488_v19  ;;  %v24731_v31 = vpop.f32.mrb[11].mxu1 }
 0x29f   : > { %v24735_v34 = vadd.f32 %v24731_v31, %v24501_v32 }
 0x2a2   : > { %1069 = vrot.lane.b32.xlu1 %v24581_v1, %s24207_s22 }
 0x2a3   : > { %v24743_v30 = vpop.f32.mrb[12].mxu1 }
 0x2a4   : > { %29693 = vst [vmem:[#allocation39_spill] sm:$0xff] %v24743_v30  ;;  %v24747_v19 = vadd.f32 %v24743_v30, %v24505_v33  ;;  %v24749_v59 = vpop.f32.mrb[13].mxu1 }
 0x2a5   : > { %29695 = vst [vmem:[#allocation41_spill] sm:$0xff] %v24749_v59  ;;  %v24753_v32 = vadd.f32 %v24749_v59, %v24518_v48  ;;  %v24755_v7 = vpop.f32.mrb[14].mxu1 }
 0x2a6   : > { %29694 = vst [vmem:[#allocation40_spill] sm:$0xff] %v24747_v19  ;;  %v24759_v56 = vadd.f32 %v24755_v7, %v24508_v37  ;;  %v24761_v16 = vpop.f32.mrb[15].mxu1  ;;  %1065 = vrot.lane.b32.xlu1 %v24587_v8, %s24207_s22 }
 0x2a7   : > { %29696 = vst [vmem:[#allocation42_spill] sm:$0xff] %v24753_v32  ;;  %v24767_v1 = vadd.f32 %v24761_v16, %v24521_v49 }
 0x2a8   : > { %29697 = vst [vmem:[#allocation43_spill] sm:$0xff] %v24759_v56 }
 0x2a9   : > { %29698 = vst [vmem:[#allocation44_spill] sm:$0xff] %v24767_v1 }
 0x2aa   : > { %1077 = vrot.lane.b32.xlu1 %v24612_v22, %s24207_s22 }
 0x2ab   : > { %v24775_v37 = vpop.f32.mrb[16].mxu1 }
 0x2ac   : > { %29699 = vst [vmem:[#allocation45_spill] sm:$0xff] %v24775_v37  ;;  %v24779_v59 = vadd.f32 %v24775_v37, %v24525_v51  ;;  %v24781_v8 = vpop.f32.mrb[17].mxu1 }
 0x2ad   : > { %29701 = vst [vmem:[#allocation47_spill] sm:$0xff] %v24781_v8  ;;  %v24785_v49 = vadd.f32 %v24781_v8, %v24528_v53  ;;  %v24787_v30 = vpop.f32.mrb[18].mxu1  ;;  %v24789_v33 = vpop.trf.xlu0 }
 0x2ae   : > { %29700 = vst [vmem:[#allocation46_spill] sm:$0xff] %v24779_v59  ;;  %29703 = vst [vmem:[#allocation49_spill] sm:$0xff] %v24789_v33  ;;  %v24793_v48 = vadd.f32 %v24787_v30, %v24531_v58  ;;  %v24795_v22 = vpop.f32.mrb[19].mxu1  ;;  %1073 = vrot.lane.b32.xlu1 %v24618_v17, %s24207_s22  ;;  %v24799_v51 = vpop.trf.xlu1  ;;  %v29355_v58 = vmov 0.0  }
 0x2af   : > { %29702 = vst [vmem:[#allocation48_spill] sm:$0xff] %v24785_v49  ;;  %29705 = vst [vmem:[#allocation51_spill] sm:$0xff] %v24799_v51  ;;  %v24803_v37 = vadd.f32 %v24795_v22, %v24535_v62  ;;  %v21552_v49 = vunpack.i.l.bf16 %v24789_v33  ;;  %20423 = vmatprep.subr.bf16.mxu0 %v29355_v58  ;;  %20435 = vmatprep.subr.bf16.mxu1 %v29355_v58 }
 0x2b0   : > { %29704 = vst [vmem:[#allocation50_spill] sm:$0xff] %v24793_v48 }
 0x2b1   : > { %29706 = vst [vmem:[#allocation52_spill] sm:$0xff] %v24803_v37  ;;  %v24807_v8 = vpop.trf.xlu0 }
 0x2b2   : > { %29707 = vst [vmem:[#allocation53_spill] sm:$0xff] %v24807_v8  ;;  %v24811_v1 = vpop.trf.xlu1  ;;  %v21557_v53 = vunpack.i.l.bf16 %v24807_v8 }
 0x2b3   : > { %29708 = vst [vmem:[#allocation54_spill] sm:$0xff] %v24811_v1 }
 0x2b5   : > { %1067 = vrot.lane.b32.xlu0 %v24569_v5, %s24207_s22  ;;  %v24815_v17 = vpop.trf.xlu0  ;;  %v6503_v5 = vpack.c.bf16 %v21557_v53, %v21552_v49 }
 0x2b6   : > { %29709 = vst [vmem:[#allocation55_spill] sm:$0xff] %v24815_v17 }
 0x2b9   : > { %v21575_v51 = vpop.trf.xlu1  ;;  %1063 = vrot.lane.b32.xlu0 %v24575_v11, %s24207_s22  ;;  %v24819_v62 = vpop.trf.xlu0  ;;  %v9324_v11 = vsel %vm9319_vm2, %v6503_v5, 0 }
 0x2ba   : > { %29710 = vst [vmem:[#allocation56_spill] sm:$0xff] %v24819_v62  ;;  %20424 = vmatpush3.bf16.xpose.msra.mxu0 %v9324_v11 }
 0x2bb   : > { %20429 = vmatprep.subr.bf16.mxu0 %v29355_v58 }
 0x2bd   : > { %v21580_v56 = vpop.trf.xlu1  ;;  %v21587_v59 = vpop.trf.xlu0 }
 0x2be   : > { %v21588_v17 = vunpack.i.l.bf16 %v21587_v59 }
 0x2c1   : > { %v24825_v1 = vpop.trf.xlu1  ;;  %v21592_v37 = vpop.trf.xlu0 }
 0x2c2   : > { %29711 = vst [vmem:[#allocation57_spill] sm:$0xff] %v24825_v1  ;;  %v21593_v62 = vunpack.i.l.bf16 %v21592_v37 }
 0x2c4   : > { %v6505_v33 = vpack.c.bf16 %v21593_v62, %v21588_v17  ;;  %v21591_v62 = vunpack.i.h.bf16 %v21587_v59  ;;  %v21596_v17 = vunpack.i.h.bf16 %v21592_v37  ;;  %v29722_v59 = vpack.i.bf16 %v24585_v63, %v24591_v18 }
 0x2c5   : > { %v24829_v8 = vpop.trf.xlu1  ;;  %v24831_v48 = vpop.trf.xlu0  ;;  %v29723_v37 = vpack.i.bf16 %v24616_v41, %v24622_v9  ;;  %v21584_v63 = vunpack.i.h.bf16 %v21580_v56  ;;  %v21581_v18 = vunpack.i.l.bf16 %v21580_v56 }
 0x2c6   : > { %29712 = vst [vmem:[#allocation58_spill] sm:$0xff] %v24831_v48  ;;  %v9418_v32 = vsel %vm9319_vm2, %v6505_v33, 0 }
 0x2c7   : > { %20436 = vmatpush3.bf16.xpose.msra.mxu1 %v9418_v32  ;;  %v29719_v32 = vpack.i.bf16 %v24573_v6, %v24579_v13 }
 0x2c8   : > { %20447 = vmatprep.subr.bf16.mxu1 %v29355_v58  ;;  %v29720_v58 = vpack.i.bf16 %v24603_v12, %v24610_v38 }
 0x2c9   : > { %v24834_v19 = vpop.trf.xlu1  ;;  %v24837_v49 = vpop.trf.xlu0 }
 0x2ca   : > { %29713 = vst [vmem:[#allocation59_spill] sm:$0xff] %v24834_v19  ;;  %29714 = vst [vmem:[#allocation60_spill] sm:$0xff] %v24837_v49 }
 0x2cd   : > { %v24839_v53 = vpop.trf.xlu1  ;;  %v24841_v5 = vpop.trf.xlu0 }
 0x2ce   : > { %29715 = vst [vmem:[#allocation61_spill] sm:$0xff] %v24839_v53  ;;  %v24857_v53 = vpack.c.bf16 %v21596_v17, %v21591_v62  ;;  %v21579_v62 = vunpack.i.h.bf16 %v21575_v51  ;;  %v21576_v17 = vunpack.i.l.bf16 %v21575_v51 }
 0x2d0   : > { %v24881_v9 = vpack.c.bf16 %v21581_v18, %v21576_v17 }
 0x2d1   : > { %v24843_v11 = vpop.trf.xlu1  ;;  %v24845_v1 = vpop.trf.xlu0 }
 0x2d2   : > { %29716 = vst [vmem:[#allocation62_spill] sm:$0xff] %v24843_v11 }
 0x2d5   : > { %v24847_v48 = vpop.trf.xlu1  ;;  %v24849_v33 = vpop.trf.xlu0 }
 0x2d6   : > { %29717 = vst [vmem:[#allocation63_spill] sm:$0xff] %v24847_v48  ;;  %29718 = vst [vmem:[#allocation64_spill] sm:$0xff] %v24849_v33 }
 0x2d7   : > { %21922 = vxpose.xlu0.b32.start [1/2] (short) (narrow) %v29719_v32, 32  ;;  %21946 = vxpose.xlu1.b32.start [1/2] (short) (narrow) %v29720_v58, 32 }
 0x2d9   : > { %v21671_v19 = vpop.trf.xlu1  ;;  %v24859_v11 = vpop.trf.xlu0 }
 0x2da   : > { %29721 = vst [vmem:[#allocation65_spill] sm:$0xff] %v24859_v11 }
 0x2db   : > { %21924 = vxpose.xlu0.b32.end [2/2] (short) (narrow) %v29722_v59, 32  ;;  %21948 = vxpose.xlu1.b32.end [2/2] (short) (narrow) %v29723_v37, 32  ;;  %v24883_v37 = vpack.c.bf16 %v21584_v63, %v21579_v62 }
 0x2dd   : > { %v21676_v33 = vpop.trf.xlu1  ;;  %v21683_v6 = vpop.trf.xlu0 }
 0x2e1   : > { %v24867_v13 = vpop.trf.xlu1  ;;  %v21688_v32 = vpop.trf.xlu0 }
 0x2e2   : > { %29724 = vst [vmem:[#allocation66_spill] sm:$0xff] %v24867_v13  ;;  %v21692_v51 = vunpack.i.h.bf16 %v21688_v32 }
 0x2e5   : > { %v24869_v12 = vpop.trf.xlu1  ;;  %v24871_v58 = vpop.trf.xlu0 }
 0x2e6   : > { %29725 = vst [vmem:[#allocation67_spill] sm:$0xff] %v24869_v12  ;;  %29726 = vst [vmem:[#allocation68_spill] sm:$0xff] %v24871_v58  ;;  %v21687_v58 = vunpack.i.h.bf16 %v21683_v6 }
 0x2e8   : > { %v24899_v62 = vpack.c.bf16 %v21692_v51, %v21687_v58  ;;  %v21675_v51 = vunpack.i.h.bf16 %v21671_v19 }
 0x2e9   : > { %v24873_v38 = vpop.trf.xlu1  ;;  %v24875_v11 = vpop.trf.xlu0 }
 0x2ea   : > { %29727 = vst [vmem:[#allocation69_spill] sm:$0xff] %v24873_v38  ;;  %29728 = vst [vmem:[#allocation70_spill] sm:$0xff] %v24875_v11  ;;  %v21684_v38 = vunpack.i.l.bf16 %v21683_v6  ;;  %v21689_v11 = vunpack.i.l.bf16 %v21688_v32 }
 0x2ec   : > { %v24897_v17 = vpack.c.bf16 %v21689_v11, %v21684_v38 }
 0x2ed   : > { %v24877_v59 = vpop.trf.xlu1  ;;  %v24879_v41 = vpop.trf.xlu0 }
 0x2ee   : > { %29729 = vst [vmem:[#allocation71_spill] sm:$0xff] %v24877_v59 }
 0x2f1   : > { %v24885_v13 = vpop.trf.xlu1  ;;  %v24887_v12 = vpop.trf.xlu0 }
 0x2f2   : > { %29730 = vst [vmem:[#allocation72_spill] sm:$0xff] %v24885_v13 }
 0x2f5   : > { %v24889_v48 = vpop.trf.xlu1  ;;  %v24891_v49 = vpop.trf.xlu0 }
 0x2f6   : > { %29731 = vst [vmem:[#allocation73_spill] sm:$0xff] %v24891_v49 }
 0x2f9   : > { %v24893_v56 = vpop.trf.xlu1  ;;  %v24895_v59 = vpop.trf.xlu0 }
 0x2fa   : > { %29732 = vst [vmem:[#allocation74_spill] sm:$0xff] %v24893_v56  ;;  %29733 = vst [vmem:[#allocation75_spill] sm:$0xff] %v24895_v59  ;;  %v21672_v56 = vunpack.i.l.bf16 %v21671_v19 }
 0x2fd   : > { %v24901_v63 = vpop.trf.xlu1  ;;  %v24903_v18 = vpop.trf.xlu0 }
 0x2fe   : > { %29734 = vst [vmem:[#allocation76_spill] sm:$0xff] %v24901_v63  ;;  %29735 = vst [vmem:[#allocation77_spill] sm:$0xff] %v24903_v18  ;;  %v21680_v63 = vunpack.i.h.bf16 %v21676_v33 }
 0x301   : > { %v24905_v13 = vpop.trf.xlu1  ;;  %1085 = vrot.lane.b32.xlu1 %v24641_v43, %s24207_s22  ;;  %v24909_v6 = vpop.trf.xlu0  ;;  %v21677_v43 = vunpack.i.l.bf16 %v21676_v33 }
 0x302   : > { %29736 = vst [vmem:[#allocation78_spill] sm:$0xff] %v24905_v13  ;;  %29737 = vst [vmem:[#allocation79_spill] sm:$0xff] %v24909_v6 }
 0x305   : > { %v24911_v32 = vpop.trf.xlu1  ;;  %1081 = vrot.lane.b32.xlu1 %v24647_v52, %s24207_s22  ;;  %v24915_v11 = vpop.trf.xlu0 }
 0x306   : > { %29738 = vst [vmem:[#allocation80_spill] sm:$0xff] %v24911_v32  ;;  %29739 = vst [vmem:[#allocation81_spill] sm:$0xff] %v24915_v11  ;;  %v29779_v11 = vld [vmem:[#allocation48_spill] sm:$0xff] }
 0x309   : > { %v24917_v58 = vpop.trf.xlu1  ;;  %1093 = vrot.lane.b32.xlu1 %v24669_v21, %s24207_s22  ;;  %v24921_v38 = vpop.trf.xlu0  ;;  %v24933_v21 = vpack.c.bf16 %v21677_v43, %v21672_v56 }
 0x30a   : > { %29740 = vst [vmem:[#allocation82_spill] sm:$0xff] %v24917_v58  ;;  %29741 = vst [vmem:[#allocation83_spill] sm:$0xff] %v24921_v38  ;;  %v24935_v58 = vpack.c.bf16 %v21680_v63, %v21675_v51  ;;  %v29781_v38 = vld [vmem:[#allocation43_spill] sm:$0xff] }
 0x30c   : > { %1075 = vrot.lane.b32.xlu0 %v24599_v0, %s24207_s22 }
 0x30d   : > { %v24925_v13 = vpop.trf.xlu1  ;;  %1089 = vrot.lane.b32.xlu1 %v24675_v28, %s24207_s22  ;;  %v24929_v52 = vpop.trf.xlu0 }
 0x30e   : > { %29742 = vst [vmem:[#allocation84_spill] sm:$0xff] %v24925_v13  ;;  %29743 = vst [vmem:[#allocation85_spill] sm:$0xff] %v24929_v52 }
 0x310   : > { %1071 = vrot.lane.b32.xlu0 %v24605_v20, %s24207_s22 }
 0x311   : > { %v24937_v19 = vpop.trf.xlu1  ;;  %v24939_v33 = vpop.trf.xlu0 }
 0x312   : > { %29744 = vst [vmem:[#allocation86_spill] sm:$0xff] %v24937_v19  ;;  %29745 = vst [vmem:[#allocation87_spill] sm:$0xff] %v24939_v33 }
 0x314   : > { %1083 = vrot.lane.b32.xlu0 %v24629_v47, %s24207_s22 }
 0x315   : > { %v24943_v0 = vpop.trf.xlu1  ;;  %v24945_v13 = vpop.trf.xlu0 }
 0x316   : > { %29746 = vst [vmem:[#allocation88_spill] sm:$0xff] %v24943_v0  ;;  %29747 = vst [vmem:[#allocation89_spill] sm:$0xff] %v24945_v13 }
 0x318   : > { %1079 = vrot.lane.b32.xlu0 %v24635_v61, %s24207_s22 }
 0x319   : > { %v24949_v28 = vpop.trf.xlu1  ;;  %v24951_v20 = vpop.trf.xlu0 }
 0x31a   : > { %29748 = vst [vmem:[#allocation90_spill] sm:$0xff] %v24949_v28  ;;  %29749 = vst [vmem:[#allocation91_spill] sm:$0xff] %v24951_v20  ;;  %v29759_v28 = vpack.i.bf16 %v24633_v40, %v24639_v25 }
 0x31d   : > { %v24953_v56 = vpop.trf.xlu1  ;;  %v24955_v63 = vpop.trf.xlu0 }
 0x31e   : > { %29750 = vst [vmem:[#allocation92_spill] sm:$0xff] %v24953_v56  ;;  %29751 = vst [vmem:[#allocation93_spill] sm:$0xff] %v24955_v63  ;;  %v29760_v56 = vpack.i.bf16 %v24661_v36, %v24667_v26  ;;  %v29776_v63 = vld [vmem:[#allocation42_spill] sm:$0xff] }
 0x321   : > { %v24957_v51 = vpop.trf.xlu1  ;;  %v24959_v43 = vpop.trf.xlu0 }
 0x322   : > { %29752 = vst [vmem:[#allocation94_spill] sm:$0xff] %v24957_v51  ;;  %29753 = vst [vmem:[#allocation95_spill] sm:$0xff] %v24959_v43  ;;  %v29761_v51 = vpack.i.bf16 %v24645_v44, %v24651_v10 }
 0x325   : > { %v24961_v47 = vpop.trf.xlu1  ;;  %v24963_v19 = vpop.trf.xlu0 }
 0x326   : > { %29754 = vst [vmem:[#allocation96_spill] sm:$0xff] %v24961_v47  ;;  %29755 = vst [vmem:[#allocation97_spill] sm:$0xff] %v24963_v19  ;;  %v29762_v19 = vpack.i.bf16 %v24673_v27, %v24679_v60  ;;  %v29765_v47 = vpack.i.bf16 %v24701_v55, %v24707_v54 }
 0x329   : > { %v24965_v13 = vpop.trf.xlu0 }
 0x32a   : > { %29756 = vst [vmem:[#allocation98_spill] sm:$0xff] %v24965_v13  ;;  %v24983_v13 = vpop.permute.xlu1 %1069 }
 0x32d   : > { %v24967_v0 = vpop.trf.xlu0 }
 0x32e   : > { %29757 = vst [vmem:[#allocation99_spill] sm:$0xff] %v24967_v0  ;;  %v24985_v0 = vpop.permute.xlu1 %1065 }
 0x331   : > { %v24969_v61 = vpop.trf.xlu0 }
 0x332   : > { %29758 = vst [vmem:[#allocation100_spill] sm:$0xff] %v24969_v61  ;;  %v24987_v61 = vpop.permute.xlu1 %1077 }
 0x335   : > { %v24989_v40 = vpop.permute.xlu0 %1067 }
 0x336   : > { %21970 = vxpose.xlu0.b32.start [1/2] (short) (narrow) %v29759_v28, 32  ;;  %21994 = vxpose.xlu1.b32.start [1/2] (short) (narrow) %v29760_v56, 32  ;;  %v24991_v25 = vpop.permute.xlu1 %1073 }
 0x339   : > { %v24993_v26 = vpop.permute.xlu0 %1063 }
 0x33a   : > { %21972 = vxpose.xlu0.b32.end [2/2] (short) (narrow) %v29761_v51, 32  ;;  %21996 = vxpose.xlu1.b32.end [2/2] (short) (narrow) %v29762_v19, 32 }
 0x357   : > { %v24995_v36 = vpop.trf.xlu1  ;;  %v24997_v44 = vpop.trf.xlu0 }
 0x35b   : > { %v24999_v10 = vpop.trf.xlu1  ;;  %v25001_v60 = vpop.trf.xlu0 }
 0x35f   : > { %v25003_v27 = vpop.trf.xlu1  ;;  %v25005_v19 = vpop.trf.xlu0 }
 0x360   : > { %1101 = vrot.lane.b32.xlu1 %v24697_v3, %s24207_s22 }
 0x363   : > { %v21964_v28 = vpop.trf.xlu1  ;;  %v25009_v56 = vpop.trf.xlu0 }
 0x364   : > { %1097 = vrot.lane.b32.xlu1 %v24703_v23, %s24207_s22 }
 0x368   : > { %1109 = vrot.lane.b32.xlu1 %v24725_v15, %s24207_s22 }
 0x36b   : > { %1091 = vrot.lane.b32.xlu0 %v24657_v35, %s24207_s22 }
 0x36c   : > { %1105 = vrot.lane.b32.xlu1 %v24731_v31, %s24207_s22 }
 0x36f   : > { %1087 = vrot.lane.b32.xlu0 %v24663_v57, %s24207_s22 }
 0x373   : > { %1099 = vrot.lane.b32.xlu0 %v24685_v2, %s24207_s22  ;;  %v1086_v15 = vpop.permute.xlu1 %1085  ;;  %v29763_v2 = vpack.i.bf16 %v24689_v45, %v24695_v24 }
 0x374   : > { %v25030_v35 = vadd.f32 %v1086_v15, %v24426_v46  ;;  %v29766_v46 = vpack.i.bf16 %v24729_v4, %v24735_v34 }
 0x377   : > { %1095 = vrot.lane.b32.xlu0 %v24691_v50, %s24207_s22  ;;  %v29764_v50 = vpack.i.bf16 %v24717_v39, %v24723_v29 }
 0x37e   : > { %v25025_v3 = vpop.permute.xlu0 %1075 }
 0x382   : > { %v25027_v23 = vpop.permute.xlu0 %1071 }
 0x386   : > { %v1084_v51 = vpop.permute.xlu0 %1083 }
 0x387   : > { %v25033_v31 = vadd.f32 %v1084_v51, %v24420_v42  ;;  %v25049_v42 = vpop.permute.xlu1 %1081 }
 0x38a   : > { %v25053_v57 = vpop.permute.xlu0 %1079 }
 0x38b   : > { %v1094_v15 = vpop.permute.xlu1 %1093 }
 0x38f   : > { %v25051_v51 = vpop.permute.xlu1 %1089 }
 0x390   : > { %29767 = vst [vmem:[#allocation101_spill] sm:$0xff] %v25051_v51 }
 0x395   : > { %22018 = vxpose.xlu0.b32.start [1/2] (short) (narrow) %v29763_v2, 32  ;;  %22042 = vxpose.xlu1.b32.start [1/2] (short) (narrow) %v29764_v50, 32  ;;  %v29769_v2 = vld [vmem:[#allocation39_spill] sm:$0xff] }
 0x396   : > { %v29771_v50 = vld [vmem:[#allocation19_spill] sm:$0xff] }
 0x399   : > { %22020 = vxpose.xlu0.b32.end [2/2] (short) (narrow) %v29765_v47, 32  ;;  %22044 = vxpose.xlu1.b32.end [2/2] (short) (narrow) %v29766_v46, 32  ;;  %v29768_v47 = vld [vmem:[#allocation38_spill] sm:$0xff]  ;;  %v25080_v46 = vadd.f32 %v1094_v15, %v29771_v50  ;;  %v29785_v50 = vld [vmem:[#allocation52_spill] sm:$0xff] }
 0x39a   : > { %v29784_v15 = vld [vmem:[#allocation50_spill] sm:$0xff] }
 0x39b   : > { %29772 = vst [vmem:[#allocation38_spill] sm:$0xff] %v25080_v46  ;;  %v29786_v52 = vpack.i.bf16 %v29784_v15, %v29785_v50 }
 0x3b6   : > { %v25055_v24 = vpop.trf.xlu1  ;;  %v25057_v45 = vpop.trf.xlu0 }
 0x3ba   : > { %v25059_v29 = vpop.trf.xlu1  ;;  %v25061_v39 = vpop.trf.xlu0 }
 0x3be   : > { %v22007_v54 = vpop.trf.xlu1  ;;  %v21983_v55 = vpop.trf.xlu0 }
 0x3bf   : > { %1117 = vrot.lane.b32.xlu1 %v24755_v7, %s24207_s22  ;;  %v29770_v7 = vld [vmem:[#allocation41_spill] sm:$0xff] }
 0x3c2   : > { %v22012_v34 = vpop.trf.xlu1  ;;  %v21988_v4 = vpop.trf.xlu0 }
 0x3c3   : > { %1113 = vrot.lane.b32.xlu1 %v24761_v16, %s24207_s22  ;;  %v21992_v15 = vunpack.i.h.bf16 %v21988_v4 }
 0x3c7   : > { %1125 = vrot.lane.b32.xlu1 %v24787_v30, %s24207_s22  ;;  %v29773_v30 = vld [vmem:[#allocation18_spill] sm:$0xff] }
 0x3ca   : > { %1107 = vrot.lane.b32.xlu0 %v24713_v14, %s24207_s22 }
 0x3cb   : > { %1121 = vrot.lane.b32.xlu1 %v24795_v22, %s24207_s22  ;;  %v29775_v22 = vld [vmem:[#allocation40_spill] sm:$0xff] }
 0x3cc   : > { %v29777_v43 = vpack.i.bf16 %v29775_v22, %v29776_v63  ;;  %v21963_v22 = vunpack.i.h.bf16 %v25003_v27 }
 0x3ce   : > { %1103 = vrot.lane.b32.xlu0 %v29768_v47, %s24207_s22  ;;  %v29778_v47 = vld [vmem:[#allocation46_spill] sm:$0xff] }
 0x3d2   : > { %1115 = vrot.lane.b32.xlu0 %v29769_v2, %s24207_s22  ;;  %v29780_v2 = vpack.i.bf16 %v29778_v47, %v29779_v11  ;;  %v25101_v14 = vpop.permute.xlu1 %1101 }
 0x3d6   : > { %1111 = vrot.lane.b32.xlu0 %v29770_v7, %s24207_s22  ;;  %v29782_v7 = vld [vmem:[#allocation44_spill] sm:$0xff]  ;;  %v25104_v47 = vpop.permute.xlu1 %1097 }
 0x3d7   : > { %v29783_v51 = vpack.i.bf16 %v29781_v38, %v29782_v7  ;;  %29787 = vst [vmem:[#allocation41_spill] sm:$0xff] %v25104_v47  ;;  %v21987_v7 = vunpack.i.h.bf16 %v21983_v55  ;;  %v22016_v47 = vunpack.i.h.bf16 %v22012_v34 }
 0x3da   : > { %v25109_v50 = vpop.permute.xlu1 %1109 }
 0x3db   : > { %29789 = vst [vmem:[#allocation18_spill] sm:$0xff] %v25109_v50 }
 0x3dd   : > { %v1092_v16 = vpop.permute.xlu0 %1091 }
 0x3de   : > { %v25083_v20 = vadd.f32 %v1092_v16, %v29773_v30  ;;  %v21934_v16 = vunpack.i.h.bf16 %v25001_v60  ;;  %v21929_v30 = vunpack.i.h.bf16 %v24997_v44 }
 0x3e0   : > { %29774 = vst [vmem:[#allocation39_spill] sm:$0xff] %v25083_v20  ;;  %v22113_v63 = vpack.i.bf16 %v21934_v16, %v21929_v30  ;;  %v22233_v16 = vpack.i.bf16 %v21992_v15, %v21987_v7  ;;  %v21984_v30 = vunpack.i.l.bf16 %v21983_v55 }
 0x3e1   : > { %v25106_v38 = vpop.permute.xlu0 %1087 }
 0x3e2   : > { %29788 = vst [vmem:[#allocation19_spill] sm:$0xff] %v25106_v38  ;;  %v22013_v38 = vunpack.i.l.bf16 %v22012_v34 }
 0x3e5   : > { %v25111_v33 = vpop.permute.xlu0 %1099 }
 0x3f4   : > { %22066 = vxpose.xlu0.b32.start [1/2] (short) (narrow) %v29777_v43, 32  ;;  %22090 = vxpose.xlu1.b32.start [1/2] (short) (narrow) %v29780_v2, 32  ;;  %v21968_v43 = vunpack.i.h.bf16 %v21964_v28  ;;  %v21960_v2 = vunpack.i.l.bf16 %v25003_v27  ;;  %v22011_v27 = vunpack.i.h.bf16 %v22007_v54 }
 0x3f6   : > { %v22185_v11 = vpack.i.bf16 %v21968_v43, %v21963_v22  ;;  %v25113_v43 = vpop.permute.xlu1 %1105  ;;  %v25115_v22 = vpop.permute.xlu0 %1095 }
 0x3f7   : > { %29790 = vst [vmem:[#allocation40_spill] sm:$0xff] %v25113_v43  ;;  %29791 = vst [vmem:[#allocation42_spill] sm:$0xff] %v25115_v22 }
 0x3f8   : > { %22068 = vxpose.xlu0.b32.end [2/2] (short) (narrow) %v29783_v51, 32  ;;  %22092 = vxpose.xlu1.b32.end [2/2] (short) (narrow) %v29786_v52, 32  ;;  %v21965_v51 = vunpack.i.l.bf16 %v21964_v28 }
 0x3fa   : > { %v22209_v52 = vpack.i.bf16 %v21965_v51, %v21960_v2  ;;  %v22281_v2 = vpack.i.bf16 %v22016_v47, %v22011_v27 }
 0x401   : > { %22114 = vxpose.xlu1.b32.start.end [1/1] (short) (narrow) %v22113_v63, 16  ;;  %v21989_v63 = vunpack.i.l.bf16 %v21988_v4 }
 0x403   : > { %v22257_v28 = vpack.i.bf16 %v21989_v63, %v21984_v30 }
 0x406   : > { %22186 = vxpose.xlu1.b32.start.end [1/1] (short) (narrow) %v22185_v11, 16 }
 0x40b   : > { %22210 = vxpose.xlu1.b32.start.end [1/1] (short) (narrow) %v22209_v52, 16  ;;  %v22008_v52 = vunpack.i.l.bf16 %v22007_v54 }
 0x40d   : > { %v22305_v7 = vpack.i.bf16 %v22013_v38, %v22008_v52  ;;  %v29792_v38 = vld [vmem:[#allocation45_spill] sm:$0xff] }
 0x410   : > { %22234 = vxpose.xlu1.b32.start.end [1/1] (short) (narrow) %v22233_v16, 16 }
 0x415   : > { %v25117_v11 = vpop.trf.xlu0  ;;  %22258 = vxpose.xlu1.b32.start.end [1/1] (short) (narrow) %v22257_v28, 16  ;;  %v25119_v51 = vpop.trf.xlu1 }
 0x419   : > { %v25121_v32 = vpop.trf.xlu0  ;;  %v25123_v55 = vpop.trf.xlu1 }
 0x41a   : > { %22282 = vxpose.xlu1.b32.start.end [1/1] (short) (narrow) %v22281_v2, 16 }
 0x41d   : > { %v22031_v4 = vpop.trf.xlu0  ;;  %v22055_v15 = vpop.trf.xlu1 }
 0x41e   : > { %v22059_v30 = vunpack.i.h.bf16 %v22055_v15  ;;  %v22056_v63 = vunpack.i.l.bf16 %v22055_v15  ;;  %v22035_v22 = vunpack.i.h.bf16 %v22031_v4  ;;  %v22032_v2 = vunpack.i.l.bf16 %v22031_v4 }
 0x41f   : > { %22306 = vxpose.xlu1.b32.start.end [1/1] (short) (narrow) %v22305_v7, 16  ;;  %v29793_v7 = vld [vmem:[#allocation47_spill] sm:$0xff] }
 0x421   : > { %v22036_v16 = vpop.trf.xlu0  ;;  %v22060_v28 = vpop.trf.xlu1 }
 0x422   : > { %v22040_v43 = vunpack.i.h.bf16 %v22036_v16  ;;  %v22064_v49 = vunpack.i.h.bf16 %v22060_v28  ;;  %v22061_v59 = vunpack.i.l.bf16 %v22060_v28  ;;  %v22037_v34 = vunpack.i.l.bf16 %v22036_v16  ;;  %v29796_v16 = vld [vmem:[#allocation31_spill] sm:$0xff] }
 0x423   : > { %v29800_v28 = vld [vmem:[#allocation11_spill] sm:$0xff] }
 0x424   : > { %v22329_v47 = vpack.i.bf16 %v22040_v43, %v22035_v22  ;;  %v25125_v27 = vpack.i.bf16 %v22064_v49, %v22059_v30  ;;  %v25127_v54 = vpack.i.bf16 %v22061_v59, %v22056_v63  ;;  %v22358_v52 = vpack.i.bf16 %v22037_v34, %v22032_v2  ;;  %v29798_v30 = vld [vmem:[#allocation30_spill] sm:$0xff] }
 0x425   : > { %v21926_v49 = vunpack.i.l.bf16 %v24997_v44  ;;  %v21931_v59 = vunpack.i.l.bf16 %v25001_v60  ;;  %v29801_v2 = vld [vmem:[#allocation10_spill] sm:$0xff]  ;;  %v21944_v44 = vunpack.i.h.bf16 %v25009_v56  ;;  %v21939_v60 = vunpack.i.h.bf16 %v25005_v19 }
 0x426   : > { %22330 = vxpose.xlu1.b32.start.end [1/1] (short) (narrow) %v22329_v47, 16  ;;  %v1159_v47 = vadd.f32 %v24993_v26, %v29800_v28  ;;  %v21953_v26 = vunpack.i.h.bf16 %v24995_v36  ;;  %v21955_v28 = vunpack.i.l.bf16 %v24999_v10 }
 0x429   : > { %1123 = vrot.lane.b32.xlu0 %v29792_v38, %s24207_s22  ;;  %v1160_v38 = vadd.f32 %v24985_v0, %v29801_v2  ;;  %v21941_v0 = vunpack.i.l.bf16 %v25009_v56  ;;  %v21979_v56 = vunpack.i.l.bf16 %v25061_v39 }
 0x42b   : > { %22359 = vxpose.xlu1.b32.start.end [1/1] (short) (narrow) %v22358_v52, 16  ;;  %v22125_v52 = vpack.i.bf16 %v21931_v59, %v21926_v49  ;;  %v21936_v49 = vunpack.i.l.bf16 %v25005_v19 }
 0x42d   : > { %1119 = vrot.lane.b32.xlu0 %v29793_v7, %s24207_s22  ;;  %v22382_v7 = vpack.i.bf16 %v1160_v38, %v1159_v47  ;;  %v22161_v59 = vpack.i.bf16 %v21941_v0, %v21936_v49  ;;  %v21950_v47 = vunpack.i.l.bf16 %v24995_v36  ;;  %v21977_v38 = vunpack.i.h.bf16 %v25057_v45 }
 0x42e   : > { %v22001_v36 = vunpack.i.h.bf16 %v25055_v24  ;;  %v22030_v49 = vunpack.i.h.bf16 %v25121_v32 }
 0x42f   : > { %v22173_v2 = vpack.i.bf16 %v21955_v28, %v21950_v47  ;;  %v22025_v28 = vunpack.i.h.bf16 %v25117_v11 }
 0x431   : > { %v1118_v43 = vpop.permute.xlu1 %1117 }
 0x432   : > { %v25140_v4 = vadd.f32 %v1118_v43, %v29796_v16  ;;  %v22137_v43 = vpack.i.bf16 %v21944_v44, %v21939_v60  ;;  %v21974_v60 = vunpack.i.l.bf16 %v25057_v45 }
 0x434   : > { %29797 = vst [vmem:[#allocation43_spill] sm:$0xff] %v25140_v4  ;;  %v22221_v19 = vpack.i.bf16 %v21979_v56, %v21974_v60  ;;  %v22054_v56 = vunpack.i.h.bf16 %v25123_v55  ;;  %v29820_v4 = vld [vmem:[#allocation49_spill] sm:$0xff] }
 0x43c   : > { %v25133_v15 = vpop.permute.xlu0 %1107 }
 0x43d   : > { %29794 = vst [vmem:[#allocation46_spill] sm:$0xff] %v25133_v15 }
 0x440   : > { %v25135_v18 = vpop.permute.xlu0 %1103 }
 0x441   : > { %29795 = vst [vmem:[#allocation48_spill] sm:$0xff] %v25135_v18  ;;  %v29810_v18 = vld [vmem:[#allocation34_spill] sm:$0xff] }
 0x444   : > { %v1116_v22 = vpop.permute.xlu0 %1115 }
 0x445   : > { %v25143_v63 = vadd.f32 %v1116_v22, %v29798_v30  ;;  %v21958_v22 = vunpack.i.h.bf16 %v24999_v10  ;;  %v29802_v30 = vmov 0.0   ;;  %v22006_v10 = vunpack.i.h.bf16 %v25059_v29 }
 0x446   : > { %20425 = vmatprep.mubr.msk.bf16.mxu0 %vm24211_vm3, %v29802_v30  ;;  %20437 = vmatprep.mubr.msk.bf16.mxu1 %vm24211_vm3, %v29802_v30 }
 0x447   : > { %29799 = vst [vmem:[#allocation44_spill] sm:$0xff] %v25143_v63  ;;  %v22149_v16 = vpack.i.bf16 %v21958_v22, %v21953_v26  ;;  %v22245_v22 = vpack.i.bf16 %v22006_v10, %v22001_v36  ;;  %v22003_v26 = vunpack.i.l.bf16 %v25059_v29  ;;  %v22293_v29 = vpack.i.bf16 %v22030_v49, %v22025_v28  ;;  %v29819_v63 = vld [vmem:[#allocation53_spill] sm:$0xff] }
 0x448   : > { %v25176_v45 = vpop.permute.xlu0 %1111 }
 0x449   : > { %29805 = vst [vmem:[#allocation45_spill] sm:$0xff] %v25176_v45 }
 0x44b   : > { %22126 = vxpose.xlu0.b32.start.end [1/1] (short) (narrow) %v22125_v52, 16  ;;  %v21982_v52 = vunpack.i.h.bf16 %v25061_v39 }
 0x44d   : > { %22383 = vrot.lane.b32.xlu1 %v22382_v7, %s24210_s24  ;;  %v22197_v44 = vpack.i.bf16 %v21982_v52, %v21977_v38  ;;  %v25168_v7 = vpop.permute.xlu1 %1113  ;;  %v22022_v52 = vunpack.i.l.bf16 %v25117_v11 }
 0x44e   : > { %29803 = vst [vmem:[#allocation50_spill] sm:$0xff] %v25168_v7 }
 0x450   : > { %22138 = vxpose.xlu0.b32.start.end [1/1] (short) (narrow) %v22137_v43, 16 }
 0x451   : > { %v1126_v43 = vpop.permute.xlu1 %1125 }
 0x455   : > { %22150 = vxpose.xlu0.b32.start.end [1/1] (short) (narrow) %v22149_v16, 16  ;;  %v21998_v16 = vunpack.i.l.bf16 %v25055_v24  ;;  %v25174_v0 = vpop.permute.xlu1 %1121  ;;  %v22027_v24 = vunpack.i.l.bf16 %v25121_v32 }
 0x456   : > { %29804 = vst [vmem:[#allocation52_spill] sm:$0xff] %v25174_v0 }
 0x457   : > { %v22269_v39 = vpack.i.bf16 %v22003_v26, %v21998_v16 }
 0x45a   : > { %22162 = vxpose.xlu0.b32.start.end [1/1] (short) (narrow) %v22161_v59, 16 }
 0x45f   : > { %22174 = vxpose.xlu0.b32.start.end [1/1] (short) (narrow) %v22173_v2, 16 }
 0x464   : > { %22198 = vxpose.xlu0.b32.start.end [1/1] (short) (narrow) %v22197_v44, 16  ;;  %v22317_v44 = vpack.i.bf16 %v22027_v24, %v22022_v52 }
 0x469   : > { %22222 = vxpose.xlu0.b32.start.end [1/1] (short) (narrow) %v22221_v19, 16  ;;  %v22049_v19 = vunpack.i.h.bf16 %v25119_v51 }
 0x46b   : > { %v22341_v36 = vpack.i.bf16 %v22054_v56, %v22049_v19  ;;  %v29806_v19 = vld [vmem:[#allocation13_spill] sm:$0xff] }
 0x46e   : > { %22246 = vxpose.xlu0.b32.start.end [1/1] (short) (narrow) %v22245_v22, 16 }
 0x473   : > { %22270 = vxpose.xlu0.b32.start.end [1/1] (short) (narrow) %v22269_v39, 16 }
 0x474   : > { %v25179_v59 = vpop.trf.xlu1  ;;  %v25182_v47 = vpop.trf.xlu0 }
 0x475   : > { %v22097_v20 = vunpack.i.h.bf16 %v25179_v59 }
 0x476   : > { %22388 = vxpose.xlu1.b32.start.end [1/1] (short) (narrow) %v25125_v27, 16 }
 0x478   : > { %22294 = vxpose.xlu0.b32.start.end [1/1] (short) (narrow) %v22293_v29, 16  ;;  %v25186_v2 = vpop.trf.xlu1  ;;  %v25188_v38 = vpop.trf.xlu0 }
 0x47c   : > { %v25191_v60 = vpop.trf.xlu1  ;;  %v22079_v10 = vpop.trf.xlu0 }
 0x47d   : > { %22318 = vxpose.xlu0.b32.start.end [1/1] (short) (narrow) %v22317_v44, 16  ;;  %v22083_v22 = vunpack.i.h.bf16 %v22079_v10  ;;  %v22080_v39 = vunpack.i.l.bf16 %v22079_v10  ;;  %v29807_v10 = vld [vmem:[#allocation12_spill] sm:$0xff] }
 0x480   : > { %v25195_v27 = vpop.trf.xlu1  ;;  %v22084_v32 = vpop.trf.xlu0 }
 0x481   : > { %v22088_v26 = vunpack.i.h.bf16 %v22084_v32  ;;  %v22085_v11 = vunpack.i.l.bf16 %v22084_v32  ;;  %v1166_v32 = vadd.f32 %v24987_v61, %v29807_v10  ;;  %v29813_v10 = vld [vmem:[#allocation9_spill] sm:$0xff] }
 0x482   : > { %22342 = vxpose.xlu0.b32.start.end [1/1] (short) (narrow) %v22341_v36, 16  ;;  %v1165_v36 = vadd.f32 %v25025_v3, %v29806_v19  ;;  %v29812_v19 = vld [vmem:[#allocation8_spill] sm:$0xff] }
 0x483   : > { %v25199_v49 = vpack.i.bf16 %v22088_v26, %v22083_v22  ;;  %v25203_v29 = vpack.i.bf16 %v22085_v11, %v22080_v39 }
 0x484   : > { %v25197_v16 = vpop.trf.xlu1  ;;  %v22411_v26 = vpack.i.bf16 %v1166_v32, %v1165_v36  ;;  %v1161_v36 = vadd.f32 %v24989_v40, %v29812_v19  ;;  %v22051_v19 = vunpack.i.l.bf16 %v25123_v55 }
 0x488   : > { %v25201_v28 = vpop.trf.xlu1 }
 0x48c   : > { %v22187_v24 = vpop.trf.xlu1 }
 0x48d   : > { %v22191_v52 = vunpack.i.h.bf16 %v22187_v24  ;;  %v22188_v44 = vunpack.i.l.bf16 %v22187_v24  ;;  %v29808_v24 = vld [vmem:[#allocation36_spill] sm:$0xff] }
 0x490   : > { %v22192_v34 = vpop.trf.xlu1 }
 0x491   : > { %v22196_v0 = vunpack.i.h.bf16 %v22192_v34  ;;  %v22193_v56 = vunpack.i.l.bf16 %v22192_v34  ;;  %v25219_v34 = vadd.f32 %v1126_v43, %v29808_v24  ;;  %v1162_v43 = vadd.f32 %v24983_v13, %v29813_v10 }
 0x492   : > { %v22046_v13 = vunpack.i.l.bf16 %v25119_v51  ;;  %v22070_v51 = vunpack.i.l.bf16 %v25182_v47 }
 0x493   : > { %v25207_v7 = vpack.c.bf16 %v22193_v56, %v22188_v44  ;;  %v25209_v45 = vpack.c.bf16 %v22196_v0, %v22191_v52  ;;  %29809 = vst [vmem:[#allocation47_spill] sm:$0xff] %v25219_v34 }
 0x494   : > { %v25213_v22 = vpop.trf.xlu1 }
 0x498   : > { %22412 = vrot.lane.b32.xlu1 %v22411_v26, %s24210_s24  ;;  %v25216_v39 = vpop.trf.xlu1 }
 0x49b   : > { %v1124_v11 = vpop.permute.xlu0 %1123 }
 0x49c   : > { %v25222_v3 = vadd.f32 %v1124_v11, %v29810_v18  ;;  %v25224_v44 = vpop.trf.xlu1  ;;  %v22353_v18 = vpack.i.bf16 %v1162_v43, %v1161_v36  ;;  %v22073_v43 = vunpack.i.h.bf16 %v25182_v47  ;;  %v22107_v47 = vunpack.i.h.bf16 %v25191_v60 }
 0x49e   : > { %29811 = vst [vmem:[#allocation31_spill] sm:$0xff] %v25222_v3 }
 0x49f   : > { %v25256_v36 = vpop.permute.xlu0 %1119 }
 0x4a0   : > { %v25228_v61 = vpop.trf.xlu1  ;;  %29817 = vst [vmem:[#allocation13_spill] sm:$0xff] %v25256_v36  ;;  %v22075_v36 = vunpack.i.l.bf16 %v25188_v38 }
 0x4a4   : > { %v25230_v52 = vpop.trf.xlu1 }
 0x4a8   : > { %v25232_v56 = vpop.trf.xlu1 }
 0x4ac   : > { %v25238_v32 = vpop.trf.xlu1 }
 0x4af   : > { %22354 = vrot.lane.b32.xlu0 %v22353_v18, %s24210_s24  ;;  %v22078_v18 = vunpack.i.h.bf16 %v25188_v38  ;;  %v22104_v38 = vunpack.i.l.bf16 %v25191_v60 }
 0x4b0   : > { %v25241_v26 = vpop.trf.xlu1 }
 0x4b1   : > { %v22399_v6 = vpack.i.bf16 %v22078_v18, %v22073_v43 }
 0x4b4   : > { %v25243_v11 = vpop.trf.xlu1 }
 0x4b8   : > { %v25245_v24 = vpop.trf.xlu1 }
 0x4bc   : > { %v25247_v0 = vpop.trf.xlu1 }
 0x4bd   : > { %29814 = vst [vmem:[#allocation30_spill] sm:$0xff] %v25247_v0  ;;  %v22370_v0 = vpack.i.bf16 %v22051_v19, %v22046_v13  ;;  %v22428_v13 = vpack.i.bf16 %v22075_v36, %v22070_v51 }
 0x4c0   : > { %v25249_v3 = vpop.trf.xlu1 }
 0x4c1   : > { %29815 = vst [vmem:[#allocation11_spill] sm:$0xff] %v25249_v3  ;;  %22417 = vxpose.xlu1.b32.start.end [1/1] (short) (narrow) %v25127_v54, 16  ;;  %v21560_v3 = vunpack.i.h.bf16 %v29819_v63  ;;  %v21555_v54 = vunpack.i.h.bf16 %v29820_v4  ;;  %v22102_v4 = vunpack.i.h.bf16 %v25186_v2 }
 0x4c3   : > { %v6504_v50 = vpack.c.bf16 %v21560_v3, %v21555_v54  ;;  %v22112_v3 = vunpack.i.h.bf16 %v25195_v27 }
 0x4c4   : > { %v25252_v40 = vpop.trf.xlu1 }
 0x4c5   : > { %29816 = vst [vmem:[#allocation10_spill] sm:$0xff] %v25252_v40  ;;  %v9371_v63 = vsel %vm9319_vm2, %v6504_v50, 0 }
 0x4c8   : > { %v25258_v10 = vpop.trf.xlu1 }
 0x4c9   : > { %29818 = vst [vmem:[#allocation12_spill] sm:$0xff] %v25258_v10 }
 0x4cb   : > { %v22127_v34 = vpop.trf.xlu0 }
 0x4cc   : > { %v22128_v40 = vunpack.i.l.bf16 %v22127_v34 }
 0x4cd   : > { %22371 = vxpose.xlu0.b32.start.end [1/1] (short) (narrow) %v22370_v0, 16  ;;  %v22131_v0 = vunpack.i.h.bf16 %v22127_v34 }
 0x4cf   : > { %v22132_v55 = vpop.trf.xlu0 }
 0x4d0   : > { %v22133_v10 = vunpack.i.l.bf16 %v22132_v55  ;;  %v22136_v19 = vunpack.i.h.bf16 %v22132_v55  ;;  %v29824_v55 = vld [vmem:[#allocation54_spill] sm:$0xff] }
 0x4d2   : > { %v3751_v15 = vpack.c.bf16 %v22133_v10, %v22128_v40  ;;  %22400 = vxpose.xlu0.b32.start.end [1/1] (short) (narrow) %v22399_v6, 16  ;;  %v22109_v6 = vunpack.i.l.bf16 %v25195_v27  ;;  %v3752_v34 = vpack.c.bf16 %v22136_v19, %v22131_v0  ;;  %v22457_v40 = vpack.i.bf16 %v22102_v4, %v22097_v20  ;;  %v29822_v10 = vld [vmem:[#allocation15_spill] sm:$0xff]  ;;  %v29823_v20 = vld [vmem:[#allocation14_spill] sm:$0xff] }
 0x4d3   : > { %v25267_v46 = vpop.trf.xlu0  ;;  %v9465_v27 = vsel %vm9319_vm2, %v24857_v53, 0  ;;  %v1163_v43 = vadd.f32 %v25027_v23, %v29822_v10  ;;  %v1164_v18 = vadd.f32 %v24991_v25, %v29823_v20  ;;  %v21545_v53 = vunpack.i.l.bf16 %v29824_v55  ;;  %v29825_v23 = vld [vmem:[#allocation51_spill] sm:$0xff] }
 0x4d4   : > { %20426 = vmatmul.mubr.msk.bf16.vlgmr.msra.gmra.mrb[44].mxu0 %vm9319_vm2, %v3751_v15  ;;  %v25281_v15 = vpack.i.bf16 %v22112_v3, %v22107_v47  ;;  %v25283_v36 = vpack.i.bf16 %v22109_v6, %v22104_v38  ;;  %v21540_v4 = vunpack.i.l.bf16 %v29825_v23  ;;  %v21543_v0 = vunpack.i.h.bf16 %v29825_v23 }
 0x4d5   : > { %20430 = vmatpush3.bf16.xpose.msra.mxu0 %v9371_v63  ;;  %20431 = vmatprep.mubr.msk.bf16.mxu0 %vm24211_vm3, %v29802_v30  ;;  %v22440_v51 = vpack.i.bf16 %v1164_v18, %v1163_v43  ;;  %v21548_v63 = vunpack.i.h.bf16 %v29824_v55  ;;  %v29827_v18 = vld [vmem:[#allocation55_spill] sm:$0xff]  ;;  %v22116_v23 = vunpack.i.l.bf16 %v25197_v16 }
 0x4d6   : > { %20441 = vmatprep.subr.bf16.mxu0 %v29802_v30  ;;  %29821 = vst [vmem:[#allocation36_spill] sm:$0xff] %v25283_v36  ;;  %v6507_v3 = vpack.c.bf16 %v21545_v53, %v21540_v4  ;;  %v21564_v55 = vunpack.i.l.bf16 %v29827_v18  ;;  %v22119_v36 = vunpack.i.h.bf16 %v25197_v16  ;;  %v22124_v4 = vunpack.i.h.bf16 %v25201_v28 }
 0x4d7   : > { %v25279_v50 = vpop.trf.xlu0  ;;  %22429 = vxpose.xlu0.b32.start.end [1/1] (short) (narrow) %v22428_v13, 16  ;;  %v6508_v6 = vpack.c.bf16 %v21548_v63, %v21543_v0  ;;  %v22121_v0 = vunpack.i.l.bf16 %v25201_v28 }
 0x4d8   : > { %v9512_v63 = vsel %vm9319_vm2, %v6507_v3, 0  ;;  %v25324_v3 = vpop.permute.xlu1 %22383 }
 0x4d9   : > { %v9559_v53 = vsel %vm9319_vm2, %v6508_v6, 0  ;;  %v3755_v28 = vpack.c.bf16 %v22121_v0, %v22116_v23  ;;  %v21605_v6 = vunpack.i.l.bf16 %v24829_v8  ;;  %v21636_v0 = vunpack.i.l.bf16 %v24841_v5 }
 0x4db   : > { %v25285_v60 = vpop.trf.xlu0 }
 0x4dc   : > { %20432 = vmatmul.mubr.msk.bf16.vlgmr.msra.gmra.mrb[48].mxu0 %vm9319_vm2, %v3752_v34  ;;  %22458 = vxpose.xlu0.b32.start.end [1/1] (short) (narrow) %v22457_v40, 16  ;;  %v29826_v40 = vld [vmem:[#allocation56_spill] sm:$0xff] }
 0x4dd   : > { %20442 = vmatpush3.bf16.xpose.msra.mxu0 %v9465_v27  ;;  %20443 = vmatprep.mubr.msk.bf16.mxu0 %vm24211_vm3, %v29802_v30  ;;  %v21572_v27 = vunpack.i.h.bf16 %v29826_v40  ;;  %v21569_v10 = vunpack.i.l.bf16 %v29826_v40  ;;  %v21608_v40 = vunpack.i.h.bf16 %v24829_v8 }
 0x4de   : > { %20453 = vmatprep.subr.bf16.mxu0 %v29802_v30 }
 0x4df   : > { %v25297_v54 = vpop.trf.xlu0 }
 0x4e3   : > { %v22163_v13 = vpop.trf.xlu0  ;;  %22441 = vrot.lane.b32.xlu1 %v22440_v51, %s24210_s24  ;;  %v21567_v51 = vunpack.i.h.bf16 %v29827_v18  ;;  %v22140_v18 = vunpack.i.l.bf16 %v25267_v46 }
 0x4e4   : > { %v22167_v19 = vunpack.i.h.bf16 %v22163_v13  ;;  %v22164_v47 = vunpack.i.l.bf16 %v22163_v13 }
 0x4e7   : > { %v22168_v38 = vpop.trf.xlu0 }
 0x4e8   : > { %v22172_v25 = vunpack.i.h.bf16 %v22168_v38  ;;  %v22169_v34 = vunpack.i.l.bf16 %v22168_v38  ;;  %v3756_v38 = vpack.c.bf16 %v22124_v4, %v22119_v36  ;;  %v21641_v4 = vunpack.i.l.bf16 %v24845_v1 }
 0x4ea   : > { %v3753_v43 = vpack.c.bf16 %v22169_v34, %v22164_v47  ;;  %v3754_v20 = vpack.c.bf16 %v22172_v25, %v22167_v19  ;;  %v6509_v19 = vpack.c.bf16 %v21569_v10, %v21564_v55  ;;  %v6510_v47 = vpack.c.bf16 %v21572_v27, %v21567_v51  ;;  %v29828_v25 = vld [vmem:[#allocation57_spill] sm:$0xff] }
 0x4eb   : > { %v25310_v13 = vpop.trf.xlu0  ;;  %v21600_v34 = vunpack.i.l.bf16 %v29828_v25  ;;  %v22148_v10 = vunpack.i.h.bf16 %v25279_v50  ;;  %v22145_v55 = vunpack.i.l.bf16 %v25279_v50 }
 0x4ec   : > { %20438 = vmatmul.mubr.msk.bf16.vlgmr.msra.gmra.mrb[20].mxu1 %vm9319_vm2, %v3753_v43  ;;  %20444 = vmatmul.mubr.msk.bf16.vlgmr.msra.gmra.mrb[52].mxu0 %vm9319_vm2, %v3754_v20  ;;  %v21603_v43 = vunpack.i.h.bf16 %v29828_v25  ;;  %v22143_v20 = vunpack.i.h.bf16 %v25267_v46  ;;  %v9606_v27 = vsel %vm9319_vm2, %v6509_v19, 0  ;;  %v9653_v36 = vsel %vm9319_vm2, %v6510_v47, 0 }
 0x4ed   : > { %20448 = vmatpush3.bf16.xpose.msra.mxu1 %v9512_v63  ;;  %20454 = vmatpush3.bf16.xpose.msra.mxu0 %v9559_v53  ;;  %v6511_v8 = vpack.c.bf16 %v21605_v6, %v21600_v34  ;;  %v3757_v50 = vpack.c.bf16 %v22145_v55, %v22140_v18  ;;  %v22179_v25 = vunpack.i.h.bf16 %v25310_v13  ;;  %v22176_v34 = vunpack.i.l.bf16 %v25310_v13 }
 0x4ee   : > { %20449 = vmatprep.mubr.msk.bf16.mxu1 %vm24211_vm3, %v29802_v30  ;;  %20455 = vmatprep.mubr.msk.bf16.mxu0 %vm24211_vm3, %v29802_v30  ;;  %v6512_v46 = vpack.c.bf16 %v21608_v40, %v21603_v43  ;;  %v3758_v53 = vpack.c.bf16 %v22148_v10, %v22143_v20  ;;  %v22212_v55 = vunpack.i.l.bf16 %v25213_v22 }
 0x4ef   : > { %v22180_v16 = vpop.trf.xlu0  ;;  %20459 = vmatprep.subr.bf16.mxu1 %v29802_v30  ;;  %20465 = vmatprep.subr.bf16.mxu0 %v29802_v30  ;;  %v9700_v19 = vsel %vm9319_vm2, %v6511_v8, 0  ;;  %v22217_v8 = vunpack.i.l.bf16 %v25216_v39 }
 0x4f0   : > { %v9747_v47 = vsel %vm9319_vm2, %v6512_v46, 0  ;;  %v22184_v43 = vunpack.i.h.bf16 %v22180_v16  ;;  %v22181_v20 = vunpack.i.l.bf16 %v22180_v16  ;;  %v22215_v46 = vunpack.i.h.bf16 %v25213_v22 }
 0x4f1   : > { %v29829_v22 = vpack.i.bf16 %v25030_v35, %v25033_v31  ;;  %v22155_v35 = vunpack.i.h.bf16 %v25285_v60  ;;  %v22160_v31 = vunpack.i.h.bf16 %v25297_v54 }
 0x4f2   : > { %v3759_v16 = vpack.c.bf16 %v22181_v20, %v22176_v34  ;;  %v3760_v18 = vpack.c.bf16 %v22184_v43, %v22179_v25  ;;  %v22152_v43 = vunpack.i.l.bf16 %v25285_v60  ;;  %v22157_v20 = vunpack.i.l.bf16 %v25297_v54 }
 0x4f3   : > { %v25332_v63 = vpop.trf.xlu0  ;;  %v3764_v54 = vpack.c.bf16 %v22160_v31, %v22155_v35  ;;  %v10170_v35 = vsel %vm9319_vm2, %v24897_v17, 0  ;;  %v22268_v17 = vunpack.i.h.bf16 %v25232_v56 }
 0x4f4   : > { %20450 = vmatmul.mubr.msk.bf16.vlgmr.msra.gmra.mrb[24].mxu1 %vm9319_vm2, %v3755_v28  ;;  %20456 = vmatmul.mubr.msk.bf16.vlgmr.msra.gmra.mrb[56].mxu0 %vm9319_vm2, %v3756_v38  ;;  %v21644_v28 = vunpack.i.h.bf16 %v24845_v1  ;;  %v21639_v38 = vunpack.i.h.bf16 %v24841_v5  ;;  %v6513_v5 = vpack.c.bf16 %v21641_v4, %v21636_v0  ;;  %v3761_v4 = vpack.c.bf16 %v22217_v8, %v22212_v55 }
 0x4f5   : > { %20460 = vmatpush3.bf16.xpose.msra.mxu1 %v9606_v27  ;;  %20466 = vmatpush3.bf16.xpose.msra.mxu0 %v9653_v36 }
 0x4f6   : > { %20461 = vmatprep.mubr.msk.bf16.mxu1 %vm24211_vm3, %v29802_v30  ;;  %20467 = vmatprep.mubr.msk.bf16.mxu0 %vm24211_vm3, %v29802_v30  ;;  %v25344_v51 = vpop.trf.xlu1  ;;  %v6514_v13 = vpack.c.bf16 %v21644_v28, %v21639_v38  ;;  %v9794_v36 = vsel %vm9319_vm2, %v6513_v5, 0  ;;  %v29831_v38 = vld [vmem:[#allocation58_spill] sm:$0xff] }
 0x4f7   : > { %v25346_v23 = vpop.trf.xlu0  ;;  %20471 = vmatprep.subr.bf16.mxu1 %v29802_v30  ;;  %20477 = vmatprep.subr.bf16.mxu0 %v29802_v30  ;;  %v21612_v25 = vunpack.i.l.bf16 %v29831_v38  ;;  %v21615_v5 = vunpack.i.h.bf16 %v29831_v38 }
 0x4f8   : > { %v9841_v10 = vsel %vm9319_vm2, %v6514_v13, 0 }
 0x4fa   : > { %v25356_v6 = vpop.trf.xlu1 }
 0x4fb   : > { %v25360_v40 = vpop.trf.xlu0 }
 0x4fc   : > { %20462 = vmatmul.mubr.msk.bf16.vlgmr.msra.gmra.mrb[28].mxu1 %vm9319_vm2, %v3757_v50  ;;  %20468 = vmatmul.mubr.msk.bf16.vlgmr.msra.gmra.mrb[60].mxu0 %vm9319_vm2, %v3758_v53  ;;  %v22220_v50 = vunpack.i.h.bf16 %v25216_v39 }
 0x4fd   : > { %20472 = vmatpush3.bf16.xpose.msra.mxu1 %v9700_v19  ;;  %20478 = vmatpush3.bf16.xpose.msra.mxu0 %v9747_v47  ;;  %v9888_v19 = vsel %vm9319_vm2, %v24881_v9, 0  ;;  %v29830_v47 = vld [vmem:[#allocation60_spill] sm:$0xff]  ;;  %v9935_v9 = vsel %vm9319_vm2, %v24883_v37, 0 }
 0x4fe   : > { %20473 = vmatprep.mubr.msk.bf16.mxu1 %vm24211_vm3, %v29802_v30  ;;  %20479 = vmatprep.mubr.msk.bf16.mxu0 %vm24211_vm3, %v29802_v30  ;;  %v3762_v0 = vpack.c.bf16 %v22220_v50, %v22215_v46  ;;  %v21617_v28 = vunpack.i.l.bf16 %v29830_v47  ;;  %v21620_v34 = vunpack.i.h.bf16 %v29830_v47 }
 0x4ff   : > { %v25368_v1 = vpop.trf.xlu0  ;;  %20483 = vmatprep.subr.bf16.mxu1 %v29802_v30  ;;  %20489 = vmatprep.subr.bf16.mxu0 %v29802_v30 }
 0x500   : > { %v6517_v60 = vpack.c.bf16 %v21617_v28, %v21612_v25  ;;  %v6518_v37 = vpack.c.bf16 %v21620_v34, %v21615_v5  ;;  %v22224_v28 = vunpack.i.l.bf16 %v25360_v40  ;;  %v22229_v38 = vunpack.i.l.bf16 %v25368_v1  ;;  %v29834_v5 = vld [vmem:[#allocation61_spill] sm:$0xff] }
 0x501   : > { %v22227_v25 = vunpack.i.h.bf16 %v25360_v40  ;;  %v22232_v34 = vunpack.i.h.bf16 %v25368_v1  ;;  %v22094_v40 = vunpack.i.l.bf16 %v25179_v59  ;;  %v22265_v59 = vunpack.i.l.bf16 %v25232_v56 }
 0x502   : > { %v9982_v8 = vsel %vm9319_vm2, %v6517_v60, 0  ;;  %v10029_v50 = vsel %vm9319_vm2, %v6518_v37, 0  ;;  %v29835_v60 = vld [vmem:[#allocation59_spill] sm:$0xff]  ;;  %v21632_v37 = vunpack.i.h.bf16 %v29834_v5 }
 0x503   : > { %v25372_v27 = vpop.trf.xlu0  ;;  %v3768_v1 = vpack.c.bf16 %v22232_v34, %v22227_v25 }
 0x504   : > { %20474 = vmatmul.mubr.msk.bf16.vlgmr.msra.gmra.mrb[32].mxu1 %vm9319_vm2, %v3759_v16  ;;  %20480 = vmatmul.mubr.msk.bf16.vlgmr.msra.gmra.mrb[64].mxu0 %vm9319_vm2, %v3760_v18  ;;  %v29832_v16 = vld [vmem:[#allocation63_spill] sm:$0xff] }
 0x505   : > { %20484 = vmatpush3.bf16.xpose.msra.mxu1 %v9794_v36  ;;  %20490 = vmatpush3.bf16.xpose.msra.mxu0 %v9841_v10  ;;  %v21653_v18 = vunpack.i.l.bf16 %v29832_v16  ;;  %v29833_v10 = vld [vmem:[#allocation62_spill] sm:$0xff]  ;;  %v21656_v46 = vunpack.i.h.bf16 %v29832_v16  ;;  %v22260_v16 = vunpack.i.l.bf16 %v25230_v52 }
 0x506   : > { %20485 = vmatprep.mubr.msk.bf16.mxu1 %vm24211_vm3, %v29802_v30  ;;  %20491 = vmatprep.mubr.msk.bf16.mxu0 %vm24211_vm3, %v29802_v30  ;;  %v21648_v55 = vunpack.i.l.bf16 %v29833_v10 }
 0x507   : > { %v25386_v53 = vpop.trf.xlu0  ;;  %20495 = vmatprep.subr.bf16.mxu1 %v29802_v30  ;;  %20501 = vmatprep.subr.bf16.mxu0 %v29802_v30 }
 0x509   : > { %22470 = vrot.lane.b32.xlu0 %v29829_v22, %s24210_s24 }
 0x50b   : > { %v25394_v39 = vpop.trf.xlu0 }
 0x50c   : > { %22446 = vxpose.xlu1.b32.start.end [1/1] (short) (narrow) %v25199_v49, 16  ;;  %20486 = vmatmul.mubr.msk.bf16.vlgmr.msra.gmra.mrb[36].mxu1 %vm9319_vm2, %v3761_v4  ;;  %v3763_v49 = vpack.c.bf16 %v22157_v20, %v22152_v43 }
 0x50d   : > { %20492 = vmatmul.mubr.msk.bf16.vlgmr.msra.gmra.mrb[68].mxu0 %vm9319_vm2, %v3762_v0  ;;  %20496 = vmatpush3.bf16.xpose.msra.mxu1 %v9888_v19  ;;  %v6519_v0 = vpack.c.bf16 %v21653_v18, %v21648_v55  ;;  %v21627_v18 = vunpack.i.h.bf16 %v29835_v60 }
 0x50e   : > { %20502 = vmatpush3.bf16.xpose.msra.mxu0 %v9935_v9  ;;  %20497 = vmatprep.mubr.msk.bf16.mxu1 %vm24211_vm3, %v29802_v30  ;;  %v10217_v9 = vsel %vm9319_vm2, %v24899_v62, 0 }
 0x50f   : > { %v25413_v13 = vpop.trf.xlu0  ;;  %20503 = vmatprep.mubr.msk.bf16.mxu0 %vm24211_vm3, %v29802_v30  ;;  %20507 = vmatprep.subr.bf16.mxu1 %v29802_v30  ;;  %v10076_v47 = vsel %vm9319_vm2, %v6519_v0, 0  ;;  %v29837_v0 = vld [vmem:[#allocation64_spill] sm:$0xff] }
 0x510   : > { %20513 = vmatprep.subr.bf16.mxu0 %v29802_v30  ;;  %v21663_v34 = vunpack.i.h.bf16 %v29837_v0 }
 0x511   : > { %22475 = vxpose.xlu1.b32.start.end [1/1] (short) (narrow) %v25203_v29, 16  ;;  %v21651_v29 = vunpack.i.h.bf16 %v29833_v10 }
 0x513   : > { %v25421_v36 = vpop.trf.xlu0  ;;  %v6520_v22 = vpack.c.bf16 %v21656_v46, %v21651_v29  ;;  %v29836_v46 = vld [vmem:[#allocation65_spill] sm:$0xff] }
 0x514   : > { %20498 = vmatmul.mubr.msk.bf16.vlgmr.msra.gmra.mrb[40].mxu1 %vm9319_vm2, %v3763_v49  ;;  %v21629_v49 = vunpack.i.l.bf16 %v29834_v5  ;;  %v21665_v29 = vunpack.i.l.bf16 %v29836_v46 }
 0x515   : > { %20504 = vmatmul.mubr.msk.bf16.vlgmr.msra.gmra.mrb[72].mxu0 %vm9319_vm2, %v3764_v54  ;;  %20508 = vmatpush3.bf16.xpose.msra.mxu1 %v9982_v8  ;;  %v10123_v43 = vsel %vm9319_vm2, %v6520_v22, 0  ;;  %v21624_v54 = vunpack.i.l.bf16 %v29835_v60  ;;  %v6524_v8 = vpack.c.bf16 %v21632_v37, %v21627_v18  ;;  %v21660_v22 = vunpack.i.l.bf16 %v29837_v0 }
 0x516   : > { %20514 = vmatpush3.bf16.xpose.msra.mxu0 %v10029_v50  ;;  %20509 = vmatprep.mubr.msk.bf16.mxu1 %vm24211_vm3, %v29802_v30  ;;  %v21668_v50 = vunpack.i.h.bf16 %v29836_v46  ;;  %v22241_v18 = vunpack.i.l.bf16 %v25228_v61  ;;  %v22244_v46 = vunpack.i.h.bf16 %v25228_v61 }
 0x517   : > { %v25432_v4 = vpop.trf.xlu0  ;;  %20515 = vmatprep.mubr.msk.bf16.mxu0 %vm24211_vm3, %v29802_v30  ;;  %20519 = vmatprep.subr.bf16.mxu1 %v29802_v30  ;;  %v6523_v55 = vpack.c.bf16 %v21629_v49, %v21624_v54  ;;  %v10311_v5 = vsel %vm9319_vm2, %v6524_v8, 0  ;;  %v29839_v54 = vld [vmem:[#allocation17_spill] sm:$0xff]  ;;  %v22239_v8 = vunpack.i.h.bf16 %v25224_v44 }
 0x518   : > { %20525 = vmatprep.subr.bf16.mxu0 %v29802_v30 }
 0x519   : > { %v10264_v25 = vsel %vm9319_vm2, %v6523_v55, 0  ;;  %v3774_v61 = vpack.c.bf16 %v22244_v46, %v22239_v8  ;;  %v10687_v8 = vsel %vm9319_vm2, %v24935_v58, 0 }
 0x51b   : > { %v25438_v19 = vpop.trf.xlu0 }
 0x51c   : > { %20510 = vmatmul.mubr.msk.bf16.vlgmr.msra.gmra.mrb[44].mxu1 %vm9319_vm2, %v25207_v7  ;;  %v3767_v7 = vpack.c.bf16 %v22229_v38, %v22224_v28  ;;  %v22385_v28 = vunpack.i.l.bf16 %v25324_v3 }
 0x51d   : > { %20516 = vmatmul.mubr.msk.bf16.vlgmr.msra.gmra.mrb[76].mxu0 %vm9319_vm2, %v25209_v45  ;;  %20520 = vmatpush3.bf16.xpose.msra.mxu1 %v10076_v47  ;;  %v22099_v45 = vunpack.i.l.bf16 %v25186_v2  ;;  %v22263_v2 = vunpack.i.h.bf16 %v25230_v52  ;;  %v3769_v52 = vpack.c.bf16 %v22265_v59, %v22260_v16  ;;  %v22386_v47 = vunpack.i.h.bf16 %v25324_v3 }
 0x51e   : > { %20526 = vmatpush3.bf16.xpose.msra.mxu0 %v10123_v43  ;;  %20521 = vmatprep.mubr.msk.bf16.mxu1 %vm24211_vm3, %v29802_v30  ;;  %v22200_v43 = vunpack.i.l.bf16 %v25332_v63  ;;  %v22208_v3 = vunpack.i.h.bf16 %v25346_v23  ;;  %v6526_v59 = vpack.c.bf16 %v21668_v50, %v21663_v34 }
 0x51f   : > { %v25452_v20 = vpop.trf.xlu0  ;;  %20527 = vmatprep.mubr.msk.bf16.mxu0 %vm24211_vm3, %v29802_v30  ;;  %20531 = vmatprep.subr.bf16.mxu1 %v29802_v30  ;;  %v22486_v62 = vpack.i.bf16 %v22099_v45, %v22094_v40  ;;  %v3770_v56 = vpack.c.bf16 %v22268_v17, %v22263_v2  ;;  %v29840_v2 = vld [vmem:[#allocation67_spill] sm:$0xff] }
 0x520   : > { %20537 = vmatprep.subr.bf16.mxu0 %v29802_v30  ;;  %v21704_v17 = vunpack.i.h.bf16 %v29840_v2  ;;  %v10405_v50 = vsel %vm9319_vm2, %v6526_v59, 0 }
 0x523   : > { %v25462_v31 = vpop.trf.xlu0 }
 0x524   : > { %20522 = vmatmul.mubr.msk.bf16.vlgmr.msra.gmra.mrb[48].mxu1 %vm9319_vm2, %v3767_v7  ;;  %v22205_v7 = vunpack.i.l.bf16 %v25346_v23  ;;  %v6525_v23 = vpack.c.bf16 %v21665_v29, %v21660_v22 }
 0x525   : > { %20528 = vmatmul.mubr.msk.bf16.vlgmr.msra.gmra.mrb[80].mxu0 %vm9319_vm2, %v3768_v1  ;;  %20532 = vmatpush3.bf16.xpose.msra.mxu1 %v10170_v35  ;;  %v29838_v1 = vld [vmem:[#allocation16_spill] sm:$0xff] }
 0x526   : > { %20538 = vmatpush3.bf16.xpose.msra.mxu0 %v10217_v9  ;;  %20533 = vmatprep.mubr.msk.bf16.mxu1 %vm24211_vm3, %v29802_v30  ;;  %v1167_v35 = vadd.f32 %v25053_v57, %v29838_v1  ;;  %v22203_v9 = vunpack.i.h.bf16 %v25332_v63  ;;  %v1168_v57 = vadd.f32 %v25049_v42, %v29839_v54  ;;  %v3771_v63 = vpack.c.bf16 %v22205_v7, %v22200_v43  ;;  %v25538_v7 = vpop.permute.xlu1 %22412 }
 0x527   : > { %v25478_v10 = vpop.trf.xlu0  ;;  %22487 = vxpose.xlu0.b32.start.end [1/1] (short) (narrow) %v22486_v62, 16  ;;  %20539 = vmatprep.mubr.msk.bf16.mxu0 %vm24211_vm3, %v29802_v30  ;;  %v21701_v62 = vunpack.i.l.bf16 %v29840_v2  ;;  %v22236_v42 = vunpack.i.l.bf16 %v25224_v44  ;;  %v10358_v55 = vsel %vm9319_vm2, %v6525_v23, 0  ;;  %v21732_v43 = vunpack.i.l.bf16 %v24879_v41  ;;  %v29843_v2 = vld [vmem:[#allocation68_spill] sm:$0xff] }
 0x528   : > { %20543 = vmatprep.subr.bf16.mxu1 %v29802_v30  ;;  %20549 = vmatprep.subr.bf16.mxu0 %v29802_v30  ;;  %v22498_v37 = vpack.i.bf16 %v1168_v57, %v1167_v35  ;;  %v3772_v16 = vpack.c.bf16 %v22208_v3, %v22203_v9  ;;  %v21735_v1 = vunpack.i.h.bf16 %v24879_v41  ;;  %v22313_v41 = vunpack.i.l.bf16 %v25245_v24 }
 0x529   : > { %v3773_v0 = vpack.c.bf16 %v22241_v18, %v22236_v42  ;;  %v22311_v57 = vunpack.i.h.bf16 %v25243_v11  ;;  %v22253_v42 = vunpack.i.l.bf16 %v25386_v53  ;;  %v10640_v18 = vsel %vm9319_vm2, %v24933_v21, 0 }
 0x52a   : > { %v21711_v46 = vunpack.i.h.bf16 %v29843_v2 }
 0x52b   : > { %v22355_v38 = vpop.permute.xlu0 %22354 }
 0x52c   : > { %v22357_v40 = vunpack.i.h.bf16 %v22355_v38  ;;  %v22356_v45 = vunpack.i.l.bf16 %v22355_v38  ;;  %20534 = vmatmul.mubr.msk.bf16.vlgmr.msra.gmra.mrb[52].mxu1 %vm9319_vm2, %v3769_v52  ;;  %v29841_v52 = vld [vmem:[#allocation66_spill] sm:$0xff]  ;;  %v22272_v38 = vunpack.i.l.bf16 %v25394_v39 }
 0x52d   : > { %20540 = vmatmul.mubr.msk.bf16.vlgmr.msra.gmra.mrb[84].mxu0 %vm9319_vm2, %v3770_v56  ;;  %20544 = vmatpush3.bf16.xpose.msra.mxu1 %v10264_v25  ;;  %v21696_v56 = vunpack.i.l.bf16 %v29841_v52  ;;  %v21699_v29 = vunpack.i.h.bf16 %v29841_v52  ;;  %v22277_v25 = vunpack.i.l.bf16 %v25413_v13  ;;  %v22251_v52 = vunpack.i.h.bf16 %v25372_v27 }
 0x52e   : > { %v25500_v49 = vpack.i.bf16 %v22357_v40, %v22386_v47  ;;  %v25502_v60 = vpack.i.bf16 %v22356_v45, %v22385_v28  ;;  %20550 = vmatpush3.bf16.xpose.msra.mxu0 %v10311_v5  ;;  %20545 = vmatprep.mubr.msk.bf16.mxu1 %vm24211_vm3, %v29802_v30  ;;  %v21740_v47 = vunpack.i.h.bf16 %v24887_v12  ;;  %v21737_v28 = vunpack.i.l.bf16 %v24887_v12 }
 0x52f   : > { %20551 = vmatprep.mubr.msk.bf16.mxu0 %vm24211_vm3, %v29802_v30  ;;  %20555 = vmatprep.subr.bf16.mxu1 %v29802_v30  ;;  %v6527_v44 = vpack.c.bf16 %v21701_v62, %v21696_v56  ;;  %v6528_v22 = vpack.c.bf16 %v21704_v17, %v21699_v29  ;;  %v22275_v40 = vunpack.i.h.bf16 %v25394_v39  ;;  %v22280_v45 = vunpack.i.h.bf16 %v25413_v13 }
 0x530   : > { %20561 = vmatprep.subr.bf16.mxu0 %v29802_v30  ;;  %v3775_v35 = vpack.c.bf16 %v22277_v25, %v22272_v38  ;;  %v6529_v39 = vpack.c.bf16 %v21737_v28, %v21732_v43  ;;  %v6530_v9 = vpack.c.bf16 %v21740_v47, %v21735_v1  ;;  %v22308_v5 = vunpack.i.l.bf16 %v25243_v11  ;;  %v29845_v28 = vld [vmem:[#allocation23_spill] sm:$0xff]  ;;  %v29846_v43 = vld [vmem:[#allocation38_spill] sm:$0xff] }
 0x531   : > { %v10452_v34 = vsel %vm9319_vm2, %v6527_v44, 0  ;;  %v10499_v12 = vsel %vm9319_vm2, %v6528_v22, 0  ;;  %v3776_v13 = vpack.c.bf16 %v22280_v45, %v22275_v40  ;;  %v21708_v17 = vunpack.i.l.bf16 %v29843_v2  ;;  %v29847_v40 = vld [vmem:[#allocation39_spill] sm:$0xff] }
 0x532   : > { %v10546_v54 = vsel %vm9319_vm2, %v6529_v39, 0  ;;  %v10593_v23 = vsel %vm9319_vm2, %v6530_v9, 0  ;;  %v22248_v62 = vunpack.i.l.bf16 %v25372_v27  ;;  %v22256_v56 = vunpack.i.h.bf16 %v25386_v53 }
 0x533   : > { %22499 = vrot.lane.b32.xlu1 %v22498_v37, %s24210_s24  ;;  %v21749_v22 = vunpack.i.l.bf16 %v24889_v48  ;;  %v1178_v38 = vadd.f32 %v25101_v14, %v29845_v28  ;;  %v22284_v25 = vunpack.i.l.bf16 %v25238_v32  ;;  %v29848_v45 = vpack.i.bf16 %v29846_v43, %v29847_v40  ;;  %v29862_v43 = vld [vmem:[#allocation12_spill] sm:$0xff] }
 0x534   : > { %20546 = vmatmul.mubr.msk.bf16.vlgmr.msra.gmra.mrb[56].mxu1 %vm9319_vm2, %v3771_v63  ;;  %v22316_v63 = vunpack.i.h.bf16 %v25245_v24  ;;  %v29842_v24 = vld [vmem:[#allocation70_spill] sm:$0xff]  ;;  %v3779_v27 = vpack.c.bf16 %v22253_v42, %v22248_v62  ;;  %v3780_v53 = vpack.c.bf16 %v22256_v56, %v22251_v52  ;;  %v22292_v1 = vunpack.i.h.bf16 %v25241_v26 }
 0x535   : > { %20552 = vmatmul.mubr.msk.bf16.vlgmr.msra.gmra.mrb[88].mxu0 %vm9319_vm2, %v3772_v16  ;;  %20556 = vmatpush3.bf16.xpose.msra.mxu1 %v10358_v55  ;;  %v3777_v16 = vpack.c.bf16 %v22313_v41, %v22308_v5  ;;  %v21713_v59 = vunpack.i.l.bf16 %v29842_v24  ;;  %v21716_v55 = vunpack.i.h.bf16 %v29842_v24  ;;  %v29854_v24 = vld [vmem:[#allocation79_spill] sm:$0xff]  ;;  %v22323_v56 = vunpack.i.h.bf16 %v25438_v19 }
 0x536   : > { %20562 = vmatpush3.bf16.xpose.msra.mxu0 %v10405_v50  ;;  %20557 = vmatprep.mubr.msk.bf16.mxu1 %vm24211_vm3, %v29802_v30  ;;  %v3778_v11 = vpack.c.bf16 %v22316_v63, %v22311_v57  ;;  %v21785_v2 = vunpack.i.l.bf16 %v29854_v24  ;;  %v22366_v40 = vunpack.i.l.bf16 %v29862_v43 }
 0x537   : > { %20563 = vmatprep.mubr.msk.bf16.mxu0 %vm24211_vm3, %v29802_v30  ;;  %20567 = vmatprep.subr.bf16.mxu1 %v29802_v30  ;;  %v6533_v21 = vpack.c.bf16 %v21713_v59, %v21708_v17  ;;  %v6534_v29 = vpack.c.bf16 %v21716_v55, %v21711_v46  ;;  %v21788_v59 = vunpack.i.h.bf16 %v29854_v24  ;;  %v29855_v17 = vld [vmem:[#allocation77_spill] sm:$0xff]  ;;  %v22325_v55 = vunpack.i.l.bf16 %v25452_v20 }
 0x538   : > { %20573 = vmatprep.subr.bf16.mxu0 %v29802_v30  ;;  %v21780_v62 = vunpack.i.l.bf16 %v29855_v17 }
 0x539   : > { %v10734_v47 = vsel %vm9319_vm2, %v6533_v21, 0  ;;  %v10781_v14 = vsel %vm9319_vm2, %v6534_v29, 0  ;;  %v21783_v21 = vunpack.i.h.bf16 %v29855_v17 }
 0x53b   : > { %v6538_v29 = vpack.c.bf16 %v21788_v59, %v21783_v21  ;;  %v22296_v59 = vunpack.i.l.bf16 %v25421_v36  ;;  %v29869_v21 = vld [vmem:[#allocation80_spill] sm:$0xff] }
 0x53c   : > { %20558 = vmatmul.mubr.msk.bf16.vlgmr.msra.gmra.mrb[60].mxu1 %vm9319_vm2, %v3773_v0  ;;  %v29844_v0 = vld [vmem:[#allocation22_spill] sm:$0xff] }
 0x53d   : > { %20564 = vmatmul.mubr.msk.bf16.vlgmr.msra.gmra.mrb[92].mxu0 %vm9319_vm2, %v3774_v61  ;;  %20568 = vmatpush3.bf16.xpose.msra.mxu1 %v10452_v34  ;;  %v1177_v44 = vadd.f32 %v25111_v33, %v29844_v0  ;;  %v21752_v61 = vunpack.i.h.bf16 %v24889_v48  ;;  %v22289_v34 = vunpack.i.l.bf16 %v25241_v26  ;;  %v29849_v33 = vld [vmem:[#allocation72_spill] sm:$0xff]  ;;  %v22287_v48 = vunpack.i.h.bf16 %v25238_v32  ;;  %v29850_v32 = vld [vmem:[#allocation26_spill] sm:$0xff] }
 0x53e   : > { %20574 = vmatpush3.bf16.xpose.msra.mxu0 %v10499_v12  ;;  %20569 = vmatprep.mubr.msk.bf16.mxu1 %vm24211_vm3, %v29802_v30  ;;  %v21744_v12 = vunpack.i.l.bf16 %v29849_v33  ;;  %v29851_v26 = vld [vmem:[#allocation46_spill] sm:$0xff] }
 0x53f   : > { %20575 = vmatprep.mubr.msk.bf16.mxu0 %vm24211_vm3, %v29802_v30  ;;  %20579 = vmatprep.subr.bf16.mxu1 %v29802_v30  ;;  %v1181_v9 = vadd.f32 %v29851_v26, %v29850_v32  ;;  %v3781_v5 = vpack.c.bf16 %v22289_v34, %v22284_v25  ;;  %v29861_v25 = vld [vmem:[#allocation10_spill] sm:$0xff]  ;;  %v29864_v32 = vld [vmem:[#allocation47_spill] sm:$0xff] }
 0x540   : > { %20585 = vmatprep.subr.bf16.mxu0 %v29802_v30  ;;  %v6535_v41 = vpack.c.bf16 %v21749_v22, %v21744_v12  ;;  %v22361_v34 = vunpack.i.l.bf16 %v29861_v25  ;;  %v29865_v26 = vld [vmem:[#allocation31_spill] sm:$0xff] }
 0x541   : > { %v25551_v3 = vpop.trf.xlu1 }
 0x542   : > { %v10828_v52 = vsel %vm9319_vm2, %v6535_v41, 0 }
 0x544   : > { %20570 = vmatmul.mubr.msk.bf16.vlgmr.msra.gmra.mrb[64].mxu1 %vm9319_vm2, %v3775_v35  ;;  %v21747_v35 = vunpack.i.h.bf16 %v29849_v33  ;;  %v29863_v33 = vld [vmem:[#allocation69_spill] sm:$0xff] }
 0x545   : > { %20576 = vmatmul.mubr.msk.bf16.vlgmr.msra.gmra.mrb[96].mxu0 %vm9319_vm2, %v3776_v13  ;;  %20580 = vmatpush3.bf16.xpose.msra.mxu1 %v10546_v54  ;;  %v25561_v37 = vpop.trf.xlu1  ;;  %v22537_v13 = vpack.i.bf16 %v1178_v38, %v1177_v44  ;;  %v3782_v54 = vpack.c.bf16 %v22292_v1, %v22287_v48  ;;  %v29857_v44 = vld [vmem:[#allocation43_spill] sm:$0xff]  ;;  %v21720_v12 = vunpack.i.l.bf16 %v29863_v33  ;;  %v22364_v48 = vunpack.i.h.bf16 %v29861_v25 }
 0x546   : > { %20586 = vmatpush3.bf16.xpose.msra.mxu0 %v10593_v23  ;;  %20581 = vmatprep.mubr.msk.bf16.mxu1 %vm24211_vm3, %v29802_v30  ;;  %v6536_v57 = vpack.c.bf16 %v21752_v61, %v21747_v35  ;;  %v29852_v23 = vld [vmem:[#allocation27_spill] sm:$0xff]  ;;  %v29858_v61 = vld [vmem:[#allocation44_spill] sm:$0xff]  ;;  %v22369_v1 = vunpack.i.h.bf16 %v29862_v43  ;;  %v21723_v35 = vunpack.i.h.bf16 %v29863_v33 }
 0x547   : > { %20587 = vmatprep.mubr.msk.bf16.mxu0 %vm24211_vm3, %v29802_v30  ;;  %20591 = vmatprep.subr.bf16.mxu1 %v29802_v30  ;;  %v29859_v22 = vpack.i.bf16 %v29857_v44, %v29858_v61 }
 0x548   : > { %20597 = vmatprep.subr.bf16.mxu0 %v29802_v30  ;;  %v10875_v46 = vsel %vm9319_vm2, %v6536_v57, 0 }
 0x54c   : > { %20582 = vmatmul.mubr.msk.bf16.vlgmr.msra.gmra.mrb[68].mxu1 %vm9319_vm2, %v3777_v16  ;;  %v29853_v16 = vld [vmem:[#allocation18_spill] sm:$0xff] }
 0x54d   : > { %20588 = vmatmul.mubr.msk.bf16.vlgmr.msra.gmra.mrb[100].mxu0 %vm9319_vm2, %v3778_v11  ;;  %20592 = vmatpush3.bf16.xpose.msra.mxu1 %v10640_v18  ;;  %v25583_v50 = vpop.trf.xlu0  ;;  %v1182_v11 = vadd.f32 %v29853_v16, %v29852_v23  ;;  %v22320_v18 = vunpack.i.l.bf16 %v25438_v19  ;;  %v6537_v19 = vpack.c.bf16 %v21785_v2, %v21780_v62  ;;  %v29867_v16 = vld [vmem:[#allocation75_spill] sm:$0xff]  ;;  %v22301_v2 = vunpack.i.l.bf16 %v25432_v4  ;;  %v29868_v62 = vld [vmem:[#allocation73_spill] sm:$0xff] }
 0x54e   : > { %20598 = vmatpush3.bf16.xpose.msra.mxu0 %v10687_v8  ;;  %20593 = vmatprep.mubr.msk.bf16.mxu1 %vm24211_vm3, %v29802_v30  ;;  %v22328_v8 = vunpack.i.h.bf16 %v25452_v20  ;;  %v21761_v24 = vunpack.i.l.bf16 %v29867_v16 }
 0x54f   : > { %20599 = vmatprep.mubr.msk.bf16.mxu0 %vm24211_vm3, %v29802_v30  ;;  %20603 = vmatprep.subr.bf16.mxu1 %v29802_v30  ;;  %v22547_v42 = vpack.i.bf16 %v1182_v11, %v1181_v9  ;;  %v29866_v9 = vpack.i.bf16 %v29864_v32, %v29865_v26  ;;  %v21764_v11 = vunpack.i.h.bf16 %v29867_v16  ;;  %v22373_v26 = vunpack.i.l.bf16 %v25583_v50 }
 0x550   : > { %20609 = vmatprep.subr.bf16.mxu0 %v29802_v30  ;;  %v3784_v20 = vpack.c.bf16 %v22328_v8, %v22323_v56  ;;  %v21759_v56 = vunpack.i.h.bf16 %v29868_v62  ;;  %v3787_v8 = vpack.c.bf16 %v22301_v2, %v22296_v59 }
 0x551   : > { %v25591_v58 = vpop.trf.xlu0 }
 0x554   : > { %20594 = vmatmul.mubr.msk.bf16.vlgmr.msra.gmra.mrb[72].mxu1 %vm9319_vm2, %v3779_v27  ;;  %22516 = vrot.lane.b32.xlu0 %v29848_v45, %s24210_s24  ;;  %v10922_v45 = vsel %vm9319_vm2, %v6537_v19, 0  ;;  %v21797_v19 = vunpack.i.l.bf16 %v29869_v21 }
 0x555   : > { %20600 = vmatmul.mubr.msk.bf16.vlgmr.msra.gmra.mrb[104].mxu0 %vm9319_vm2, %v3780_v53  ;;  %20604 = vmatpush3.bf16.xpose.msra.mxu1 %v10734_v47  ;;  %v25613_v39 = vpop.trf.xlu0  ;;  %v29856_v53 = vld [vmem:[#allocation36_spill] sm:$0xff]  ;;  %v29860_v47 = vld [vmem:[#allocation71_spill] sm:$0xff] }
 0x556   : > { %20610 = vmatpush3.bf16.xpose.msra.mxu0 %v10781_v14  ;;  %20605 = vmatprep.mubr.msk.bf16.mxu1 %vm24211_vm3, %v29802_v30  ;;  %v21728_v28 = vunpack.i.h.bf16 %v29860_v47  ;;  %v21725_v38 = vunpack.i.l.bf16 %v29860_v47  ;;  %v10969_v14 = vsel %vm9319_vm2, %v6538_v29, 0  ;;  %v29871_v29 = vld [vmem:[#allocation11_spill] sm:$0xff] }
 0x557   : > { %20611 = vmatprep.mubr.msk.bf16.mxu0 %vm24211_vm3, %v29802_v30  ;;  %20615 = vmatprep.subr.bf16.mxu1 %v29802_v30  ;;  %v22337_v44 = vunpack.i.l.bf16 %v29871_v29 }
 0x558   : > { %22538 = vrot.lane.b32.xlu0 %v22537_v13, %s24210_s24  ;;  %20621 = vmatprep.subr.bf16.mxu0 %v29802_v30  ;;  %v6539_v41 = vpack.c.bf16 %v21725_v38, %v21720_v12  ;;  %v6540_v57 = vpack.c.bf16 %v21728_v28, %v21723_v35  ;;  %v22340_v38 = vunpack.i.h.bf16 %v29871_v29  ;;  %v29873_v12 = vld [vmem:[#allocation87_spill] sm:$0xff]  ;;  %v29874_v35 = vld [vmem:[#allocation85_spill] sm:$0xff] }
 0x559   : > { %v25624_v63 = vpop.trf.xlu0  ;;  %v21828_v32 = vunpack.i.l.bf16 %v29874_v35  ;;  %v29883_v29 = vld [vmem:[#allocation41_spill] sm:$0xff] }
 0x55a   : > { %v11016_v17 = vsel %vm9319_vm2, %v6539_v41, 0  ;;  %v21831_v41 = vunpack.i.h.bf16 %v29874_v35  ;;  %v29888_v35 = vld [vmem:[#allocation40_spill] sm:$0xff] }
 0x55c   : > { %20606 = vmatmul.mubr.msk.bf16.vlgmr.msra.gmra.mrb[76].mxu1 %vm9319_vm2, %v3781_v5  ;;  %22504 = vxpose.xlu1.b32.start.end [1/1] (short) (narrow) %v25281_v15, 16  ;;  %v3783_v15 = vpack.c.bf16 %v22325_v55, %v22320_v18  ;;  %v3785_v5 = vpack.c.bf16 %v22366_v40, %v22361_v34  ;;  %v22299_v18 = vunpack.i.h.bf16 %v25421_v36  ;;  %v22304_v55 = vunpack.i.h.bf16 %v25432_v4 }
 0x55d   : > { %20612 = vmatmul.mubr.msk.bf16.vlgmr.msra.gmra.mrb[108].mxu0 %vm9319_vm2, %v3782_v54  ;;  %20616 = vmatpush3.bf16.xpose.msra.mxu1 %v10828_v52  ;;  %v25641_v27 = vpop.trf.xlu0  ;;  %v3786_v54 = vpack.c.bf16 %v22369_v1, %v22364_v48  ;;  %v11063_v52 = vsel %vm9319_vm2, %v6540_v57, 0  ;;  %v21836_v48 = vunpack.i.h.bf16 %v29873_v12  ;;  %v21833_v1 = vunpack.i.l.bf16 %v29873_v12  ;;  %v29876_v57 = vld [vmem:[#allocation19_spill] sm:$0xff] }
 0x55e   : > { %20622 = vmatpush3.bf16.xpose.msra.mxu0 %v10875_v46  ;;  %22548 = vrot.lane.b32.xlu0 %v22547_v42, %s24210_s24  ;;  %v21756_v42 = vunpack.i.l.bf16 %v29868_v62  ;;  %v3788_v4 = vpack.c.bf16 %v22304_v55, %v22299_v18  ;;  %v6542_v46 = vpack.c.bf16 %v21764_v11, %v21759_v56  ;;  %v22376_v11 = vunpack.i.h.bf16 %v25583_v50  ;;  %v29878_v62 = vld [vmem:[#allocation101_spill] sm:$0xff]  ;;  %v29879_v56 = vld [vmem:[#allocation24_spill] sm:$0xff] }
 0x55f   : > { %20617 = vmatprep.mubr.msk.bf16.mxu1 %vm24211_vm3, %v29802_v30  ;;  %20623 = vmatprep.mubr.msk.bf16.mxu0 %vm24211_vm3, %v29802_v30  ;;  %v6545_v50 = vpack.c.bf16 %v21833_v1, %v21828_v32  ;;  %v6546_v55 = vpack.c.bf16 %v21836_v48, %v21831_v41  ;;  %v22422_v48 = vunpack.i.h.bf16 %v25551_v3  ;;  %v22427_v1 = vunpack.i.h.bf16 %v25561_v37 }
 0x560   : > { %20627 = vmatprep.subr.bf16.mxu1 %v29802_v30  ;;  %20633 = vmatprep.subr.bf16.mxu0 %v29802_v30  ;;  %v6541_v36 = vpack.c.bf16 %v21761_v24, %v21756_v42  ;;  %v11157_v25 = vsel %vm9319_vm2, %v6542_v46, 0  ;;  %v22381_v24 = vunpack.i.h.bf16 %v25591_v58  ;;  %v29881_v46 = vld [vmem:[#allocation76_spill] sm:$0xff] }
 0x561   : > { %22521 = vxpose.xlu1.b32.start.end [1/1] (short) (narrow) %v29856_v53, 16  ;;  %v25651_v0 = vpop.trf.xlu0 }
 0x562   : > { %22558 = vrot.lane.b32.xlu0 %v29859_v22, %s24210_s24  ;;  %v11110_v61 = vsel %vm9319_vm2, %v6541_v36, 0  ;;  %v29872_v22 = vld [vmem:[#allocation78_spill] sm:$0xff] }
 0x563   : > { %v21792_v47 = vunpack.i.l.bf16 %v29872_v22  ;;  %v21795_v34 = vunpack.i.h.bf16 %v29872_v22  ;;  %v29884_v22 = vld [vmem:[#allocation74_spill] sm:$0xff] }
 0x564   : > { %20618 = vmatmul.mubr.msk.bf16.vlgmr.msra.gmra.mrb[80].mxu1 %vm9319_vm2, %v3783_v15  ;;  %v21800_v15 = vunpack.i.h.bf16 %v29869_v21  ;;  %v21776_v21 = vunpack.i.h.bf16 %v29881_v46 }
 0x565   : > { %20624 = vmatmul.mubr.msk.bf16.vlgmr.msra.gmra.mrb[112].mxu0 %vm9319_vm2, %v3784_v20  ;;  %20628 = vmatpush3.bf16.xpose.msra.mxu1 %v10922_v45  ;;  %v25669_v13 = vpop.trf.xlu0  ;;  %v29870_v20 = vld [vmem:[#allocation30_spill] sm:$0xff]  ;;  %v6543_v40 = vpack.c.bf16 %v21797_v19, %v21792_v47  ;;  %v21768_v47 = vunpack.i.l.bf16 %v29884_v22 }
 0x566   : > { %20634 = vmatpush3.bf16.xpose.msra.mxu0 %v10969_v14  ;;  %22568 = vrot.lane.b32.xlu0 %v29866_v9, %s24210_s24  ;;  %v22332_v53 = vunpack.i.l.bf16 %v29870_v20  ;;  %v22335_v28 = vunpack.i.h.bf16 %v29870_v20  ;;  %v6544_v33 = vpack.c.bf16 %v21800_v15, %v21795_v34  ;;  %v22442_v14 = vpop.permute.xlu1 %22441  ;;  %v22378_v9 = vunpack.i.l.bf16 %v25591_v58 }
 0x567   : > { %20629 = vmatprep.mubr.msk.bf16.mxu1 %vm24211_vm3, %v29802_v30  ;;  %20635 = vmatprep.mubr.msk.bf16.mxu0 %vm24211_vm3, %v29802_v30  ;;  %v22443_v2 = vunpack.i.l.bf16 %v22442_v14  ;;  %v22414_v58 = vunpack.i.l.bf16 %v25538_v7  ;;  %v21773_v15 = vunpack.i.l.bf16 %v29881_v46  ;;  %v22444_v19 = vunpack.i.h.bf16 %v22442_v14  ;;  %v29887_v14 = vld [vmem:[#allocation29_spill] sm:$0xff] }
 0x568   : > { %20639 = vmatprep.subr.bf16.mxu1 %v29802_v30  ;;  %20645 = vmatprep.subr.bf16.mxu0 %v29802_v30  ;;  %v3789_v43 = vpack.c.bf16 %v22337_v44, %v22332_v53  ;;  %v3790_v45 = vpack.c.bf16 %v22340_v38, %v22335_v28  ;;  %v11251_v59 = vsel %vm9319_vm2, %v6544_v33, 0  ;;  %v3791_v18 = vpack.c.bf16 %v22378_v9, %v22373_v26  ;;  %v29882_v53 = vld [vmem:[#allocation25_spill] sm:$0xff]  ;;  %v29886_v33 = vld [vmem:[#allocation48_spill] sm:$0xff] }
 0x569   : > { %v25681_v23 = vpop.trf.xlu0  ;;  %v22601_v20 = vpack.i.bf16 %v22414_v58, %v22443_v2  ;;  %v1176_v44 = vadd.f32 %v29883_v29, %v29882_v53  ;;  %v21771_v28 = vunpack.i.h.bf16 %v29884_v22  ;;  %v22415_v38 = vunpack.i.h.bf16 %v25538_v7  ;;  %v29889_v9 = vld [vmem:[#allocation32_spill] sm:$0xff]  ;;  %v29893_v2 = vld [vmem:[#allocation50_spill] sm:$0xff] }
 0x56a   : > { %v22424_v34 = vunpack.i.l.bf16 %v25561_v37  ;;  %v1180_v32 = vadd.f32 %v29888_v35, %v29887_v14  ;;  %v6547_v26 = vpack.c.bf16 %v21773_v15, %v21768_v47  ;;  %v29890_v37 = vld [vmem:[#allocation45_spill] sm:$0xff]  ;;  %v22352_v15 = vunpack.i.h.bf16 %v25478_v10  ;;  %v29899_v47 = vld [vmem:[#allocation88_spill] sm:$0xff] }
 0x56b   : > { %v22603_v7 = vpack.i.bf16 %v22415_v38, %v22444_v19  ;;  %v29897_v19 = vld [vmem:[#allocation37_spill] sm:$0xff]  ;;  %v21845_v38 = vunpack.i.l.bf16 %v29899_v47 }
 0x56c   : > { %20630 = vmatmul.mubr.msk.bf16.vlgmr.msra.gmra.mrb[84].mxu1 %vm9319_vm2, %v3785_v5  ;;  %v11204_v5 = vsel %vm9319_vm2, %v6543_v40, 0 }
 0x56d   : > { %20636 = vmatmul.mubr.msk.bf16.vlgmr.msra.gmra.mrb[116].mxu0 %vm9319_vm2, %v3786_v54  ;;  %20640 = vmatpush3.bf16.xpose.msra.mxu1 %v11016_v17  ;;  %v29875_v54 = vld [vmem:[#allocation20_spill] sm:$0xff]  ;;  %v29877_v17 = vld [vmem:[#allocation21_spill] sm:$0xff] }
 0x56e   : > { %20646 = vmatpush3.bf16.xpose.msra.mxu0 %v11063_v52  ;;  %20641 = vmatprep.mubr.msk.bf16.mxu1 %vm24211_vm3, %v29802_v30  ;;  %v1171_v16 = vadd.f32 %v29876_v57, %v29875_v54  ;;  %v1172_v42 = vadd.f32 %v29878_v62, %v29877_v17  ;;  %v3794_v57 = vpack.c.bf16 %v22427_v1, %v22422_v48  ;;  %v11392_v62 = vsel %vm9319_vm2, %v6547_v26, 0 }
 0x56f   : > { %20647 = vmatprep.mubr.msk.bf16.mxu0 %vm24211_vm3, %v29802_v30  ;;  %20651 = vmatprep.subr.bf16.mxu1 %v29802_v30  ;;  %v22393_v1 = vunpack.i.h.bf16 %v25344_v51 }
 0x570   : > { %20657 = vmatprep.subr.bf16.mxu0 %v29802_v30  ;;  %v22532_v52 = vpack.i.bf16 %v1172_v42, %v1171_v16  ;;  %v29891_v16 = vld [vmem:[#allocation83_spill] sm:$0xff] }
 0x574   : > { %20642 = vmatmul.mubr.msk.bf16.vlgmr.msra.gmra.mrb[88].mxu1 %vm9319_vm2, %v3787_v8  ;;  %v29880_v8 = vld [vmem:[#allocation42_spill] sm:$0xff] }
 0x575   : > { %20648 = vmatmul.mubr.msk.bf16.vlgmr.msra.gmra.mrb[120].mxu0 %vm9319_vm2, %v3788_v4  ;;  %20652 = vmatpush3.bf16.xpose.msra.mxu1 %v11110_v61  ;;  %v1175_v36 = vadd.f32 %v29880_v8, %v29879_v56  ;;  %v3792_v4 = vpack.c.bf16 %v22381_v24, %v22376_v11  ;;  %v11298_v61 = vsel %vm9319_vm2, %v6545_v50, 0  ;;  %v21812_v11 = vunpack.i.h.bf16 %v29891_v16  ;;  %v29894_v50 = vld [vmem:[#allocation81_spill] sm:$0xff] }
 0x576   : > { %20658 = vmatpush3.bf16.xpose.msra.mxu0 %v11157_v25  ;;  %20653 = vmatprep.mubr.msk.bf16.mxu1 %vm24211_vm3, %v29802_v30  ;;  %v22419_v25 = vunpack.i.l.bf16 %v25551_v3  ;;  %v6548_v3 = vpack.c.bf16 %v21776_v21, %v21771_v28  ;;  %v21809_v24 = vunpack.i.l.bf16 %v29891_v16  ;;  %v21804_v58 = vunpack.i.l.bf16 %v29894_v50  ;;  %v29896_v56 = vld [vmem:[#allocation13_spill] sm:$0xff] }
 0x577   : > { %20659 = vmatprep.mubr.msk.bf16.mxu0 %vm24211_vm3, %v29802_v30  ;;  %20663 = vmatprep.subr.bf16.mxu1 %v29802_v30  ;;  %v22542_v40 = vpack.i.bf16 %v1176_v44, %v1175_v36  ;;  %v22344_v36 = vunpack.i.l.bf16 %v25462_v31  ;;  %v22347_v21 = vunpack.i.h.bf16 %v25462_v31  ;;  %v21848_v28 = vunpack.i.h.bf16 %v29899_v47 }
 0x578   : > { %20669 = vmatprep.subr.bf16.mxu0 %v29802_v30  ;;  %v3793_v41 = vpack.c.bf16 %v22424_v34, %v22419_v25  ;;  %v11439_v42 = vsel %vm9319_vm2, %v6548_v3, 0  ;;  %v6549_v29 = vpack.c.bf16 %v21809_v24, %v21804_v58  ;;  %v22434_v16 = vunpack.i.h.bf16 %v25641_v27  ;;  %v29904_v58 = vld [vmem:[#allocation82_spill] sm:$0xff] }
 0x579   : > { %v3796_v22 = vpack.c.bf16 %v22352_v15, %v22347_v21 }
 0x57a   : > { %v11486_v25 = vsel %vm9319_vm2, %v6549_v29, 0 }
 0x57c   : > { %20654 = vmatmul.mubr.msk.bf16.vlgmr.msra.gmra.mrb[92].mxu1 %vm9319_vm2, %v3789_v43  ;;  %v11345_v43 = vsel %vm9319_vm2, %v6546_v55, 0 }
 0x57d   : > { %20660 = vmatmul.mubr.msk.bf16.vlgmr.msra.gmra.mrb[124].mxu0 %vm9319_vm2, %v3790_v45  ;;  %20664 = vmatpush3.bf16.xpose.msra.mxu1 %v11204_v5  ;;  %v29885_v45 = vld [vmem:[#allocation28_spill] sm:$0xff]  ;;  %v1183_v5 = vadd.f32 %v29890_v37, %v29889_v9  ;;  %v22431_v37 = vunpack.i.l.bf16 %v25641_v27 }
 0x57e   : > { %20670 = vmatpush3.bf16.xpose.msra.mxu0 %v11251_v59  ;;  %20665 = vmatprep.mubr.msk.bf16.mxu1 %vm24211_vm3, %v29802_v30  ;;  %v1179_v12 = vadd.f32 %v29886_v33, %v29885_v45  ;;  %v29892_v59 = vld [vmem:[#allocation33_spill] sm:$0xff]  ;;  %v29900_v45 = vld [vmem:[#allocation86_spill] sm:$0xff] }
 0x57f   : > { %20671 = vmatprep.mubr.msk.bf16.mxu0 %vm24211_vm3, %v29802_v30  ;;  %20675 = vmatprep.subr.bf16.mxu1 %v29802_v30  ;;  %v1184_v17 = vadd.f32 %v29893_v2, %v29892_v59  ;;  %v21840_v33 = vunpack.i.l.bf16 %v29900_v45 }
 0x580   : > { %20681 = vmatprep.subr.bf16.mxu0 %v29802_v30  ;;  %v22552_v54 = vpack.i.bf16 %v1180_v32, %v1179_v12  ;;  %v21843_v12 = vunpack.i.h.bf16 %v29900_v45 }
 0x581   : > { %v22562_v55 = vpack.i.bf16 %v1184_v17, %v1183_v5  ;;  %v6551_v35 = vpack.c.bf16 %v21845_v38, %v21840_v33  ;;  %v22436_v5 = vunpack.i.l.bf16 %v25651_v0 }
 0x582   : > { %v6552_v26 = vpack.c.bf16 %v21848_v28, %v21843_v12 }
 0x583   : > { %22533 = vrot.lane.b32.xlu1 %v22532_v52, %s24210_s24  ;;  %v29895_v52 = vld [vmem:[#allocation35_spill] sm:$0xff]  ;;  %v3799_v2 = vpack.c.bf16 %v22436_v5, %v22431_v37 }
 0x584   : > { %22602 = vxpose.xlu0.b32.start [1/2] (short) (narrow) %v22601_v20, 32  ;;  %20666 = vmatmul.mubr.msk.bf16.vlgmr.msra.gmra.mrb[96].mxu1 %vm9319_vm2, %v3791_v18  ;;  %v21807_v18 = vunpack.i.h.bf16 %v29894_v50  ;;  %v1187_v8 = vadd.f32 %v29896_v56, %v29895_v52  ;;  %v29898_v20 = vld [vmem:[#allocation52_spill] sm:$0xff]  ;;  %v11627_v24 = vsel %vm9319_vm2, %v6552_v26, 0  ;;  %v22471_v50 = vpop.permute.xlu0 %22470  ;;  %v22405_v26 = vunpack.i.h.bf16 %v25613_v39 }
 0x585   : > { %20672 = vmatmul.mubr.msk.bf16.vlgmr.msra.gmra.mrb[128].mxu0 %vm9319_vm2, %v3792_v4  ;;  %20676 = vmatpush3.bf16.xpose.msra.mxu1 %v11298_v61  ;;  %v22349_v4 = vunpack.i.l.bf16 %v25478_v10  ;;  %v1188_v53 = vadd.f32 %v29898_v20, %v29897_v19  ;;  %v21819_v19 = vunpack.i.h.bf16 %v29904_v58  ;;  %v22472_v20 = vunpack.i.l.bf16 %v22471_v50 }
 0x586   : > { %20682 = vmatpush3.bf16.xpose.msra.mxu0 %v11345_v43  ;;  %20677 = vmatprep.mubr.msk.bf16.mxu1 %vm24211_vm3, %v29802_v30  ;;  %v6550_v44 = vpack.c.bf16 %v21812_v11, %v21807_v18  ;;  %v22390_v43 = vunpack.i.l.bf16 %v25344_v51  ;;  %v22439_v11 = vunpack.i.h.bf16 %v25651_v0  ;;  %v21816_v18 = vunpack.i.l.bf16 %v29904_v58 }
 0x587   : > { %22543 = vrot.lane.b32.xlu1 %v22542_v40, %s24210_s24  ;;  %20683 = vmatprep.mubr.msk.bf16.mxu0 %vm24211_vm3, %v29802_v30  ;;  %v3795_v31 = vpack.c.bf16 %v22349_v4, %v22344_v36  ;;  %v22572_v61 = vpack.i.bf16 %v1188_v53, %v1187_v8  ;;  %v22395_v40 = vunpack.i.l.bf16 %v25356_v6  ;;  %v22473_v45 = vunpack.i.h.bf16 %v22471_v50 }
 0x588   : > { %22604 = vxpose.xlu0.b32.end [2/2] (short) (narrow) %v22603_v7, 32  ;;  %20687 = vmatprep.subr.bf16.mxu1 %v29802_v30  ;;  %v11533_v34 = vsel %vm9319_vm2, %v6550_v44, 0  ;;  %v22398_v7 = vunpack.i.h.bf16 %v25356_v6  ;;  %v29901_v6 = vld [vmem:[#allocation95_spill] sm:$0xff]  ;;  %v3800_v0 = vpack.c.bf16 %v22439_v11, %v22434_v16  ;;  %v29907_v11 = vld [vmem:[#allocation96_spill] sm:$0xff] }
 0x589   : > { %20693 = vmatprep.subr.bf16.mxu0 %v29802_v30  ;;  %v3797_v14 = vpack.c.bf16 %v22395_v40, %v22390_v43  ;;  %v21884_v3 = vunpack.i.h.bf16 %v29901_v6  ;;  %v21881_v9 = vunpack.i.l.bf16 %v29901_v6  ;;  %v29905_v43 = vld [vmem:[#allocation91_spill] sm:$0xff]  ;;  %v22410_v6 = vunpack.i.h.bf16 %v25624_v63 }
 0x58a   : > { %v3798_v51 = vpack.c.bf16 %v22398_v7, %v22393_v1  ;;  %v21860_v40 = vunpack.i.h.bf16 %v29905_v43  ;;  %v21857_v12 = vunpack.i.l.bf16 %v29905_v43  ;;  %v29906_v7 = vld [vmem:[#allocation89_spill] sm:$0xff] }
 0x58b   : > { %22553 = vrot.lane.b32.xlu1 %v22552_v54, %s24210_s24  ;;  %v29902_v54 = vld [vmem:[#allocation93_spill] sm:$0xff] }
 0x58c   : > { %20678 = vmatmul.mubr.msk.bf16.vlgmr.msra.gmra.mrb[100].mxu1 %vm9319_vm2, %v3793_v41  ;;  %v25787_v46 = vpop.trf.xlu1  ;;  %v11580_v41 = vsel %vm9319_vm2, %v6551_v35, 0  ;;  %v21879_v59 = vunpack.i.h.bf16 %v29902_v54 }
 0x58d   : > { %20684 = vmatmul.mubr.msk.bf16.vlgmr.msra.gmra.mrb[132].mxu0 %vm9319_vm2, %v3794_v57  ;;  %20688 = vmatpush3.bf16.xpose.msra.mxu1 %v11392_v62  ;;  %v21876_v57 = vunpack.i.l.bf16 %v29902_v54  ;;  %v29903_v62 = vld [vmem:[#allocation84_spill] sm:$0xff] }
 0x58e   : > { %20694 = vmatpush3.bf16.xpose.msra.mxu0 %v11439_v42  ;;  %20689 = vmatprep.mubr.msk.bf16.mxu1 %vm24211_vm3, %v29802_v30  ;;  %v6554_v17 = vpack.c.bf16 %v21884_v3, %v21879_v59  ;;  %v21821_v42 = vunpack.i.l.bf16 %v29903_v62  ;;  %v21893_v59 = vunpack.i.l.bf16 %v29907_v11 }
 0x58f   : > { %22563 = vrot.lane.b32.xlu1 %v22562_v55, %s24210_s24  ;;  %20695 = vmatprep.mubr.msk.bf16.mxu0 %vm24211_vm3, %v29802_v30  ;;  %v6553_v27 = vpack.c.bf16 %v21881_v9, %v21876_v57  ;;  %v21824_v55 = vunpack.i.h.bf16 %v29903_v62  ;;  %v21855_v9 = vunpack.i.h.bf16 %v29906_v7 }
 0x590   : > { %20699 = vmatprep.subr.bf16.mxu1 %v29802_v30  ;;  %20705 = vmatprep.subr.bf16.mxu0 %v29802_v30  ;;  %v25801_v10 = vpop.trf.xlu1  ;;  %v11721_v21 = vsel %vm9319_vm2, %v6554_v17, 0  ;;  %v6555_v29 = vpack.c.bf16 %v21821_v42, %v21816_v18  ;;  %v29908_v17 = vld [vmem:[#allocation94_spill] sm:$0xff]  ;;  %v22451_v42 = vunpack.i.h.bf16 %v25787_v46 }
 0x591   : > { %v11674_v8 = vsel %vm9319_vm2, %v6553_v27, 0  ;;  %v6558_v54 = vpack.c.bf16 %v21860_v40, %v21855_v9  ;;  %v22453_v27 = vunpack.i.l.bf16 %v25801_v10  ;;  %v21888_v62 = vunpack.i.l.bf16 %v29908_v17 }
 0x592   : > { %v11768_v1 = vsel %vm9319_vm2, %v6555_v29, 0  ;;  %v22456_v50 = vunpack.i.h.bf16 %v25801_v10  ;;  %v21891_v18 = vunpack.i.h.bf16 %v29908_v17 }
 0x593   : > { %22573 = vrot.lane.b32.xlu1 %v22572_v61, %s24210_s24  ;;  %v11909_v58 = vsel %vm9319_vm2, %v6558_v54, 0 }
 0x594   : > { %20690 = vmatmul.mubr.msk.bf16.vlgmr.msra.gmra.mrb[104].mxu1 %vm9319_vm2, %v3795_v31  ;;  %v25813_v48 = vpop.trf.xlu1  ;;  %v3806_v10 = vpack.c.bf16 %v22456_v50, %v22451_v42 }
 0x595   : > { %20696 = vmatmul.mubr.msk.bf16.vlgmr.msra.gmra.mrb[136].mxu0 %vm9319_vm2, %v3796_v22  ;;  %20700 = vmatpush3.bf16.xpose.msra.mxu1 %v11486_v25  ;;  %v22477_v52 = vunpack.i.l.bf16 %v25813_v48  ;;  %v22480_v36 = vunpack.i.h.bf16 %v25813_v48  ;;  %v6556_v25 = vpack.c.bf16 %v21824_v55, %v21819_v19  ;;  %v22402_v48 = vunpack.i.l.bf16 %v25613_v39  ;;  %v29910_v19 = vld [vmem:[#allocation99_spill] sm:$0xff] }
 0x596   : > { %20706 = vmatpush3.bf16.xpose.msra.mxu0 %v11533_v34  ;;  %20701 = vmatprep.mubr.msk.bf16.mxu1 %vm24211_vm3, %v29802_v30 }
 0x597   : > { %20707 = vmatprep.mubr.msk.bf16.mxu0 %vm24211_vm3, %v29802_v30  ;;  %20711 = vmatprep.subr.bf16.mxu1 %v29802_v30  ;;  %v11815_v3 = vsel %vm9319_vm2, %v6556_v25, 0 }
 0x598   : > { %20717 = vmatprep.subr.bf16.mxu0 %v29802_v30  ;;  %v22481_v32 = vpop.trf.xlu1 }
 0x599   : > { %v22482_v56 = vunpack.i.l.bf16 %v22481_v32  ;;  %v22485_v4 = vunpack.i.h.bf16 %v22481_v32  ;;  %v22407_v32 = vunpack.i.l.bf16 %v25624_v63 }
 0x59b   : > { %v3801_v61 = vpack.c.bf16 %v22482_v56, %v22477_v52  ;;  %v3802_v38 = vpack.c.bf16 %v22485_v4, %v22480_v36  ;;  %v3803_v39 = vpack.c.bf16 %v22407_v32, %v22402_v48  ;;  %v29909_v56 = vld [vmem:[#allocation100_spill] sm:$0xff] }
 0x59c   : > { %20702 = vmatmul.mubr.msk.bf16.vlgmr.msra.gmra.mrb[108].mxu1 %vm9319_vm2, %v3797_v14  ;;  %v21852_v14 = vunpack.i.l.bf16 %v29906_v7  ;;  %v21917_v36 = vunpack.i.l.bf16 %v29909_v56 }
 0x59d   : > { %20708 = vmatmul.mubr.msk.bf16.vlgmr.msra.gmra.mrb[140].mxu0 %vm9319_vm2, %v3798_v51  ;;  %20712 = vmatpush3.bf16.xpose.msra.mxu1 %v11580_v41  ;;  %v3804_v41 = vpack.c.bf16 %v22410_v6, %v22405_v26 }
 0x59e   : > { %20718 = vmatpush3.bf16.xpose.msra.mxu0 %v11627_v24  ;;  %20713 = vmatprep.mubr.msk.bf16.mxu1 %vm24211_vm3, %v29802_v30  ;;  %v6557_v63 = vpack.c.bf16 %v21857_v12, %v21852_v14  ;;  %v21896_v24 = vunpack.i.h.bf16 %v29907_v11  ;;  %v12335_v12 = vld [vmem:[%s29294_s2 + $0x38] sm:$0xff] }
 0x59f   : > { %20719 = vmatprep.mubr.msk.bf16.mxu0 %vm24211_vm3, %v29802_v30  ;;  %20723 = vmatprep.subr.bf16.mxu1 %v29802_v30 }
 0x5a0   : > { %20729 = vmatprep.subr.bf16.mxu0 %v29802_v30  ;;  %v6560_v52 = vpack.c.bf16 %v21896_v24, %v21891_v18 }
 0x5a2   : > { %v12003_v29 = vsel %vm9319_vm2, %v6560_v52, 0 }
 0x5a4   : > { %20714 = vmatmul.mubr.msk.bf16.vlgmr.msra.gmra.mrb[112].mxu1 %vm9319_vm2, %v3799_v2  ;;  %v22448_v2 = vunpack.i.l.bf16 %v25787_v46  ;;  %v6559_v46 = vpack.c.bf16 %v21893_v59, %v21888_v62 }
 0x5a5   : > { %20720 = vmatmul.mubr.msk.bf16.vlgmr.msra.gmra.mrb[144].mxu0 %vm9319_vm2, %v3800_v0  ;;  %20724 = vmatpush3.bf16.xpose.msra.mxu1 %v11674_v8  ;;  %v22500_v15 = vpop.permute.xlu1 %22499  ;;  %v11862_v0 = vsel %vm9319_vm2, %v6557_v63, 0  ;;  %v21920_v8 = vunpack.i.h.bf16 %v29909_v56 }
 0x5a6   : > { %20730 = vmatpush3.bf16.xpose.msra.mxu0 %v11721_v21  ;;  %v22501_v53 = vunpack.i.l.bf16 %v22500_v15  ;;  %20725 = vmatprep.mubr.msk.bf16.mxu1 %vm24211_vm3, %v29802_v30  ;;  %v22502_v22 = vunpack.i.h.bf16 %v22500_v15  ;;  %v3805_v55 = vpack.c.bf16 %v22453_v27, %v22448_v2  ;;  %v11956_v21 = vsel %vm9319_vm2, %v6559_v46, 0 }
 0x5a7   : > { %20731 = vmatprep.mubr.msk.bf16.mxu0 %vm24211_vm3, %v29802_v30  ;;  %20735 = vmatprep.subr.bf16.mxu1 %v29802_v30  ;;  %v25857_v44 = vpop.trf.xlu0  ;;  %v25859_v31 = vpop.f32.mrb[44].mxu0 }
 0x5a8   : > { %v22625_v47 = vpack.i.bf16 %v22472_v20, %v22501_v53  ;;  %20741 = vmatprep.subr.bf16.mxu0 %v29802_v30  ;;  %v20427_v28 = vpop.f32.mrb[45].mxu0  ;;  %v22627_v51 = vpack.i.bf16 %v22473_v45, %v22502_v22  ;;  %v22489_v4 = vunpack.i.l.bf16 %v25857_v44  ;;  %v21912_v20 = vunpack.i.l.bf16 %v29910_v19 }
 0x5a9   : > { %v25862_v34 = vpop.f32.mrb[46].mxu0  ;;  %v22492_v53 = vunpack.i.h.bf16 %v25857_v44  ;;  %v21915_v22 = vunpack.i.h.bf16 %v29910_v19 }
 0x5aa   : > { %22626 = vxpose.xlu0.b32.start [1/2] (short) (narrow) %v22625_v47, 32  ;;  %v20428_v33 = vpop.f32.mrb[47].mxu0  ;;  %v6561_v28 = vpack.c.bf16 %v21917_v36, %v21912_v20 }
 0x5ab   : > { %v25869_v35 = vpop.trf.xlu0  ;;  %v6562_v40 = vpack.c.bf16 %v21920_v8, %v21915_v22  ;;  %v29917_v22 = vld [vmem:[#allocation92_spill] sm:$0xff] }
 0x5ac   : > { %20726 = vmatmul.mubr.msk.bf16.vlgmr.msra.gmra.mrb[116].mxu1 %vm9319_vm2, %v3801_v61  ;;  %v22494_v15 = vunpack.i.l.bf16 %v25869_v35  ;;  %v22497_v61 = vunpack.i.h.bf16 %v25869_v35  ;;  %v12050_v14 = vsel %vm9319_vm2, %v6561_v28, 0  ;;  %v21869_v28 = vunpack.i.l.bf16 %v29917_v22 }
 0x5ad   : > { %20732 = vmatmul.mubr.msk.bf16.vlgmr.msra.gmra.mrb[148].mxu0 %vm9319_vm2, %v3802_v38  ;;  %20736 = vmatpush3.bf16.xpose.msra.mxu1 %v11768_v1  ;;  %v12097_v32 = vsel %vm9319_vm2, %v6562_v40, 0 }
 0x5ae   : > { %20742 = vmatpush3.bf16.xpose.msra.mxu0 %v11815_v3  ;;  %22628 = vxpose.xlu0.b32.end [2/2] (short) (narrow) %v22627_v51, 32  ;;  %v3807_v47 = vpack.c.bf16 %v22494_v15, %v22489_v4  ;;  %v3808_v43 = vpack.c.bf16 %v22497_v61, %v22492_v53 }
 0x5af   : > { %20737 = vmatprep.mubr.msk.bf16.mxu1 %vm24211_vm3, %v29802_v30  ;;  %20743 = vmatprep.mubr.msk.bf16.mxu0 %vm24211_vm3, %v29802_v30  ;;  %v25882_v37 = vpop.f32.mrb[48].mxu0 }
 0x5b0   : > { %20747 = vmatprep.subr.bf16.mxu1 %v29802_v30  ;;  %20753 = vmatprep.subr.bf16.mxu0 %v29802_v30  ;;  %v20433_v5 = vpop.f32.mrb[49].mxu0 }
 0x5b1   : > { %v25886_v57 = vpop.f32.mrb[50].mxu0 }
 0x5b2   : > { %v20434_v16 = vpop.f32.mrb[51].mxu0 }
 0x5b4   : > { %20738 = vmatmul.mubr.msk.bf16.vlgmr.msra.gmra.mrb[120].mxu1 %vm9319_vm2, %v3803_v39 }
 0x5b5   : > { %20744 = vmatmul.mubr.msk.bf16.vlgmr.msra.gmra.mrb[152].mxu0 %vm9319_vm2, %v3804_v41  ;;  %20748 = vmatpush3.bf16.xpose.msra.mxu1 %v11862_v0  ;;  %v12333_v0 = vld [vmem:[%s29294_s2 + $0x28] sm:$0xff] }
 0x5b6   : > { %20754 = vmatpush3.bf16.xpose.msra.mxu0 %v11909_v58  ;;  %20749 = vmatprep.mubr.msk.bf16.mxu1 %vm24211_vm3, %v29802_v30 }
 0x5b7   : > { %20755 = vmatprep.mubr.msk.bf16.mxu0 %vm24211_vm3, %v29802_v30  ;;  %20759 = vmatprep.subr.bf16.mxu1 %v29802_v30 }
 0x5b8   : > { %20765 = vmatprep.subr.bf16.mxu0 %v29802_v30 }
 0x5bc   : > { %20750 = vmatmul.mubr.msk.bf16.vlgmr.msra.gmra.mrb[124].mxu1 %vm9319_vm2, %v3805_v55  ;;  %22578 = vxpose.xlu1.b32.start [1/2] (short) (narrow) %v25502_v60, 32 }
 0x5bd   : > { %20756 = vmatmul.mubr.msk.bf16.vlgmr.msra.gmra.mrb[156].mxu0 %vm9319_vm2, %v3806_v10  ;;  %20760 = vmatpush3.bf16.xpose.msra.mxu1 %v11956_v21 }
 0x5be   : > { %20766 = vmatpush3.bf16.xpose.msra.mxu0 %v12003_v29  ;;  %20761 = vmatprep.mubr.msk.bf16.mxu1 %vm24211_vm3, %v29802_v30 }
 0x5bf   : > { %20767 = vmatprep.mubr.msk.bf16.mxu0 %vm24211_vm3, %v29802_v30  ;;  %20771 = vmatprep.subr.bf16.mxu1 %v29802_v30  ;;  %v25924_v60 = vpop.f32.mrb[20].mxu1  ;;  %v25926_v44 = vpop.f32.mrb[52].mxu0 }
 0x5c0   : > { %22580 = vxpose.xlu1.b32.end [2/2] (short) (narrow) %v25500_v49, 32  ;;  %20777 = vmatprep.subr.bf16.mxu0 %v29802_v30  ;;  %v20439_v38 = vpop.f32.mrb[21].mxu1  ;;  %v20445_v25 = vpop.f32.mrb[53].mxu0  ;;  %v12465_v49 = vld [vmem:[%s29293_s1 + $0x8] sm:$0xff] }
 0x5c1   : > { %v9457_v45 = vpop.f32.mrb[22].mxu1  ;;  %v9504_v33 = vpop.f32.mrb[54].mxu0  ;;  %v29918_v25 = vld [vmem:[#allocation90_spill] sm:$0xff] }
 0x5c2   : > { %v12343_v48 = vadd.f32 %v12335_v12, %v9504_v33  ;;  %v20440_v1 = vpop.f32.mrb[23].mxu1  ;;  %v20446_v7 = vpop.f32.mrb[55].mxu0  ;;  %v12341_v17 = vadd.f32 %v12333_v0, %v9457_v45  ;;  %v21867_v40 = vunpack.i.h.bf16 %v29918_v25 }
 0x5c4   : > { %20762 = vmatmul.mubr.msk.bf16.vlgmr.msra.gmra.mrb[128].mxu1 %vm9319_vm2, %v3807_v47  ;;  %v25938_v35 = vadd.f32 %v12465_v49, %v12343_v48  ;;  %v25975_v10 = vadd.f32 %v12465_v49, %v12341_v17  ;;  %v21872_v47 = vunpack.i.h.bf16 %v29917_v22  ;;  %v29921_v17 = vld [vmem:[#allocation98_spill] sm:$0xff]  ;;  %v22460_v22 = vunpack.i.l.bf16 %v25669_v13 }
 0x5c5   : > { %20768 = vmatmul.mubr.msk.bf16.vlgmr.msra.gmra.mrb[160].mxu0 %vm9319_vm2, %v3808_v43  ;;  %20772 = vmatpush3.bf16.xpose.msra.mxu1 %v12050_v14  ;;  %v21864_v43 = vunpack.i.l.bf16 %v29918_v25 }
 0x5c6   : > { %20778 = vmatpush3.bf16.xpose.msra.mxu0 %v12097_v32  ;;  %20773 = vmatprep.mubr.msk.bf16.mxu1 %vm24211_vm3, %v29802_v30  ;;  %v25979_v8 = vpop.permute.xlu0 %22516  ;;  %v6564_v49 = vpack.c.bf16 %v21872_v47, %v21867_v40  ;;  %v22468_v47 = vunpack.i.h.bf16 %v25681_v23 }
 0x5c7   : > { %20779 = vmatprep.mubr.msk.bf16.mxu0 %vm24211_vm3, %v29802_v30  ;;  %20783 = vmatprep.subr.bf16.mxu1 %v29802_v30  ;;  %v25947_v51 = vpop.f32.mrb[24].mxu1  ;;  %v25949_v26 = vpop.f32.mrb[56].mxu0  ;;  %v6563_v7 = vpack.c.bf16 %v21869_v28, %v21864_v43  ;;  %v22465_v28 = vunpack.i.l.bf16 %v25681_v23 }
 0x5c8   : > { %20789 = vmatprep.subr.bf16.mxu0 %v29802_v30  ;;  %v20451_v6 = vpop.f32.mrb[25].mxu1  ;;  %v20457_v3 = vpop.f32.mrb[57].mxu0 }
 0x5c9   : > { %v25952_v9 = vpop.f32.mrb[26].mxu1  ;;  %v25954_v39 = vpop.f32.mrb[58].mxu0 }
 0x5ca   : > { %v20452_v63 = vpop.f32.mrb[27].mxu1  ;;  %v20458_v5 = vpop.f32.mrb[59].mxu0 }
 0x5cb   : > { %v25995_v45 = vpop.permute.xlu0 %22538 }
 0x5cf   : > { %v25956_v41 = vpop.f32.mrb[28].mxu1  ;;  %v25958_v54 = vpop.f32.mrb[60].mxu0 }
 0x5d0   : > { %v20463_v16 = vpop.f32.mrb[29].mxu1  ;;  %v20469_v11 = vpop.f32.mrb[61].mxu0 }
 0x5d1   : > { %v25960_v24 = vpop.f32.mrb[30].mxu1  ;;  %v25962_v59 = vpop.f32.mrb[62].mxu0 }
 0x5d2   : > { %29911 = vst [vmem:[#allocation34_spill] sm:$0xff] %v25960_v24  ;;  %29912 = vst [vmem:[#allocation8_spill] sm:$0xff] %v25962_v59  ;;  %v20464_v2 = vpop.f32.mrb[31].mxu1  ;;  %v20470_v27 = vpop.f32.mrb[63].mxu0 }
 0x5d7   : > { %v25967_v62 = vpop.f32.mrb[32].mxu1  ;;  %v25969_v42 = vpop.f32.mrb[64].mxu0 }
 0x5d8   : > { %v20475_v50 = vpop.f32.mrb[33].mxu1  ;;  %v20481_v58 = vpop.f32.mrb[65].mxu0 }
 0x5d9   : > { %v25971_v18 = vpop.f32.mrb[34].mxu1  ;;  %v25973_v55 = vpop.f32.mrb[66].mxu0  ;;  %v21908_v50 = vunpack.i.h.bf16 %v29921_v17  ;;  %v21905_v58 = vunpack.i.l.bf16 %v29921_v17 }
 0x5da   : > { %29913 = vst [vmem:[#allocation9_spill] sm:$0xff] %v25971_v18  ;;  %29914 = vst [vmem:[#allocation53_spill] sm:$0xff] %v25973_v55  ;;  %v20476_v46 = vpop.f32.mrb[35].mxu1  ;;  %v20482_v52 = vpop.f32.mrb[67].mxu0 }
 0x5db   : > { %v12144_v46 = vsel %vm9319_vm2, %v6563_v7, 0  ;;  %v12191_v52 = vsel %vm9319_vm2, %v6564_v49, 0  ;;  %v3811_v49 = vpack.c.bf16 %v22465_v28, %v22460_v22 }
 0x5dc   : > { %v25977_v56 = vpop.trf.xlu1 }
 0x5dd   : > { %v22509_v17 = vunpack.i.h.bf16 %v25977_v56 }
 0x5df   : > { %v25981_v36 = vpop.f32.mrb[36].mxu1 }
 0x5e0   : > { %v25983_v4 = vpop.trf.xlu1  ;;  %v25985_v21 = vpop.f32.mrb[68].mxu0 }
 0x5e1   : > { %v20487_v15 = vpop.f32.mrb[37].mxu1  ;;  %v20493_v19 = vpop.f32.mrb[69].mxu0 }
 0x5e2   : > { %v25987_v20 = vpop.f32.mrb[38].mxu1  ;;  %v25989_v53 = vpop.f32.mrb[70].mxu0  ;;  %v29922_v15 = vld [vmem:[#allocation97_spill] sm:$0xff] }
 0x5e3   : > { %29915 = vst [vmem:[#allocation49_spill] sm:$0xff] %v25987_v20  ;;  %29916 = vst [vmem:[#allocation15_spill] sm:$0xff] %v25989_v53  ;;  %v20488_v29 = vpop.f32.mrb[39].mxu1  ;;  %v20494_v61 = vpop.f32.mrb[71].mxu0  ;;  %v21900_v19 = vunpack.i.l.bf16 %v29922_v15 }
 0x5e4   : > { %v22522_v38 = vpop.trf.xlu1  ;;  %v21903_v29 = vunpack.i.h.bf16 %v29922_v15  ;;  %v22463_v61 = vunpack.i.h.bf16 %v25669_v13 }
 0x5e5   : > { %v22526_v33 = vunpack.i.h.bf16 %v22522_v38  ;;  %v22523_v12 = vunpack.i.l.bf16 %v22522_v38  ;;  %v26017_v38 = vpop.permute.xlu0 %22548  ;;  %v6565_v40 = vpack.c.bf16 %v21905_v58, %v21900_v19  ;;  %v22514_v58 = vunpack.i.h.bf16 %v25983_v4 }
 0x5e7   : > { %v25997_v48 = vpop.f32.mrb[40].mxu1 }
 0x5e8   : > { %v22527_v1 = vpop.trf.xlu1  ;;  %v25999_v14 = vpop.f32.mrb[72].mxu0 }
 0x5e9   : > { %v22531_v32 = vunpack.i.h.bf16 %v22527_v1  ;;  %v22528_v6 = vunpack.i.l.bf16 %v22527_v1  ;;  %v20499_v3 = vpop.f32.mrb[41].mxu1  ;;  %v20505_v63 = vpop.f32.mrb[73].mxu0 }
 0x5ea   : > { %v26001_v5 = vpop.f32.mrb[42].mxu1  ;;  %v26003_v16 = vpop.f32.mrb[74].mxu0  ;;  %v12238_v63 = vsel %vm9319_vm2, %v6565_v40, 0 }
 0x5eb   : > { %29919 = vst [vmem:[#allocation14_spill] sm:$0xff] %v26001_v5  ;;  %29920 = vst [vmem:[#allocation54_spill] sm:$0xff] %v26003_v16  ;;  %v3809_v11 = vpack.c.bf16 %v22528_v6, %v22523_v12  ;;  %v3810_v2 = vpack.c.bf16 %v22531_v32, %v22526_v33  ;;  %v20500_v27 = vpop.f32.mrb[43].mxu1  ;;  %v20506_v0 = vpop.f32.mrb[75].mxu0  ;;  %v6566_v33 = vpack.c.bf16 %v21908_v50, %v21903_v29  ;;  %v22506_v50 = vunpack.i.l.bf16 %v25977_v56 }
 0x5ec   : > { %v3812_v32 = vpack.c.bf16 %v22468_v47, %v22463_v61  ;;  %v26038_v0 = vpop.permute.xlu0 %22558  ;;  %v22540_v47 = vunpack.i.l.bf16 %v25995_v45 }
 0x5ed   : > { %20774 = vmatmul.mubr.msk.bf16.vlgmr.msra.gmra.mrb[132].mxu1 %vm9319_vm2, %v3809_v11  ;;  %20780 = vmatmul.mubr.msk.bf16.vlgmr.msra.gmra.mrb[164].mxu0 %vm9319_vm2, %v3810_v2  ;;  %v12285_v11 = vsel %vm9319_vm2, %v6566_v33, 0  ;;  %v22518_v2 = vunpack.i.l.bf16 %v25979_v8 }
 0x5ee   : > { %20784 = vmatpush3.bf16.xpose.msra.mxu1 %v12144_v46  ;;  %20790 = vmatpush3.bf16.xpose.msra.mxu0 %v12191_v52  ;;  %v22511_v46 = vunpack.i.l.bf16 %v25983_v4  ;;  %v22519_v4 = vunpack.i.h.bf16 %v25979_v8  ;;  %v22541_v8 = vunpack.i.h.bf16 %v25995_v45 }
 0x5ef   : > { %20785 = vmatprep.mubr.msk.bf16.mxu1 %vm24211_vm3, %v29802_v30  ;;  %20791 = vmatprep.mubr.msk.bf16.mxu0 %vm24211_vm3, %v29802_v30  ;;  %v26023_v25 = vpop.f32.mrb[44].mxu1 }
 0x5f0   : > { %20795 = vmatprep.subr.bf16.mxu1 %v29802_v30  ;;  %20801 = vmatprep.subr.bf16.mxu0 %v29802_v30  ;;  %v26027_v43 = vpop.f32.mrb[76].mxu0  ;;  %v20511_v13 = vpop.f32.mrb[45].mxu1  ;;  %v3813_v33 = vpack.c.bf16 %v22511_v46, %v22506_v50 }
 0x5f1   : > { %v20517_v23 = vpop.f32.mrb[77].mxu0  ;;  %v26029_v12 = vpop.f32.mrb[46].mxu1 }
 0x5f2   : > { %29923 = vst [vmem:[#allocation51_spill] sm:$0xff] %v26029_v12  ;;  %v26031_v1 = vpop.f32.mrb[78].mxu0  ;;  %v20512_v7 = vpop.f32.mrb[47].mxu1  ;;  %v3814_v23 = vpack.c.bf16 %v22514_v58, %v22509_v17 }
 0x5f3   : > { %29924 = vst [vmem:[#allocation56_spill] sm:$0xff] %v26031_v1  ;;  %v20518_v6 = vpop.f32.mrb[79].mxu0 }
 0x5f5   : > { %v22534_v3 = vpop.permute.xlu1 %22533  ;;  %20786 = vmatmul.mubr.msk.bf16.vlgmr.msra.gmra.mrb[136].mxu1 %vm9319_vm2, %v3811_v49  ;;  %20792 = vmatmul.mubr.msk.bf16.vlgmr.msra.gmra.mrb[168].mxu0 %vm9319_vm2, %v3812_v32 }
 0x5f6   : > { %v22535_v27 = vunpack.i.l.bf16 %v22534_v3  ;;  %20796 = vmatpush3.bf16.xpose.msra.mxu1 %v12238_v63  ;;  %20802 = vmatpush3.bf16.xpose.msra.mxu0 %v12285_v11  ;;  %v22536_v15 = vunpack.i.h.bf16 %v22534_v3  ;;  %v22569_v11 = vpop.permute.xlu0 %22568 }
 0x5f7   : > { %20797 = vmatprep.mubr.msk.bf16.mxu1 %vm24211_vm3, %v29802_v30  ;;  %20803 = vmatprep.mubr.msk.bf16.mxu0 %vm24211_vm3, %v29802_v30  ;;  %v26048_v52 = vpop.f32.mrb[48].mxu1 }
 0x5f8   : > { %v22649_v19 = vpack.i.bf16 %v22518_v2, %v22535_v27  ;;  %v26050_v29 = vpop.f32.mrb[80].mxu0  ;;  %v20523_v61 = vpop.f32.mrb[49].mxu1  ;;  %20807 = vmatprep.subr.bf16.mxu1 %v29802_v30  ;;  %20813 = vmatprep.subr.bf16.mxu0 %v29802_v30  ;;  %v22651_v32 = vpack.i.bf16 %v22519_v4, %v22536_v15 }
 0x5f9   : > { %v22544_v56 = vpop.permute.xlu1 %22543  ;;  %v20529_v22 = vpop.f32.mrb[81].mxu0  ;;  %v22550_v61 = vunpack.i.l.bf16 %v26017_v38 }
 0x5fa   : > { %v22545_v28 = vunpack.i.l.bf16 %v22544_v56  ;;  %22650 = vxpose.xlu1.b32.start [1/2] (short) (narrow) %v22649_v19, 32  ;;  %v26056_v13 = vpop.f32.mrb[50].mxu1  ;;  %v26058_v40 = vpop.f32.mrb[82].mxu0  ;;  %v22546_v6 = vunpack.i.h.bf16 %v22544_v56 }
 0x5fb   : > { %29925 = vst [vmem:[#allocation55_spill] sm:$0xff] %v26056_v13  ;;  %29926 = vst [vmem:[#allocation57_spill] sm:$0xff] %v26058_v40  ;;  %v20524_v7 = vpop.f32.mrb[51].mxu1  ;;  %v20530_v49 = vpop.f32.mrb[83].mxu0 }
 0x5fc   : > { %v22673_v3 = vpack.i.bf16 %v22540_v47, %v22545_v28  ;;  %v22675_v27 = vpack.i.bf16 %v22541_v8, %v22546_v6  ;;  %v22560_v7 = vunpack.i.l.bf16 %v26038_v0 }
 0x5fd   : > { %v22554_v63 = vpop.permute.xlu1 %22553  ;;  %20798 = vmatmul.mubr.msk.bf16.vlgmr.msra.gmra.mrb[140].mxu1 %vm9319_vm2, %v3813_v33  ;;  %20804 = vmatmul.mubr.msk.bf16.vlgmr.msra.gmra.mrb[172].mxu0 %vm9319_vm2, %v3814_v23  ;;  %v22551_v23 = vunpack.i.h.bf16 %v26017_v38  ;;  %v22561_v38 = vunpack.i.h.bf16 %v26038_v0 }
 0x5fe   : > { %22674 = vxpose.xlu0.b32.start [1/2] (short) (narrow) %v22673_v3, 32  ;;  %22652 = vxpose.xlu1.b32.end [2/2] (short) (narrow) %v22651_v32, 32  ;;  %v22555_v58 = vunpack.i.l.bf16 %v22554_v63  ;;  %v22556_v4 = vunpack.i.h.bf16 %v22554_v63 }
 0x5ff   : > { %v26063_v2 = vpop.f32.mrb[52].mxu1  ;;  %20809 = vmatprep.mubr.msk.bf16.mxu1 %vm24211_vm3, %v29802_v30  ;;  %20815 = vmatprep.mubr.msk.bf16.mxu0 %vm24211_vm3, %v29802_v30 }
 0x600   : > { %v26069_v17 = vpop.f32.mrb[84].mxu0  ;;  %v20535_v50 = vpop.f32.mrb[53].mxu1  ;;  %v22697_v33 = vpack.i.bf16 %v22550_v61, %v22555_v58  ;;  %v22699_v6 = vpack.i.bf16 %v22551_v23, %v22556_v4 }
 0x601   : > { %v22564_v46 = vpop.permute.xlu1 %22563  ;;  %v20541_v15 = vpop.f32.mrb[85].mxu0 }
 0x602   : > { %22676 = vxpose.xlu0.b32.end [2/2] (short) (narrow) %v22675_v27, 32  ;;  %v26071_v45 = vpop.f32.mrb[54].mxu1  ;;  %v26073_v19 = vpop.f32.mrb[86].mxu0  ;;  %v22565_v28 = vunpack.i.l.bf16 %v22564_v46  ;;  %v22566_v27 = vunpack.i.h.bf16 %v22564_v46  ;;  %v22570_v46 = vunpack.i.l.bf16 %v22569_v11 }
 0x603   : > { %29927 = vst [vmem:[#allocation60_spill] sm:$0xff] %v26071_v45  ;;  %29928 = vst [vmem:[#allocation58_spill] sm:$0xff] %v26073_v19  ;;  %v20536_v56 = vpop.f32.mrb[55].mxu1  ;;  %v20542_v22 = vpop.f32.mrb[87].mxu0 }
 0x604   : > { %v26076_v47 = vpop.trf.xlu0  ;;  %v22721_v50 = vpack.i.bf16 %v22560_v7, %v22565_v28  ;;  %v22723_v4 = vpack.i.bf16 %v22561_v38, %v22566_v27  ;;  %v22571_v27 = vunpack.i.h.bf16 %v22569_v11 }
 0x605   : > { %v22574_v49 = vpop.permute.xlu1 %22573 }
 0x606   : > { %v22575_v23 = vunpack.i.l.bf16 %v22574_v49 }
 0x607   : > { %22698 = vxpose.xlu1.b32.start [1/2] (short) (narrow) %v22697_v33, 32  ;;  %v26080_v32 = vpop.f32.mrb[56].mxu1 }
 0x608   : > { %v26082_v3 = vpop.f32.mrb[88].mxu0  ;;  %v26084_v8 = vpop.trf.xlu0  ;;  %v22745_v0 = vpack.i.bf16 %v22570_v46, %v22575_v23 }
 0x609   : > { %v20547_v63 = vpop.f32.mrb[57].mxu1  ;;  %v20553_v15 = vpop.f32.mrb[89].mxu0 }
 0x60a   : > { %v26086_v56 = vpop.f32.mrb[58].mxu1  ;;  %v26088_v58 = vpop.f32.mrb[90].mxu0 }
 0x60b   : > { %29929 = vst [vmem:[#allocation63_spill] sm:$0xff] %v26086_v56  ;;  %29930 = vst [vmem:[#allocation62_spill] sm:$0xff] %v26088_v58  ;;  %22722 = vxpose.xlu0.b32.start [1/2] (short) (narrow) %v22721_v50, 32  ;;  %22700 = vxpose.xlu1.b32.end [2/2] (short) (narrow) %v22699_v6, 32  ;;  %v20548_v61 = vpop.f32.mrb[59].mxu1  ;;  %v20554_v22 = vpop.f32.mrb[91].mxu0  ;;  %v22576_v58 = vunpack.i.h.bf16 %v22574_v49  ;;  %v22614_v49 = vunpack.i.h.bf16 %v26084_v8 }
 0x60c   : > { %v26091_v33 = vpop.trf.xlu0 }
 0x60d   : > { %v22747_v38 = vpack.i.bf16 %v22571_v27, %v22576_v58 }
 0x60f   : > { %22724 = vxpose.xlu0.b32.end [2/2] (short) (narrow) %v22723_v4, 32  ;;  %v26093_v19 = vpop.f32.mrb[60].mxu1 }
 0x610   : > { %v26095_v28 = vpop.f32.mrb[92].mxu0  ;;  %v20559_v7 = vpop.f32.mrb[61].mxu1 }
 0x611   : > { %v20565_v63 = vpop.f32.mrb[93].mxu0  ;;  %v26097_v15 = vpop.f32.mrb[62].mxu1 }
 0x612   : > { %29931 = vst [vmem:[#allocation61_spill] sm:$0xff] %v26097_v15  ;;  %v26099_v50 = vpop.f32.mrb[94].mxu0  ;;  %v20560_v6 = vpop.f32.mrb[63].mxu1  ;;  %v22609_v63 = vunpack.i.h.bf16 %v26076_v47 }
 0x613   : > { %29932 = vst [vmem:[#allocation59_spill] sm:$0xff] %v26099_v50  ;;  %v20566_v61 = vpop.f32.mrb[95].mxu0  ;;  %v26101_v22 = vpop.trf.xlu0 }
 0x614   : > { %22746 = vxpose.xlu1.b32.start [1/2] (short) (narrow) %v22745_v0, 32  ;;  %v22805_v11 = vpack.i.bf16 %v22614_v49, %v22609_v63 }
 0x617   : > { %v26103_v4 = vpop.f32.mrb[64].mxu1 }
 0x618   : > { %22748 = vxpose.xlu1.b32.end [2/2] (short) (narrow) %v22747_v38, 32  ;;  %v26105_v56 = vpop.f32.mrb[96].mxu0  ;;  %v20571_v7 = vpop.f32.mrb[65].mxu1 }
 0x619   : > { %v20577_v23 = vpop.f32.mrb[97].mxu0  ;;  %v26109_v46 = vpop.f32.mrb[66].mxu1 }
 0x61a   : > { %29933 = vst [vmem:[#allocation65_spill] sm:$0xff] %v26109_v46  ;;  %v26111_v6 = vpop.f32.mrb[98].mxu0  ;;  %v20572_v61 = vpop.f32.mrb[67].mxu1 }
 0x61b   : > { %29934 = vst [vmem:[#allocation64_spill] sm:$0xff] %v26111_v6  ;;  %v20578_v50 = vpop.f32.mrb[99].mxu0 }
 0x61f   : > { %v26113_v0 = vpop.f32.mrb[68].mxu1 }
 0x620   : > { %v26115_v58 = vpop.f32.mrb[100].mxu0  ;;  %v20583_v27 = vpop.f32.mrb[69].mxu1 }
 0x621   : > { %22806 = vxpose.xlu1.b32.start.end [1/1] (short) (narrow) %v22805_v11, 16  ;;  %v20589_v38 = vpop.f32.mrb[101].mxu0  ;;  %v26117_v7 = vpop.f32.mrb[70].mxu1 }
 0x622   : > { %29935 = vst [vmem:[#allocation16_spill] sm:$0xff] %v26117_v7  ;;  %v26119_v15 = vpop.f32.mrb[102].mxu0  ;;  %v20584_v45 = vpop.f32.mrb[71].mxu1 }
 0x623   : > { %29936 = vst [vmem:[#allocation17_spill] sm:$0xff] %v26119_v15  ;;  %v20590_v23 = vpop.f32.mrb[103].mxu0 }
 0x627   : > { %v26121_v40 = vpop.f32.mrb[72].mxu1 }
 0x628   : > { %v26123_v46 = vpop.f32.mrb[104].mxu0  ;;  %v20595_v61 = vpop.f32.mrb[73].mxu1 }
 0x629   : > { %29937 = vst [vmem:[#allocation67_spill] sm:$0xff] %v26123_v46  ;;  %v20601_v50 = vpop.f32.mrb[105].mxu0  ;;  %v26125_v63 = vpop.f32.mrb[74].mxu1 }
 0x62a   : > { %29938 = vst [vmem:[#allocation66_spill] sm:$0xff] %v26125_v63  ;;  %v26127_v49 = vpop.trf.xlu0  ;;  %v26129_v6 = vpop.f32.mrb[106].mxu0 }
 0x62b   : > { %29939 = vst [vmem:[#allocation70_spill] sm:$0xff] %v26129_v6  ;;  %v20596_v11 = vpop.f32.mrb[75].mxu1  ;;  %v20602_v27 = vpop.f32.mrb[107].mxu0 }
 0x62e   : > { %v26131_v38 = vpop.trf.xlu0 }
 0x62f   : > { %v26133_v7 = vpop.f32.mrb[76].mxu1 }
 0x630   : > { %29940 = vst [vmem:[#allocation68_spill] sm:$0xff] %v26133_v7  ;;  %v26135_v45 = vpop.f32.mrb[108].mxu0  ;;  %v20607_v23 = vpop.f32.mrb[77].mxu1 }
 0x631   : > { %29941 = vst [vmem:[#allocation22_spill] sm:$0xff] %v26135_v45  ;;  %v20613_v15 = vpop.f32.mrb[109].mxu0  ;;  %v26137_v13 = vpop.f32.mrb[78].mxu1 }
 0x632   : > { %29942 = vst [vmem:[#allocation23_spill] sm:$0xff] %v26137_v13  ;;  %v26139_v61 = vpop.f32.mrb[110].mxu0  ;;  %v20608_v50 = vpop.f32.mrb[79].mxu1 }
 0x633   : > { %29943 = vst [vmem:[#allocation38_spill] sm:$0xff] %v26139_v61  ;;  %v20614_v63 = vpop.f32.mrb[111].mxu0  ;;  %v26141_v1 = vpop.trf.xlu0 }
 0x637   : > { %v26143_v12 = vpop.f32.mrb[80].mxu1  ;;  %v26145_v11 = vpop.trf.xlu0 }
 0x638   : > { %29944 = vst [vmem:[#allocation39_spill] sm:$0xff] %v26143_v12  ;;  %v26147_v27 = vpop.f32.mrb[112].mxu0  ;;  %v20619_v6 = vpop.f32.mrb[81].mxu1 }
 0x639   : > { %29945 = vst [vmem:[#allocation72_spill] sm:$0xff] %v26147_v27  ;;  %v20625_v16 = vpop.f32.mrb[113].mxu0  ;;  %v26149_v5 = vpop.f32.mrb[82].mxu1 }
 0x63a   : > { %29946 = vst [vmem:[#allocation26_spill] sm:$0xff] %v26149_v5  ;;  %v26151_v23 = vpop.f32.mrb[114].mxu0  ;;  %v20620_v15 = vpop.f32.mrb[83].mxu1 }
 0x63b   : > { %29947 = vst [vmem:[#allocation46_spill] sm:$0xff] %v26151_v23  ;;  %v20626_v13 = vpop.f32.mrb[115].mxu0 }
 0x63c   : > { %v22581_v53 = vpop.trf.xlu1 }
 0x63d   : > { %v22585_v61 = vunpack.i.h.bf16 %v22581_v53  ;;  %v22582_v27 = vunpack.i.l.bf16 %v22581_v53 }
 0x63f   : > { %v26153_v50 = vpop.f32.mrb[84].mxu1 }
 0x640   : > { %29948 = vst [vmem:[#allocation27_spill] sm:$0xff] %v26153_v50  ;;  %v22586_v63 = vpop.trf.xlu1  ;;  %v26155_v20 = vpop.f32.mrb[116].mxu0 }
 0x641   : > { %29949 = vst [vmem:[#allocation18_spill] sm:$0xff] %v26155_v20  ;;  %v22590_v12 = vunpack.i.h.bf16 %v22586_v63  ;;  %v20631_v55 = vpop.f32.mrb[85].mxu1  ;;  %v20637_v45 = vpop.f32.mrb[117].mxu0  ;;  %v22587_v18 = vunpack.i.l.bf16 %v22586_v63 }
 0x642   : > { %v26157_v6 = vpop.f32.mrb[86].mxu1  ;;  %v26159_v16 = vpop.f32.mrb[118].mxu0 }
 0x643   : > { %29950 = vst [vmem:[#allocation79_spill] sm:$0xff] %v26157_v6  ;;  %29951 = vst [vmem:[#allocation77_spill] sm:$0xff] %v26159_v16  ;;  %v22769_v5 = vpack.i.bf16 %v22590_v12, %v22585_v61  ;;  %v20632_v23 = vpop.f32.mrb[87].mxu1  ;;  %v20638_v15 = vpop.f32.mrb[119].mxu0  ;;  %v22781_v7 = vpack.i.bf16 %v22587_v18, %v22582_v27  ;;  %v22606_v6 = vunpack.i.l.bf16 %v26076_v47  ;;  %v22611_v12 = vunpack.i.l.bf16 %v26084_v8 }
 0x644   : > { %v22591_v13 = vpop.trf.xlu1  ;;  %v22619_v16 = vunpack.i.h.bf16 %v26091_v33  ;;  %v22638_v47 = vunpack.i.h.bf16 %v26131_v38 }
 0x645   : > { %22770 = vxpose.xlu0.b32.start.end [1/1] (short) (narrow) %v22769_v5, 16  ;;  %v22592_v59 = vunpack.i.l.bf16 %v22591_v13  ;;  %v22595_v50 = vunpack.i.h.bf16 %v22591_v13  ;;  %v22624_v13 = vunpack.i.h.bf16 %v26101_v22 }
 0x647   : > { %v26161_v46 = vpop.f32.mrb[88].mxu1 }
 0x648   : > { %v22596_v20 = vpop.trf.xlu1  ;;  %v26163_v24 = vpop.f32.mrb[120].mxu0 }
 0x649   : > { %29952 = vst [vmem:[#allocation36_spill] sm:$0xff] %v26163_v24  ;;  %v22597_v55 = vunpack.i.l.bf16 %v22596_v20  ;;  %v22600_v45 = vunpack.i.h.bf16 %v22596_v20  ;;  %v20643_v53 = vpop.f32.mrb[89].mxu1  ;;  %v20649_v63 = vpop.f32.mrb[121].mxu0  ;;  %v22829_v20 = vpack.i.bf16 %v22611_v12, %v22606_v6 }
 0x64a   : > { %22782 = vxpose.xlu0.b32.start.end [1/1] (short) (narrow) %v22781_v7, 16  ;;  %v26167_v61 = vpop.f32.mrb[90].mxu1  ;;  %v26169_v5 = vpop.f32.mrb[122].mxu0  ;;  %v22633_v7 = vunpack.i.h.bf16 %v26127_v49  ;;  %v22841_v53 = vpack.i.bf16 %v22624_v13, %v22619_v16  ;;  %v22630_v16 = vunpack.i.l.bf16 %v26127_v49 }
 0x64b   : > { %29953 = vst [vmem:[#allocation43_spill] sm:$0xff] %v26167_v61  ;;  %29954 = vst [vmem:[#allocation44_spill] sm:$0xff] %v26169_v5  ;;  %v22817_v18 = vpack.i.bf16 %v22597_v55, %v22592_v59  ;;  %v22793_v27 = vpack.i.bf16 %v22600_v45, %v22595_v50  ;;  %v20644_v23 = vpop.f32.mrb[91].mxu1  ;;  %v20650_v15 = vpop.f32.mrb[123].mxu0  ;;  %v22621_v50 = vunpack.i.l.bf16 %v26101_v22  ;;  %v22616_v55 = vunpack.i.l.bf16 %v26091_v33 }
 0x64c   : > { %v22635_v15 = vunpack.i.l.bf16 %v26131_v38  ;;  %v22643_v22 = vunpack.i.h.bf16 %v26141_v1 }
 0x64d   : > { %22818 = vxpose.xlu1.b32.start.end [1/1] (short) (narrow) %v22817_v18, 16  ;;  %v22853_v18 = vpack.i.bf16 %v22638_v47, %v22633_v7  ;;  %v22865_v13 = vpack.i.bf16 %v22621_v50, %v22616_v55  ;;  %v22645_v50 = vunpack.i.l.bf16 %v26145_v11  ;;  %v22640_v55 = vunpack.i.l.bf16 %v26141_v1 }
 0x64f   : > { %22794 = vxpose.xlu0.b32.start.end [1/1] (short) (narrow) %v22793_v27, 16  ;;  %v26175_v8 = vpop.f32.mrb[92].mxu1 }
 0x650   : > { %29955 = vst [vmem:[#allocation71_spill] sm:$0xff] %v26175_v8  ;;  %v26177_v63 = vpop.f32.mrb[124].mxu0  ;;  %v20655_v59 = vpop.f32.mrb[93].mxu1 }
 0x651   : > { %29956 = vst [vmem:[#allocation10_spill] sm:$0xff] %v26177_v63  ;;  %v20661_v45 = vpop.f32.mrb[125].mxu0  ;;  %v26181_v23 = vpop.f32.mrb[94].mxu1  ;;  %v22648_v59 = vunpack.i.h.bf16 %v26145_v11 }
 0x652   : > { %29957 = vst [vmem:[#allocation12_spill] sm:$0xff] %v26181_v23  ;;  %22830 = vxpose.xlu1.b32.start.end [1/1] (short) (narrow) %v22829_v20, 16  ;;  %v26183_v6 = vpop.f32.mrb[126].mxu0  ;;  %v20656_v12 = vpop.f32.mrb[95].mxu1  ;;  %v22877_v45 = vpack.i.bf16 %v22635_v15, %v22630_v16 }
 0x653   : > { %29958 = vst [vmem:[#allocation69_spill] sm:$0xff] %v26183_v6  ;;  %v20662_v27 = vpop.f32.mrb[127].mxu0 }
 0x654   : > { %22842 = vxpose.xlu0.b32.start.end [1/1] (short) (narrow) %v22841_v53, 16  ;;  %v22889_v53 = vpack.i.bf16 %v22648_v59, %v22643_v22 }
 0x657   : > { %22854 = vxpose.xlu1.b32.start.end [1/1] (short) (narrow) %v22853_v18, 16  ;;  %v26189_v33 = vpop.f32.mrb[96].mxu1  ;;  %v22913_v18 = vpack.i.bf16 %v22645_v50, %v22640_v55 }
 0x658   : > { %29959 = vst [vmem:[#allocation47_spill] sm:$0xff] %v26189_v33  ;;  %v26191_v20 = vpop.f32.mrb[128].mxu0  ;;  %v20667_v6 = vpop.f32.mrb[97].mxu1 }
 0x659   : > { %29960 = vst [vmem:[#allocation31_spill] sm:$0xff] %v26191_v20  ;;  %22866 = vxpose.xlu0.b32.start.end [1/1] (short) (narrow) %v22865_v13, 16  ;;  %v20673_v47 = vpop.f32.mrb[129].mxu0  ;;  %v26193_v7 = vpop.f32.mrb[98].mxu1 }
 0x65a   : > { %29961 = vst [vmem:[#allocation75_spill] sm:$0xff] %v26193_v7  ;;  %v26195_v38 = vpop.f32.mrb[130].mxu0  ;;  %v20668_v49 = vpop.f32.mrb[99].mxu1 }
 0x65b   : > { %29962 = vst [vmem:[#allocation73_spill] sm:$0xff] %v26195_v38  ;;  %v20674_v12 = vpop.f32.mrb[131].mxu0 }
 0x65c   : > { %22878 = vxpose.xlu1.b32.start.end [1/1] (short) (narrow) %v22877_v45, 16 }
 0x65e   : > { %22890 = vxpose.xlu0.b32.start.end [1/1] (short) (narrow) %v22889_v53, 16 }
 0x65f   : > { %v26199_v27 = vpop.f32.mrb[100].mxu1 }
 0x660   : > { %29963 = vst [vmem:[#allocation80_spill] sm:$0xff] %v26199_v27  ;;  %v26201_v15 = vpop.f32.mrb[132].mxu0  ;;  %v20679_v6 = vpop.f32.mrb[101].mxu1 }
 0x661   : > { %29964 = vst [vmem:[#allocation30_spill] sm:$0xff] %v26201_v15  ;;  %v20685_v16 = vpop.f32.mrb[133].mxu0  ;;  %v26203_v13 = vpop.f32.mrb[102].mxu1 }
 0x662   : > { %29965 = vst [vmem:[#allocation11_spill] sm:$0xff] %v26203_v13  ;;  %v26205_v59 = vpop.f32.mrb[134].mxu0  ;;  %v20680_v22 = vpop.f32.mrb[103].mxu1 }
 0x663   : > { %29966 = vst [vmem:[#allocation78_spill] sm:$0xff] %v26205_v59  ;;  %22914 = vxpose.xlu0.b32.start.end [1/1] (short) (narrow) %v22913_v18, 16  ;;  %v20686_v47 = vpop.f32.mrb[135].mxu0 }
 0x667   : > { %v26207_v11 = vpop.f32.mrb[104].mxu1 }
 0x668   : > { %29967 = vst [vmem:[#allocation87_spill] sm:$0xff] %v26207_v11  ;;  %v26209_v1 = vpop.f32.mrb[136].mxu0  ;;  %v20691_v45 = vpop.f32.mrb[105].mxu1 }
 0x669   : > { %29968 = vst [vmem:[#allocation85_spill] sm:$0xff] %v26209_v1  ;;  %v20697_v53 = vpop.f32.mrb[137].mxu0  ;;  %v26211_v49 = vpop.f32.mrb[106].mxu1 }
 0x66a   : > { %29969 = vst [vmem:[#allocation20_spill] sm:$0xff] %v26211_v49  ;;  %v26213_v50 = vpop.f32.mrb[138].mxu0  ;;  %v20692_v55 = vpop.f32.mrb[107].mxu1 }
 0x66b   : > { %29970 = vst [vmem:[#allocation19_spill] sm:$0xff] %v26213_v50  ;;  %v20698_v12 = vpop.f32.mrb[139].mxu0 }
 0x66f   : > { %v26215_v6 = vpop.f32.mrb[108].mxu1 }
 0x670   : > { %29971 = vst [vmem:[#allocation21_spill] sm:$0xff] %v26215_v6  ;;  %v26217_v16 = vpop.f32.mrb[140].mxu0  ;;  %v20703_v59 = vpop.f32.mrb[109].mxu1 }
 0x671   : > { %29972 = vst [vmem:[#allocation101_spill] sm:$0xff] %v26217_v16  ;;  %v20709_v22 = vpop.f32.mrb[141].mxu0  ;;  %v26219_v18 = vpop.f32.mrb[110].mxu1 }
 0x672   : > { %29973 = vst [vmem:[#allocation24_spill] sm:$0xff] %v26219_v18  ;;  %v26221_v47 = vpop.f32.mrb[142].mxu0  ;;  %v20704_v13 = vpop.f32.mrb[111].mxu1 }
 0x673   : > { %29974 = vst [vmem:[#allocation42_spill] sm:$0xff] %v26221_v47  ;;  %v20710_v38 = vpop.f32.mrb[143].mxu0 }
 0x677   : > { %v26223_v45 = vpop.f32.mrb[112].mxu1 }
 0x678   : > { %29975 = vst [vmem:[#allocation76_spill] sm:$0xff] %v26223_v45  ;;  %v26225_v53 = vpop.f32.mrb[144].mxu0  ;;  %v20715_v49 = vpop.f32.mrb[113].mxu1 }
 0x679   : > { %29976 = vst [vmem:[#allocation25_spill] sm:$0xff] %v26225_v53  ;;  %v20721_v50 = vpop.f32.mrb[145].mxu0  ;;  %v26227_v55 = vpop.f32.mrb[114].mxu1 }
 0x67a   : > { %29977 = vst [vmem:[#allocation41_spill] sm:$0xff] %v26227_v55  ;;  %v22653_v12 = vpop.trf.xlu1  ;;  %v26229_v7 = vpop.f32.mrb[146].mxu0 }
 0x67b   : > { %29978 = vst [vmem:[#allocation74_spill] sm:$0xff] %v26229_v7  ;;  %v20716_v23 = vpop.f32.mrb[115].mxu1  ;;  %v20722_v59 = vpop.f32.mrb[147].mxu0  ;;  %v22657_v13 = vunpack.i.h.bf16 %v22653_v12 }
 0x67c   : > { %v22654_v59 = vunpack.i.l.bf16 %v22653_v12 }
 0x67e   : > { %v22658_v22 = vpop.trf.xlu1  ;;  %v22677_v5 = vpop.trf.xlu0 }
 0x67f   : > { %v26231_v18 = vpop.f32.mrb[116].mxu1  ;;  %v22662_v47 = vunpack.i.h.bf16 %v22658_v22  ;;  %v22659_v16 = vunpack.i.l.bf16 %v22658_v22  ;;  %v22681_v27 = vunpack.i.h.bf16 %v22677_v5  ;;  %v22678_v63 = vunpack.i.l.bf16 %v22677_v5 }
 0x680   : > { %29979 = vst [vmem:[#allocation28_spill] sm:$0xff] %v26231_v18  ;;  %v26233_v38 = vpop.f32.mrb[148].mxu0  ;;  %v20727_v61 = vpop.f32.mrb[117].mxu1 }
 0x681   : > { %29980 = vst [vmem:[#allocation48_spill] sm:$0xff] %v26233_v38  ;;  %v20733_v45 = vpop.f32.mrb[149].mxu0  ;;  %v26235_v53 = vpop.f32.mrb[118].mxu1  ;;  %v22901_v50 = vpack.i.bf16 %v22662_v47, %v22657_v13  ;;  %v22925_v11 = vpack.i.bf16 %v22659_v16, %v22654_v59 }
 0x682   : > { %29981 = vst [vmem:[#allocation29_spill] sm:$0xff] %v26235_v53  ;;  %v22663_v49 = vpop.trf.xlu1  ;;  %v22682_v55 = vpop.trf.xlu0 }
 0x683   : > { %v26237_v6 = vpop.f32.mrb[150].mxu0  ;;  %v20728_v23 = vpop.f32.mrb[119].mxu1  ;;  %22902 = vxpose.xlu1.b32.start.end [1/1] (short) (narrow) %v22901_v50, 16  ;;  %v22667_v61 = vunpack.i.h.bf16 %v22663_v49  ;;  %v22686_v45 = vunpack.i.h.bf16 %v22682_v55  ;;  %v22683_v33 = vunpack.i.l.bf16 %v22682_v55 }
 0x684   : > { %29982 = vst [vmem:[#allocation40_spill] sm:$0xff] %v26237_v6  ;;  %v20734_v7 = vpop.f32.mrb[151].mxu0 }
 0x685   : > { %v22949_v59 = vpack.i.bf16 %v22686_v45, %v22681_v27 }
 0x686   : > { %v22668_v1 = vpop.trf.xlu1  ;;  %v22687_v18 = vpop.trf.xlu0 }
 0x687   : > { %v26239_v15 = vpop.f32.mrb[120].mxu1  ;;  %v22672_v38 = vunpack.i.h.bf16 %v22668_v1  ;;  %v22669_v7 = vunpack.i.l.bf16 %v22668_v1 }
 0x688   : > { %29983 = vst [vmem:[#allocation32_spill] sm:$0xff] %v26239_v15  ;;  %v26241_v53 = vpop.f32.mrb[152].mxu0  ;;  %v20739_v47 = vpop.f32.mrb[121].mxu1  ;;  %22926 = vxpose.xlu1.b32.start.end [1/1] (short) (narrow) %v22925_v11, 16  ;;  %v22664_v15 = vunpack.i.l.bf16 %v22663_v49 }
 0x689   : > { %29984 = vst [vmem:[#allocation45_spill] sm:$0xff] %v26241_v53  ;;  %v20745_v22 = vpop.f32.mrb[153].mxu0  ;;  %v26243_v13 = vpop.f32.mrb[122].mxu1  ;;  %v22937_v50 = vpack.i.bf16 %v22672_v38, %v22667_v61  ;;  %v22691_v38 = vunpack.i.h.bf16 %v22687_v18 }
 0x68a   : > { %29985 = vst [vmem:[#allocation83_spill] sm:$0xff] %v26243_v13  ;;  %v22701_v23 = vpop.trf.xlu1  ;;  %v22692_v12 = vpop.trf.xlu0  ;;  %v22961_v47 = vpack.i.bf16 %v22669_v7, %v22664_v15 }
 0x68b   : > { %v26245_v6 = vpop.f32.mrb[154].mxu0  ;;  %v20740_v16 = vpop.f32.mrb[123].mxu1  ;;  %22938 = vxpose.xlu0.b32.start.end [1/1] (short) (narrow) %v22937_v50, 16  ;;  %v22696_v13 = vunpack.i.h.bf16 %v22692_v12  ;;  %v22705_v5 = vunpack.i.h.bf16 %v22701_v23 }
 0x68c   : > { %29986 = vst [vmem:[#allocation33_spill] sm:$0xff] %v26245_v6  ;;  %v20746_v20 = vpop.f32.mrb[155].mxu0  ;;  %v22973_v16 = vpack.i.bf16 %v22683_v33, %v22678_v63  ;;  %v22693_v6 = vunpack.i.l.bf16 %v22692_v12  ;;  %v22702_v33 = vunpack.i.l.bf16 %v22701_v23 }
 0x68d   : > { %22950 = vxpose.xlu1.b32.start.end [1/1] (short) (narrow) %v22949_v59, 16  ;;  %v22985_v7 = vpack.i.bf16 %v22696_v13, %v22691_v38 }
 0x68e   : > { %v22706_v53 = vpop.trf.xlu1  ;;  %v26247_v11 = vpop.trf.xlu0 }
 0x68f   : > { %v26249_v22 = vpop.f32.mrb[124].mxu1  ;;  %v22710_v55 = vunpack.i.h.bf16 %v22706_v53  ;;  %v22707_v63 = vunpack.i.l.bf16 %v22706_v53 }
 0x690   : > { %29987 = vst [vmem:[#allocation50_spill] sm:$0xff] %v26249_v22  ;;  %v26251_v61 = vpop.f32.mrb[156].mxu0  ;;  %v20751_v1 = vpop.f32.mrb[125].mxu1  ;;  %22962 = vxpose.xlu0.b32.start.end [1/1] (short) (narrow) %v22961_v47, 16  ;;  %v22688_v22 = vunpack.i.l.bf16 %v22687_v18 }
 0x691   : > { %29988 = vst [vmem:[#allocation81_spill] sm:$0xff] %v26251_v61  ;;  %v20757_v50 = vpop.f32.mrb[157].mxu0  ;;  %v26253_v27 = vpop.f32.mrb[126].mxu1  ;;  %v22997_v1 = vpack.i.bf16 %v22710_v55, %v22705_v5  ;;  %v23021_v13 = vpack.i.bf16 %v22707_v63, %v22702_v33  ;;  %v22729_v5 = vunpack.i.h.bf16 %v26247_v11  ;;  %v22726_v63 = vunpack.i.l.bf16 %v26247_v11 }
 0x692   : > { %29989 = vst [vmem:[#allocation35_spill] sm:$0xff] %v26253_v27  ;;  %v22711_v20 = vpop.trf.xlu1  ;;  %v22730_v49 = vpop.trf.xlu0  ;;  %22974 = vxpose.xlu1.b32.start.end [1/1] (short) (narrow) %v22973_v16, 16  ;;  %v23009_v16 = vpack.i.bf16 %v22693_v6, %v22688_v22 }
 0x693   : > { %v26255_v15 = vpop.f32.mrb[158].mxu0  ;;  %v20752_v45 = vpop.f32.mrb[127].mxu1  ;;  %v22715_v12 = vunpack.i.h.bf16 %v22711_v20  ;;  %v22734_v23 = vunpack.i.h.bf16 %v22730_v49 }
 0x694   : > { %29990 = vst [vmem:[#allocation13_spill] sm:$0xff] %v26255_v15  ;;  %v20758_v59 = vpop.f32.mrb[159].mxu0 }
 0x695   : > { %22986 = vxpose.xlu0.b32.start.end [1/1] (short) (narrow) %v22985_v7, 16  ;;  %v23045_v22 = vpack.i.bf16 %v22734_v23, %v22729_v5 }
 0x696   : > { %v22716_v61 = vpop.trf.xlu1  ;;  %v22735_v47 = vpop.trf.xlu0 }
 0x697   : > { %v26257_v50 = vpop.f32.mrb[128].mxu1  ;;  %22998 = vxpose.xlu1.b32.start.end [1/1] (short) (narrow) %v22997_v1, 16  ;;  %v22720_v38 = vunpack.i.h.bf16 %v22716_v61  ;;  %v22717_v6 = vunpack.i.l.bf16 %v22716_v61  ;;  %v22731_v1 = vunpack.i.l.bf16 %v22730_v49 }
 0x698   : > { %v26259_v27 = vpop.f32.mrb[160].mxu0  ;;  %v20763_v8 = vpop.f32.mrb[129].mxu1 }
 0x699   : > { %29991 = vst [vmem:[#allocation37_spill] sm:$0xff] %v26259_v27  ;;  %v20769_v24 = vpop.f32.mrb[161].mxu0  ;;  %v26261_v15 = vpop.f32.mrb[130].mxu1  ;;  %v23033_v59 = vpack.i.bf16 %v22720_v38, %v22715_v12  ;;  %v22736_v12 = vunpack.i.l.bf16 %v22735_v47 }
 0x69a   : > { %29992 = vst [vmem:[#allocation52_spill] sm:$0xff] %v26261_v15  ;;  %v22740_v18 = vpop.trf.xlu0  ;;  %v22749_v45 = vpop.trf.xlu1  ;;  %23010 = vxpose.xlu0.b32.start.end [1/1] (short) (narrow) %v23009_v16, 16  ;;  %v22712_v24 = vunpack.i.l.bf16 %v22711_v20 }
 0x69b   : > { %v26263_v55 = vpop.f32.mrb[162].mxu0  ;;  %v20764_v53 = vpop.f32.mrb[131].mxu1  ;;  %v22753_v27 = vunpack.i.h.bf16 %v22749_v45  ;;  %v22741_v38 = vunpack.i.l.bf16 %v22740_v18  ;;  %v22750_v23 = vunpack.i.l.bf16 %v22749_v45 }
 0x69c   : > { %29993 = vst [vmem:[#allocation88_spill] sm:$0xff] %v26263_v55  ;;  %v20770_v7 = vpop.f32.mrb[163].mxu0  ;;  %23022 = vxpose.xlu1.b32.start.end [1/1] (short) (narrow) %v23021_v13, 16  ;;  %v23057_v16 = vpack.i.bf16 %v22717_v6, %v22712_v24  ;;  %v22744_v55 = vunpack.i.h.bf16 %v22740_v18  ;;  %v22739_v53 = vunpack.i.h.bf16 %v22735_v47 }
 0x69d   : > { %v23069_v7 = vpack.i.bf16 %v22731_v1, %v22726_v63  ;;  %v23105_v5 = vpack.i.bf16 %v22741_v38, %v22736_v12 }
 0x69e   : > { %v22754_v8 = vpop.trf.xlu1  ;;  %v23081_v61 = vpack.i.bf16 %v22744_v55, %v22739_v53 }
 0x69f   : > { %23034 = vxpose.xlu0.b32.start.end [1/1] (short) (narrow) %v23033_v59, 16  ;;  %v22758_v15 = vunpack.i.h.bf16 %v22754_v8  ;;  %v22755_v49 = vunpack.i.l.bf16 %v22754_v8 }
 0x6a1   : > { %23046 = vxpose.xlu1.b32.start.end [1/1] (short) (narrow) %v23045_v22, 16  ;;  %v23093_v20 = vpack.i.bf16 %v22758_v15, %v22753_v27  ;;  %v23117_v59 = vpack.i.bf16 %v22755_v49, %v22750_v23  ;;  %v26300_v23 = vld [vmem:[%s29294_s2] sm:$0xff] }
 0x6a2   : > { %v26267_v33 = vpop.trf.xlu1 }
 0x6a4   : > { %23058 = vxpose.xlu0.b32.start.end [1/1] (short) (narrow) %v23057_v16, 16 }
 0x6a6   : > { %v26269_v13 = vpop.trf.xlu1  ;;  %23070 = vxpose.xlu1.b32.start.end [1/1] (short) (narrow) %v23069_v7, 16 }
 0x6a9   : > { %23082 = vxpose.xlu0.b32.start.end [1/1] (short) (narrow) %v23081_v61, 16 }
 0x6aa   : > { %v26271_v11 = vpop.trf.xlu1 }
 0x6ab   : > { %29994 = vst [vmem:[#allocation86_spill] sm:$0xff] %v26271_v11  ;;  %23094 = vxpose.xlu1.b32.start.end [1/1] (short) (narrow) %v23093_v20, 16 }
 0x6ae   : > { %v26273_v6 = vpop.trf.xlu1  ;;  %23106 = vxpose.xlu0.b32.start.end [1/1] (short) (narrow) %v23105_v5, 16 }
 0x6af   : > { %29995 = vst [vmem:[#allocation95_spill] sm:$0xff] %v26273_v6 }
 0x6b0   : > { %23118 = vxpose.xlu1.b32.start.end [1/1] (short) (narrow) %v23117_v59, 16 }
 0x6c0   : > { %v26275_v24 = vpop.f32.mrb[132].mxu1  ;;  %v26277_v22 = vpop.f32.mrb[164].mxu0 }
 0x6c1   : > { %v20775_v55 = vpop.f32.mrb[133].mxu1  ;;  %v20781_v27 = vpop.f32.mrb[165].mxu0 }
 0x6c2   : > { %v26279_v15 = vpop.f32.mrb[134].mxu1  ;;  %v26281_v47 = vpop.f32.mrb[166].mxu0 }
 0x6c3   : > { %29996 = vst [vmem:[#allocation93_spill] sm:$0xff] %v26279_v15  ;;  %29997 = vst [vmem:[#allocation84_spill] sm:$0xff] %v26281_v47  ;;  %v20776_v18 = vpop.f32.mrb[135].mxu1  ;;  %v20782_v45 = vpop.f32.mrb[167].mxu0 }
 0x6c5   : > { %v26283_v8 = vpop.trf.xlu0 }
 0x6c6   : > { %29998 = vst [vmem:[#allocation82_spill] sm:$0xff] %v26283_v8 }
 0x6c8   : > { %v26285_v1 = vpop.f32.mrb[136].mxu1  ;;  %v26287_v63 = vpop.f32.mrb[168].mxu0 }
 0x6c9   : > { %29999 = vst [vmem:[#allocation91_spill] sm:$0xff] %v26287_v63  ;;  %v20787_v16 = vpop.f32.mrb[137].mxu1  ;;  %v20793_v53 = vpop.f32.mrb[169].mxu0 }
 0x6ca   : > { %v26289_v7 = vpop.f32.mrb[138].mxu1  ;;  %v26291_v61 = vpop.f32.mrb[170].mxu0  ;;  %v12336_v16 = vadd.f32 %v26300_v23, %v25859_v31  ;;  %v26315_v53 = vld [vmem:[%s29294_s2 + $0x8] sm:$0xff] }
 0x6cb   : > { %30000 = vst [vmem:[#allocation89_spill] sm:$0xff] %v26289_v7  ;;  %30001 = vst [vmem:[#allocation96_spill] sm:$0xff] %v26291_v61  ;;  %v20788_v20 = vpop.f32.mrb[139].mxu1  ;;  %v20794_v38 = vpop.f32.mrb[171].mxu0  ;;  %v12337_v31 = vadd.f32 %v26315_v53, %v25862_v34 }
 0x6cc   : > { %v26293_v12 = vpop.trf.xlu0  ;;  %v26320_v20 = vld [vmem:[%s29294_s2 + $0x10] sm:$0xff] }
 0x6cd   : > { %30002 = vst [vmem:[#allocation94_spill] sm:$0xff] %v26293_v12  ;;  %v26295_v49 = vpop.trf.xlu1 }
 0x6ce   : > { %30003 = vst [vmem:[#allocation100_spill] sm:$0xff] %v26295_v49 }
 0x6d0   : > { %v26302_v5 = vpop.f32.mrb[140].mxu1  ;;  %v26304_v59 = vpop.f32.mrb[172].mxu0 }
 0x6d1   : > { %30004 = vst [vmem:[#allocation99_spill] sm:$0xff] %v26302_v5  ;;  %30005 = vst [vmem:[#allocation92_spill] sm:$0xff] %v26304_v59  ;;  %v20799_v55 = vpop.f32.mrb[141].mxu1  ;;  %v20805_v27 = vpop.f32.mrb[173].mxu0 }
 0x6d2   : > { %v26306_v18 = vpop.f32.mrb[142].mxu1  ;;  %v26308_v45 = vpop.f32.mrb[174].mxu0  ;;  %v12464_v27 = vld [vmem:[%s29293_s1] sm:$0xff] }
 0x6d3   : > { %30006 = vst [vmem:[#allocation90_spill] sm:$0xff] %v26306_v18  ;;  %30007 = vst [vmem:[#allocation98_spill] sm:$0xff] %v26308_v45  ;;  %v20800_v38 = vpop.f32.mrb[143].mxu1  ;;  %v20806_v55 = vpop.f32.mrb[175].mxu0  ;;  %v12338_v45 = vadd.f32 %v26320_v20, %v25882_v37  ;;  %v26331_v18 = vadd.f32 %v12464_v27, %v12336_v16 }
 0x6d4   : > { %v22783_v6 = vpop.trf.xlu0  ;;  %v26325_v11 = vpop.trf.xlu1  ;;  %v26338_v55 = vld [vmem:[%s29294_s2 + $0x20] sm:$0xff] }
 0x6d5   : > { %30008 = vst [vmem:[#allocation97_spill] sm:$0xff] %v26325_v11  ;;  %v22787_v12 = vunpack.i.h.bf16 %v22783_v6  ;;  %v22784_v61 = vunpack.i.l.bf16 %v22783_v6  ;;  %v26340_v49 = vadd.f32 %v12464_v27, %v12338_v45  ;;  %v12340_v34 = vadd.f32 %v26338_v55, %v25924_v60  ;;  %v24118_v6 = vld [vmem:[%s29293_s1 + $0x8] sm:$0xff] }
 0x6d6   : > { %v12624_v37 = vsel %vm789_vm1, %v26331_v18, -inf  ;;  %v26349_v16 = vadd.f32 %v24118_v6, %v12337_v31 }
 0x6d8   : > { %v22788_v8 = vpop.trf.xlu0  ;;  %v26333_v38 = vpop.trf.xlu1 }
 0x6d9   : > { %30009 = vst [vmem:[#allocation102_spill] sm:$0xff] %v26333_v38  ;;  %v22792_v7 = vunpack.i.h.bf16 %v22788_v8  ;;  %v22789_v11 = vunpack.i.l.bf16 %v22788_v8  ;;  %v26354_v8 = vld [vmem:[%s29294_s2 + $0x18] sm:$0xff] }
 0x6db   : > { %v9255_v38 = vpack.c.bf16 %v22789_v11, %v22784_v61  ;;  %v9256_v47 = vpack.c.bf16 %v22792_v7, %v22787_v12  ;;  %12625 = vmax.xlane.f32.xlu1 %v12624_v37  ;;  %v12339_v11 = vadd.f32 %v26354_v8, %v25886_v57  ;;  %v12627_v7 = vsel %vm789_vm1, %v26349_v16, -inf }
 0x6dc   : > { %v26356_v45 = vpop.trf.xlu0  ;;  %v26358_v60 = vpop.trf.xlu1  ;;  %v12630_v61 = vsel %vm789_vm1, %v26340_v49, -inf  ;;  %v26368_v12 = vadd.f32 %v12464_v27, %v12340_v34 }
 0x6dd   : > { %30010 = vst [vmem:[#allocation103_spill] sm:$0xff] %v26356_v45  ;;  %30011 = vst [vmem:[#allocation104_spill] sm:$0xff] %v26358_v60  ;;  %20808 = vmatpush3.bf16.msra.mxu1 %v9255_v38  ;;  %20814 = vmatpush3.bf16.msra.mxu0 %v9256_v47  ;;  %v26377_v38 = vld [vmem:[%s29294_s2 + $0x30] sm:$0xff]  ;;  %v26379_v57 = vadd.f32 %v24118_v6, %v12339_v11  ;;  %v22760_v45 = vunpack.i.l.bf16 %v26267_v33 }
 0x6de   : > { %20819 = vmatprep.subr.bf16.mxu1 %v29802_v30  ;;  %20825 = vmatprep.subr.bf16.mxu0 %v29802_v30  ;;  %v12342_v37 = vadd.f32 %v26377_v38, %v25926_v44  ;;  %v12636_v34 = vsel %vm789_vm1, %v26368_v12, -inf  ;;  %v12466_v44 = vld [vmem:[%s29293_s1 + $0x10] sm:$0xff] }
 0x6df   : > { %12628 = vmax.xlane.f32.xlu0 %v12627_v7  ;;  %12631 = vmax.xlane.f32.xlu1 %v12630_v61  ;;  %v12633_v6 = vsel %vm789_vm1, %v26379_v57, -inf }
 0x6e0   : > { %v26370_v31 = vpop.trf.xlu0  ;;  %v26372_v47 = vpop.trf.xlu1  ;;  %v26389_v60 = vadd.f32 %v12464_v27, %v12342_v37 }
 0x6e1   : > { %30012 = vst [vmem:[#allocation105_spill] sm:$0xff] %v26370_v31  ;;  %30013 = vst [vmem:[#allocation106_spill] sm:$0xff] %v26372_v47  ;;  %v12344_v47 = vadd.f32 %v26300_v23, %v25947_v51 }
 0x6e2   : > { %v12642_v27 = vsel %vm789_vm1, %v26389_v60, -inf }
 0x6e3   : > { %12637 = vmax.xlane.f32.xlu1 %v12636_v34  ;;  %v26406_v37 = vadd.f32 %v12466_v44, %v12344_v47  ;;  %v12350_v47 = vadd.f32 %v26377_v38, %v25958_v54  ;;  %v12468_v54 = vld [vmem:[%s29293_s1 + $0x20] sm:$0xff] }
 0x6e4   : > { %v26385_v7 = vpop.trf.xlu0  ;;  %v26387_v61 = vpop.trf.xlu1 }
 0x6e5   : > { %30014 = vst [vmem:[#allocation107_spill] sm:$0xff] %v26385_v7  ;;  %30015 = vst [vmem:[#allocation108_spill] sm:$0xff] %v26387_v61  ;;  %v12346_v61 = vadd.f32 %v26320_v20, %v25949_v26 }
 0x6e7   : > { %12634 = vmax.xlane.f32.xlu1 %v12633_v6  ;;  %v26412_v31 = vadd.f32 %v12466_v44, %v12346_v61  ;;  %v12348_v6 = vadd.f32 %v26338_v55, %v25956_v41  ;;  %v12352_v41 = vadd.f32 %v26300_v23, %v25967_v62 }
 0x6e8   : > { %v26398_v11 = vpop.trf.xlu0  ;;  %v26400_v34 = vpop.trf.xlu1 }
 0x6e9   : > { %30016 = vst [vmem:[#allocation109_spill] sm:$0xff] %v26398_v11  ;;  %30017 = vst [vmem:[#allocation110_spill] sm:$0xff] %v26400_v34  ;;  %v12648_v34 = vsel %vm789_vm1, %v26406_v37, -inf  ;;  %v26424_v11 = vadd.f32 %v12466_v44, %v12348_v6  ;;  %v12354_v6 = vadd.f32 %v26320_v20, %v25969_v42  ;;  %v12358_v42 = vadd.f32 %v26377_v38, %v25985_v21 }
 0x6eb   : > { %12643 = vmax.xlane.f32.xlu1 %v12642_v27  ;;  %v12654_v27 = vsel %vm789_vm1, %v26412_v31, -inf }
 0x6ec   : > { %v26408_v51 = vpop.trf.xlu0  ;;  %v26410_v7 = vpop.trf.xlu1 }
 0x6ed   : > { %30018 = vst [vmem:[#allocation111_spill] sm:$0xff] %v26408_v51  ;;  %30019 = vst [vmem:[#allocation112_spill] sm:$0xff] %v26410_v7  ;;  %v26428_v7 = vadd.f32 %v12466_v44, %v12350_v47  ;;  %v26443_v47 = vadd.f32 %v12468_v54, %v12352_v41  ;;  %v22765_v51 = vunpack.i.l.bf16 %v26269_v13 }
 0x6ef   : > { %12649 = vmax.xlane.f32.xlu1 %v12648_v34  ;;  %v12660_v34 = vsel %vm789_vm1, %v26424_v11, -inf  ;;  %v12666_v44 = vsel %vm789_vm1, %v26428_v7, -inf }
 0x6f0   : > { %v26418_v26 = vpop.trf.xlu0 }
 0x6f1   : > { %30020 = vst [vmem:[#allocation113_spill] sm:$0xff] %v26418_v26 }
 0x6f3   : > { %12655 = vmax.xlane.f32.xlu1 %v12654_v27  ;;  %v26447_v27 = vadd.f32 %v12468_v54, %v12354_v6 }
 0x6f4   : > { %v26426_v61 = vpop.trf.xlu0 }
 0x6f5   : > { %30021 = vst [vmem:[#allocation114_spill] sm:$0xff] %v26426_v61  ;;  %v12678_v41 = vsel %vm789_vm1, %v26447_v27, -inf }
 0x6f7   : > { %12661 = vmax.xlane.f32.xlu1 %v12660_v34  ;;  %v12356_v34 = vadd.f32 %v26338_v55, %v25981_v36  ;;  %v12360_v36 = vadd.f32 %v26300_v23, %v25997_v48 }
 0x6f8   : > { %v26434_v26 = vpop.trf.xlu0 }
 0x6f9   : > { %30022 = vst [vmem:[#allocation115_spill] sm:$0xff] %v26434_v26  ;;  %v12672_v26 = vsel %vm789_vm1, %v26443_v47, -inf }
 0x6fb   : > { %12667 = vmax.xlane.f32.xlu1 %v12666_v44  ;;  %v26459_v44 = vadd.f32 %v12468_v54, %v12356_v34  ;;  %v12470_v34 = vld [vmem:[%s29293_s1 + $0x30] sm:$0xff] }
 0x6fc   : > { %v26445_v62 = vpop.trf.xlu0 }
 0x6fd   : > { %30023 = vst [vmem:[#allocation116_spill] sm:$0xff] %v26445_v62  ;;  %v26463_v62 = vadd.f32 %v12468_v54, %v12358_v42  ;;  %v12684_v21 = vsel %vm789_vm1, %v26459_v44, -inf  ;;  %v12362_v54 = vadd.f32 %v26320_v20, %v25999_v14  ;;  %v12364_v14 = vadd.f32 %v26338_v55, %v26023_v25 }
 0x6ff   : > { %12673 = vmax.xlane.f32.xlu1 %v12672_v26  ;;  %v22763_v26 = vunpack.i.h.bf16 %v26267_v33  ;;  %v12690_v48 = vsel %vm789_vm1, %v26463_v62, -inf  ;;  %v12366_v33 = vadd.f32 %v26377_v38, %v26027_v43 }
 0x700   : > { %v26453_v61 = vpop.trf.xlu0 }
 0x701   : > { %30024 = vst [vmem:[#allocation117_spill] sm:$0xff] %v26453_v61  ;;  %v22768_v61 = vunpack.i.h.bf16 %v26269_v13 }
 0x703   : > { %12679 = vmax.xlane.f32.xlu1 %v12678_v41  ;;  %v26461_v6 = vpop.trf.xlu1  ;;  %v23129_v42 = vpack.i.bf16 %v22768_v61, %v22763_v26 }
 0x704   : > { %30025 = vst [vmem:[#allocation118_spill] sm:$0xff] %v26461_v6  ;;  %v26480_v6 = vadd.f32 %v12470_v34, %v12360_v36  ;;  %v23141_v36 = vpack.i.bf16 %v22765_v51, %v22760_v45  ;;  %v12368_v45 = vadd.f32 %v26300_v23, %v26048_v52 }
 0x706   : > { %v12696_v61 = vsel %vm789_vm1, %v26480_v6, -inf }
 0x707   : > { %12685 = vmax.xlane.f32.xlu1 %v12684_v21  ;;  %v26474_v41 = vpop.trf.xlu1  ;;  %v26488_v21 = vadd.f32 %v12470_v34, %v12362_v54 }
 0x708   : > { %30026 = vst [vmem:[#allocation119_spill] sm:$0xff] %v26474_v41 }
 0x709   : > { %v12702_v54 = vsel %vm789_vm1, %v26488_v21, -inf }
 0x70b   : > { %12691 = vmax.xlane.f32.xlu1 %v12690_v48  ;;  %v26484_v30 = vpop.trf.xlu1  ;;  %v26486_v15 = vpop.trf.xlu0  ;;  %v26502_v48 = vadd.f32 %v12470_v34, %v12364_v14  ;;  %v12472_v14 = vld [vmem:[%s29293_s1 + $0x40] sm:$0xff] }
 0x70c   : > { %30027 = vst [vmem:[#allocation120_spill] sm:$0xff] %v26484_v30  ;;  %30028 = vst [vmem:[#allocation121_spill] sm:$0xff] %v26486_v15  ;;  %23130 = vxpose.xlu0.b32.start.end [1/1] (short) (narrow) %v23129_v42, 16 }
 0x70d   : > { %v12708_v51 = vsel %vm789_vm1, %v26502_v48, -inf }
 0x70f   : > { %12697 = vmax.xlane.f32.xlu1 %v12696_v61  ;;  %v26494_v26 = vpop.trf.xlu1  ;;  %v26496_v13 = vpop.trf.xlu0  ;;  %v26508_v61 = vadd.f32 %v12470_v34, %v12366_v33  ;;  %v12370_v34 = vadd.f32 %v26320_v20, %v26050_v29 }
 0x710   : > { %30029 = vst [vmem:[#allocation122_spill] sm:$0xff] %v26494_v26  ;;  %30030 = vst [vmem:[#allocation123_spill] sm:$0xff] %v26496_v13 }
 0x711   : > { %23142 = vxpose.xlu0.b32.start.end [1/1] (short) (narrow) %v23141_v36, 16  ;;  %v12714_v52 = vsel %vm789_vm1, %v26508_v61, -inf }
 0x713   : > { %12703 = vmax.xlane.f32.xlu1 %v12702_v54  ;;  %v26504_v25 = vpop.trf.xlu1  ;;  %v26506_v42 = vpop.trf.xlu0  ;;  %v26521_v54 = vadd.f32 %v12472_v14, %v12368_v45 }
 0x714   : > { %30031 = vst [vmem:[#allocation124_spill] sm:$0xff] %v26504_v25  ;;  %30032 = vst [vmem:[#allocation125_spill] sm:$0xff] %v26506_v42  ;;  %v12372_v25 = vadd.f32 %v26338_v55, %v26063_v2 }
 0x715   : > { %v12720_v45 = vsel %vm789_vm1, %v26521_v54, -inf }
 0x716   : > { %v26541_v15 = vadd.f32 %v12472_v14, %v12372_v25 }
 0x717   : > { %12709 = vmax.xlane.f32.xlu1 %v12708_v51  ;;  %v26514_v43 = vpop.trf.xlu1  ;;  %v26516_v36 = vpop.trf.xlu0 }
 0x718   : > { %30033 = vst [vmem:[#allocation126_spill] sm:$0xff] %v26514_v43  ;;  %30034 = vst [vmem:[#allocation127_spill] sm:$0xff] %v26516_v36  ;;  %v26531_v43 = vadd.f32 %v12472_v14, %v12370_v34  ;;  %v12732_v25 = vsel %vm789_vm1, %v26541_v15, -inf  ;;  %v30068_v36 = vld [vmem:[#allocation8_spill] sm:$0xff] }
 0x71a   : > { %v12726_v34 = vsel %vm789_vm1, %v26531_v43, -inf }
 0x71b   : > { %12715 = vmax.xlane.f32.xlu1 %v12714_v52  ;;  %v26527_v33 = vpop.trf.xlu1  ;;  %v26529_v51 = vpop.trf.xlu0  ;;  %v12374_v52 = vadd.f32 %v26377_v38, %v26069_v17 }
 0x71c   : > { %30035 = vst [vmem:[#allocation128_spill] sm:$0xff] %v26527_v33  ;;  %30036 = vst [vmem:[#allocation129_spill] sm:$0xff] %v26529_v51 }
 0x71d   : > { %v26551_v33 = vadd.f32 %v12472_v14, %v12374_v52  ;;  %v12378_v14 = vadd.f32 %v26320_v20, %v26082_v3 }
 0x71f   : > { %12721 = vmax.xlane.f32.xlu1 %v12720_v45  ;;  %v26537_v13 = vpop.trf.xlu1  ;;  %v26539_v29 = vpop.trf.xlu0  ;;  %v12376_v45 = vadd.f32 %v26300_v23, %v26080_v32  ;;  %v12738_v32 = vsel %vm789_vm1, %v26551_v33, -inf }
 0x720   : > { %30037 = vst [vmem:[#allocation130_spill] sm:$0xff] %v26537_v13  ;;  %30038 = vst [vmem:[#allocation131_spill] sm:$0xff] %v26539_v29 }
 0x723   : > { %12727 = vmax.xlane.f32.xlu1 %v12726_v34  ;;  %v26547_v51 = vpop.trf.xlu1  ;;  %v26549_v2 = vpop.trf.xlu0  ;;  %v12474_v34 = vld [vmem:[%s29293_s1 + $0x50] sm:$0xff] }
 0x724   : > { %30039 = vst [vmem:[#allocation132_spill] sm:$0xff] %v26547_v51  ;;  %30040 = vst [vmem:[#allocation133_spill] sm:$0xff] %v26549_v2  ;;  %v26564_v51 = vadd.f32 %v12474_v34, %v12376_v45 }
 0x726   : > { %v12744_v45 = vsel %vm789_vm1, %v26564_v51, -inf }
 0x727   : > { %12733 = vmax.xlane.f32.xlu1 %v12732_v25  ;;  %v26557_v29 = vpop.trf.xlu1  ;;  %v26559_v17 = vpop.trf.xlu0 }
 0x728   : > { %30041 = vst [vmem:[#allocation134_spill] sm:$0xff] %v26557_v29  ;;  %30042 = vst [vmem:[#allocation135_spill] sm:$0xff] %v26559_v17  ;;  %v26574_v29 = vadd.f32 %v12474_v34, %v12378_v14  ;;  %v12380_v17 = vadd.f32 %v26338_v55, %v26093_v19 }
 0x72a   : > { %v26584_v13 = vadd.f32 %v12474_v34, %v12380_v17  ;;  %v12750_v14 = vsel %vm789_vm1, %v26574_v29, -inf }
 0x72b   : > { %12739 = vmax.xlane.f32.xlu1 %v12738_v32  ;;  %v26570_v52 = vpop.trf.xlu1  ;;  %v26572_v25 = vpop.trf.xlu0  ;;  %v12382_v32 = vadd.f32 %v26377_v38, %v26095_v28 }
 0x72c   : > { %30043 = vst [vmem:[#allocation136_spill] sm:$0xff] %v26570_v52  ;;  %30044 = vst [vmem:[#allocation137_spill] sm:$0xff] %v26572_v25  ;;  %v12756_v17 = vsel %vm789_vm1, %v26584_v13, -inf }
 0x72d   : > { %v26594_v52 = vadd.f32 %v12474_v34, %v12382_v32  ;;  %v12386_v34 = vadd.f32 %v26320_v20, %v26105_v56 }
 0x72f   : > { %12745 = vmax.xlane.f32.xlu1 %v12744_v45  ;;  %v26580_v2 = vpop.trf.xlu1  ;;  %v26582_v3 = vpop.trf.xlu0  ;;  %30049 = vst [vmem:[#allocation142_spill] sm:$0xff] %v26594_v52  ;;  %v12384_v45 = vadd.f32 %v26300_v23, %v26103_v4  ;;  %v12762_v4 = vsel %vm789_vm1, %v26594_v52, -inf  ;;  %v30095_v52 = vld [vmem:[#allocation56_spill] sm:$0xff] }
 0x730   : > { %30045 = vst [vmem:[#allocation138_spill] sm:$0xff] %v26580_v2  ;;  %30046 = vst [vmem:[#allocation139_spill] sm:$0xff] %v26582_v3  ;;  %v12645_v2 = vsel %vm789_vm1, %v25938_v35, -inf }
 0x733   : > { %12751 = vmax.xlane.f32.xlu1 %v12750_v14  ;;  %v26590_v25 = vpop.trf.xlu1  ;;  %v26592_v19 = vpop.trf.xlu0  ;;  %v12476_v14 = vld [vmem:[%s29293_s1 + $0x60] sm:$0xff] }
 0x734   : > { %30047 = vst [vmem:[#allocation140_spill] sm:$0xff] %v26590_v25  ;;  %30048 = vst [vmem:[#allocation141_spill] sm:$0xff] %v26592_v19  ;;  %v26607_v25 = vadd.f32 %v12476_v14, %v12384_v45 }
 0x736   : > { %30052 = vst [vmem:[#allocation145_spill] sm:$0xff] %v26607_v25  ;;  %v12768_v45 = vsel %vm789_vm1, %v26607_v25, -inf }
 0x737   : > { %12757 = vmax.xlane.f32.xlu1 %v12756_v17  ;;  %v26600_v3 = vpop.trf.xlu1  ;;  %v26602_v28 = vpop.trf.xlu0 }
 0x738   : > { %30050 = vst [vmem:[#allocation143_spill] sm:$0xff] %v26600_v3  ;;  %30051 = vst [vmem:[#allocation144_spill] sm:$0xff] %v26602_v28  ;;  %v26617_v3 = vadd.f32 %v12476_v14, %v12386_v34  ;;  %v12388_v28 = vadd.f32 %v26338_v55, %v26113_v0  ;;  %v12467_v34 = vld [vmem:[%s29293_s1 + $0x18] sm:$0xff]  ;;  %v12390_v0 = vadd.f32 %v26377_v38, %v26115_v58 }
 0x739   : > { %v12392_v58 = vadd.f32 %v26300_v23, %v26121_v40  ;;  %v12478_v40 = vld [vmem:[%s29293_s1 + $0x70] sm:$0xff] }
 0x73a   : > { %30055 = vst [vmem:[#allocation148_spill] sm:$0xff] %v26617_v3  ;;  %v26650_v41 = vadd.f32 %v12476_v14, %v12390_v0 }
 0x73b   : > { %12763 = vmax.xlane.f32.xlu1 %v12762_v4  ;;  %v26613_v32 = vpop.trf.xlu1  ;;  %v26615_v17 = vpop.trf.xlu0  ;;  %v12345_v4 = vadd.f32 %v26315_v53, %v25952_v9 }
 0x73c   : > { %30053 = vst [vmem:[#allocation146_spill] sm:$0xff] %v26613_v32  ;;  %30054 = vst [vmem:[#allocation147_spill] sm:$0xff] %v26615_v17  ;;  %v12639_v32 = vsel %vm789_vm1, %v25975_v10, -inf  ;;  %v26634_v17 = vadd.f32 %v12476_v14, %v12388_v28  ;;  %v30064_v14 = vld [vmem:[#allocation34_spill] sm:$0xff] }
 0x73d   : > { %v26648_v28 = vadd.f32 %v12467_v34, %v12345_v4  ;;  %30061 = vst [vmem:[#allocation154_spill] sm:$0xff] %v26650_v41  ;;  %v26665_v4 = vld [vmem:[%s29294_s2 + $0x28] sm:$0xff] }
 0x73e   : > { %30058 = vst [vmem:[#allocation151_spill] sm:$0xff] %v26634_v17  ;;  %v12349_v0 = vadd.f32 %v26665_v4, %v30064_v14  ;;  %v26685_v14 = vld [vmem:[%s29294_s2 + $0x38] sm:$0xff] }
 0x73f   : > { %12769 = vmax.xlane.f32.xlu1 %v12768_v45  ;;  %v26623_v19 = vpop.trf.xlu1  ;;  %v26625_v56 = vpop.trf.xlu0  ;;  %v12774_v45 = vsel %vm789_vm1, %v26617_v3, -inf  ;;  %v12351_v42 = vadd.f32 %v26685_v14, %v30068_v36  ;;  %v30072_v36 = vld [vmem:[#allocation9_spill] sm:$0xff] }
 0x740   : > { %30056 = vst [vmem:[#allocation149_spill] sm:$0xff] %v26623_v19  ;;  %30057 = vst [vmem:[#allocation150_spill] sm:$0xff] %v26625_v56  ;;  %v12347_v19 = vadd.f32 %v26354_v8, %v25954_v39  ;;  %v26691_v26 = vadd.f32 %v12467_v34, %v12349_v0 }
 0x741   : > { %v26701_v59 = vadd.f32 %v12467_v34, %v12351_v42  ;;  %v12469_v42 = vld [vmem:[%s29293_s1 + $0x28] sm:$0xff] }
 0x742   : > { %12640 = vmax.xlane.f32.xlu0 %v12639_v32  ;;  %v12780_v32 = vsel %vm789_vm1, %v26634_v17, -inf  ;;  %v12663_v0 = vsel %vm789_vm1, %v26691_v26, -inf  ;;  %v30074_v17 = vld [vmem:[#allocation22_spill] sm:$0xff] }
 0x743   : > { %12775 = vmax.xlane.f32.xlu1 %v12774_v45  ;;  %v26640_v56 = vpop.trf.xlu1  ;;  %v26642_v9 = vpop.trf.xlu0 }
 0x744   : > { %30059 = vst [vmem:[#allocation152_spill] sm:$0xff] %v26640_v56  ;;  %30060 = vst [vmem:[#allocation153_spill] sm:$0xff] %v26642_v9  ;;  %v26658_v56 = vadd.f32 %v12467_v34, %v12347_v19  ;;  %v30066_v19 = vld [vmem:[#allocation67_spill] sm:$0xff]  ;;  %v30075_v34 = vld [vmem:[#allocation53_spill] sm:$0xff] }
 0x746   : > { %12646 = vmax.xlane.f32.xlu0 %v12645_v2  ;;  %v12651_v2 = vsel %vm789_vm1, %v26648_v28, -inf }
 0x747   : > { %12781 = vmax.xlane.f32.xlu1 %v12780_v32  ;;  %v26656_v45 = vpop.trf.xlu1  ;;  %v26660_v39 = vpop.trf.xlu0  ;;  %v26674_v32 = vadd.f32 %v12478_v40, %v12392_v58  ;;  %v12657_v58 = vsel %vm789_vm1, %v26658_v56, -inf }
 0x748   : > { %30062 = vst [vmem:[#allocation155_spill] sm:$0xff] %v26656_v45  ;;  %30063 = vst [vmem:[#allocation156_spill] sm:$0xff] %v26660_v39  ;;  %v12394_v45 = vadd.f32 %v26320_v20, %v30066_v19  ;;  %v12786_v39 = vsel %vm789_vm1, %v26650_v41, -inf  ;;  %v30070_v19 = vld [vmem:[#allocation68_spill] sm:$0xff]  ;;  %v12353_v41 = vadd.f32 %v26315_v53, %v30072_v36  ;;  %v12669_v36 = vsel %vm789_vm1, %v26701_v59, -inf }
 0x749   : > { %30065 = vst [vmem:[#allocation34_spill] sm:$0xff] %v26674_v32 }
 0x74a   : > { %12652 = vmax.xlane.f32.xlu0 %v12651_v2  ;;  %v26693_v2 = vadd.f32 %v12478_v40, %v12394_v45 }
 0x74b   : > { %12787 = vmax.xlane.f32.xlu1 %v12786_v39  ;;  %v26680_v9 = vpop.trf.xlu1  ;;  %v12396_v39 = vadd.f32 %v26338_v55, %v30070_v19  ;;  %v12398_v19 = vadd.f32 %v26377_v38, %v30074_v17  ;;  %v30077_v17 = vld [vmem:[#allocation39_spill] sm:$0xff] }
 0x74c   : > { %30067 = vst [vmem:[#allocation67_spill] sm:$0xff] %v26680_v9  ;;  %30069 = vst [vmem:[#allocation8_spill] sm:$0xff] %v26693_v2  ;;  %v12792_v9 = vsel %vm789_vm1, %v26674_v32, -inf  ;;  %v30078_v32 = vld [vmem:[#allocation49_spill] sm:$0xff] }
 0x74d   : > { %v26707_v45 = vadd.f32 %v12478_v40, %v12396_v39  ;;  %v26720_v39 = vadd.f32 %v12469_v42, %v12353_v41  ;;  %v12480_v41 = vld [vmem:[%s29293_s1 + $0x80] sm:$0xff] }
 0x74e   : > { %12658 = vmax.xlane.f32.xlu0 %v12657_v58  ;;  %v12798_v58 = vsel %vm789_vm1, %v26693_v2, -inf }
 0x74f   : > { %12793 = vmax.xlane.f32.xlu1 %v12792_v9  ;;  %v26699_v30 = vpop.trf.xlu1  ;;  %30073 = vst [vmem:[#allocation9_spill] sm:$0xff] %v26707_v45  ;;  %v12355_v9 = vadd.f32 %v26354_v8, %v30075_v34  ;;  %v12357_v34 = vadd.f32 %v26665_v4, %v30078_v32 }
 0x750   : > { %30071 = vst [vmem:[#allocation68_spill] sm:$0xff] %v26699_v30  ;;  %v26722_v30 = vadd.f32 %v12478_v40, %v12398_v19  ;;  %v12675_v40 = vsel %vm789_vm1, %v26720_v39, -inf }
 0x751   : > { %v26728_v2 = vadd.f32 %v12469_v42, %v12355_v9  ;;  %v26747_v3 = vadd.f32 %v12469_v42, %v12357_v34  ;;  %v12471_v34 = vld [vmem:[%s29293_s1 + $0x38] sm:$0xff] }
 0x752   : > { %12664 = vmax.xlane.f32.xlu0 %v12663_v0  ;;  %30076 = vst [vmem:[#allocation22_spill] sm:$0xff] %v26722_v30  ;;  %v12400_v0 = vadd.f32 %v26300_v23, %v30077_v17  ;;  %v30080_v17 = vld [vmem:[#allocation72_spill] sm:$0xff]  ;;  %v12810_v9 = vsel %vm789_vm1, %v26722_v30, -inf }
 0x753   : > { %12799 = vmax.xlane.f32.xlu1 %v12798_v58  ;;  %v12804_v58 = vsel %vm789_vm1, %v26707_v45, -inf  ;;  %v12681_v45 = vsel %vm789_vm1, %v26728_v2, -inf  ;;  %v12687_v30 = vsel %vm789_vm1, %v26747_v3, -inf }
 0x754   : > { %v26737_v19 = vadd.f32 %v12480_v41, %v12400_v0  ;;  %v30083_v0 = vld [vmem:[#allocation27_spill] sm:$0xff] }
 0x755   : > { %v12404_v63 = vadd.f32 %v26338_v55, %v30083_v0  ;;  %v30087_v0 = vld [vmem:[#allocation18_spill] sm:$0xff] }
 0x756   : > { %12670 = vmax.xlane.f32.xlu0 %v12669_v36  ;;  %30079 = vst [vmem:[#allocation53_spill] sm:$0xff] %v26737_v19  ;;  %v12402_v36 = vadd.f32 %v26320_v20, %v30080_v17 }
 0x757   : > { %12805 = vmax.xlane.f32.xlu1 %v12804_v58  ;;  %v30081_v58 = vld [vmem:[#allocation15_spill] sm:$0xff] }
 0x758   : > { %v12359_v32 = vadd.f32 %v26685_v14, %v30081_v58  ;;  %v26749_v5 = vadd.f32 %v12480_v41, %v12402_v36  ;;  %v26764_v36 = vadd.f32 %v12480_v41, %v12404_v63  ;;  %v12408_v63 = vadd.f32 %v26300_v23, %v26161_v46 }
 0x75a   : > { %12676 = vmax.xlane.f32.xlu0 %v12675_v40  ;;  %30082 = vst [vmem:[#allocation39_spill] sm:$0xff] %v26749_v5  ;;  %v12816_v40 = vsel %vm789_vm1, %v26737_v19, -inf  ;;  %v26755_v17 = vadd.f32 %v12469_v42, %v12359_v32  ;;  %30086 = vst [vmem:[#allocation72_spill] sm:$0xff] %v26764_v36  ;;  %v12822_v42 = vsel %vm789_vm1, %v26749_v5, -inf  ;;  %v30088_v32 = vld [vmem:[#allocation54_spill] sm:$0xff]  ;;  %v30092_v5 = vld [vmem:[#allocation51_spill] sm:$0xff] }
 0x75b   : > { %12811 = vmax.xlane.f32.xlu1 %v12810_v9  ;;  %v30085_v9 = vld [vmem:[#allocation14_spill] sm:$0xff] }
 0x75c   : > { %30084 = vst [vmem:[#allocation49_spill] sm:$0xff] %v26755_v17  ;;  %v12361_v58 = vadd.f32 %v26315_v53, %v30085_v9  ;;  %v12693_v9 = vsel %vm789_vm1, %v26755_v17, -inf  ;;  %v12367_v17 = vadd.f32 %v26685_v14, %v30095_v52  ;;  %v30100_v52 = vld [vmem:[#allocation55_spill] sm:$0xff] }
 0x75e   : > { %12682 = vmax.xlane.f32.xlu0 %v12681_v45  ;;  %v12406_v45 = vadd.f32 %v26377_v38, %v30087_v0  ;;  %v26774_v19 = vadd.f32 %v12471_v34, %v12361_v58  ;;  %v12482_v58 = vld [vmem:[%s29293_s1 + $0x90] sm:$0xff] }
 0x75f   : > { %12817 = vmax.xlane.f32.xlu1 %v12816_v40  ;;  %v12363_v40 = vadd.f32 %v26354_v8, %v30088_v32  ;;  %v12365_v32 = vadd.f32 %v26665_v4, %v30092_v5 }
 0x760   : > { %30089 = vst [vmem:[#allocation15_spill] sm:$0xff] %v26774_v19  ;;  %v26776_v25 = vadd.f32 %v12480_v41, %v12406_v45  ;;  %v12699_v46 = vsel %vm789_vm1, %v26774_v19, -inf  ;;  %v26792_v45 = vadd.f32 %v12482_v58, %v12408_v63  ;;  %v30098_v19 = vld [vmem:[#allocation71_spill] sm:$0xff] }
 0x762   : > { %12688 = vmax.xlane.f32.xlu0 %v12687_v30  ;;  %30090 = vst [vmem:[#allocation27_spill] sm:$0xff] %v26776_v25  ;;  %v12828_v30 = vsel %vm789_vm1, %v26764_v36, -inf  ;;  %30093 = vst [vmem:[#allocation18_spill] sm:$0xff] %v26792_v45 }
 0x763   : > { %12823 = vmax.xlane.f32.xlu1 %v12822_v42  ;;  %v26782_v42 = vadd.f32 %v12471_v34, %v12363_v40  ;;  %v12834_v40 = vsel %vm789_vm1, %v26776_v25, -inf }
 0x765   : > { %30091 = vst [vmem:[#allocation14_spill] sm:$0xff] %v26782_v42 }
 0x766   : > { %12694 = vmax.xlane.f32.xlu0 %v12693_v9  ;;  %v30094_v9 = vld [vmem:[#allocation36_spill] sm:$0xff] }
 0x767   : > { %12829 = vmax.xlane.f32.xlu1 %v12828_v30  ;;  %v12410_v30 = vadd.f32 %v26320_v20, %v30094_v9 }
 0x768   : > { %v12626_v0 = vpop.xlane.xlu1 %12625 }
 0x769   : > { %v13008_v41 = vsub.f32 %v26331_v18, %v12626_v0  ;;  %v12705_v18 = vsel %vm789_vm1, %v26782_v42, -inf  ;;  %v26802_v0 = vadd.f32 %v12471_v34, %v12365_v32  ;;  %v26804_v63 = vadd.f32 %v12482_v58, %v12410_v30  ;;  %v30110_v42 = vld [vmem:[#allocation58_spill] sm:$0xff] }
 0x76a   : > { %12700 = vmax.xlane.f32.xlu0 %v12699_v46  ;;  %v12412_v46 = vadd.f32 %v26338_v55, %v30098_v19 }
 0x76b   : > { %v13136_v36 = vmul.f32 1.442695, %v13008_v41  ;;  %12835 = vmax.xlane.f32.xlu1 %v12834_v40  ;;  %30096 = vst [vmem:[#allocation54_spill] sm:$0xff] %v26802_v0  ;;  %30097 = vst [vmem:[#allocation51_spill] sm:$0xff] %v26804_v63  ;;  %v12840_v41 = vsel %vm789_vm1, %v26792_v45, -inf  ;;  %v26810_v40 = vadd.f32 %v12471_v34, %v12367_v17  ;;  %v12711_v32 = vsel %vm789_vm1, %v26802_v0, -inf }
 0x76c   : > { %v12632_v5 = vpop.xlane.xlu1 %12631  ;;  %v26817_v30 = vadd.f32 %v12482_v58, %v12412_v46  ;;  %v12846_v19 = vsel %vm789_vm1, %v26804_v63, -inf  ;;  %v12473_v17 = vld [vmem:[%s29293_s1 + $0x48] sm:$0xff]  ;;  %v30102_v34 = vld [vmem:[#allocation57_spill] sm:$0xff]  ;;  %v30106_v0 = vld [vmem:[#allocation60_spill] sm:$0xff] }
 0x76d   : > { %23606 = vpow2.f32 %v13136_v36  ;;  %30099 = vst [vmem:[#allocation36_spill] sm:$0xff] %v26810_v40  ;;  %v12369_v36 = vadd.f32 %v26315_v53, %v30100_v52  ;;  %v13010_v25 = vsub.f32 %v26340_v49, %v12632_v5  ;;  %v12717_v52 = vsel %vm789_vm1, %v26810_v40, -inf }
 0x76e   : > { %12706 = vmax.xlane.f32.xlu0 %v12705_v18  ;;  %30101 = vst [vmem:[#allocation56_spill] sm:$0xff] %v26817_v30  ;;  %v12371_v18 = vadd.f32 %v26354_v8, %v30102_v34  ;;  %v12852_v63 = vsel %vm789_vm1, %v26817_v30, -inf }
 0x76f   : > { %12841 = vmax.xlane.f32.xlu1 %v12840_v41  ;;  %v26828_v49 = vadd.f32 %v12473_v17, %v12369_v36  ;;  %v13140_v5 = vmul.f32 1.442695, %v13010_v25  ;;  %v12373_v25 = vadd.f32 %v26665_v4, %v30106_v0  ;;  %v12375_v0 = vadd.f32 %v26685_v14, %v30110_v42  ;;  %v30113_v42 = vld [vmem:[#allocation63_spill] sm:$0xff] }
 0x770   : > { %v12638_v9 = vpop.xlane.xlu1 %12637  ;;  %v26839_v34 = vadd.f32 %v12473_v17, %v12371_v18 }
 0x771   : > { %v13012_v46 = vsub.f32 %v26368_v12, %v12638_v9  ;;  %23608 = vpow2.f32 %v13140_v5  ;;  %v12723_v9 = vsel %vm789_vm1, %v26828_v49, -inf  ;;  %v26851_v30 = vadd.f32 %v12473_v17, %v12373_v25  ;;  %v26858_v5 = vld [vmem:[%s29293_s1 + $0xa0] sm:$0xff] }
 0x772   : > { %12712 = vmax.xlane.f32.xlu0 %v12711_v32  ;;  %v30103_v32 = vld [vmem:[#allocation10_spill] sm:$0xff]  ;;  %30105 = vst [vmem:[#allocation55_spill] sm:$0xff] %v26839_v34  ;;  %v26867_v25 = vadd.f32 %v12473_v17, %v12375_v0  ;;  %v12475_v17 = vld [vmem:[%s29293_s1 + $0x58] sm:$0xff] }
 0x773   : > { %12847 = vmax.xlane.f32.xlu1 %v12846_v19  ;;  %v12414_v19 = vadd.f32 %v26377_v38, %v30103_v32  ;;  %v13144_v12 = vmul.f32 1.442695, %v13012_v46  ;;  %30109 = vst [vmem:[#allocation10_spill] sm:$0xff] %v26851_v30  ;;  %v30115_v0 = vld [vmem:[#allocation62_spill] sm:$0xff] }
 0x774   : > { %v26826_v41 = vpop.xlane.xlu1 %12634 }
 0x775   : > { %v26845_v40 = vadd.f32 %v12482_v58, %v12414_v19  ;;  %23610 = vpow2.f32 %v13144_v12  ;;  %v12735_v12 = vsel %vm789_vm1, %v26851_v30, -inf }
 0x776   : > { %12718 = vmax.xlane.f32.xlu0 %v12717_v52  ;;  %v30108_v52 = vld [vmem:[#allocation47_spill] sm:$0xff] }
 0x777   : > { %v26837_v45 = vpop.eup %23606  ;;  %12853 = vmax.xlane.f32.xlu1 %v12852_v63  ;;  %30107 = vst [vmem:[#allocation57_spill] sm:$0xff] %v26845_v40  ;;  %v12416_v32 = vadd.f32 %v26300_v23, %v30108_v52  ;;  %v12729_v23 = vsel %vm789_vm1, %v26839_v34, -inf  ;;  %v12858_v46 = vsel %vm789_vm1, %v26845_v40, -inf  ;;  %30112 = vst [vmem:[#allocation47_spill] sm:$0xff] %v26867_v25 }
 0x778   : > { %30104 = vst [vmem:[#allocation71_spill] sm:$0xff] %v26837_v45  ;;  %v12644_v36 = vpop.xlane.xlu1 %12643  ;;  %v13392_v63 = vsel %vm789_vm1, %v26837_v45, 0.0  ;;  %v30117_v45 = vld [vmem:[#allocation31_spill] sm:$0xff] }
 0x779   : > { %v26863_v58 = vadd.f32 %v26858_v5, %v12416_v32  ;;  %v13014_v52 = vsub.f32 %v26389_v60, %v12644_v36 }
 0x77a   : > { %12724 = vmax.xlane.f32.xlu0 %v12723_v9  ;;  %v12377_v9 = vadd.f32 %v26315_v53, %v30113_v42 }
 0x77b   : > { %13393 = vadd.xlane.f32.xlu1 %v13392_v63  ;;  %30111 = vst [vmem:[#allocation60_spill] sm:$0xff] %v26863_v58  ;;  %v12864_v32 = vsel %vm789_vm1, %v26863_v58, -inf  ;;  %v26876_v63 = vpop.eup %23608  ;;  %v13148_v60 = vmul.f32 1.442695, %v13014_v52  ;;  %v12418_v58 = vadd.f32 %v26320_v20, %v30117_v45 }
 0x77c   : > { %v12650_v18 = vpop.xlane.xlu1 %12649  ;;  %30114 = vst [vmem:[#allocation58_spill] sm:$0xff] %v26876_v63  ;;  %v26883_v42 = vadd.f32 %v12475_v17, %v12377_v9  ;;  %v26896_v9 = vpop.xlane.xlu0 %12628 }
 0x77d   : > { %v13016_v36 = vsub.f32 %v26406_v37, %v12650_v18  ;;  %v30120_v37 = vld [vmem:[#allocation61_spill] sm:$0xff]  ;;  %23612 = vpow2.f32 %v13148_v60  ;;  %v26905_v45 = vadd.f32 %v26858_v5, %v12418_v58 }
 0x77e   : > { %12730 = vmax.xlane.f32.xlu0 %v12729_v23  ;;  %v12379_v23 = vadd.f32 %v26354_v8, %v30115_v0  ;;  %30116 = vst [vmem:[#allocation63_spill] sm:$0xff] %v26883_v42  ;;  %v12381_v18 = vadd.f32 %v26665_v4, %v30120_v37  ;;  %v12747_v20 = vsel %vm789_vm1, %v26883_v42, -inf  ;;  %v30125_v42 = vld [vmem:[#allocation59_spill] sm:$0xff] }
 0x77f   : > { %12859 = vmax.xlane.f32.xlu1 %v12858_v46  ;;  %v26892_v40 = vpop.eup %23610  ;;  %30121 = vst [vmem:[#allocation61_spill] sm:$0xff] %v26905_v45  ;;  %v12383_v58 = vadd.f32 %v26685_v14, %v30125_v42 }
 0x780   : > { %v12656_v19 = vpop.xlane.xlu1 %12655  ;;  %30118 = vst [vmem:[#allocation62_spill] sm:$0xff] %v26892_v40  ;;  %v26894_v0 = vadd.f32 %v12475_v17, %v12379_v23  ;;  %v13404_v23 = vsel %vm789_vm1, %v26892_v40, 0.0  ;;  %v26917_v37 = vadd.f32 %v12475_v17, %v12381_v18 }
 0x781   : > { %v26932_v18 = vadd.f32 %v12475_v17, %v12383_v58  ;;  %v13018_v42 = vsub.f32 %v26412_v31, %v12656_v19  ;;  %v30132_v17 = vld [vmem:[#allocation64_spill] sm:$0xff] }
 0x782   : > { %12736 = vmax.xlane.f32.xlu0 %v12735_v12  ;;  %v12741_v12 = vsel %vm789_vm1, %v26867_v25, -inf  ;;  %30119 = vst [vmem:[#allocation31_spill] sm:$0xff] %v26894_v0  ;;  %v13152_v25 = vmul.f32 1.442695, %v13016_v36  ;;  %v12753_v60 = vsel %vm789_vm1, %v26894_v0, -inf  ;;  %30124 = vst [vmem:[#allocation157_spill] sm:$0xff] %v26917_v37  ;;  %v12387_v58 = vadd.f32 %v26354_v8, %v30132_v17 }
 0x783   : > { %12865 = vmax.xlane.f32.xlu1 %v12864_v32  ;;  %v13398_v32 = vsel %vm789_vm1, %v26876_v63, 0.0  ;;  %30129 = vst [vmem:[#allocation158_spill] sm:$0xff] %v26932_v18 }
 0x784   : > { %v12662_v46 = vpop.xlane.xlu1 %12661  ;;  %23614 = vpow2.f32 %v13152_v25  ;;  %v12759_v25 = vsel %vm789_vm1, %v26917_v37, -inf }
 0x786   : > { %12742 = vmax.xlane.f32.xlu0 %v12741_v12  ;;  %v30122_v12 = vld [vmem:[#allocation80_spill] sm:$0xff] }
 0x787   : > { %13399 = vadd.xlane.f32.xlu1 %v13398_v32  ;;  %v12420_v32 = vadd.f32 %v26338_v55, %v30122_v12  ;;  %v30127_v12 = vld [vmem:[#allocation65_spill] sm:$0xff] }
 0x788   : > { %v26898_v52 = vpop.xlane.xlu1 %12667 }
 0x789   : > { %v26922_v55 = vadd.f32 %v26858_v5, %v12420_v32 }
 0x78a   : > { %12748 = vmax.xlane.f32.xlu0 %v12747_v20  ;;  %v12870_v20 = vsel %vm789_vm1, %v26905_v45, -inf }
 0x78b   : > { %13405 = vadd.xlane.f32.xlu1 %v13404_v23  ;;  %30126 = vst [vmem:[#allocation59_spill] sm:$0xff] %v26922_v55  ;;  %v12385_v23 = vadd.f32 %v26315_v53, %v30127_v12  ;;  %v12876_v32 = vsel %vm789_vm1, %v26922_v55, -inf  ;;  %v12477_v53 = vld [vmem:[%s29293_s1 + $0x68] sm:$0xff]  ;;  %v13156_v12 = vmul.f32 1.442695, %v13018_v42  ;;  %v30138_v42 = vld [vmem:[#allocation16_spill] sm:$0xff] }
 0x78c   : > { %v26911_v63 = vpop.xlane.xlu1 %12673  ;;  %v26915_v36 = vpop.trf.xlu0  ;;  %v30134_v55 = vld [vmem:[#allocation30_spill] sm:$0xff]  ;;  %v26961_v8 = vadd.f32 %v12477_v53, %v12387_v58  ;;  %v30140_v58 = vld [vmem:[#allocation87_spill] sm:$0xff] }
 0x78d   : > { %30123 = vst [vmem:[#allocation80_spill] sm:$0xff] %v26915_v36  ;;  %v12422_v37 = vadd.f32 %v26377_v38, %v30134_v55  ;;  %23616 = vpow2.f32 %v13156_v12  ;;  %v26977_v55 = vld [vmem:[%s29294_s2] sm:$0xff] }
 0x78e   : > { %12754 = vmax.xlane.f32.xlu0 %v12753_v60  ;;  %v26939_v60 = vpop.eup %23612  ;;  %30136 = vst [vmem:[#allocation161_spill] sm:$0xff] %v26961_v8 }
 0x78f   : > { %12871 = vmax.xlane.f32.xlu1 %v12870_v20  ;;  %30130 = vst [vmem:[#allocation159_spill] sm:$0xff] %v26939_v60  ;;  %v26944_v20 = vadd.f32 %v12477_v53, %v12385_v23  ;;  %v13410_v23 = vsel %vm789_vm1, %v26939_v60, 0.0 }
 0x790   : > { %v26928_v40 = vpop.xlane.xlu1 %12679  ;;  %v26930_v36 = vpop.trf.xlu0 }
 0x791   : > { %30128 = vst [vmem:[#allocation65_spill] sm:$0xff] %v26930_v36  ;;  %30131 = vst [vmem:[#allocation160_spill] sm:$0xff] %v26944_v20  ;;  %v12765_v36 = vsel %vm789_vm1, %v26932_v18, -inf  ;;  %v27041_v18 = vld [vmem:[%s29294_s2 + $0x10] sm:$0xff] }
 0x792   : > { %12760 = vmax.xlane.f32.xlu0 %v12759_v25  ;;  %v13020_v25 = vsub.f32 %v26424_v11, %v12662_v46  ;;  %v12771_v11 = vsel %vm789_vm1, %v26944_v20, -inf }
 0x793   : > { %12877 = vmax.xlane.f32.xlu1 %v12876_v32  ;;  %v26959_v32 = vpop.eup %23614 }
 0x794   : > { %v26948_v31 = vpop.xlane.xlu1 %12685  ;;  %v26950_v19 = vpop.trf.xlu0  ;;  %30135 = vst [vmem:[#allocation30_spill] sm:$0xff] %v26959_v32  ;;  %v13160_v38 = vmul.f32 1.442695, %v13020_v25  ;;  %v30142_v25 = vld [vmem:[#allocation17_spill] sm:$0xff] }
 0x795   : > { %30133 = vst [vmem:[#allocation64_spill] sm:$0xff] %v26950_v19  ;;  %v12389_v19 = vadd.f32 %v26665_v4, %v30138_v42 }
 0x796   : > { %12766 = vmax.xlane.f32.xlu0 %v12765_v36  ;;  %v26972_v36 = vadd.f32 %v26858_v5, %v12422_v37  ;;  %v12391_v5 = vadd.f32 %v26685_v14, %v30142_v25  ;;  %v26992_v37 = vld [vmem:[%s29293_s1 + $0xb0] sm:$0xff]  ;;  %23618 = vpow2.f32 %v13160_v38  ;;  %v27008_v25 = vld [vmem:[%s29294_s2 + $0x8] sm:$0xff] }
 0x797   : > { %13411 = vadd.xlane.f32.xlu1 %v13410_v23  ;;  %v12424_v23 = vadd.f32 %v26977_v55, %v30140_v58  ;;  %v26985_v12 = vadd.f32 %v12477_v53, %v12389_v19  ;;  %v30145_v38 = vld [vmem:[#allocation66_spill] sm:$0xff] }
 0x798   : > { %v26963_v17 = vpop.xlane.xlu1 %12691  ;;  %v26967_v46 = vpop.trf.xlu0  ;;  %30139 = vst [vmem:[#allocation16_spill] sm:$0xff] %v26972_v36  ;;  %v12882_v19 = vsel %vm789_vm1, %v26972_v36, -inf  ;;  %v27003_v58 = vadd.f32 %v12477_v53, %v12391_v5  ;;  %v12479_v5 = vld [vmem:[%s29293_s1 + $0x78] sm:$0xff] }
 0x799   : > { %30137 = vst [vmem:[#allocation162_spill] sm:$0xff] %v26967_v46  ;;  %v13416_v46 = vsel %vm789_vm1, %v26959_v32, 0.0  ;;  %30141 = vst [vmem:[#allocation87_spill] sm:$0xff] %v26985_v12  ;;  %v26997_v42 = vadd.f32 %v26992_v37, %v12424_v23  ;;  %v12393_v32 = vadd.f32 %v27008_v25, %v30145_v38  ;;  %v13022_v23 = vsub.f32 %v26428_v7, %v26898_v52  ;;  %v27018_v53 = vpop.eup %23616  ;;  %v27026_v38 = vld [vmem:[%s29294_s2 + $0x18] sm:$0xff]  ;;  %v30147_v7 = vld [vmem:[#allocation70_spill] sm:$0xff] }
 0x79a   : > { %12772 = vmax.xlane.f32.xlu0 %v12771_v11  ;;  %v12777_v11 = vsel %vm789_vm1, %v26961_v8, -inf  ;;  %30144 = vst [vmem:[#allocation163_spill] sm:$0xff] %v27003_v58  ;;  %30146 = vst [vmem:[#allocation66_spill] sm:$0xff] %v27018_v53  ;;  %v12395_v52 = vadd.f32 %v27026_v38, %v30147_v7  ;;  %v12789_v20 = vsel %vm789_vm1, %v27003_v58, -inf }
 0x79b   : > { %13417 = vadd.xlane.f32.xlu1 %v13416_v46  ;;  %30143 = vst [vmem:[#allocation17_spill] sm:$0xff] %v26997_v42  ;;  %v13164_v8 = vmul.f32 1.442695, %v13022_v23 }
 0x79c   : > { %v26983_v60 = vpop.xlane.xlu1 %12697  ;;  %v27049_v23 = vadd.f32 %v12479_v5, %v12395_v52  ;;  %v30154_v52 = vld [vmem:[#allocation21_spill] sm:$0xff] }
 0x79d   : > { %23620 = vpow2.f32 %v13164_v8 }
 0x79e   : > { %12778 = vmax.xlane.f32.xlu0 %v12777_v11  ;;  %v12783_v11 = vsel %vm789_vm1, %v26985_v12, -inf  ;;  %30151 = vst [vmem:[#allocation164_spill] sm:$0xff] %v27049_v23 }
 0x79f   : > { %12883 = vmax.xlane.f32.xlu1 %v12882_v19  ;;  %v12888_v19 = vsel %vm789_vm1, %v26997_v42, -inf  ;;  %v30149_v42 = vld [vmem:[#allocation85_spill] sm:$0xff] }
 0x7a0   : > { %v27001_v46 = vpop.xlane.xlu1 %12703  ;;  %v12426_v36 = vadd.f32 %v27041_v18, %v30149_v42  ;;  %v27047_v7 = vpop.eup %23618  ;;  %v27063_v42 = vld [vmem:[%s29294_s2 + $0x20] sm:$0xff] }
 0x7a1   : > { %30150 = vst [vmem:[#allocation85_spill] sm:$0xff] %v27047_v7 }
 0x7a2   : > { %12784 = vmax.xlane.f32.xlu0 %v12783_v11  ;;  %v27032_v11 = vadd.f32 %v12479_v5, %v12393_v32  ;;  %v13422_v32 = vsel %vm789_vm1, %v27018_v53, 0.0  ;;  %v30156_v53 = vld [vmem:[#allocation38_spill] sm:$0xff] }
 0x7a3   : > { %12889 = vmax.xlane.f32.xlu1 %v12888_v19  ;;  %v13024_v19 = vsub.f32 %v26443_v47, %v26911_v63  ;;  %v30152_v63 = vld [vmem:[#allocation23_spill] sm:$0xff] }
 0x7a4   : > { %v27030_v12 = vpop.xlane.xlu1 %12709  ;;  %30148 = vst [vmem:[#allocation70_spill] sm:$0xff] %v27032_v11  ;;  %v12397_v58 = vadd.f32 %v26665_v4, %v30152_v63  ;;  %v12795_v0 = vsel %vm789_vm1, %v27032_v11, -inf  ;;  %v13428_v63 = vsel %vm789_vm1, %v27047_v7, 0.0  ;;  %v12801_v11 = vsel %vm789_vm1, %v27049_v23, -inf  ;;  %v30163_v23 = vld [vmem:[#allocation101_spill] sm:$0xff] }
 0x7a5   : > { %v13168_v45 = vmul.f32 1.442695, %v13024_v19 }
 0x7a6   : > { %12790 = vmax.xlane.f32.xlu0 %v12789_v20  ;;  %v27058_v20 = vadd.f32 %v26992_v37, %v12426_v36  ;;  %v27071_v19 = vadd.f32 %v12479_v5, %v12397_v58  ;;  %v12399_v36 = vadd.f32 %v26685_v14, %v30156_v53  ;;  %v30159_v58 = vld [vmem:[#allocation26_spill] sm:$0xff] }
 0x7a7   : > { %13423 = vadd.xlane.f32.xlu1 %v13422_v32  ;;  %v12428_v32 = vadd.f32 %v27063_v42, %v30154_v52  ;;  %23622 = vpow2.f32 %v13168_v45  ;;  %v12401_v7 = vadd.f32 %v27008_v25, %v30159_v58  ;;  %v13026_v45 = vsub.f32 %v26447_v27, %v26928_v40 }
 0x7a8   : > { %v27051_v47 = vpop.xlane.xlu1 %12715  ;;  %30153 = vst [vmem:[#allocation23_spill] sm:$0xff] %v27058_v20  ;;  %30155 = vst [vmem:[#allocation21_spill] sm:$0xff] %v27071_v19  ;;  %v12807_v53 = vsel %vm789_vm1, %v27071_v19, -inf }
 0x7a9   : > { %v27078_v30 = vadd.f32 %v26992_v37, %v12428_v32  ;;  %v27094_v32 = vpop.eup %23620  ;;  %v13172_v40 = vmul.f32 1.442695, %v13026_v45 }
 0x7aa   : > { %12796 = vmax.xlane.f32.xlu0 %v12795_v0  ;;  %v12894_v0 = vsel %vm789_vm1, %v27058_v20, -inf  ;;  %30160 = vst [vmem:[#allocation26_spill] sm:$0xff] %v27094_v32 }
 0x7ab   : > { %13429 = vadd.xlane.f32.xlu1 %v13428_v63  ;;  %30157 = vst [vmem:[#allocation38_spill] sm:$0xff] %v27078_v30  ;;  %v27084_v63 = vadd.f32 %v12479_v5, %v12399_v36  ;;  %v12481_v5 = vld [vmem:[%s29293_s1 + $0x88] sm:$0xff]  ;;  %23624 = vpow2.f32 %v13172_v40 }
 0x7ac   : > { %v27069_v8 = vpop.xlane.xlu1 %12721  ;;  %v30161_v36 = vld [vmem:[#allocation46_spill] sm:$0xff]  ;;  %v27103_v27 = vadd.f32 %v12481_v5, %v12401_v7  ;;  %v13434_v7 = vsel %vm789_vm1, %v27094_v32, 0.0 }
 0x7ad   : > { %30158 = vst [vmem:[#allocation165_spill] sm:$0xff] %v27084_v63  ;;  %v12813_v19 = vsel %vm789_vm1, %v27084_v63, -inf }
 0x7ae   : > { %12802 = vmax.xlane.f32.xlu0 %v12801_v11  ;;  %v12900_v11 = vsel %vm789_vm1, %v27078_v30, -inf  ;;  %30162 = vst [vmem:[#allocation46_spill] sm:$0xff] %v27103_v27  ;;  %v12819_v34 = vsel %vm789_vm1, %v27103_v27, -inf }
 0x7af   : > { %12895 = vmax.xlane.f32.xlu1 %v12894_v0  ;;  %v12403_v0 = vadd.f32 %v27026_v38, %v30161_v36 }
 0x7b0   : > { %v27082_v52 = vpop.xlane.xlu1 %12727 }
 0x7b1   : > { %v27118_v36 = vpop.eup %23622  ;;  %v27120_v45 = vadd.f32 %v12481_v5, %v12403_v0 }
 0x7b2   : > { %12808 = vmax.xlane.f32.xlu0 %v12807_v53  ;;  %v13028_v53 = vsub.f32 %v26459_v44, %v26948_v31  ;;  %30164 = vst [vmem:[#allocation101_spill] sm:$0xff] %v27118_v36  ;;  %v30166_v31 = vld [vmem:[#allocation79_spill] sm:$0xff]  ;;  %v13440_v0 = vsel %vm789_vm1, %v27118_v36, 0.0 }
 0x7b3   : > { %12901 = vmax.xlane.f32.xlu1 %v12900_v11  ;;  %v27112_v11 = vld [vmem:[%s29294_s2 + $0x30] sm:$0xff]  ;;  %30165 = vst [vmem:[#allocation166_spill] sm:$0xff] %v27120_v45  ;;  %v12405_v63 = vadd.f32 %v26665_v4, %v30166_v31  ;;  %v30169_v31 = vld [vmem:[#allocation77_spill] sm:$0xff] }
 0x7b4   : > { %v27101_v58 = vpop.xlane.xlu1 %12733  ;;  %v12430_v30 = vadd.f32 %v27112_v11, %v30163_v23  ;;  %v13176_v20 = vmul.f32 1.442695, %v13028_v53 }
 0x7b5   : > { %v27142_v53 = vadd.f32 %v12481_v5, %v12405_v63 }
 0x7b6   : > { %12814 = vmax.xlane.f32.xlu0 %v12813_v19  ;;  %v27129_v23 = vadd.f32 %v26992_v37, %v12430_v30  ;;  %v30167_v19 = vld [vmem:[#allocation76_spill] sm:$0xff]  ;;  %v12407_v30 = vadd.f32 %v26685_v14, %v30169_v31  ;;  %23626 = vpow2.f32 %v13176_v20  ;;  %v30172_v31 = vld [vmem:[#allocation43_spill] sm:$0xff] }
 0x7b7   : > { %13435 = vadd.xlane.f32.xlu1 %v13434_v7  ;;  %v12432_v32 = vadd.f32 %v26977_v55, %v30167_v19  ;;  %v27138_v7 = vld [vmem:[%s29293_s1 + $0xc0] sm:$0xff]  ;;  %30168 = vst [vmem:[#allocation79_spill] sm:$0xff] %v27142_v53  ;;  %v12409_v20 = vadd.f32 %v27008_v25, %v30172_v31 }
 0x7b8   : > { %v27122_v44 = vpop.xlane.xlu1 %12739  ;;  %v12906_v19 = vsel %vm789_vm1, %v27129_v23, -inf  ;;  %v27157_v36 = vadd.f32 %v12481_v5, %v12407_v30 }
 0x7b9   : > { %v27149_v37 = vadd.f32 %v27138_v7, %v12432_v32  ;;  %v12831_v32 = vsel %vm789_vm1, %v27142_v53, -inf }
 0x7ba   : > { %12820 = vmax.xlane.f32.xlu0 %v12819_v34  ;;  %v12825_v34 = vsel %vm789_vm1, %v27120_v45, -inf  ;;  %30171 = vst [vmem:[#allocation77_spill] sm:$0xff] %v27157_v36  ;;  %v13030_v45 = vsub.f32 %v26463_v62, %v26963_v17  ;;  %v12837_v53 = vsel %vm789_vm1, %v27157_v36, -inf }
 0x7bb   : > { %13441 = vadd.xlane.f32.xlu1 %v13440_v0  ;;  %30170 = vst [vmem:[#allocation76_spill] sm:$0xff] %v27149_v37  ;;  %v13009_v0 = vsub.f32 %v26349_v16, %v26896_v9  ;;  %v12483_v16 = vld [vmem:[%s29293_s1 + $0x98] sm:$0xff] }
 0x7bc   : > { %v27140_v40 = vpop.xlane.xlu1 %12745  ;;  %v30174_v9 = vld [vmem:[#allocation44_spill] sm:$0xff]  ;;  %v27176_v62 = vadd.f32 %v12483_v16, %v12409_v20  ;;  %v13180_v17 = vmul.f32 1.442695, %v13030_v45 }
 0x7bd   : > { %v12411_v5 = vadd.f32 %v27026_v38, %v30174_v9  ;;  %v13138_v30 = vmul.f32 1.442695, %v13009_v0  ;;  %v30179_v20 = vld [vmem:[#allocation12_spill] sm:$0xff] }
 0x7be   : > { %12826 = vmax.xlane.f32.xlu0 %v12825_v34  ;;  %v12912_v34 = vsel %vm789_vm1, %v27149_v37, -inf  ;;  %30175 = vst [vmem:[#allocation44_spill] sm:$0xff] %v27176_v62 }
 0x7bf   : > { %12907 = vmax.xlane.f32.xlu1 %v12906_v19  ;;  %v27167_v19 = vpop.eup %23624  ;;  %v27188_v0 = vadd.f32 %v12483_v16, %v12411_v5  ;;  %23628 = vpow2.f32 %v13138_v30  ;;  %v13011_v5 = vsub.f32 %v26379_v57, %v26826_v41 }
 0x7c0   : > { %v27155_v63 = vpop.xlane.xlu1 %12751  ;;  %30173 = vst [vmem:[#allocation43_spill] sm:$0xff] %v27167_v19  ;;  %v13446_v37 = vsel %vm789_vm1, %v27167_v19, 0.0  ;;  %v27186_v9 = vpop.eup %23626  ;;  %23630 = vpow2.f32 %v13180_v17  ;;  %v30181_v19 = vld [vmem:[#allocation28_spill] sm:$0xff] }
 0x7c1   : > { %30178 = vst [vmem:[#allocation167_spill] sm:$0xff] %v27188_v0  ;;  %v12436_v36 = vadd.f32 %v27063_v42, %v30181_v19  ;;  %v13142_v41 = vmul.f32 1.442695, %v13011_v5 }
 0x7c2   : > { %12832 = vmax.xlane.f32.xlu0 %v12831_v32  ;;  %v13032_v32 = vsub.f32 %v26480_v6, %v26983_v60  ;;  %v12413_v6 = vadd.f32 %v26665_v4, %v30179_v20 }
 0x7c3   : > { %12913 = vmax.xlane.f32.xlu1 %v12912_v34  ;;  %v30176_v34 = vld [vmem:[#allocation25_spill] sm:$0xff] }
 0x7c4   : > { %v27174_v31 = vpop.xlane.xlu1 %12757  ;;  %v12434_v27 = vadd.f32 %v27041_v18, %v30176_v34  ;;  %30177 = vst [vmem:[#allocation25_spill] sm:$0xff] %v27186_v9  ;;  %v13184_v60 = vmul.f32 1.442695, %v13032_v32  ;;  %v12843_v34 = vsel %vm789_vm1, %v27176_v62, -inf  ;;  %v27207_v17 = vadd.f32 %v12483_v16, %v12413_v6  ;;  %v30188_v62 = vld [vmem:[#allocation48_spill] sm:$0xff] }
 0x7c5   : > { %v27212_v32 = vadd.f32 %v27138_v7, %v12436_v36 }
 0x7c6   : > { %12838 = vmax.xlane.f32.xlu0 %v12837_v53  ;;  %v27197_v53 = vadd.f32 %v27138_v7, %v12434_v27  ;;  %30182 = vst [vmem:[#allocation28_spill] sm:$0xff] %v27207_v17  ;;  %23632 = vpow2.f32 %v13184_v60  ;;  %v12849_v27 = vsel %vm789_vm1, %v27188_v0, -inf  ;;  %v13034_v60 = vsub.f32 %v26488_v21, %v27001_v46  ;;  %v30187_v21 = vld [vmem:[#allocation75_spill] sm:$0xff] }
 0x7c7   : > { %13447 = vadd.xlane.f32.xlu1 %v13446_v37  ;;  %v13452_v37 = vsel %vm789_vm1, %v27186_v9, 0.0  ;;  %30183 = vst [vmem:[#allocation168_spill] sm:$0xff] %v27212_v32  ;;  %v12855_v36 = vsel %vm789_vm1, %v27207_v17, -inf  ;;  %23634 = vpow2.f32 %v13142_v41  ;;  %v12417_v46 = vadd.f32 %v27008_v25, %v30187_v21 }
 0x7c8   : > { %v27190_v45 = vpop.xlane.xlu1 %12763  ;;  %30180 = vst [vmem:[#allocation12_spill] sm:$0xff] %v27197_v53  ;;  %v12918_v19 = vsel %vm789_vm1, %v27197_v53, -inf  ;;  %v13188_v17 = vmul.f32 1.442695, %v13034_v60  ;;  %v30198_v53 = vld [vmem:[#allocation45_spill] sm:$0xff] }
 0x7ca   : > { %12844 = vmax.xlane.f32.xlu0 %v12843_v34  ;;  %v30184_v34 = vld [vmem:[#allocation69_spill] sm:$0xff] }
 0x7cb   : > { %13453 = vadd.xlane.f32.xlu1 %v13452_v37  ;;  %v12415_v57 = vadd.f32 %v26685_v14, %v30184_v34 }
 0x7cc   : > { %v27205_v30 = vpop.xlane.xlu1 %12769 }
 0x7cd   : > { %v27231_v5 = vadd.f32 %v12483_v16, %v12415_v57 }
 0x7ce   : > { %12850 = vmax.xlane.f32.xlu0 %v12849_v27  ;;  %v27225_v27 = vpop.eup %23628 }
 0x7cf   : > { %v12641_v20 = vpop.xlane.xlu0 %12640  ;;  %12919 = vmax.xlane.f32.xlu1 %v12918_v19  ;;  %v12924_v19 = vsel %vm789_vm1, %v27212_v32, -inf  ;;  %v27229_v9 = vpop.eup %23630  ;;  %30186 = vst [vmem:[#allocation169_spill] sm:$0xff] %v27231_v5  ;;  %v13395_v0 = vsel %vm789_vm1, %v27225_v27, 0.0  ;;  %v12438_v32 = vadd.f32 %v27112_v11, %v30188_v62 }
 0x7d0   : > { %v13013_v6 = vsub.f32 %v25975_v10, %v12641_v20  ;;  %v27219_v37 = vpop.xlane.xlu1 %12775  ;;  %30185 = vst [vmem:[#allocation69_spill] sm:$0xff] %v27229_v9  ;;  %v13458_v16 = vsel %vm789_vm1, %v27229_v9, 0.0  ;;  %v27245_v57 = vpop.eup %23632 }
 0x7d1   : > { %30189 = vst [vmem:[#allocation75_spill] sm:$0xff] %v27245_v57  ;;  %v27260_v60 = vadd.f32 %v27138_v7, %v12438_v32  ;;  %v27276_v32 = vpop.eup %23634 }
 0x7d2   : > { %12856 = vmax.xlane.f32.xlu0 %v12855_v36  ;;  %v13146_v10 = vmul.f32 1.442695, %v13013_v6  ;;  %v13036_v36 = vsub.f32 %v26502_v48, %v27030_v12  ;;  %v27250_v6 = vld [vmem:[%s29293_s1 + $0xa8] sm:$0xff] }
 0x7d3   : > { %v12647_v34 = vpop.xlane.xlu0 %12646  ;;  %12925 = vmax.xlane.f32.xlu1 %v12924_v19  ;;  %v27255_v12 = vadd.f32 %v27250_v6, %v12417_v46  ;;  %30191 = vst [vmem:[#allocation170_spill] sm:$0xff] %v27260_v60  ;;  %v30192_v19 = vld [vmem:[#allocation32_spill] sm:$0xff]  ;;  %v27269_v46 = vld [vmem:[%s29293_s1 + $0xd0] sm:$0xff] }
 0x7d4   : > { %v27233_v20 = vpop.xlane.xlu1 %12781  ;;  %23636 = vpow2.f32 %v13146_v10  ;;  %v13192_v62 = vmul.f32 1.442695, %v13036_v36  ;;  %v12440_v21 = vadd.f32 %v26977_v55, %v30192_v19  ;;  %v13464_v10 = vsel %vm789_vm1, %v27245_v57, 0.0 }
 0x7d5   : > { %30190 = vst [vmem:[#allocation48_spill] sm:$0xff] %v27255_v12  ;;  %23638 = vpow2.f32 %v13188_v17  ;;  %v13015_v36 = vsub.f32 %v25938_v35, %v12647_v34  ;;  %v12867_v7 = vsel %vm789_vm1, %v27255_v12, -inf  ;;  %v12930_v19 = vsel %vm789_vm1, %v27260_v60, -inf }
 0x7d6   : > { %13396 = vadd.xlane.f32.xlu0 %v13395_v0  ;;  %v12861_v0 = vsel %vm789_vm1, %v27231_v5, -inf  ;;  %23640 = vpow2.f32 %v13192_v62  ;;  %v13038_v12 = vsub.f32 %v26508_v61, %v27051_v47  ;;  %v30197_v47 = vld [vmem:[#allocation11_spill] sm:$0xff] }
 0x7d7   : > { %v12653_v41 = vpop.xlane.xlu0 %12652  ;;  %13459 = vadd.xlane.f32.xlu1 %v13458_v16  ;;  %v13150_v34 = vmul.f32 1.442695, %v13015_v36  ;;  %v12421_v36 = vadd.f32 %v26665_v4, %v30197_v47 }
 0x7d8   : > { %v27252_v48 = vpop.xlane.xlu1 %12787  ;;  %v13017_v62 = vsub.f32 %v26648_v28, %v12653_v41  ;;  %v13196_v60 = vmul.f32 1.442695, %v13038_v12 }
 0x7d9   : > { %23642 = vpow2.f32 %v13150_v34 }
 0x7da   : > { %12862 = vmax.xlane.f32.xlu0 %v12861_v0  ;;  %v27279_v0 = vadd.f32 %v27269_v46, %v12440_v21  ;;  %v13401_v21 = vsel %vm789_vm1, %v27276_v32, 0.0  ;;  %v13154_v41 = vmul.f32 1.442695, %v13017_v62 }
 0x7db   : > { %v12659_v17 = vpop.xlane.xlu0 %12658  ;;  %13465 = vadd.xlane.f32.xlu1 %v13464_v10  ;;  %v30194_v10 = vld [vmem:[#allocation73_spill] sm:$0xff] }
 0x7dc   : > { %v27272_v16 = vpop.xlane.xlu1 %12793  ;;  %30193 = vst [vmem:[#allocation32_spill] sm:$0xff] %v27279_v0  ;;  %v12419_v35 = vadd.f32 %v27026_v38, %v30194_v10  ;;  %23644 = vpow2.f32 %v13154_v41 }
 0x7dd   : > { %23646 = vpow2.f32 %v13196_v60 }
 0x7de   : > { %12868 = vmax.xlane.f32.xlu0 %v12867_v7  ;;  %v27294_v7 = vpop.eup %23636  ;;  %v27303_v28 = vadd.f32 %v27250_v6, %v12419_v35 }
 0x7df   : > { %v27283_v57 = vpop.xlane.xlu0 %12664  ;;  %12931 = vmax.xlane.f32.xlu1 %v12930_v19  ;;  %v12936_v19 = vsel %vm789_vm1, %v27279_v0, -inf  ;;  %v27298_v5 = vpop.eup %23638  ;;  %v13407_v0 = vsel %vm789_vm1, %v27294_v7, 0.0 }
 0x7e0   : > { %v27288_v9 = vpop.xlane.xlu1 %12799  ;;  %30195 = vst [vmem:[#allocation73_spill] sm:$0xff] %v27298_v5  ;;  %30196 = vst [vmem:[#allocation171_spill] sm:$0xff] %v27303_v28  ;;  %v13470_v35 = vsel %vm789_vm1, %v27298_v5, 0.0  ;;  %v27317_v34 = vpop.eup %23640 }
 0x7e1   : > { %30199 = vst [vmem:[#allocation11_spill] sm:$0xff] %v27317_v34  ;;  %v13476_v41 = vsel %vm789_vm1, %v27317_v34, 0.0 }
 0x7e2   : > { %13402 = vadd.xlane.f32.xlu0 %v13401_v21  ;;  %v13040_v21 = vsub.f32 %v26521_v54, %v27069_v8  ;;  %v27324_v54 = vadd.f32 %v27250_v6, %v12421_v36  ;;  %v13019_v36 = vsub.f32 %v26658_v56, %v12659_v17 }
 0x7e3   : > { %v27300_v10 = vpop.xlane.xlu0 %12670  ;;  %12937 = vmax.xlane.f32.xlu1 %v12936_v19  ;;  %v12442_v19 = vadd.f32 %v27041_v18, %v30198_v53  ;;  %v12873_v53 = vsel %vm789_vm1, %v27303_v28, -inf }
 0x7e4   : > { %v27305_v61 = vpop.xlane.xlu1 %12805  ;;  %30200 = vst [vmem:[#allocation45_spill] sm:$0xff] %v27324_v54  ;;  %v13200_v8 = vmul.f32 1.442695, %v13040_v21  ;;  %v12879_v21 = vsel %vm789_vm1, %v27324_v54, -inf  ;;  %v13158_v17 = vmul.f32 1.442695, %v13019_v36 }
 0x7e5   : > { %v27329_v12 = vadd.f32 %v27269_v46, %v12442_v19  ;;  %v27342_v19 = vpop.eup %23642 }
 0x7e6   : > { %13408 = vadd.xlane.f32.xlu0 %v13407_v0  ;;  %v30202_v0 = vld [vmem:[#allocation50_spill] sm:$0xff]  ;;  %23648 = vpow2.f32 %v13200_v8  ;;  %v13021_v8 = vsub.f32 %v26691_v26, %v27283_v57  ;;  %v27361_v54 = vpop.eup %23644 }
 0x7e7   : > { %v27319_v62 = vpop.xlane.xlu0 %12676  ;;  %13471 = vadd.xlane.f32.xlu1 %v13470_v35  ;;  %30201 = vst [vmem:[#allocation172_spill] sm:$0xff] %v27329_v12  ;;  %v12444_v47 = vadd.f32 %v27063_v42, %v30202_v0  ;;  %30203 = vst [vmem:[#allocation50_spill] sm:$0xff] %v27342_v19  ;;  %v27365_v28 = vpop.eup %23646  ;;  %23650 = vpow2.f32 %v13158_v17 }
 0x7e8   : > { %v27321_v4 = vpop.xlane.xlu1 %12811  ;;  %30207 = vst [vmem:[#allocation174_spill] sm:$0xff] %v27365_v28  ;;  %v13162_v57 = vmul.f32 1.442695, %v13021_v8  ;;  %v27391_v8 = vld [vmem:[%s29293_s1 + $0xb8] sm:$0xff] }
 0x7e9   : > { %v27345_v5 = vadd.f32 %v27269_v46, %v12444_v47  ;;  %v13042_v47 = vsub.f32 %v26531_v43, %v27082_v52  ;;  %v30209_v52 = vld [vmem:[#allocation20_spill] sm:$0xff] }
 0x7ea   : > { %12874 = vmax.xlane.f32.xlu0 %v12873_v53  ;;  %v12942_v53 = vsel %vm789_vm1, %v27329_v12, -inf  ;;  %v12425_v36 = vadd.f32 %v27008_v25, %v30209_v52  ;;  %v30210_v12 = vld [vmem:[#allocation81_spill] sm:$0xff]  ;;  %23652 = vpow2.f32 %v13162_v57  ;;  %v12448_v52 = vadd.f32 %v26977_v55, %v26257_v50 }
 0x7eb   : > { %v27335_v35 = vpop.xlane.xlu0 %12682  ;;  %13477 = vadd.xlane.f32.xlu1 %v13476_v41  ;;  %30204 = vst [vmem:[#allocation173_spill] sm:$0xff] %v27345_v5  ;;  %v30205_v41 = vld [vmem:[#allocation78_spill] sm:$0xff] }
 0x7ec   : > { %v27338_v60 = vpop.xlane.xlu1 %12817  ;;  %v12423_v56 = vadd.f32 %v26685_v14, %v30205_v41  ;;  %30206 = vst [vmem:[#allocation78_spill] sm:$0xff] %v27361_v54  ;;  %v13204_v41 = vmul.f32 1.442695, %v13042_v47 }
 0x7ee   : > { %12880 = vmax.xlane.f32.xlu0 %v12879_v21  ;;  %v13413_v21 = vsel %vm789_vm1, %v27342_v19, 0.0  ;;  %v27370_v26 = vadd.f32 %v27250_v6, %v12423_v56  ;;  %v13482_v6 = vsel %vm789_vm1, %v27365_v28, 0.0  ;;  %23654 = vpow2.f32 %v13204_v41  ;;  %v30246_v19 = vld [vmem:[#allocation91_spill] sm:$0xff] }
 0x7ef   : > { %v27349_v0 = vpop.xlane.xlu0 %12688  ;;  %12943 = vmax.xlane.f32.xlu1 %v12942_v53  ;;  %v12948_v53 = vsel %vm789_vm1, %v27345_v5, -inf  ;;  %v13419_v5 = vsel %vm789_vm1, %v27361_v54, 0.0 }
 0x7f0   : > { %v27355_v34 = vpop.xlane.xlu1 %12823  ;;  %30208 = vst [vmem:[#allocation175_spill] sm:$0xff] %v27370_v26  ;;  %v27384_v56 = vpop.eup %23648 }
 0x7f1   : > { %30211 = vst [vmem:[#allocation20_spill] sm:$0xff] %v27384_v56  ;;  %v13488_v57 = vsel %vm789_vm1, %v27384_v56, 0.0 }
 0x7f2   : > { %13414 = vadd.xlane.f32.xlu0 %v13413_v21  ;;  %v13044_v21 = vsub.f32 %v26541_v15, %v27101_v58  ;;  %v27396_v58 = vadd.f32 %v27391_v8, %v12425_v36  ;;  %v27410_v36 = vld [vmem:[%s29293_s1 + $0xe0] sm:$0xff] }
 0x7f3   : > { %v27367_v14 = vpop.xlane.xlu0 %12694  ;;  %12949 = vmax.xlane.f32.xlu1 %v12948_v53  ;;  %v12446_v53 = vadd.f32 %v27112_v11, %v30210_v12  ;;  %v12885_v12 = vsel %vm789_vm1, %v27370_v26, -inf }
 0x7f4   : > { %v27372_v43 = vpop.xlane.xlu1 %12829  ;;  %30212 = vst [vmem:[#allocation81_spill] sm:$0xff] %v27396_v58  ;;  %v12891_v50 = vsel %vm789_vm1, %v27396_v58, -inf }
 0x7f5   : > { %v27401_v47 = vadd.f32 %v27269_v46, %v12446_v53  ;;  %v27420_v53 = vpop.eup %23650 }
 0x7f6   : > { %13420 = vadd.xlane.f32.xlu0 %v13419_v5  ;;  %v13208_v5 = vmul.f32 1.442695, %v13044_v21  ;;  %v13023_v21 = vsub.f32 %v26701_v59, %v27300_v10  ;;  %30214 = vst [vmem:[#allocation177_spill] sm:$0xff] %v27420_v53  ;;  %v27439_v58 = vpop.eup %23652 }
 0x7f7   : > { %v27386_v17 = vpop.xlane.xlu0 %12700  ;;  %13483 = vadd.xlane.f32.xlu1 %v13482_v6  ;;  %30213 = vst [vmem:[#allocation176_spill] sm:$0xff] %v27401_v47  ;;  %v27423_v6 = vadd.f32 %v27410_v36, %v12448_v52  ;;  %v13046_v52 = vsub.f32 %v26551_v33, %v27122_v44  ;;  %v27455_v44 = vld [vmem:[%s29294_s2 + $0x28] sm:$0xff] }
 0x7f8   : > { %v27393_v15 = vpop.xlane.xlu1 %12835  ;;  %23656 = vpow2.f32 %v13208_v5  ;;  %v13166_v10 = vmul.f32 1.442695, %v13023_v21  ;;  %v13025_v5 = vsub.f32 %v26720_v39, %v27319_v62  ;;  %v27443_v26 = vpop.eup %23654 }
 0x7f9   : > { %30215 = vst [vmem:[#allocation178_spill] sm:$0xff] %v27423_v6  ;;  %30218 = vst [vmem:[#allocation179_spill] sm:$0xff] %v27443_v26 }
 0x7fa   : > { %12886 = vmax.xlane.f32.xlu0 %v12885_v12  ;;  %v12954_v12 = vsel %vm789_vm1, %v27401_v47, -inf  ;;  %23658 = vpow2.f32 %v13166_v10  ;;  %v13170_v62 = vmul.f32 1.442695, %v13025_v5  ;;  %v13048_v47 = vsub.f32 %v26564_v51, %v27140_v40 }
 0x7fb   : > { %v27412_v41 = vpop.xlane.xlu0 %12706  ;;  %13489 = vadd.xlane.f32.xlu1 %v13488_v57  ;;  %v30216_v57 = vld [vmem:[#allocation19_spill] sm:$0xff]  ;;  %v13494_v5 = vsel %vm789_vm1, %v27443_v26, 0.0 }
 0x7fc   : > { %v27416_v46 = vpop.xlane.xlu1 %12841  ;;  %v12427_v59 = vadd.f32 %v27026_v38, %v30216_v57  ;;  %30217 = vst [vmem:[#allocation19_spill] sm:$0xff] %v27439_v58  ;;  %v30220_v57 = vld [vmem:[#allocation24_spill] sm:$0xff]  ;;  %23660 = vpow2.f32 %v13170_v62  ;;  %v13216_v40 = vmul.f32 1.442695, %v13048_v47 }
 0x7fe   : > { %12892 = vmax.xlane.f32.xlu0 %v12891_v50  ;;  %v13425_v50 = vsel %vm789_vm1, %v27420_v53, 0.0  ;;  %v27448_v39 = vadd.f32 %v27391_v8, %v12427_v59  ;;  %v13431_v59 = vsel %vm789_vm1, %v27439_v58, 0.0 }
 0x7ff   : > { %v27427_v56 = vpop.xlane.xlu0 %12712  ;;  %12955 = vmax.xlane.f32.xlu1 %v12954_v12  ;;  %v12960_v12 = vsel %vm789_vm1, %v27423_v6, -inf  ;;  %v13212_v6 = vmul.f32 1.442695, %v13046_v52 }
 0x800   : > { %v27433_v28 = vpop.xlane.xlu1 %12847  ;;  %30219 = vst [vmem:[#allocation180_spill] sm:$0xff] %v27448_v39 }
 0x801   : > { %23662 = vpow2.f32 %v13212_v6  ;;  %v13027_v6 = vsub.f32 %v26728_v2, %v27335_v35  ;;  %v27505_v2 = vld [vmem:[%s29294_s2 + $0x38] sm:$0xff]  ;;  %v30227_v35 = vld [vmem:[#allocation42_spill] sm:$0xff] }
 0x802   : > { %13426 = vadd.xlane.f32.xlu0 %v13425_v50  ;;  %v12429_v50 = vadd.f32 %v27455_v44, %v30220_v57  ;;  %v27467_v53 = vpop.eup %23656  ;;  %v12897_v57 = vsel %vm789_vm1, %v27448_v39, -inf  ;;  %23664 = vpow2.f32 %v13216_v40  ;;  %v12431_v40 = vadd.f32 %v27505_v2, %v30227_v35 }
 0x803   : > { %v27445_v21 = vpop.xlane.xlu0 %12718  ;;  %12961 = vmax.xlane.f32.xlu1 %v12960_v12  ;;  %v30221_v12 = vld [vmem:[#allocation37_spill] sm:$0xff]  ;;  %30222 = vst [vmem:[#allocation24_spill] sm:$0xff] %v27467_v53  ;;  %v13500_v62 = vsel %vm789_vm1, %v27467_v53, 0.0 }
 0x804   : > { %v27450_v33 = vpop.xlane.xlu1 %12853  ;;  %v12450_v10 = vadd.f32 %v27041_v18, %v30221_v12  ;;  %v27474_v51 = vadd.f32 %v27391_v8, %v12429_v50  ;;  %v12452_v12 = vadd.f32 %v27063_v42, %v26275_v24 }
 0x806   : > { %13432 = vadd.xlane.f32.xlu0 %v13431_v59  ;;  %30223 = vst [vmem:[#allocation37_spill] sm:$0xff] %v27474_v51  ;;  %v27479_v59 = vadd.f32 %v27410_v36, %v12450_v10  ;;  %v12903_v50 = vsel %vm789_vm1, %v27474_v51, -inf  ;;  %v27493_v10 = vpop.eup %23658  ;;  %v27496_v24 = vadd.f32 %v27410_v36, %v12452_v12  ;;  %v13029_v12 = vsub.f32 %v26747_v3, %v27349_v0 }
 0x807   : > { %v27469_v54 = vpop.xlane.xlu0 %12724  ;;  %13495 = vadd.xlane.f32.xlu1 %v13494_v5  ;;  %30225 = vst [vmem:[#allocation182_spill] sm:$0xff] %v27493_v10  ;;  %v27517_v51 = vpop.eup %23660  ;;  %v27526_v3 = vadd.f32 %v27391_v8, %v12431_v40  ;;  %v12454_v8 = vadd.f32 %v27112_v11, %v26277_v22 }
 0x808   : > { %v27471_v52 = vpop.xlane.xlu1 %13393  ;;  %30224 = vst [vmem:[#allocation181_spill] sm:$0xff] %v27479_v59  ;;  %30226 = vst [vmem:[#allocation183_spill] sm:$0xff] %v27496_v24  ;;  %v12972_v39 = vsel %vm789_vm1, %v27496_v24, -inf  ;;  %v13178_v0 = vmul.f32 1.442695, %v13029_v12  ;;  %v13443_v24 = vsel %vm789_vm1, %v27517_v51, 0.0 }
 0x809   : > { %30228 = vst [vmem:[#allocation42_spill] sm:$0xff] %v27517_v51  ;;  %30230 = vst [vmem:[#allocation185_spill] sm:$0xff] %v27526_v3  ;;  %v12909_v22 = vsel %vm789_vm1, %v27526_v3, -inf  ;;  %v30240_v3 = vld [vmem:[#allocation142_spill] sm:$0xff] }
 0x80a   : > { %12898 = vmax.xlane.f32.xlu0 %v12897_v57  ;;  %v12966_v57 = vsel %vm789_vm1, %v27479_v59, -inf }
 0x80b   : > { %v27485_v5 = vpop.xlane.xlu0 %12730  ;;  %13501 = vadd.xlane.f32.xlu1 %v13500_v62  ;;  %v13174_v62 = vmul.f32 1.442695, %v13027_v6  ;;  %v27521_v59 = vpop.eup %23662 }
 0x80c   : > { %v27489_v47 = vpop.xlane.xlu1 %12859  ;;  %30229 = vst [vmem:[#allocation184_spill] sm:$0xff] %v27521_v59  ;;  %v13506_v40 = vsel %vm789_vm1, %v27521_v59, 0.0 }
 0x80d   : > { %23666 = vpow2.f32 %v13174_v62  ;;  %v27545_v62 = vpop.eup %23664 }
 0x80e   : > { %12904 = vmax.xlane.f32.xlu0 %v12903_v50  ;;  %v13050_v50 = vsub.f32 %v26574_v29, %v27155_v63  ;;  %v30231_v63 = vld [vmem:[#allocation41_spill] sm:$0xff]  ;;  %23668 = vpow2.f32 %v13178_v0  ;;  %v13512_v0 = vsel %vm789_vm1, %v27545_v62, 0.0 }
 0x80f   : > { %v27500_v53 = vpop.xlane.xlu0 %12736  ;;  %12967 = vmax.xlane.f32.xlu1 %v12966_v57  ;;  %v13437_v57 = vsel %vm789_vm1, %v27493_v10, 0.0  ;;  %v12433_v35 = vadd.f32 %v27008_v25, %v30231_v63  ;;  %30232 = vst [vmem:[#allocation41_spill] sm:$0xff] %v27545_v62  ;;  %v12456_v63 = vadd.f32 %v26977_v55, %v26285_v1 }
 0x810   : > { %v27511_v26 = vpop.xlane.xlu1 %12865  ;;  %v13220_v10 = vmul.f32 1.442695, %v13050_v50 }
 0x812   : > { %13438 = vadd.xlane.f32.xlu0 %v13437_v57  ;;  %v13052_v57 = vsub.f32 %v26584_v13, %v27174_v31  ;;  %23670 = vpow2.f32 %v13220_v10 }
 0x813   : > { %v27523_v6 = vpop.xlane.xlu0 %12742  ;;  %12973 = vmax.xlane.f32.xlu1 %v12972_v39  ;;  %v27539_v39 = vld [vmem:[%s29293_s1 + $0xc8] sm:$0xff] }
 0x814   : > { %v27528_v29 = vpop.xlane.xlu1 %13399  ;;  %v27552_v31 = vadd.f32 %v27539_v39, %v12433_v35  ;;  %v13224_v50 = vmul.f32 1.442695, %v13052_v57  ;;  %v27566_v35 = vld [vmem:[%s29293_s1 + $0xf0] sm:$0xff]  ;;  %v30235_v57 = vld [vmem:[#allocation49_spill] sm:$0xff] }
 0x816   : > { %13444 = vadd.xlane.f32.xlu0 %v13443_v24  ;;  %30233 = vst [vmem:[#allocation186_spill] sm:$0xff] %v27552_v31  ;;  %v27557_v24 = vadd.f32 %v27410_v36, %v12454_v8  ;;  %23672 = vpow2.f32 %v13224_v50  ;;  %v12915_v1 = vsel %vm789_vm1, %v27552_v31, -inf  ;;  %v27579_v8 = vadd.f32 %v27566_v35, %v12456_v63  ;;  %v30239_v50 = vld [vmem:[#allocation15_spill] sm:$0xff] }
 0x817   : > { %v27547_v12 = vpop.xlane.xlu0 %12748  ;;  %13507 = vadd.xlane.f32.xlu1 %v13506_v40  ;;  %v13031_v40 = vsub.f32 %v30235_v57, %v27367_v14  ;;  %v27576_v55 = vpop.eup %23666  ;;  %v13033_v59 = vsub.f32 %v30239_v50, %v27386_v17  ;;  %v13054_v63 = vsub.f32 %v30240_v3, %v27190_v45  ;;  %v30244_v3 = vld [vmem:[#allocation29_spill] sm:$0xff] }
 0x818   : > { %v27549_v13 = vpop.xlane.xlu1 %13405  ;;  %30234 = vst [vmem:[#allocation187_spill] sm:$0xff] %v27557_v24  ;;  %30236 = vst [vmem:[#allocation49_spill] sm:$0xff] %v27576_v55  ;;  %v27595_v51 = vpop.eup %23668  ;;  %v12437_v50 = vadd.f32 %v27455_v44, %v30244_v3 }
 0x819   : > { %30237 = vst [vmem:[#allocation188_spill] sm:$0xff] %v27579_v8  ;;  %v13182_v57 = vmul.f32 1.442695, %v13031_v40 }
 0x81a   : > { %12910 = vmax.xlane.f32.xlu0 %v12909_v22  ;;  %v12978_v22 = vsel %vm789_vm1, %v27557_v24, -inf }
 0x81b   : > { %v27568_v10 = vpop.xlane.xlu0 %12754  ;;  %13513 = vadd.xlane.f32.xlu1 %v13512_v0  ;;  %v30238_v0 = vld [vmem:[#allocation74_spill] sm:$0xff]  ;;  %23674 = vpow2.f32 %v13182_v57 }
 0x81c   : > { %v27572_v36 = vpop.xlane.xlu1 %12871  ;;  %v12435_v14 = vadd.f32 %v27026_v38, %v30238_v0  ;;  %30241 = vst [vmem:[#allocation74_spill] sm:$0xff] %v27595_v51  ;;  %v27599_v24 = vpop.eup %23670  ;;  %v13186_v0 = vmul.f32 1.442695, %v13033_v59 }
 0x81d   : > { %30242 = vst [vmem:[#allocation15_spill] sm:$0xff] %v27599_v24 }
 0x81e   : > { %12916 = vmax.xlane.f32.xlu0 %v12915_v1  ;;  %v13449_v1 = vsel %vm789_vm1, %v27576_v55, 0.0  ;;  %v27604_v17 = vadd.f32 %v27539_v39, %v12435_v14  ;;  %v13228_v55 = vmul.f32 1.442695, %v13054_v63  ;;  %v13518_v14 = vsel %vm789_vm1, %v27599_v24, 0.0  ;;  %v30252_v24 = vld [vmem:[#allocation148_spill] sm:$0xff] }
 0x81f   : > { %v27583_v62 = vpop.xlane.xlu0 %12760  ;;  %12979 = vmax.xlane.f32.xlu1 %v12978_v22  ;;  %v12984_v22 = vsel %vm789_vm1, %v27579_v8, -inf  ;;  %v13455_v8 = vsel %vm789_vm1, %v27595_v51, 0.0  ;;  %23676 = vpow2.f32 %v13186_v0 }
 0x820   : > { %v27589_v31 = vpop.xlane.xlu1 %12877  ;;  %30243 = vst [vmem:[#allocation142_spill] sm:$0xff] %v27604_v17  ;;  %v27618_v59 = vpop.eup %23672  ;;  %23678 = vpow2.f32 %v13228_v55 }
 0x821   : > { %30247 = vst [vmem:[#allocation29_spill] sm:$0xff] %v27618_v59  ;;  %v13524_v0 = vsel %vm789_vm1, %v27618_v59, 0.0 }
 0x822   : > { %13450 = vadd.xlane.f32.xlu0 %v13449_v1  ;;  %v30245_v1 = vld [vmem:[#allocation145_spill] sm:$0xff] }
 0x823   : > { %v27601_v40 = vpop.xlane.xlu0 %12766  ;;  %12985 = vmax.xlane.f32.xlu1 %v12984_v22  ;;  %v13056_v58 = vsub.f32 %v30245_v1, %v27205_v30  ;;  %v12458_v22 = vadd.f32 %v27041_v18, %v30246_v19  ;;  %v27625_v30 = vadd.f32 %v27539_v39, %v12437_v50  ;;  %v12921_v18 = vsel %vm789_vm1, %v27604_v17, -inf  ;;  %v30251_v50 = vld [vmem:[#allocation14_spill] sm:$0xff] }
 0x824   : > { %v27606_v45 = vpop.xlane.xlu1 %13411  ;;  %v13035_v55 = vsub.f32 %v30251_v50, %v27412_v41  ;;  %v30255_v41 = vld [vmem:[#allocation40_spill] sm:$0xff] }
 0x825   : > { %30248 = vst [vmem:[#allocation145_spill] sm:$0xff] %v27625_v30  ;;  %v13232_v3 = vmul.f32 1.442695, %v13056_v58  ;;  %v27630_v19 = vadd.f32 %v27566_v35, %v12458_v22  ;;  %v13058_v22 = vsub.f32 %v30252_v24, %v27219_v37  ;;  %v12927_v17 = vsel %vm789_vm1, %v27625_v30, -inf  ;;  %v30256_v37 = vld [vmem:[#allocation54_spill] sm:$0xff] }
 0x826   : > { %13456 = vadd.xlane.f32.xlu0 %v13455_v8  ;;  %v30250_v8 = vld [vmem:[#allocation99_spill] sm:$0xff]  ;;  %v13190_v50 = vmul.f32 1.442695, %v13035_v55  ;;  %v13037_v24 = vsub.f32 %v30256_v37, %v27427_v56 }
 0x827   : > { %v27620_v57 = vpop.xlane.xlu0 %12772  ;;  %13519 = vadd.xlane.f32.xlu1 %v13518_v14  ;;  %30249 = vst [vmem:[#allocation91_spill] sm:$0xff] %v27630_v19  ;;  %v12460_v1 = vadd.f32 %v27063_v42, %v30250_v8  ;;  %23680 = vpow2.f32 %v13232_v3  ;;  %v27646_v42 = vpop.eup %23674  ;;  %v12990_v8 = vsel %vm789_vm1, %v27630_v19, -inf  ;;  %v12439_v3 = vadd.f32 %v27505_v2, %v30255_v41 }
 0x828   : > { %v27622_v63 = vpop.xlane.xlu1 %13417  ;;  %30253 = vst [vmem:[#allocation99_spill] sm:$0xff] %v27646_v42  ;;  %v13236_v30 = vmul.f32 1.442695, %v13058_v22  ;;  %v30261_v22 = vld [vmem:[#allocation83_spill] sm:$0xff]  ;;  %23682 = vpow2.f32 %v13190_v50  ;;  %v13194_v37 = vmul.f32 1.442695, %v13037_v24 }
 0x829   : > { %v27665_v19 = vpop.eup %23676  ;;  %v27674_v56 = vadd.f32 %v27539_v39, %v12439_v3  ;;  %v30263_v3 = vld [vmem:[#allocation92_spill] sm:$0xff] }
 0x82a   : > { %12922 = vmax.xlane.f32.xlu0 %v12921_v18  ;;  %v27649_v18 = vadd.f32 %v27566_v35, %v12460_v1  ;;  %v30257_v1 = vld [vmem:[#allocation151_spill] sm:$0xff]  ;;  %30258 = vst [vmem:[#allocation148_spill] sm:$0xff] %v27665_v19  ;;  %v27669_v41 = vpop.eup %23678  ;;  %23684 = vpow2.f32 %v13236_v30  ;;  %v13467_v39 = vsel %vm789_vm1, %v27665_v19, 0.0 }
 0x82b   : > { %v27636_v14 = vpop.xlane.xlu0 %12778  ;;  %13525 = vadd.xlane.f32.xlu1 %v13524_v0  ;;  %v13060_v51 = vsub.f32 %v30257_v1, %v27233_v20  ;;  %30259 = vst [vmem:[#allocation40_spill] sm:$0xff] %v27669_v41  ;;  %30260 = vst [vmem:[#allocation54_spill] sm:$0xff] %v27674_v56  ;;  %v12441_v20 = vadd.f32 %v27008_v25, %v30261_v22  ;;  %v12462_v25 = vadd.f32 %v27112_v11, %v30263_v3 }
 0x82c   : > { %v27640_v58 = vpop.xlane.xlu1 %12883  ;;  %30254 = vst [vmem:[#allocation14_spill] sm:$0xff] %v27649_v18  ;;  %v13530_v50 = vsel %vm789_vm1, %v27669_v41, 0.0  ;;  %23686 = vpow2.f32 %v13194_v37  ;;  %v30268_v37 = vld [vmem:[#allocation36_spill] sm:$0xff] }
 0x82d   : > { %v27707_v3 = vadd.f32 %v27566_v35, %v12462_v25 }
 0x82e   : > { %12928 = vmax.xlane.f32.xlu0 %v12927_v17  ;;  %v13461_v17 = vsel %vm789_vm1, %v27646_v42, 0.0  ;;  %v13240_v42 = vmul.f32 1.442695, %v13060_v51 }
 0x82f   : > { %v27653_v0 = vpop.xlane.xlu0 %12784  ;;  %12991 = vmax.xlane.f32.xlu1 %v12990_v8  ;;  %v12996_v8 = vsel %vm789_vm1, %v27649_v18, -inf  ;;  %v30262_v18 = vld [vmem:[#allocation154_spill] sm:$0xff] }
 0x830   : > { %v27659_v59 = vpop.xlane.xlu1 %12889  ;;  %23688 = vpow2.f32 %v13240_v42  ;;  %30267 = vst [vmem:[#allocation154_spill] sm:$0xff] %v27707_v3  ;;  %v13039_v42 = vsub.f32 %v30268_v37, %v27445_v21  ;;  %v30272_v21 = vld [vmem:[#allocation33_spill] sm:$0xff] }
 0x831   : > { %v27693_v24 = vpop.eup %23680 }
 0x832   : > { %13462 = vadd.xlane.f32.xlu0 %v13461_v17  ;;  %v27683_v17 = vld [vmem:[%s29293_s1 + $0xd8] sm:$0xff]  ;;  %30264 = vst [vmem:[#allocation151_spill] sm:$0xff] %v27693_v24  ;;  %v27721_v25 = vpop.eup %23682 }
 0x833   : > { %v27671_v55 = vpop.xlane.xlu0 %12790  ;;  %12997 = vmax.xlane.f32.xlu1 %v12996_v8  ;;  %v13062_v8 = vsub.f32 %v30262_v18, %v27252_v48  ;;  %v27698_v51 = vadd.f32 %v27683_v17, %v12441_v20  ;;  %v30266_v18 = vld [vmem:[#allocation34_spill] sm:$0xff]  ;;  %30270 = vst [vmem:[#allocation92_spill] sm:$0xff] %v27721_v25 }
 0x834   : > { %v27678_v1 = vpop.xlane.xlu1 %13423  ;;  %v13064_v11 = vsub.f32 %v30266_v18, %v27272_v16  ;;  %v30269_v18 = vld [vmem:[#allocation8_spill] sm:$0xff] }
 0x835   : > { %30265 = vst [vmem:[#allocation83_spill] sm:$0xff] %v27698_v51  ;;  %v13244_v30 = vmul.f32 1.442695, %v13062_v8  ;;  %v13066_v41 = vsub.f32 %v30269_v18, %v27288_v9  ;;  %v12939_v35 = vsel %vm789_vm1, %v27698_v51, -inf  ;;  %v13041_v9 = vsub.f32 %v26828_v49, %v27469_v54  ;;  %v30277_v54 = vld [vmem:[#allocation35_spill] sm:$0xff] }
 0x836   : > { %13468 = vadd.xlane.f32.xlu0 %v13467_v39  ;;  %v12933_v39 = vsel %vm789_vm1, %v27674_v56, -inf  ;;  %v13248_v16 = vmul.f32 1.442695, %v13064_v11  ;;  %v13198_v11 = vmul.f32 1.442695, %v13039_v42  ;;  %v13473_v56 = vsel %vm789_vm1, %v27721_v25, 0.0 }
 0x837   : > { %v27695_v22 = vpop.xlane.xlu0 %12796  ;;  %13531 = vadd.xlane.f32.xlu1 %v13530_v50  ;;  %v13536_v50 = vsel %vm789_vm1, %v27693_v24, 0.0  ;;  %23690 = vpow2.f32 %v13244_v30  ;;  %v12443_v30 = vadd.f32 %v27026_v38, %v30272_v21  ;;  %v13252_v18 = vmul.f32 1.442695, %v13066_v41  ;;  %v30278_v21 = vld [vmem:[#allocation22_spill] sm:$0xff] }
 0x838   : > { %v27700_v48 = vpop.xlane.xlu1 %13429  ;;  %23692 = vpow2.f32 %v13248_v16  ;;  %v13202_v41 = vmul.f32 1.442695, %v13041_v9  ;;  %v30281_v9 = vld [vmem:[#allocation53_spill] sm:$0xff] }
 0x839   : > { %v27748_v49 = vadd.f32 %v27683_v17, %v12443_v30  ;;  %23694 = vpow2.f32 %v13198_v11 }
 0x83a   : > { %12934 = vmax.xlane.f32.xlu0 %v12933_v39  ;;  %v13002_v39 = vsel %vm789_vm1, %v27707_v3, -inf  ;;  %23696 = vpow2.f32 %v13252_v18  ;;  %v13072_v18 = vsub.f32 %v30281_v9, %v27338_v60  ;;  %v30284_v60 = vld [vmem:[#allocation39_spill] sm:$0xff] }
 0x83b   : > { %v27711_v20 = vpop.xlane.xlu0 %12802  ;;  %13537 = vadd.xlane.f32.xlu1 %v13536_v50  ;;  %v27725_v50 = vpop.eup %23684  ;;  %30276 = vst [vmem:[#allocation33_spill] sm:$0xff] %v27748_v49  ;;  %23698 = vpow2.f32 %v13202_v41  ;;  %v13074_v9 = vsub.f32 %v30284_v60, %v27355_v34  ;;  %v30288_v34 = vld [vmem:[#allocation10_spill] sm:$0xff] }
 0x83c   : > { %v27715_v8 = vpop.xlane.xlu1 %12895  ;;  %30271 = vst [vmem:[#allocation34_spill] sm:$0xff] %v27725_v50  ;;  %v27739_v19 = vpop.eup %23686  ;;  %v13542_v38 = vsel %vm789_vm1, %v27725_v50, 0.0 }
 0x83d   : > { %30274 = vst [vmem:[#allocation36_spill] sm:$0xff] %v27739_v19  ;;  %v27743_v42 = vpop.eup %23688  ;;  %v13479_v50 = vsel %vm789_vm1, %v27739_v19, 0.0 }
 0x83e   : > { %12940 = vmax.xlane.f32.xlu0 %v12939_v35  ;;  %v30273_v35 = vld [vmem:[#allocation9_spill] sm:$0xff]  ;;  %30275 = vst [vmem:[#allocation8_spill] sm:$0xff] %v27743_v42  ;;  %v13548_v30 = vsel %vm789_vm1, %v27743_v42, 0.0 }
 0x83f   : > { %v27727_v24 = vpop.xlane.xlu0 %12808  ;;  %13003 = vmax.xlane.f32.xlu1 %v13002_v39  ;;  %v13068_v51 = vsub.f32 %v30273_v35, %v27305_v61  ;;  %v12445_v61 = vadd.f32 %v27455_v44, %v30277_v54  ;;  %v13070_v35 = vsub.f32 %v30278_v21, %v27321_v4 }
 0x840   : > { %v27733_v37 = vpop.xlane.xlu1 %12901 }
 0x841   : > { %v27765_v11 = vadd.f32 %v27683_v17, %v12445_v61  ;;  %v13260_v4 = vmul.f32 1.442695, %v13070_v35  ;;  %v30283_v61 = vld [vmem:[#allocation55_spill] sm:$0xff]  ;;  %v13264_v35 = vmul.f32 1.442695, %v13072_v18 }
 0x842   : > { %13474 = vadd.xlane.f32.xlu0 %v13473_v56  ;;  %v13256_v56 = vmul.f32 1.442695, %v13068_v51  ;;  %v13043_v41 = vsub.f32 %v30283_v61, %v27485_v5  ;;  %v30287_v5 = vld [vmem:[#allocation13_spill] sm:$0xff]  ;;  %v13045_v61 = vsub.f32 %v30288_v34, %v27500_v53 }
 0x843   : > { %v27745_v39 = vpop.xlane.xlu0 %12814  ;;  %13543 = vadd.xlane.f32.xlu1 %v13542_v38  ;;  %v27760_v38 = vpop.eup %23690  ;;  %30280 = vst [vmem:[#allocation35_spill] sm:$0xff] %v27765_v11 }
 0x844   : > { %v27752_v16 = vpop.xlane.xlu1 %13435  ;;  %30279 = vst [vmem:[#allocation9_spill] sm:$0xff] %v27760_v38  ;;  %23700 = vpow2.f32 %v13256_v56  ;;  %v13554_v54 = vsel %vm789_vm1, %v27760_v38, 0.0  ;;  %v27775_v21 = vpop.eup %23692  ;;  %v13206_v18 = vmul.f32 1.442695, %v13043_v41 }
 0x845   : > { %30282 = vst [vmem:[#allocation22_spill] sm:$0xff] %v27775_v21  ;;  %23702 = vpow2.f32 %v13260_v4  ;;  %v27787_v42 = vpop.eup %23694  ;;  %v13560_v38 = vsel %vm789_vm1, %v27775_v21, 0.0  ;;  %v12447_v4 = vadd.f32 %v27505_v2, %v30287_v5 }
 0x846   : > { %13480 = vadd.xlane.f32.xlu0 %v13479_v50  ;;  %v12945_v50 = vsel %vm789_vm1, %v27748_v49, -inf  ;;  %30285 = vst [vmem:[#allocation53_spill] sm:$0xff] %v27787_v42  ;;  %23704 = vpow2.f32 %v13264_v35  ;;  %v13485_v21 = vsel %vm789_vm1, %v27787_v42, 0.0  ;;  %v30293_v35 = vld [vmem:[#allocation52_spill] sm:$0xff] }
 0x847   : > { %v27762_v25 = vpop.xlane.xlu0 %12820  ;;  %13549 = vadd.xlane.f32.xlu1 %v13548_v30  ;;  %v27814_v53 = vadd.f32 %v27683_v17, %v12447_v4  ;;  %23706 = vpow2.f32 %v13206_v18  ;;  %v30294_v4 = vld [vmem:[#allocation27_spill] sm:$0xff] }
 0x848   : > { %v27767_v51 = vpop.xlane.xlu1 %13441 }
 0x849   : > { %30292 = vst [vmem:[#allocation10_spill] sm:$0xff] %v27814_v53 }
 0x84a   : > { %12946 = vmax.xlane.f32.xlu0 %v12945_v50  ;;  %v12951_v50 = vsel %vm789_vm1, %v27765_v11, -inf  ;;  %v13268_v11 = vmul.f32 1.442695, %v13074_v9 }
 0x84b   : > { %v27777_v30 = vpop.xlane.xlu0 %12826  ;;  %13555 = vadd.xlane.f32.xlu1 %v13554_v54  ;;  %v27791_v54 = vpop.eup %23696 }
 0x84c   : > { %v27781_v56 = vpop.xlane.xlu1 %12907  ;;  %30286 = vst [vmem:[#allocation55_spill] sm:$0xff] %v27791_v54  ;;  %v27805_v3 = vpop.eup %23698  ;;  %23708 = vpow2.f32 %v13268_v11  ;;  %v30299_v11 = vld [vmem:[#allocation18_spill] sm:$0xff] }
 0x84d   : > { %30290 = vst [vmem:[#allocation39_spill] sm:$0xff] %v27805_v3 }
 0x84e   : > { %12952 = vmax.xlane.f32.xlu0 %v12951_v50  ;;  %v30289_v50 = vld [vmem:[#allocation72_spill] sm:$0xff]  ;;  %v27809_v41 = vpop.eup %23700 }
 0x84f   : > { %v27793_v49 = vpop.xlane.xlu0 %12832  ;;  %13561 = vadd.xlane.f32.xlu1 %v13560_v38  ;;  %v13076_v19 = vsub.f32 %v30289_v50, %v27372_v43  ;;  %v13566_v38 = vsel %vm789_vm1, %v27791_v54, 0.0  ;;  %30291 = vst [vmem:[#allocation13_spill] sm:$0xff] %v27809_v41  ;;  %v27819_v43 = vld [vmem:[%s29294_s2 + $0x8] sm:$0xff]  ;;  %v13491_v54 = vsel %vm789_vm1, %v27805_v3, 0.0  ;;  %v13572_v18 = vsel %vm789_vm1, %v27809_v41, 0.0 }
 0x850   : > { %v27799_v60 = vpop.xlane.xlu1 %12913  ;;  %v12449_v9 = vadd.f32 %v27819_v43, %v30293_v35  ;;  %v27828_v50 = vld [vmem:[%s29293_s1 + $0xe8] sm:$0xff] }
 0x851   : > { %v13272_v17 = vmul.f32 1.442695, %v13076_v19 }
 0x852   : > { %13486 = vadd.xlane.f32.xlu0 %v13485_v21  ;;  %v13210_v21 = vmul.f32 1.442695, %v13045_v61  ;;  %v27836_v61 = vpop.eup %23702  ;;  %v27841_v42 = vadd.f32 %v27828_v50, %v12449_v9  ;;  %v30302_v9 = vld [vmem:[#allocation47_spill] sm:$0xff] }
 0x853   : > { %v27811_v5 = vpop.xlane.xlu0 %12838  ;;  %13567 = vadd.xlane.f32.xlu1 %v13566_v38  ;;  %v13078_v38 = vsub.f32 %v30294_v4, %v27393_v15  ;;  %30295 = vst [vmem:[#allocation72_spill] sm:$0xff] %v27836_v61  ;;  %v13080_v4 = vsub.f32 %v30299_v11, %v27416_v46  ;;  %v13578_v41 = vsel %vm789_vm1, %v27836_v61, 0.0  ;;  %v27851_v3 = vpop.eup %23704  ;;  %v30303_v46 = vld [vmem:[#allocation51_spill] sm:$0xff] }
 0x854   : > { %v27823_v34 = vpop.xlane.xlu1 %13447  ;;  %30297 = vst [vmem:[#allocation27_spill] sm:$0xff] %v27841_v42  ;;  %23710 = vpow2.f32 %v13210_v21  ;;  %30300 = vst [vmem:[#allocation18_spill] sm:$0xff] %v27851_v3  ;;  %v13047_v21 = vsub.f32 %v30302_v9, %v27523_v6  ;;  %v13082_v11 = vsub.f32 %v30303_v46, %v27433_v28  ;;  %v13584_v61 = vsel %vm789_vm1, %v27851_v3, 0.0  ;;  %v27874_v6 = vld [vmem:[%s29294_s2 + $0x18] sm:$0xff]  ;;  %v30308_v9 = vld [vmem:[#allocation63_spill] sm:$0xff] }
 0x855   : > { %23712 = vpow2.f32 %v13272_v17  ;;  %v13276_v15 = vmul.f32 1.442695, %v13078_v38  ;;  %v13280_v38 = vmul.f32 1.442695, %v13080_v4  ;;  %v30307_v28 = vld [vmem:[#allocation88_spill] sm:$0xff]  ;;  %v13049_v46 = vsub.f32 %v30308_v9, %v27547_v12 }
 0x856   : > { %13492 = vadd.xlane.f32.xlu0 %v13491_v54  ;;  %v12957_v54 = vsel %vm789_vm1, %v27814_v53, -inf  ;;  %v27863_v53 = vpop.eup %23706  ;;  %v13214_v4 = vmul.f32 1.442695, %v13047_v21  ;;  %v13284_v3 = vmul.f32 1.442695, %v13082_v11  ;;  %v30313_v11 = vld [vmem:[#allocation93_spill] sm:$0xff] }
 0x857   : > { %v27838_v35 = vpop.xlane.xlu0 %12844  ;;  %13573 = vadd.xlane.f32.xlu1 %v13572_v18  ;;  %23714 = vpow2.f32 %v13276_v15  ;;  %30304 = vst [vmem:[#allocation47_spill] sm:$0xff] %v27863_v53  ;;  %v12451_v15 = vadd.f32 %v27874_v6, %v30307_v28 }
 0x858   : > { %30296 = vst [vmem:[#allocation52_spill] sm:$0xff] %v27838_v35  ;;  %v27843_v19 = vpop.xlane.xlu1 %13453  ;;  %23716 = vpow2.f32 %v13280_v38 }
 0x859   : > { %30298 = vst [vmem:[#allocation189_spill] sm:$0xff] %v27843_v19  ;;  %23718 = vrcp.f32 %v27471_v52  ;;  %v27894_v38 = vadd.f32 %v27828_v50, %v12451_v15 }
 0x85a   : > { %12958 = vmax.xlane.f32.xlu0 %v12957_v54  ;;  %v12963_v54 = vsel %vm789_vm1, %v27841_v42, -inf  ;;  %v30309_v42 = vld [vmem:[#allocation56_spill] sm:$0xff]  ;;  %23720 = vpow2.f32 %v13214_v4 }
 0x85b   : > { %v27853_v18 = vpop.xlane.xlu0 %12850  ;;  %13579 = vadd.xlane.f32.xlu1 %v13578_v41  ;;  %v27867_v41 = vpop.eup %23708  ;;  %30312 = vst [vmem:[#allocation56_spill] sm:$0xff] %v27894_v38  ;;  %23722 = vpow2.f32 %v13284_v3 }
 0x85c   : > { %30301 = vst [vmem:[#allocation190_spill] sm:$0xff] %v27853_v18  ;;  %v27857_v17 = vpop.xlane.xlu1 %12919  ;;  %30305 = vst [vmem:[#allocation51_spill] sm:$0xff] %v27867_v41  ;;  %v13590_v28 = vsel %vm789_vm1, %v27867_v41, 0.0  ;;  %v30315_v41 = vld [vmem:[#allocation57_spill] sm:$0xff] }
 0x85e   : > { %12964 = vmax.xlane.f32.xlu0 %v12963_v54  ;;  %v27886_v35 = vpop.eup %23710 }
 0x85f   : > { %v27869_v18 = vpop.xlane.xlu0 %12856  ;;  %13585 = vadd.xlane.f32.xlu1 %v13584_v61  ;;  %v13497_v61 = vsel %vm789_vm1, %v27863_v53, 0.0  ;;  %30310 = vst [vmem:[#allocation88_spill] sm:$0xff] %v27886_v35  ;;  %v27890_v21 = vpop.eup %23712  ;;  %v13086_v53 = vsub.f32 %v30315_v41, %v27489_v47  ;;  %v13503_v52 = vsel %vm789_vm1, %v27886_v35, 0.0 }
 0x860   : > { %30306 = vst [vmem:[#allocation191_spill] sm:$0xff] %v27869_v18  ;;  %v27880_v54 = vpop.xlane.xlu1 %12925  ;;  %v13084_v18 = vsub.f32 %v30309_v42, %v27450_v33  ;;  %30311 = vst [vmem:[#allocation63_spill] sm:$0xff] %v27890_v21  ;;  %v12453_v33 = vadd.f32 %v27455_v44, %v30313_v11  ;;  %v13218_v42 = vmul.f32 1.442695, %v13049_v46  ;;  %v13596_v15 = vsel %vm789_vm1, %v27890_v21, 0.0  ;;  %v30328_v21 = vld [vmem:[#allocation100_spill] sm:$0xff] }
 0x861   : > { %v27908_v4 = vpop.eup %23714 }
 0x862   : > { %13498 = vadd.xlane.f32.xlu0 %v13497_v61  ;;  %v13288_v61 = vmul.f32 1.442695, %v13084_v18  ;;  %30317 = vst [vmem:[#allocation57_spill] sm:$0xff] %v27908_v4  ;;  %v27915_v47 = vadd.f32 %v27828_v50, %v12453_v33  ;;  %v13292_v18 = vmul.f32 1.442695, %v13086_v53  ;;  %v27921_v11 = vpop.eup %23716  ;;  %v30324_v53 = vld [vmem:[#allocation61_spill] sm:$0xff] }
 0x863   : > { %v13397_v12 = vpop.xlane.xlu0 %13396  ;;  %13591 = vadd.xlane.f32.xlu1 %v13590_v28  ;;  %v30316_v28 = vld [vmem:[#allocation60_spill] sm:$0xff]  ;;  %30321 = vst [vmem:[#allocation194_spill] sm:$0xff] %v27921_v11 }
 0x864   : > { %v27898_v9 = vpop.xlane.xlu1 %13459  ;;  %v13088_v19 = vsub.f32 %v30316_v28, %v27511_v26  ;;  %23724 = vrcp.f32 %v13397_v12  ;;  %30320 = vst [vmem:[#allocation193_spill] sm:$0xff] %v27915_v47  ;;  %v12969_v26 = vsel %vm789_vm1, %v27894_v38, -inf  ;;  %v13602_v12 = vsel %vm789_vm1, %v27908_v4, 0.0  ;;  %v30329_v38 = vld [vmem:[#allocation97_spill] sm:$0xff] }
 0x865   : > { %30314 = vst [vmem:[#allocation93_spill] sm:$0xff] %v27898_v9  ;;  %23726 = vpow2.f32 %v13218_v42  ;;  %v22825_v35 = vunpack.i.l.bf16 %v30329_v38 }
 0x866   : > { %13504 = vadd.xlane.f32.xlu0 %v13503_v52  ;;  %23728 = vpow2.f32 %v13288_v61  ;;  %v13296_v41 = vmul.f32 1.442695, %v13088_v19  ;;  %v30322_v52 = vld [vmem:[#allocation31_spill] sm:$0xff]  ;;  %v23719_v61 = vpop.eup %23718  ;;  %v12975_v19 = vsel %vm789_vm1, %v27915_v47, -inf }
 0x867   : > { %v27910_v46 = vpop.xlane.xlu0 %12862  ;;  %13597 = vadd.xlane.f32.xlu1 %v13596_v15  ;;  %v13051_v42 = vsub.f32 %v30322_v52, %v27568_v10  ;;  %23730 = vpow2.f32 %v13292_v18  ;;  %v13090_v15 = vsub.f32 %v30324_v53, %v27572_v36  ;;  %v13608_v10 = vsel %vm789_vm1, %v27921_v11, 0.0  ;;  %v30331_v11 = vld [vmem:[#allocation157_spill] sm:$0xff] }
 0x868   : > { %30318 = vst [vmem:[#allocation60_spill] sm:$0xff] %v27910_v46  ;;  %v27912_v3 = vpop.xlane.xlu1 %13465  ;;  %23732 = vpow2.f32 %v13296_v41  ;;  %v22820_v18 = vunpack.i.l.bf16 %v30328_v21  ;;  %v30330_v41 = vld [vmem:[#allocation71_spill] sm:$0xff] }
 0x869   : > { %30319 = vst [vmem:[#allocation192_spill] sm:$0xff] %v27912_v3  ;;  %23734 = vrcp.f32 %v27528_v29  ;;  %v13222_v36 = vmul.f32 1.442695, %v13051_v42  ;;  %v30332_v46 = vld [vmem:[#allocation59_spill] sm:$0xff] }
 0x86a   : > { %12970 = vmax.xlane.f32.xlu0 %v12969_v26  ;;  %v27933_v26 = vpop.eup %23720  ;;  %23736 = vrcp.f32 %v27549_v13  ;;  %v13092_v9 = vsub.f32 %v30332_v46, %v27589_v31 }
 0x86b   : > { %v27925_v28 = vpop.xlane.xlu0 %12868  ;;  %13603 = vadd.xlane.f32.xlu1 %v13602_v12  ;;  %30325 = vst [vmem:[#allocation61_spill] sm:$0xff] %v27933_v26  ;;  %v27937_v52 = vpop.eup %23722  ;;  %v30327_v12 = vld [vmem:[#allocation84_spill] sm:$0xff]  ;;  %v13509_v42 = vsel %vm789_vm1, %v27933_v26, 0.0  ;;  %v30350_v26 = vld [vmem:[#allocation94_spill] sm:$0xff] }
 0x86c   : > { %30323 = vst [vmem:[#allocation31_spill] sm:$0xff] %v27925_v28  ;;  %v27927_v33 = vpop.xlane.xlu1 %12931  ;;  %30326 = vst [vmem:[#allocation195_spill] sm:$0xff] %v27937_v52  ;;  %v12455_v4 = vadd.f32 %v27505_v2, %v30327_v12  ;;  %v13053_v28 = vsub.f32 %v30331_v11, %v27583_v62  ;;  %v13300_v12 = vmul.f32 1.442695, %v13090_v15  ;;  %v13614_v13 = vsel %vm789_vm1, %v27937_v52, 0.0 }
 0x86d   : > { %v9257_v15 = vpack.c.bf16 %v22825_v35, %v22820_v18 }
 0x86e   : > { %12976 = vmax.xlane.f32.xlu0 %v12975_v19  ;;  %v23725_v47 = vpop.eup %23724  ;;  %v13904_v19 = vmul.f32 %v23719_v61, %v30330_v41  ;;  %v27962_v62 = vadd.f32 %v27828_v50, %v12455_v4  ;;  %v27971_v41 = vld [vmem:[%s29293_s1 + $0xf8] sm:$0xff]  ;;  %v13304_v50 = vmul.f32 1.442695, %v13092_v9 }
 0x86f   : > { %v13403_v53 = vpop.xlane.xlu0 %13402  ;;  %13609 = vadd.xlane.f32.xlu1 %v13608_v10  ;;  %v13905_v29 = vmul.f32 %v23725_v47, %v27225_v27  ;;  %v27955_v10 = vpop.eup %23726  ;;  %v30336_v27 = vld [vmem:[#allocation89_spill] sm:$0xff]  ;;  %v13226_v47 = vmul.f32 1.442695, %v13053_v28  ;;  %v30338_v4 = vld [vmem:[#allocation16_spill] sm:$0xff] }
 0x870   : > { %v27948_v3 = vpop.xlane.xlu1 %12937  ;;  %30333 = vst [vmem:[#allocation84_spill] sm:$0xff] %v27955_v10  ;;  %23738 = vrcp.f32 %v13403_v53  ;;  %v27959_v61 = vpop.eup %23728  ;;  %30335 = vst [vmem:[#allocation97_spill] sm:$0xff] %v27962_v62  ;;  %v12457_v46 = vadd.f32 %v27819_v43, %v30336_v27  ;;  %v13515_v43 = vsel %vm789_vm1, %v27955_v10, 0.0 }
 0x871   : > { %30334 = vst [vmem:[#allocation100_spill] sm:$0xff] %v27959_v61  ;;  %23740 = vpow2.f32 %v13222_v36  ;;  %v14032_v31 = vpack.c.bf16 %v13905_v29, %v13904_v19  ;;  %v13094_v36 = vsub.f32 %v30338_v4, %v27640_v58  ;;  %v13620_v35 = vsel %vm789_vm1, %v27959_v61, 0.0  ;;  %v27980_v28 = vpop.eup %23730  ;;  %v30346_v4 = vld [vmem:[#allocation158_spill] sm:$0xff] }
 0x872   : > { %13510 = vadd.xlane.f32.xlu0 %v13509_v42  ;;  %30339 = vst [vmem:[#allocation157_spill] sm:$0xff] %v27980_v28  ;;  %v30340_v19 = vmov 0.0   ;;  %v27986_v9 = vpop.eup %23732  ;;  %v27989_v58 = vadd.f32 %v27971_v41, %v12457_v46  ;;  %v13626_v46 = vsel %vm789_vm1, %v27980_v28, 0.0 }
 0x873   : > { %v13409_v11 = vpop.xlane.xlu0 %13408  ;;  %13615 = vadd.xlane.f32.xlu1 %v13614_v13  ;;  %20810 = vmatmul.mubr.msk.bf16.vlgmr.msra.gmra.mrb[144].mxu1 %vm789_vm1, %v14032_v31  ;;  %30341 = vst [vmem:[#allocation59_spill] sm:$0xff] %v27986_v9  ;;  %v23735_v29 = vpop.eup %23734  ;;  %v13308_v42 = vmul.f32 1.442695, %v13094_v36  ;;  %v30344_v13 = vld [vmem:[#allocation17_spill] sm:$0xff]  ;;  %v12981_v31 = vsel %vm789_vm1, %v27962_v62, -inf  ;;  %v22823_v36 = vunpack.i.h.bf16 %v30328_v21  ;;  %v30349_v21 = vld [vmem:[#allocation96_spill] sm:$0xff] }
 0x874   : > { %23742 = vrcp.f32 %v13409_v11  ;;  %v27966_v53 = vpop.xlane.xlu1 %13471  ;;  %20820 = vmatpush3.bf16.msra.mxu1 %v9257_v15  ;;  %20821 = vmatprep.mubr.msk.bf16.mxu1 %vm24211_vm3, %v30340_v19  ;;  %30342 = vst [vmem:[#allocation89_spill] sm:$0xff] %v27989_v58  ;;  %v13096_v11 = vsub.f32 %v30344_v13, %v27659_v59  ;;  %v23737_v27 = vpop.eup %23736  ;;  %v30345_v15 = vld [vmem:[#allocation82_spill] sm:$0xff]  ;;  %v22828_v59 = vunpack.i.h.bf16 %v30329_v38  ;;  %v12459_v38 = vadd.f32 %v27874_v6, %v30349_v21  ;;  %v30353_v6 = vld [vmem:[#allocation160_spill] sm:$0xff] }
 0x875   : > { %30337 = vst [vmem:[#allocation71_spill] sm:$0xff] %v27966_v53  ;;  %23744 = vpow2.f32 %v13300_v12  ;;  %20831 = vmatprep.subr.bf16.mxu1 %v30340_v19  ;;  %v30347_v13 = vld [vmem:[#allocation58_spill] sm:$0xff] }
 0x876   : > { %13516 = vadd.xlane.f32.xlu0 %v13515_v43  ;;  %23746 = vpow2.f32 %v13226_v47  ;;  %v22772_v47 = vunpack.i.l.bf16 %v30345_v15  ;;  %v13055_v43 = vsub.f32 %v30346_v4, %v27601_v40  ;;  %v13906_v61 = vmul.f32 %v23735_v29, %v30347_v13  ;;  %v30348_v40 = vld [vmem:[#allocation23_spill] sm:$0xff]  ;;  %v30351_v13 = vld [vmem:[#allocation62_spill] sm:$0xff] }
 0x877   : > { %v27982_v18 = vpop.xlane.xlu0 %12874  ;;  %13621 = vadd.xlane.f32.xlu1 %v13620_v35  ;;  %23748 = vpow2.f32 %v13304_v50  ;;  %v13312_v62 = vmul.f32 1.442695, %v13096_v11  ;;  %v13098_v4 = vsub.f32 %v30348_v40, %v27715_v8  ;;  %v22777_v29 = vunpack.i.l.bf16 %v30350_v26 }
 0x878   : > { %v27991_v12 = vpop.xlane.xlu1 %13477  ;;  %23750 = vpow2.f32 %v13308_v42  ;;  %v13230_v42 = vmul.f32 1.442695, %v13055_v43 }
 0x879   : > { %30343 = vst [vmem:[#allocation16_spill] sm:$0xff] %v27991_v12  ;;  %v13908_v12 = vmul.f32 %v23737_v27, %v30351_v13  ;;  %23752 = vrcp.f32 %v27606_v45  ;;  %v9258_v27 = vpack.c.bf16 %v22828_v59, %v22823_v36  ;;  %v13316_v43 = vmul.f32 1.442695, %v13098_v4  ;;  %v30354_v45 = vld [vmem:[#allocation38_spill] sm:$0xff] }
 0x87a   : > { %12982 = vmax.xlane.f32.xlu0 %v12981_v31  ;;  %v23739_v50 = vpop.eup %23738  ;;  %v12987_v31 = vsel %vm789_vm1, %v27989_v58, -inf  ;;  %v13632_v58 = vsel %vm789_vm1, %v27986_v9, 0.0  ;;  %23754 = vrcp.f32 %v27622_v63  ;;  %v13100_v21 = vsub.f32 %v30354_v45, %v27733_v37  ;;  %v30360_v45 = vld [vmem:[#allocation87_spill] sm:$0xff]  ;;  %v30431_v9 = vld [vmem:[#allocation93_spill] sm:$0xff] }
 0x87b   : > { %v28003_v35 = vpop.xlane.xlu0 %12880  ;;  %13627 = vadd.xlane.f32.xlu1 %v13626_v46  ;;  %v28012_v28 = vpop.eup %23740  ;;  %v13907_v46 = vmul.f32 %v23739_v50, %v27276_v32  ;;  %v13057_v50 = vsub.f32 %v30353_v6, %v27620_v57  ;;  %23756 = vpow2.f32 %v13312_v62  ;;  %v9259_v57 = vpack.c.bf16 %v22777_v29, %v22772_v47  ;;  %v30359_v6 = vld [vmem:[#allocation76_spill] sm:$0xff] }
 0x87c   : > { %v28008_v52 = vpop.xlane.xlu1 %12943  ;;  %v13521_v40 = vsel %vm789_vm1, %v28012_v28, 0.0  ;;  %v28045_v37 = vadd.f32 %v27971_v41, %v12459_v38  ;;  %v13320_v59 = vmul.f32 1.442695, %v13100_v21  ;;  %v13102_v4 = vsub.f32 %v27129_v23, %v27781_v56 }
 0x87d   : > { %v14033_v11 = vpack.c.bf16 %v13907_v46, %v13906_v61  ;;  %v13234_v36 = vmul.f32 1.442695, %v13057_v50  ;;  %v13104_v50 = vsub.f32 %v30359_v6, %v27799_v60  ;;  %v13061_v21 = vsub.f32 %v30360_v45, %v27653_v0 }
 0x87e   : > { %v23743_v10 = vpop.eup %23742  ;;  %12988 = vmax.xlane.f32.xlu0 %v12987_v31 }
 0x87f   : > { %v28023_v53 = vpop.eup %23744  ;;  %v13909_v8 = vmul.f32 %v23743_v10, %v27294_v7  ;;  %v13415_v32 = vpop.xlane.xlu0 %13414  ;;  %13633 = vadd.xlane.f32.xlu1 %v13632_v58  ;;  %20816 = vmatmul.mubr.msk.bf16.vlgmr.msra.gmra.mrb[176].mxu0 %vm789_vm1, %v14033_v11  ;;  %v30356_v58 = vld [vmem:[#allocation90_spill] sm:$0xff]  ;;  %v13324_v11 = vmul.f32 1.442695, %v13102_v4  ;;  %v13328_v4 = vmul.f32 1.442695, %v13104_v50 }
 0x880   : > { %30352 = vst [vmem:[#allocation17_spill] sm:$0xff] %v28023_v53  ;;  %v28030_v31 = vpop.xlane.xlu1 %12949  ;;  %v28037_v10 = vpop.eup %23746  ;;  %23758 = vrcp.f32 %v13415_v32  ;;  %20826 = vmatpush3.bf16.msra.mxu0 %v9258_v27  ;;  %v13638_v63 = vsel %vm789_vm1, %v28023_v53, 0.0  ;;  %20827 = vmatprep.mubr.msk.bf16.mxu0 %vm24211_vm3, %v30340_v19  ;;  %v12993_v27 = vsel %vm789_vm1, %v28045_v37, -inf }
 0x881   : > { %v14034_v7 = vpack.c.bf16 %v13909_v8, %v13908_v12  ;;  %v28041_v61 = vpop.eup %23748  ;;  %23760 = vpow2.f32 %v13230_v42  ;;  %v12461_v12 = vadd.f32 %v27455_v44, %v30356_v58  ;;  %v13527_v46 = vsel %vm789_vm1, %v28037_v10, 0.0  ;;  %20837 = vmatprep.subr.bf16.mxu0 %v30340_v19  ;;  %v30357_v44 = vld [vmem:[#allocation161_spill] sm:$0xff] }
 0x882   : > { %13522 = vadd.xlane.f32.xlu0 %v13521_v40  ;;  %30355 = vst [vmem:[#allocation82_spill] sm:$0xff] %v28041_v61  ;;  %v13059_v38 = vsub.f32 %v30357_v44, %v27636_v14  ;;  %v13644_v29 = vsel %vm789_vm1, %v28041_v61, 0.0  ;;  %v28065_v13 = vpop.eup %23750  ;;  %v22775_v42 = vunpack.i.h.bf16 %v30345_v15  ;;  %v22780_v8 = vunpack.i.h.bf16 %v30350_v26 }
 0x883   : > { %v13421_v62 = vpop.xlane.xlu0 %13420  ;;  %20822 = vmatmul.mubr.msk.bf16.vlgmr.msra.gmra.mrb[148].mxu1 %vm789_vm1, %v14034_v7  ;;  %13639 = vadd.xlane.f32.xlu1 %v13638_v63  ;;  %30358 = vst [vmem:[#allocation158_spill] sm:$0xff] %v28065_v13  ;;  %v28070_v56 = vadd.f32 %v27971_v41, %v12461_v12  ;;  %v23753_v32 = vpop.eup %23752  ;;  %v13650_v26 = vsel %vm789_vm1, %v28065_v13, 0.0  ;;  %v30362_v63 = vld [vmem:[#allocation103_spill] sm:$0xff] }
 0x884   : > { %23762 = vrcp.f32 %v13421_v62  ;;  %20832 = vmatpush3.bf16.msra.mxu1 %v9259_v57  ;;  %v28049_v47 = vpop.xlane.xlu1 %13483  ;;  %20833 = vmatprep.mubr.msk.bf16.mxu1 %vm24211_vm3, %v30340_v19  ;;  %v23755_v40 = vpop.eup %23754  ;;  %v22796_v60 = vunpack.i.l.bf16 %v30362_v63  ;;  %v30363_v62 = vld [vmem:[#allocation159_spill] sm:$0xff]  ;;  %v9260_v0 = vpack.c.bf16 %v22780_v8, %v22775_v42  ;;  %v30368_v42 = vld [vmem:[#allocation30_spill] sm:$0xff] }
 0x885   : > { %23764 = vpow2.f32 %v13316_v43  ;;  %20843 = vmatprep.subr.bf16.mxu1 %v30340_v19  ;;  %v13238_v43 = vmul.f32 1.442695, %v13059_v38  ;;  %v28084_v15 = vpop.eup %23756  ;;  %v13910_v58 = vmul.f32 %v23753_v32, %v30363_v62  ;;  %v30365_v38 = vld [vmem:[#allocation50_spill] sm:$0xff]  ;;  %v13242_v32 = vmul.f32 1.442695, %v13061_v21 }
 0x886   : > { %13528 = vadd.xlane.f32.xlu0 %v13527_v46  ;;  %23766 = vpow2.f32 %v13234_v36  ;;  %30361 = vst [vmem:[#allocation58_spill] sm:$0xff] %v28084_v15  ;;  %v12999_v36 = vsel %vm789_vm1, %v28070_v56, -inf  ;;  %v30364_v46 = vld [vmem:[#allocation12_spill] sm:$0xff]  ;;  %v13912_v8 = vmul.f32 %v23755_v40, %v30368_v42 }
 0x887   : > { %v28067_v23 = vpop.xlane.xlu0 %12886  ;;  %13645 = vadd.xlane.f32.xlu1 %v13644_v29  ;;  %23768 = vpow2.f32 %v13320_v59  ;;  %v13106_v44 = vsub.f32 %v30364_v46, %v27857_v17 }
 0x888   : > { %v28074_v14 = vpop.xlane.xlu1 %13489  ;;  %23770 = vpow2.f32 %v13324_v11  ;;  %v30369_v11 = vld [vmem:[#allocation78_spill] sm:$0xff] }
 0x889   : > { %23772 = vpow2.f32 %v13238_v43  ;;  %v30371_v43 = vld [vmem:[#allocation163_spill] sm:$0xff] }
 0x88a   : > { %12994 = vmax.xlane.f32.xlu0 %v12993_v27  ;;  %v23759_v57 = vpop.eup %23758  ;;  %v30366_v27 = vld [vmem:[#allocation105_spill] sm:$0xff]  ;;  %23774 = vrcp.f32 %v27678_v1  ;;  %v13063_v21 = vsub.f32 %v30371_v43, %v27671_v55  ;;  %v13332_v1 = vmul.f32 1.442695, %v13106_v44 }
 0x88b   : > { %v28086_v7 = vpop.xlane.xlu0 %12892  ;;  %13651 = vadd.xlane.f32.xlu1 %v13650_v26  ;;  %v28094_v59 = vpop.eup %23760  ;;  %v13911_v29 = vmul.f32 %v23759_v57, %v30365_v38  ;;  %v22801_v45 = vunpack.i.l.bf16 %v30366_v27  ;;  %v13656_v26 = vsel %vm789_vm1, %v28084_v15, 0.0  ;;  %v30370_v57 = vld [vmem:[#allocation98_spill] sm:$0xff]  ;;  %23776 = vrcp.f32 %v27700_v48 }
 0x88c   : > { %v28090_v12 = vpop.xlane.xlu1 %12955  ;;  %v12463_v38 = vadd.f32 %v27505_v2, %v30370_v57  ;;  %v13533_v40 = vsel %vm789_vm1, %v28094_v59, 0.0  ;;  %23778 = vpow2.f32 %v13328_v4  ;;  %v13246_v44 = vmul.f32 1.442695, %v13063_v21  ;;  %v30378_v21 = vld [vmem:[#allocation32_spill] sm:$0xff] }
 0x88d   : > { %v14035_v46 = vpack.c.bf16 %v13911_v29, %v13910_v58  ;;  %v9261_v2 = vpack.c.bf16 %v22801_v45, %v22796_v60  ;;  %v30375_v45 = vld [vmem:[#allocation170_spill] sm:$0xff] }
 0x88e   : > { %v23763_v6 = vpop.eup %23762  ;;  %13000 = vmax.xlane.f32.xlu0 %v12999_v36 }
 0x88f   : > { %v28102_v62 = vpop.eup %23764  ;;  %v13913_v50 = vmul.f32 %v23763_v6, %v30369_v11  ;;  %v13427_v17 = vpop.xlane.xlu0 %13426  ;;  %13657 = vadd.xlane.f32.xlu1 %v13656_v26  ;;  %v30372_v6 = vld [vmem:[#allocation168_spill] sm:$0xff]  ;;  %20828 = vmatmul.mubr.msk.bf16.vlgmr.msra.gmra.mrb[180].mxu0 %vm789_vm1, %v14035_v46  ;;  %v30374_v26 = vld [vmem:[#allocation70_spill] sm:$0xff] }
 0x890   : > { %30367 = vst [vmem:[#allocation23_spill] sm:$0xff] %v28102_v62  ;;  %v28112_v36 = vpop.xlane.xlu1 %12961  ;;  %v13108_v42 = vsub.f32 %v30372_v6, %v27880_v54  ;;  %v28119_v29 = vpop.eup %23766  ;;  %23780 = vrcp.f32 %v13427_v17  ;;  %20838 = vmatpush3.bf16.msra.mxu0 %v9260_v0  ;;  %v13662_v55 = vsel %vm789_vm1, %v28102_v62, 0.0  ;;  %v28127_v54 = vadd.f32 %v27971_v41, %v12463_v38  ;;  %20839 = vmatprep.mubr.msk.bf16.mxu0 %vm24211_vm3, %v30340_v19 }
 0x891   : > { %v14036_v58 = vpack.c.bf16 %v13913_v50, %v13912_v8  ;;  %v28123_v48 = vpop.eup %23768  ;;  %23782 = vpow2.f32 %v13242_v32  ;;  %v13065_v8 = vsub.f32 %v30374_v26, %v27695_v22  ;;  %v13110_v32 = vsub.f32 %v30375_v45, %v27927_v33  ;;  %20849 = vmatprep.subr.bf16.mxu0 %v30340_v19  ;;  %v30376_v22 = vld [vmem:[#allocation164_spill] sm:$0xff] }
 0x892   : > { %13534 = vadd.xlane.f32.xlu0 %v13533_v40  ;;  %30373 = vst [vmem:[#allocation96_spill] sm:$0xff] %v28123_v48  ;;  %v13336_v0 = vmul.f32 1.442695, %v13108_v42  ;;  %v13539_v41 = vsel %vm789_vm1, %v28119_v29, 0.0  ;;  %v13067_v11 = vsub.f32 %v30376_v22, %v27711_v20  ;;  %v13668_v50 = vsel %vm789_vm1, %v28123_v48, 0.0  ;;  %v28147_v17 = vpop.eup %23770  ;;  %v30387_v48 = vld [vmem:[#allocation85_spill] sm:$0xff] }
 0x893   : > { %v13433_v4 = vpop.xlane.xlu0 %13432  ;;  %20834 = vmatmul.mubr.msk.bf16.vlgmr.msra.gmra.mrb[152].mxu1 %vm789_vm1, %v14036_v58  ;;  %13663 = vadd.xlane.f32.xlu1 %v13662_v55  ;;  %30377 = vst [vmem:[#allocation94_spill] sm:$0xff] %v28147_v17  ;;  %v28151_v46 = vpop.eup %23772  ;;  %v13250_v57 = vmul.f32 1.442695, %v13065_v8  ;;  %v13340_v20 = vmul.f32 1.442695, %v13110_v32  ;;  %v13112_v40 = vsub.f32 %v30378_v21, %v27948_v3  ;;  %v30379_v58 = vld [vmem:[#allocation21_spill] sm:$0xff]  ;;  %v22799_v8 = vunpack.i.h.bf16 %v30362_v63 }
 0x894   : > { %23784 = vrcp.f32 %v13433_v4  ;;  %20844 = vmatpush3.bf16.msra.mxu1 %v9261_v2  ;;  %v28131_v60 = vpop.xlane.xlu1 %13495  ;;  %20845 = vmatprep.mubr.msk.bf16.mxu1 %vm24211_vm3, %v30340_v19  ;;  %v23775_v43 = vpop.eup %23774  ;;  %v13254_v42 = vmul.f32 1.442695, %v13067_v11  ;;  %v13069_v2 = vsub.f32 %v30379_v58, %v27727_v24  ;;  %v13674_v55 = vsel %vm789_vm1, %v28147_v17, 0.0  ;;  %v30382_v32 = vld [vmem:[#allocation66_spill] sm:$0xff]  ;;  %v30383_v63 = vld [vmem:[#allocation172_spill] sm:$0xff] }
 0x895   : > { %23786 = vpow2.f32 %v13332_v1  ;;  %20855 = vmatprep.subr.bf16.mxu1 %v30340_v19  ;;  %v13005_v1 = vsel %vm789_vm1, %v28127_v54, -inf  ;;  %v23777_v6 = vpop.eup %23776  ;;  %v22804_v45 = vunpack.i.h.bf16 %v30366_v27  ;;  %v13545_v22 = vsel %vm789_vm1, %v28151_v46, 0.0  ;;  %v30385_v17 = vld [vmem:[#allocation104_spill] sm:$0xff] }
 0x896   : > { %13540 = vadd.xlane.f32.xlu0 %v13539_v41  ;;  %23788 = vpow2.f32 %v13246_v44  ;;  %v28163_v4 = vpop.eup %23778  ;;  %v30381_v44 = vld [vmem:[#allocation102_spill] sm:$0xff]  ;;  %v13914_v41 = vmul.f32 %v23775_v43, %v30382_v32  ;;  %v13114_v21 = vsub.f32 %v30383_v63, %v28008_v52  ;;  %v22837_v27 = vunpack.i.l.bf16 %v30385_v17 }
 0x897   : > { %v28149_v33 = vpop.xlane.xlu0 %12898  ;;  %13669 = vadd.xlane.f32.xlu1 %v13668_v50  ;;  %23790 = vpow2.f32 %v13336_v0  ;;  %30380 = vst [vmem:[#allocation62_spill] sm:$0xff] %v28163_v4  ;;  %v22832_v26 = vunpack.i.l.bf16 %v30381_v44  ;;  %v13344_v50 = vmul.f32 1.442695, %v13112_v40  ;;  %v13258_v43 = vmul.f32 1.442695, %v13069_v2 }
 0x898   : > { %v28153_v38 = vpop.xlane.xlu1 %13501  ;;  %23792 = vpow2.f32 %v13250_v57  ;;  %v13680_v57 = vsel %vm789_vm1, %v28163_v4, 0.0  ;;  %v13916_v62 = vmul.f32 %v23777_v6, %v30387_v48  ;;  %v13348_v48 = vmul.f32 1.442695, %v13114_v21 }
 0x899   : > { %23794 = vpow2.f32 %v13340_v20  ;;  %v30388_v20 = vld [vmem:[#allocation19_spill] sm:$0xff] }
 0x89a   : > { %13006 = vmax.xlane.f32.xlu0 %v13005_v1  ;;  %v23781_v3 = vpop.eup %23780  ;;  %v30384_v1 = vld [vmem:[#allocation177_spill] sm:$0xff]  ;;  %23796 = vpow2.f32 %v13254_v42  ;;  %v9262_v42 = vpack.c.bf16 %v22804_v45, %v22799_v8 }
 0x89b   : > { %v28167_v0 = vpop.xlane.xlu0 %12904  ;;  %13675 = vadd.xlane.f32.xlu1 %v13674_v55  ;;  %v28175_v11 = vpop.eup %23782  ;;  %v13915_v58 = vmul.f32 %v23781_v3, %v30384_v1  ;;  %23798 = vrcp.f32 %v27752_v16  ;;  %v30389_v3 = vld [vmem:[#allocation165_spill] sm:$0xff] }
 0x89c   : > { %v28171_v24 = vpop.xlane.xlu1 %12967  ;;  %v13071_v1 = vsub.f32 %v30389_v3, %v27745_v39  ;;  %23800 = vrcp.f32 %v27767_v51  ;;  %v30390_v16 = vld [vmem:[#allocation173_spill] sm:$0xff]  ;;  %v9263_v39 = vpack.c.bf16 %v22837_v27, %v22832_v26 }
 0x89d   : > { %v14037_v63 = vpack.c.bf16 %v13915_v58, %v13914_v41  ;;  %23802 = vpow2.f32 %v13344_v50  ;;  %v13116_v6 = vsub.f32 %v30390_v16, %v28030_v31  ;;  %v30392_v50 = vld [vmem:[#allocation46_spill] sm:$0xff] }
 0x89e   : > { %v23785_v55 = vpop.eup %23784  ;;  %13546 = vadd.xlane.f32.xlu0 %v13545_v22  ;;  %v13551_v22 = vsel %vm789_vm1, %v28175_v11, 0.0  ;;  %v13262_v31 = vmul.f32 1.442695, %v13071_v1 }
 0x89f   : > { %v28183_v32 = vpop.eup %23786  ;;  %v13917_v40 = vmul.f32 %v23785_v55, %v30388_v20  ;;  %v13439_v52 = vpop.xlane.xlu0 %13438  ;;  %13681 = vadd.xlane.f32.xlu1 %v13680_v57  ;;  %20840 = vmatmul.mubr.msk.bf16.vlgmr.msra.gmra.mrb[184].mxu0 %vm789_vm1, %v14037_v63  ;;  %v13352_v26 = vmul.f32 1.442695, %v13116_v6  ;;  %v30393_v55 = vld [vmem:[#allocation176_spill] sm:$0xff]  ;;  %v30394_v57 = vld [vmem:[#allocation166_spill] sm:$0xff] }
 0x8a0   : > { %30386 = vst [vmem:[#allocation160_spill] sm:$0xff] %v28183_v32  ;;  %v28191_v2 = vpop.xlane.xlu1 %12973  ;;  %v28198_v58 = vpop.eup %23788  ;;  %23804 = vrcp.f32 %v13439_v52  ;;  %20850 = vmatpush3.bf16.msra.mxu0 %v9262_v42  ;;  %v13686_v51 = vsel %vm789_vm1, %v28183_v32, 0.0  ;;  %20851 = vmatprep.mubr.msk.bf16.mxu0 %vm24211_vm3, %v30340_v19  ;;  %v13118_v27 = vsub.f32 %v30393_v55, %v28090_v12  ;;  %v13075_v20 = vsub.f32 %v30394_v57, %v27777_v30  ;;  %v30399_v55 = vld [vmem:[#allocation111_spill] sm:$0xff]  ;;  %v30405_v32 = vld [vmem:[#allocation101_spill] sm:$0xff] }
 0x8a1   : > { %v14038_v41 = vpack.c.bf16 %v13917_v40, %v13916_v62  ;;  %v28202_v8 = vpop.eup %23790  ;;  %23806 = vpow2.f32 %v13258_v43  ;;  %v13073_v62 = vsub.f32 %v30392_v50, %v27762_v25  ;;  %v13557_v43 = vsel %vm789_vm1, %v28198_v58, 0.0  ;;  %20861 = vmatprep.subr.bf16.mxu0 %v30340_v19 }
 0x8a2   : > { %13552 = vadd.xlane.f32.xlu0 %v13551_v22  ;;  %30391 = vst [vmem:[#allocation38_spill] sm:$0xff] %v28202_v8  ;;  %v28218_v25 = vpop.eup %23792  ;;  %v13692_v40 = vsel %vm789_vm1, %v28202_v8, 0.0  ;;  %v13356_v30 = vmul.f32 1.442695, %v13118_v27  ;;  %v30396_v22 = vld [vmem:[#allocation178_spill] sm:$0xff]  ;;  %v22835_v50 = vunpack.i.h.bf16 %v30381_v44  ;;  %v22868_v27 = vunpack.i.l.bf16 %v30399_v55 }
 0x8a3   : > { %v13445_v45 = vpop.xlane.xlu0 %13444  ;;  %20846 = vmatmul.mubr.msk.bf16.vlgmr.msra.gmra.mrb[156].mxu1 %vm789_vm1, %v14038_v41  ;;  %13687 = vadd.xlane.f32.xlu1 %v13686_v51  ;;  %v28225_v12 = vpop.eup %23794  ;;  %v13266_v3 = vmul.f32 1.442695, %v13073_v62  ;;  %v13563_v16 = vsel %vm789_vm1, %v28218_v25, 0.0  ;;  %v13270_v41 = vmul.f32 1.442695, %v13075_v20  ;;  %v22840_v62 = vunpack.i.h.bf16 %v30385_v17  ;;  %v30401_v17 = vld [vmem:[#allocation181_spill] sm:$0xff] }
 0x8a4   : > { %23808 = vrcp.f32 %v13445_v45  ;;  %20856 = vmatpush3.bf16.msra.mxu1 %v9263_v39  ;;  %v28207_v21 = vpop.xlane.xlu1 %13507  ;;  %20857 = vmatprep.mubr.msk.bf16.mxu1 %vm24211_vm3, %v30340_v19  ;;  %30395 = vst [vmem:[#allocation90_spill] sm:$0xff] %v28225_v12  ;;  %v28229_v63 = vpop.eup %23796  ;;  %v30397_v39 = vld [vmem:[#allocation79_spill] sm:$0xff]  ;;  %v13698_v45 = vsel %vm789_vm1, %v28225_v12, 0.0  ;;  %v30403_v12 = vld [vmem:[#allocation113_spill] sm:$0xff] }
 0x8a5   : > { %23810 = vpow2.f32 %v13348_v48  ;;  %20867 = vmatprep.subr.bf16.mxu1 %v30340_v19  ;;  %v23799_v42 = vpop.eup %23798  ;;  %v13120_v48 = vsub.f32 %v30396_v22, %v28112_v36  ;;  %v13077_v51 = vsub.f32 %v30397_v39, %v27793_v49  ;;  %v13569_v20 = vsel %vm789_vm1, %v28229_v63, 0.0 }
 0x8a6   : > { %13558 = vadd.xlane.f32.xlu0 %v13557_v43  ;;  %23812 = vpow2.f32 %v13262_v31  ;;  %v23801_v6 = vpop.eup %23800  ;;  %v30400_v43 = vld [vmem:[#allocation26_spill] sm:$0xff]  ;;  %v13122_v22 = vsub.f32 %v30401_v17, %v28171_v24  ;;  %v22873_v8 = vunpack.i.l.bf16 %v30403_v12 }
 0x8a7   : > { %v28227_v52 = vpop.xlane.xlu0 %12910  ;;  %13693 = vadd.xlane.f32.xlu1 %v13692_v40  ;;  %23814 = vpow2.f32 %v13352_v26  ;;  %v28241_v31 = vpop.eup %23802  ;;  %v13918_v57 = vmul.f32 %v23799_v42, %v30400_v43  ;;  %v13360_v44 = vmul.f32 1.442695, %v13120_v48  ;;  %v13274_v42 = vmul.f32 1.442695, %v13077_v51 }
 0x8a8   : > { %v28231_v1 = vpop.xlane.xlu1 %13513  ;;  %30398 = vst [vmem:[#allocation161_spill] sm:$0xff] %v28241_v31  ;;  %23816 = vpow2.f32 %v13266_v3  ;;  %v13704_v3 = vsel %vm789_vm1, %v28241_v31, 0.0  ;;  %v13920_v4 = vmul.f32 %v23801_v6, %v30405_v32  ;;  %v9264_v51 = vpack.c.bf16 %v22840_v62, %v22835_v50 }
 0x8a9   : > { %23818 = vpow2.f32 %v13356_v30  ;;  %v30406_v30 = vld [vmem:[#allocation42_spill] sm:$0xff]  ;;  %v13364_v32 = vmul.f32 1.442695, %v13122_v22  ;;  %v30411_v22 = vld [vmem:[#allocation52_spill] sm:$0xff] }
 0x8aa   : > { %13564 = vadd.xlane.f32.xlu0 %v13563_v16  ;;  %v23805_v36 = vpop.eup %23804  ;;  %v30402_v16 = vld [vmem:[#allocation182_spill] sm:$0xff]  ;;  %23820 = vpow2.f32 %v13270_v41  ;;  %v30408_v41 = vld [vmem:[#allocation189_spill] sm:$0xff] }
 0x8ab   : > { %v28245_v26 = vpop.xlane.xlu0 %12916  ;;  %13699 = vadd.xlane.f32.xlu1 %v13698_v45  ;;  %v28253_v40 = vpop.eup %23806  ;;  %v13919_v39 = vmul.f32 %v23805_v36, %v30402_v16  ;;  %23822 = vrcp.f32 %v27823_v34  ;;  %v30407_v36 = vld [vmem:[#allocation77_spill] sm:$0xff]  ;;  %v30409_v34 = vld [vmem:[#allocation183_spill] sm:$0xff] }
 0x8ac   : > { %v28249_v49 = vpop.xlane.xlu1 %12979  ;;  %v13079_v16 = vsub.f32 %v30407_v36, %v27811_v5  ;;  %23824 = vrcp.f32 %v30408_v41  ;;  %v13575_v31 = vsel %vm789_vm1, %v28253_v40, 0.0  ;;  %v13124_v6 = vsub.f32 %v30409_v34, %v28191_v2 }
 0x8ad   : > { %v14039_v17 = vpack.c.bf16 %v13919_v39, %v13918_v57  ;;  %23826 = vpow2.f32 %v13360_v44  ;;  %v9265_v5 = vpack.c.bf16 %v22873_v8, %v22868_v27 }
 0x8ae   : > { %v23809_v45 = vpop.eup %23808  ;;  %13570 = vadd.xlane.f32.xlu0 %v13569_v20  ;;  %v13278_v2 = vmul.f32 1.442695, %v13079_v16  ;;  %v13368_v8 = vmul.f32 1.442695, %v13124_v6 }
 0x8af   : > { %v28261_v43 = vpop.eup %23810  ;;  %v13921_v48 = vmul.f32 %v23809_v45, %v30406_v30  ;;  %v13451_v24 = vpop.xlane.xlu0 %13450  ;;  %13705 = vadd.xlane.f32.xlu1 %v13704_v3  ;;  %20852 = vmatmul.mubr.msk.bf16.vlgmr.msra.gmra.mrb[188].mxu0 %vm789_vm1, %v14039_v17  ;;  %v30412_v45 = vld [vmem:[#allocation44_spill] sm:$0xff] }
 0x8b0   : > { %30404 = vst [vmem:[#allocation76_spill] sm:$0xff] %v28261_v43  ;;  %v28269_v20 = vpop.xlane.xlu1 %12985  ;;  %v28276_v39 = vpop.eup %23812  ;;  %23828 = vrcp.f32 %v13451_v24  ;;  %20862 = vmatpush3.bf16.msra.mxu0 %v9264_v51  ;;  %v13710_v50 = vsel %vm789_vm1, %v28261_v43, 0.0  ;;  %20863 = vmatprep.mubr.msk.bf16.mxu0 %vm24211_vm3, %v30340_v19  ;;  %v30416_v24 = vld [vmem:[#allocation167_spill] sm:$0xff] }
 0x8b1   : > { %v14040_v57 = vpack.c.bf16 %v13921_v48, %v13920_v4  ;;  %v28280_v62 = vpop.eup %23814  ;;  %23830 = vpow2.f32 %v13274_v42  ;;  %v13081_v4 = vsub.f32 %v30412_v45, %v30411_v22  ;;  %v13581_v42 = vsel %vm789_vm1, %v28276_v39, 0.0  ;;  %20873 = vmatprep.subr.bf16.mxu0 %v30340_v19  ;;  %v30415_v48 = vld [vmem:[#allocation190_spill] sm:$0xff]  ;;  %v30420_v45 = vld [vmem:[#allocation191_spill] sm:$0xff] }
 0x8b2   : > { %13576 = vadd.xlane.f32.xlu0 %v13575_v31  ;;  %30410 = vst [vmem:[#allocation87_spill] sm:$0xff] %v28280_v62  ;;  %v30413_v31 = vld [vmem:[#allocation187_spill] sm:$0xff]  ;;  %v28296_v30 = vpop.eup %23816  ;;  %v13083_v17 = vsub.f32 %v30416_v24, %v30415_v48  ;;  %v13716_v36 = vsel %vm789_vm1, %v28280_v62, 0.0  ;;  %v30423_v48 = vld [vmem:[#allocation86_spill] sm:$0xff] }
 0x8b3   : > { %v13457_v44 = vpop.xlane.xlu0 %13456  ;;  %20858 = vmatmul.mubr.msk.bf16.vlgmr.msra.gmra.mrb[160].mxu1 %vm789_vm1, %v14040_v57  ;;  %13711 = vadd.xlane.f32.xlu1 %v13710_v50  ;;  %v13126_v27 = vsub.f32 %v30413_v31, %v28249_v49  ;;  %30414 = vst [vmem:[#allocation103_spill] sm:$0xff] %v28296_v30  ;;  %v28303_v49 = vpop.eup %23818  ;;  %v13282_v51 = vmul.f32 1.442695, %v13081_v4  ;;  %v30419_v57 = vld [vmem:[#allocation188_spill] sm:$0xff]  ;;  %v13587_v50 = vsel %vm789_vm1, %v28296_v30, 0.0 }
 0x8b4   : > { %23832 = vrcp.f32 %v13457_v44  ;;  %20868 = vmatpush3.bf16.msra.mxu1 %v9265_v5  ;;  %v28285_v3 = vpop.xlane.xlu1 %13519  ;;  %20869 = vmatprep.mubr.msk.bf16.mxu1 %vm24211_vm3, %v30340_v19  ;;  %30417 = vst [vmem:[#allocation159_spill] sm:$0xff] %v28303_v49  ;;  %v28307_v41 = vpop.eup %23820  ;;  %v13128_v5 = vsub.f32 %v30419_v57, %v28269_v20  ;;  %v13286_v22 = vmul.f32 1.442695, %v13083_v17  ;;  %v30421_v31 = vld [vmem:[#allocation28_spill] sm:$0xff]  ;;  %v30424_v17 = vld [vmem:[#allocation43_spill] sm:$0xff] }
 0x8b5   : > { %23834 = vpow2.f32 %v13364_v32  ;;  %20879 = vmatprep.subr.bf16.mxu1 %v30340_v19  ;;  %30418 = vst [vmem:[#allocation12_spill] sm:$0xff] %v28307_v41  ;;  %v23823_v34 = vpop.eup %23822  ;;  %v13372_v6 = vmul.f32 1.442695, %v13126_v27  ;;  %v22871_v27 = vunpack.i.h.bf16 %v30399_v55  ;;  %v30427_v55 = vld [vmem:[#allocation91_spill] sm:$0xff] }
 0x8b6   : > { %13582 = vadd.xlane.f32.xlu0 %v13581_v42  ;;  %23836 = vpow2.f32 %v13278_v2  ;;  %v23825_v44 = vpop.eup %23824  ;;  %v13085_v42 = vsub.f32 %v30421_v31, %v30420_v45  ;;  %v13722_v2 = vsel %vm789_vm1, %v28303_v49, 0.0  ;;  %v13922_v57 = vmul.f32 %v23823_v34, %v30424_v17  ;;  %v30426_v49 = vld [vmem:[#allocation49_spill] sm:$0xff] }
 0x8b7   : > { %v28305_v16 = vpop.xlane.xlu0 %12922  ;;  %13717 = vadd.xlane.f32.xlu1 %v13716_v36  ;;  %23838 = vpow2.f32 %v13368_v8  ;;  %v28319_v4 = vpop.eup %23826  ;;  %v22808_v8 = vunpack.i.l.bf16 %v30423_v48  ;;  %v22876_v36 = vunpack.i.h.bf16 %v30403_v12  ;;  %v13376_v43 = vmul.f32 1.442695, %v13128_v5  ;;  %v30430_v17 = vld [vmem:[#allocation25_spill] sm:$0xff] }
 0x8b8   : > { %v28309_v32 = vpop.xlane.xlu1 %13525  ;;  %30422 = vst [vmem:[#allocation50_spill] sm:$0xff] %v28319_v4  ;;  %23840 = vpow2.f32 %v13282_v51  ;;  %v13290_v12 = vmul.f32 1.442695, %v13085_v42  ;;  %v13728_v51 = vsel %vm789_vm1, %v28319_v4, 0.0  ;;  %v13924_v53 = vmul.f32 %v23825_v44, %v30430_v17 }
 0x8b9   : > { %23842 = vpow2.f32 %v13372_v6  ;;  %v30432_v6 = vld [vmem:[#allocation74_spill] sm:$0xff]  ;;  %v9266_v42 = vpack.c.bf16 %v22876_v36, %v22871_v27 }
 0x8ba   : > { %13588 = vadd.xlane.f32.xlu0 %v13587_v50  ;;  %v23829_v20 = vpop.eup %23828  ;;  %v13593_v50 = vsel %vm789_vm1, %v28307_v41, 0.0  ;;  %23844 = vpow2.f32 %v13286_v22  ;;  %v30435_v22 = vld [vmem:[#allocation192_spill] sm:$0xff] }
 0x8bb   : > { %v28323_v24 = vpop.xlane.xlu0 %12928  ;;  %13723 = vadd.xlane.f32.xlu1 %v13722_v2  ;;  %v28329_v31 = vpop.eup %23830  ;;  %v13923_v62 = vmul.f32 %v23829_v20, %v30426_v49  ;;  %v30428_v2 = vld [vmem:[#allocation95_spill] sm:$0xff]  ;;  %23846 = vrcp.f32 %v30431_v9  ;;  %v30436_v9 = vld [vmem:[#allocation14_spill] sm:$0xff] }
 0x8bc   : > { %v12992_v45 = vpop.xlane.xlu1 %12991  ;;  %30425 = vst [vmem:[#allocation105_spill] sm:$0xff] %v28329_v31  ;;  %v22813_v61 = vunpack.i.l.bf16 %v30428_v2  ;;  %23848 = vrcp.f32 %v30435_v22  ;;  %v13599_v4 = vsel %vm789_vm1, %v28329_v31, 0.0 }
 0x8bd   : > { %v13130_v15 = vsub.f32 %v30427_v55, %v12992_v45  ;;  %v14041_v20 = vpack.c.bf16 %v13923_v62, %v13922_v57  ;;  %v30433_v45 = vld [vmem:[#allocation60_spill] sm:$0xff]  ;;  %v30434_v55 = vld [vmem:[#allocation169_spill] sm:$0xff]  ;;  %23850 = vpow2.f32 %v13376_v43  ;;  %v30439_v43 = vld [vmem:[#allocation31_spill] sm:$0xff] }
 0x8be   : > { %v23833_v13 = vpop.eup %23832  ;;  %13594 = vadd.xlane.f32.xlu0 %v13593_v50  ;;  %v13087_v41 = vsub.f32 %v30434_v55, %v30433_v45  ;;  %v9267_v62 = vpack.c.bf16 %v22813_v61, %v22808_v8 }
 0x8bf   : > { %v28336_v34 = vpop.eup %23834  ;;  %v13925_v49 = vmul.f32 %v23833_v13, %v30432_v6  ;;  %v13463_v5 = vpop.xlane.xlu0 %13462  ;;  %13729 = vadd.xlane.f32.xlu1 %v13728_v51  ;;  %v13380_v30 = vmul.f32 1.442695, %v13130_v15  ;;  %20864 = vmatmul.mubr.msk.bf16.vlgmr.msra.gmra.mrb[192].mxu0 %vm789_vm1, %v14041_v20  ;;  %v30440_v51 = vld [vmem:[#allocation48_spill] sm:$0xff]  ;;  %v30444_v20 = vld [vmem:[#allocation171_spill] sm:$0xff] }
 0x8c0   : > { %30429 = vst [vmem:[#allocation30_spill] sm:$0xff] %v28336_v34  ;;  %v12998_v50 = vpop.xlane.xlu1 %12997  ;;  %v28348_v17 = vpop.eup %23836  ;;  %23852 = vrcp.f32 %v13463_v5  ;;  %20874 = vmatpush3.bf16.msra.mxu0 %v9266_v42  ;;  %v13734_v27 = vsel %vm789_vm1, %v28336_v34, 0.0  ;;  %v13294_v15 = vmul.f32 1.442695, %v13087_v41  ;;  %20875 = vmatprep.mubr.msk.bf16.mxu0 %vm24211_vm3, %v30340_v19  ;;  %v13091_v45 = vsub.f32 %v30444_v20, %v27982_v18  ;;  %v30446_v18 = vld [vmem:[#allocation45_spill] sm:$0xff] }
 0x8c1   : > { %v13132_v44 = vsub.f32 %v30436_v9, %v12998_v50  ;;  %v14042_v13 = vpack.c.bf16 %v13925_v49, %v13924_v53  ;;  %30437 = vst [vmem:[#allocation78_spill] sm:$0xff] %v28348_v17  ;;  %v28352_v36 = vpop.eup %23838  ;;  %23854 = vpow2.f32 %v13290_v12  ;;  %v13089_v53 = vsub.f32 %v30440_v51, %v30439_v43  ;;  %20885 = vmatprep.subr.bf16.mxu0 %v30340_v19  ;;  %v30447_v43 = vld [vmem:[#allocation107_spill] sm:$0xff] }
 0x8c2   : > { %13600 = vadd.xlane.f32.xlu0 %v13599_v4  ;;  %30438 = vst [vmem:[#allocation98_spill] sm:$0xff] %v28352_v36  ;;  %v13605_v4 = vsel %vm789_vm1, %v28348_v17, 0.0  ;;  %v28366_v41 = vpop.eup %23840  ;;  %v13740_v8 = vsel %vm789_vm1, %v28352_v36, 0.0  ;;  %v22844_v51 = vunpack.i.l.bf16 %v30447_v43  ;;  %v30452_v36 = vld [vmem:[#allocation109_spill] sm:$0xff] }
 0x8c3   : > { %v13469_v57 = vpop.xlane.xlu0 %13468  ;;  %20870 = vmatmul.mubr.msk.bf16.vlgmr.msra.gmra.mrb[164].mxu1 %vm789_vm1, %v14042_v13  ;;  %13735 = vadd.xlane.f32.xlu1 %v13734_v27  ;;  %v13384_v61 = vmul.f32 1.442695, %v13132_v44  ;;  %30441 = vst [vmem:[#allocation163_spill] sm:$0xff] %v28366_v41  ;;  %v28371_v12 = vpop.eup %23842  ;;  %v13298_v5 = vmul.f32 1.442695, %v13089_v53  ;;  %v13611_v42 = vsel %vm789_vm1, %v28366_v41, 0.0  ;;  %v22811_v13 = vunpack.i.h.bf16 %v30423_v48 }
 0x8c4   : > { %23856 = vrcp.f32 %v13469_v57  ;;  %20880 = vmatpush3.bf16.msra.mxu1 %v9267_v62  ;;  %v28357_v6 = vpop.xlane.xlu1 %13531  ;;  %20881 = vmatprep.mubr.msk.bf16.mxu1 %vm24211_vm3, %v30340_v19  ;;  %30442 = vst [vmem:[#allocation168_spill] sm:$0xff] %v28371_v12  ;;  %v28375_v49 = vpop.eup %23844  ;;  %v13746_v9 = vsel %vm789_vm1, %v28371_v12, 0.0  ;;  %v22816_v62 = vunpack.i.h.bf16 %v30428_v2  ;;  %v13093_v27 = vsub.f32 %v30446_v18, %v28003_v35  ;;  %v30448_v48 = vld [vmem:[#allocation69_spill] sm:$0xff]  ;;  %v30449_v2 = vld [vmem:[#allocation71_spill] sm:$0xff]  ;;  %v30451_v18 = vld [vmem:[#allocation154_spill] sm:$0xff] }
 0x8c5   : > { %23858 = vpow2.f32 %v13380_v30  ;;  %20891 = vmatprep.subr.bf16.mxu1 %v30340_v19  ;;  %30443 = vst [vmem:[#allocation70_spill] sm:$0xff] %v28375_v49  ;;  %v23847_v22 = vpop.eup %23846  ;;  %v13302_v53 = vmul.f32 1.442695, %v13091_v45  ;;  %v22849_v34 = vunpack.i.l.bf16 %v30452_v36  ;;  %v30453_v41 = vld [vmem:[#allocation75_spill] sm:$0xff]  ;;  %v30454_v45 = vld [vmem:[#allocation16_spill] sm:$0xff] }
 0x8c6   : > { %13606 = vadd.xlane.f32.xlu0 %v13605_v4  ;;  %23860 = vpow2.f32 %v13294_v15  ;;  %v23849_v50 = vpop.eup %23848  ;;  %v13617_v4 = vsel %vm789_vm1, %v28375_v49, 0.0  ;;  %v13926_v20 = vmul.f32 %v23847_v22, %v30448_v48  ;;  %v13306_v22 = vmul.f32 1.442695, %v13093_v27  ;;  %v30456_v48 = vld [vmem:[#allocation148_spill] sm:$0xff] }
 0x8c7   : > { %v28373_v30 = vpop.xlane.xlu0 %12934  ;;  %13741 = vadd.xlane.f32.xlu1 %v13740_v8  ;;  %23862 = vpow2.f32 %v13384_v61  ;;  %v28385_v44 = vpop.eup %23850 }
 0x8c8   : > { %v28379_v55 = vpop.xlane.xlu1 %13537  ;;  %30445 = vst [vmem:[#allocation170_spill] sm:$0xff] %v28385_v44  ;;  %23864 = vpow2.f32 %v13298_v5  ;;  %v13928_v5 = vmul.f32 %v23849_v50, %v30453_v41  ;;  %v13752_v49 = vsel %vm789_vm1, %v28385_v44, 0.0  ;;  %v9268_v41 = vpack.c.bf16 %v22816_v62, %v22811_v13  ;;  %v30459_v13 = vld [vmem:[#allocation81_spill] sm:$0xff] }
 0x8c9   : > { %23866 = vrcp.f32 %v30449_v2  ;;  %v13097_v62 = vsub.f32 %v30459_v13, %v28086_v7 }
 0x8ca   : > { %13612 = vadd.xlane.f32.xlu0 %v13611_v42  ;;  %v23853_v15 = vpop.eup %23852  ;;  %v30450_v42 = vld [vmem:[#allocation99_spill] sm:$0xff]  ;;  %23868 = vrcp.f32 %v30454_v45 }
 0x8cb   : > { %v28391_v57 = vpop.xlane.xlu0 %12940  ;;  %13747 = vadd.xlane.f32.xlu1 %v13746_v9  ;;  %v28396_v8 = vpop.eup %23854  ;;  %v13927_v35 = vmul.f32 %v23853_v15, %v30450_v42  ;;  %23870 = vpow2.f32 %v13302_v53 }
 0x8cc   : > { %v13004_v61 = vpop.xlane.xlu1 %13003  ;;  %v13623_v50 = vsel %vm789_vm1, %v28396_v8, 0.0 }
 0x8cd   : > { %v13134_v12 = vsub.f32 %v30451_v18, %v13004_v61  ;;  %v14043_v42 = vpack.c.bf16 %v13927_v35, %v13926_v20  ;;  %v30457_v61 = vld [vmem:[#allocation175_spill] sm:$0xff] }
 0x8ce   : > { %v23857_v9 = vpop.eup %23856  ;;  %13618 = vadd.xlane.f32.xlu0 %v13617_v4  ;;  %v13095_v18 = vsub.f32 %v30457_v61, %v28067_v23  ;;  %v22847_v61 = vunpack.i.h.bf16 %v30447_v43 }
 0x8cf   : > { %v28407_v17 = vpop.eup %23858  ;;  %v13929_v2 = vmul.f32 %v23857_v9, %v30456_v48  ;;  %v13388_v31 = vmul.f32 1.442695, %v13134_v12  ;;  %v13475_v15 = vpop.xlane.xlu0 %13474  ;;  %13753 = vadd.xlane.f32.xlu1 %v13752_v49  ;;  %20876 = vmatmul.mubr.msk.bf16.vlgmr.msra.gmra.mrb[196].mxu0 %vm789_vm1, %v14043_v42  ;;  %v9269_v12 = vpack.c.bf16 %v22849_v34, %v22844_v51 }
 0x8d0   : > { %30455 = vst [vmem:[#allocation164_spill] sm:$0xff] %v28407_v17  ;;  %v28415_v45 = vpop.eup %23860  ;;  %20886 = vmatpush3.bf16.msra.mxu0 %v9268_v41  ;;  %v13758_v49 = vsel %vm789_vm1, %v28407_v17, 0.0  ;;  %20887 = vmatprep.mubr.msk.bf16.mxu0 %vm24211_vm3, %v30340_v19  ;;  %v28436_v20 = vpop.xlane.xlu1 %13543 }
 0x8d1   : > { %23872 = vpow2.f32 %v13388_v31  ;;  %v14044_v4 = vpack.c.bf16 %v13929_v2, %v13928_v5  ;;  %v28419_v27 = vpop.eup %23862  ;;  %v13310_v31 = vmul.f32 1.442695, %v13095_v18  ;;  %v13629_v34 = vsel %vm789_vm1, %v28415_v45, 0.0  ;;  %20897 = vmatprep.subr.bf16.mxu0 %v30340_v19  ;;  %v30462_v18 = vld [vmem:[#allocation37_spill] sm:$0xff] }
 0x8d2   : > { %23874 = vrcp.f32 %v13475_v15  ;;  %13624 = vadd.xlane.f32.xlu0 %v13623_v50  ;;  %30458 = vst [vmem:[#allocation32_spill] sm:$0xff] %v28419_v27  ;;  %v28431_v51 = vpop.eup %23864  ;;  %v13764_v53 = vsel %vm789_vm1, %v28419_v27, 0.0  ;;  %v13314_v5 = vmul.f32 1.442695, %v13097_v62  ;;  %v13101_v41 = vsub.f32 %v30462_v18, %v28167_v0  ;;  %v30464_v62 = vld [vmem:[#allocation92_spill] sm:$0xff] }
 0x8d3   : > { %23876 = vpow2.f32 %v13306_v22  ;;  %v13481_v23 = vpop.xlane.xlu0 %13480  ;;  %20882 = vmatmul.mubr.msk.bf16.vlgmr.msra.gmra.mrb[168].mxu1 %vm789_vm1, %v14044_v4  ;;  %13759 = vadd.xlane.f32.xlu1 %v13758_v49  ;;  %v23867_v7 = vpop.eup %23866  ;;  %v30460_v22 = vld [vmem:[#allocation180_spill] sm:$0xff]  ;;  %v13635_v2 = vsel %vm789_vm1, %v28431_v51, 0.0 }
 0x8d4   : > { %23878 = vrcp.f32 %v13481_v23  ;;  %20892 = vmatpush3.bf16.msra.mxu1 %v9269_v12  ;;  %20893 = vmatprep.mubr.msk.bf16.mxu1 %vm24211_vm3, %v30340_v19  ;;  %v23869_v9 = vpop.eup %23868  ;;  %v13099_v48 = vsub.f32 %v30460_v22, %v28149_v33  ;;  %v22852_v12 = vunpack.i.h.bf16 %v30452_v36  ;;  %v28460_v43 = vpop.xlane.xlu1 %13549  ;;  %v30465_v22 = vld [vmem:[#allocation110_spill] sm:$0xff] }
 0x8d5   : > { %20903 = vmatprep.subr.bf16.mxu1 %v30340_v19  ;;  %23880 = vpow2.f32 %v13310_v31  ;;  %v28444_v15 = vpop.eup %23870  ;;  %v30463_v31 = vld [vmem:[#allocation73_spill] sm:$0xff]  ;;  %v22880_v36 = vunpack.i.l.bf16 %v30465_v22 }
 0x8d6   : > { %13630 = vadd.xlane.f32.xlu0 %v13629_v34  ;;  %23882 = vpow2.f32 %v13314_v5  ;;  %v13318_v33 = vmul.f32 1.442695, %v13099_v48  ;;  %v13930_v13 = vmul.f32 %v23867_v7, %v30463_v31  ;;  %v13641_v0 = vsel %vm789_vm1, %v28444_v15, 0.0  ;;  %v30466_v5 = vld [vmem:[#allocation112_spill] sm:$0xff] }
 0x8d7   : > { %v28438_v35 = vpop.xlane.xlu0 %12946  ;;  %13765 = vadd.xlane.f32.xlu1 %v13764_v53  ;;  %v22885_v48 = vunpack.i.l.bf16 %v30466_v5  ;;  %23884 = vrcp.f32 %v28049_v47  ;;  %v30468_v7 = vld [vmem:[#allocation36_spill] sm:$0xff]  ;;  %v9270_v17 = vpack.c.bf16 %v22852_v12, %v22847_v61  ;;  %v30470_v61 = vld [vmem:[#allocation186_spill] sm:$0xff] }
 0x8d8   : > { %23886 = vpow2.f32 %v13318_v33  ;;  %v13105_v12 = vsub.f32 %v30470_v61, %v28245_v26  ;;  %v30472_v26 = vld [vmem:[#allocation142_spill] sm:$0xff]  ;;  %v30477_v61 = vld [vmem:[#allocation116_spill] sm:$0xff] }
 0x8d9   : > { %v9271_v47 = vpack.c.bf16 %v22885_v48, %v22880_v36  ;;  %v22883_v48 = vunpack.i.h.bf16 %v30465_v22 }
 0x8da   : > { %13636 = vadd.xlane.f32.xlu0 %v13635_v2  ;;  %v30467_v2 = vld [vmem:[#allocation11_spill] sm:$0xff] }
 0x8db   : > { %v28446_v42 = vpop.eup %23872  ;;  %v28451_v50 = vpop.xlane.xlu0 %12952  ;;  %v13932_v18 = vmul.f32 %v23869_v9, %v30467_v2  ;;  %v22888_v2 = vunpack.i.h.bf16 %v30466_v5 }
 0x8dc   : > { %30461 = vst [vmem:[#allocation21_spill] sm:$0xff] %v28446_v42  ;;  %v23875_v4 = vpop.eup %23874  ;;  %v13770_v49 = vsel %vm789_vm1, %v28446_v42, 0.0  ;;  %v13322_v42 = vmul.f32 1.442695, %v13101_v41  ;;  %v28477_v41 = vpop.xlane.xlu1 %13555 }
 0x8dd   : > { %v28456_v23 = vpop.eup %23876  ;;  %v13931_v34 = vmul.f32 %v23875_v4, %v30464_v62  ;;  %13771 = vadd.xlane.f32.xlu1 %v13770_v49  ;;  %v30469_v49 = vld [vmem:[#allocation185_spill] sm:$0xff] }
 0x8de   : > { %v23879_v53 = vpop.eup %23878  ;;  %13642 = vadd.xlane.f32.xlu0 %v13641_v0  ;;  %v13103_v27 = vsub.f32 %v30469_v49, %v28227_v52  ;;  %v13647_v44 = vsel %vm789_vm1, %v28456_v23, 0.0 }
 0x8df   : > { %v13933_v31 = vmul.f32 %v23879_v53, %v30468_v7  ;;  %v13487_v4 = vpop.xlane.xlu0 %13486  ;;  %v14045_v62 = vpack.c.bf16 %v13931_v34, %v13930_v13  ;;  %v28474_v0 = vpop.eup %23880  ;;  %v30474_v7 = vld [vmem:[#allocation145_spill] sm:$0xff] }
 0x8e0   : > { %23888 = vrcp.f32 %v13487_v4  ;;  %v13326_v52 = vmul.f32 1.442695, %v13103_v27  ;;  %v13330_v27 = vmul.f32 1.442695, %v13105_v12  ;;  %v28496_v34 = vpop.xlane.xlu1 %13561  ;;  %v22916_v12 = vunpack.i.l.bf16 %v30477_v61 }
 0x8e1   : > { %20888 = vmatmul.mubr.msk.bf16.vlgmr.msra.gmra.mrb[200].mxu0 %vm789_vm1, %v14045_v62  ;;  %v14046_v9 = vpack.c.bf16 %v13933_v31, %v13932_v18  ;;  %23890 = vrcp.f32 %v28074_v14  ;;  %v13653_v14 = vsel %vm789_vm1, %v28474_v0, 0.0  ;;  %v13109_v31 = vsub.f32 %v30474_v7, %v28323_v24  ;;  %v30475_v62 = vld [vmem:[#allocation174_spill] sm:$0xff]  ;;  %v30479_v7 = vld [vmem:[#allocation20_spill] sm:$0xff] }
 0x8e2   : > { %20898 = vmatpush3.bf16.msra.mxu0 %v9270_v17  ;;  %13648 = vadd.xlane.f32.xlu0 %v13647_v44  ;;  %23892 = vpow2.f32 %v13322_v42  ;;  %v28490_v17 = vpop.eup %23882  ;;  %v13107_v42 = vsub.f32 %v30472_v26, %v28305_v16 }
 0x8e3   : > { %v13493_v33 = vpop.xlane.xlu0 %13492  ;;  %20894 = vmatmul.mubr.msk.bf16.vlgmr.msra.gmra.mrb[172].mxu1 %vm789_vm1, %v14046_v9  ;;  %20899 = vmatprep.mubr.msk.bf16.mxu0 %vm24211_vm3, %v30340_v19  ;;  %30471 = vst [vmem:[#allocation102_spill] sm:$0xff] %v28490_v17  ;;  %v23885_v13 = vpop.eup %23884  ;;  %v13659_v53 = vsel %vm789_vm1, %v28490_v17, 0.0 }
 0x8e4   : > { %23894 = vrcp.f32 %v13493_v33  ;;  %20904 = vmatpush3.bf16.msra.mxu1 %v9271_v47  ;;  %20909 = vmatprep.subr.bf16.mxu0 %v30340_v19  ;;  %v28500_v36 = vpop.eup %23886  ;;  %v13934_v49 = vmul.f32 %v23885_v13, %v30475_v62  ;;  %v13334_v9 = vmul.f32 1.442695, %v13107_v42  ;;  %v30476_v47 = vld [vmem:[#allocation53_spill] sm:$0xff]  ;;  %v28518_v42 = vpop.xlane.xlu1 %13567  ;;  %v30480_v13 = vld [vmem:[#allocation39_spill] sm:$0xff] }
 0x8e5   : > { %20905 = vmatprep.mubr.msk.bf16.mxu1 %vm24211_vm3, %v30340_v19  ;;  %20915 = vmatprep.subr.bf16.mxu1 %v30340_v19  ;;  %23896 = vpow2.f32 %v13326_v52  ;;  %30473 = vst [vmem:[#allocation66_spill] sm:$0xff] %v28500_v36  ;;  %v13665_v22 = vsel %vm789_vm1, %v28500_v36, 0.0 }
 0x8e6   : > { %13654 = vadd.xlane.f32.xlu0 %v13653_v14  ;;  %23898 = vpow2.f32 %v13330_v27  ;;  %v30478_v14 = vld [vmem:[#allocation117_spill] sm:$0xff]  ;;  %v13338_v27 = vmul.f32 1.442695, %v13109_v31 }
 0x8e7   : > { %v28492_v44 = vpop.xlane.xlu0 %12958  ;;  %v22921_v26 = vunpack.i.l.bf16 %v30478_v14  ;;  %23900 = vrcp.f32 %v28131_v60 }
 0x8e8   : > { %23902 = vpow2.f32 %v13334_v9 }
 0x8e9   : > { %v9273_v31 = vpack.c.bf16 %v22921_v26, %v22916_v12 }
 0x8ea   : > { %13660 = vadd.xlane.f32.xlu0 %v13659_v53  ;;  %v23889_v18 = vpop.eup %23888  ;;  %v9272_v53 = vpack.c.bf16 %v22888_v2, %v22883_v48 }
 0x8eb   : > { %v28506_v4 = vpop.xlane.xlu0 %12964  ;;  %v23891_v16 = vpop.eup %23890  ;;  %v13935_v33 = vmul.f32 %v23889_v18, %v30476_v47  ;;  %v30481_v47 = vld [vmem:[#allocation54_spill] sm:$0xff] }
 0x8ec   : > { %v28510_v52 = vpop.eup %23892  ;;  %v13936_v17 = vmul.f32 %v23891_v16, %v30479_v7  ;;  %v13111_v36 = vsub.f32 %v30481_v47, %v28373_v30  ;;  %v22924_v7 = vunpack.i.h.bf16 %v30478_v14 }
 0x8ed   : > { %v14047_v24 = vpack.c.bf16 %v13935_v33, %v13934_v49  ;;  %v13671_v48 = vsel %vm789_vm1, %v28510_v52, 0.0  ;;  %v30483_v49 = vld [vmem:[#allocation83_spill] sm:$0xff] }
 0x8ee   : > { %v23895_v5 = vpop.eup %23894  ;;  %13666 = vadd.xlane.f32.xlu0 %v13665_v22  ;;  %v13342_v16 = vmul.f32 1.442695, %v13111_v36  ;;  %v13113_v9 = vsub.f32 %v30483_v49, %v28391_v57  ;;  %v30485_v57 = vld [vmem:[#allocation33_spill] sm:$0xff] }
 0x8ef   : > { %v13937_v18 = vmul.f32 %v23895_v5, %v30480_v13  ;;  %v13499_v62 = vpop.xlane.xlu0 %13498  ;;  %20900 = vmatmul.mubr.msk.bf16.vlgmr.msra.gmra.mrb[204].mxu0 %vm789_vm1, %v14047_v24  ;;  %v28528_v60 = vpop.eup %23896  ;;  %v13115_v5 = vsub.f32 %v30485_v57, %v28438_v35  ;;  %v30487_v13 = vld [vmem:[#allocation35_spill] sm:$0xff] }
 0x8f0   : > { %20910 = vmatpush3.bf16.msra.mxu0 %v9272_v53  ;;  %23904 = vrcp.f32 %v13499_v62  ;;  %20911 = vmatprep.mubr.msk.bf16.mxu0 %vm24211_vm3, %v30340_v19  ;;  %30482 = vst [vmem:[#allocation172_spill] sm:$0xff] %v28528_v60  ;;  %v28542_v33 = vpop.eup %23898  ;;  %v13346_v36 = vmul.f32 1.442695, %v13113_v9  ;;  %v22919_v53 = vunpack.i.h.bf16 %v30477_v61  ;;  %v30490_v9 = vld [vmem:[#allocation106_spill] sm:$0xff] }
 0x8f1   : > { %v14048_v2 = vpack.c.bf16 %v13937_v18, %v13936_v17  ;;  %23906 = vrcp.f32 %v28153_v38  ;;  %20921 = vmatprep.subr.bf16.mxu0 %v30340_v19  ;;  %v28537_v17 = vpop.xlane.xlu1 %13573  ;;  %v13677_v38 = vsel %vm789_vm1, %v28528_v60, 0.0  ;;  %30484 = vst [vmem:[#allocation177_spill] sm:$0xff] %v28542_v33  ;;  %v23901_v12 = vpop.eup %23900  ;;  %v13683_v26 = vsel %vm789_vm1, %v28542_v33, 0.0  ;;  %v30492_v33 = vld [vmem:[#allocation24_spill] sm:$0xff] }
 0x8f2   : > { %13672 = vadd.xlane.f32.xlu0 %v13671_v48  ;;  %23908 = vpow2.f32 %v13338_v27  ;;  %v28550_v24 = vpop.eup %23902  ;;  %v13117_v18 = vsub.f32 %v30487_v13, %v28451_v50  ;;  %v30488_v48 = vld [vmem:[#allocation179_spill] sm:$0xff]  ;;  %v30491_v50 = vld [vmem:[#allocation108_spill] sm:$0xff]  ;;  %v9274_v13 = vpack.c.bf16 %v22924_v7, %v22919_v53 }
 0x8f3   : > { %20906 = vmatmul.mubr.msk.bf16.vlgmr.msra.gmra.mrb[176].mxu1 %vm789_vm1, %v14048_v2  ;;  %v13505_v30 = vpop.xlane.xlu0 %13504  ;;  %30486 = vst [vmem:[#allocation104_spill] sm:$0xff] %v28550_v24  ;;  %v13938_v2 = vmul.f32 %v23901_v12, %v30488_v48  ;;  %v13689_v61 = vsel %vm789_vm1, %v28550_v24, 0.0  ;;  %v22861_v57 = vunpack.i.l.bf16 %v30491_v50  ;;  %v30494_v48 = vld [vmem:[#allocation10_spill] sm:$0xff] }
 0x8f4   : > { %20916 = vmatpush3.bf16.msra.mxu1 %v9273_v31  ;;  %23910 = vrcp.f32 %v13505_v30  ;;  %20917 = vmatprep.mubr.msk.bf16.mxu1 %vm24211_vm3, %v30340_v19  ;;  %v13350_v31 = vmul.f32 1.442695, %v13115_v5  ;;  %v30489_v30 = vld [vmem:[#allocation47_spill] sm:$0xff]  ;;  %v30493_v5 = vld [vmem:[#allocation88_spill] sm:$0xff] }
 0x8f5   : > { %20927 = vmatprep.subr.bf16.mxu1 %v30340_v19  ;;  %23912 = vpow2.f32 %v13342_v16  ;;  %v28556_v62 = vpop.xlane.xlu1 %13579 }
 0x8f6   : > { %13678 = vadd.xlane.f32.xlu0 %v13677_v38  ;;  %23914 = vpow2.f32 %v13346_v36  ;;  %v22856_v38 = vunpack.i.l.bf16 %v30490_v9  ;;  %v13354_v36 = vmul.f32 1.442695, %v13117_v18 }
 0x8f7   : > { %v28544_v22 = vpop.xlane.xlu0 %12970  ;;  %23916 = vrcp.f32 %v28207_v21 }
 0x8f8   : > { %23918 = vpow2.f32 %v13350_v31  ;;  %v9275_v7 = vpack.c.bf16 %v22861_v57, %v22856_v38 }
 0x8f9   : > { %v28574_v24 = vpop.xlane.xlu1 %13585 }
 0x8fa   : > { %13684 = vadd.xlane.f32.xlu0 %v13683_v26  ;;  %v23905_v27 = vpop.eup %23904 }
 0x8fb   : > { %v28558_v47 = vpop.xlane.xlu0 %12976  ;;  %v23907_v35 = vpop.eup %23906  ;;  %v13939_v16 = vmul.f32 %v23905_v27, %v30489_v30  ;;  %v13119_v30 = vsub.f32 %v30494_v48, %v28492_v44 }
 0x8fc   : > { %v28562_v49 = vpop.eup %23908  ;;  %v13940_v60 = vmul.f32 %v23907_v35, %v30492_v33  ;;  %v30496_v35 = vld [vmem:[#allocation27_spill] sm:$0xff] }
 0x8fd   : > { %v14049_v26 = vpack.c.bf16 %v13939_v16, %v13938_v2  ;;  %v13695_v53 = vsel %vm789_vm1, %v28562_v49, 0.0  ;;  %v13358_v18 = vmul.f32 1.442695, %v13119_v30  ;;  %v13121_v2 = vsub.f32 %v30496_v35, %v28506_v4  ;;  %v28594_v31 = vpop.xlane.xlu1 %13591  ;;  %v30498_v4 = vld [vmem:[#allocation56_spill] sm:$0xff] }
 0x8fe   : > { %v23911_v14 = vpop.eup %23910  ;;  %13690 = vadd.xlane.f32.xlu0 %v13689_v61 }
 0x8ff   : > { %v13941_v12 = vmul.f32 %v23911_v14, %v30493_v5  ;;  %v13511_v27 = vpop.xlane.xlu0 %13510  ;;  %20912 = vmatmul.mubr.msk.bf16.vlgmr.msra.gmra.mrb[208].mxu0 %vm789_vm1, %v14049_v26  ;;  %v28580_v21 = vpop.eup %23912  ;;  %v13362_v61 = vmul.f32 1.442695, %v13121_v2  ;;  %v13123_v14 = vsub.f32 %v30498_v4, %v28544_v22  ;;  %v22864_v5 = vunpack.i.h.bf16 %v30491_v50  ;;  %v30503_v50 = vld [vmem:[#allocation114_spill] sm:$0xff]  ;;  %v30504_v4 = vld [vmem:[#allocation115_spill] sm:$0xff] }
 0x900   : > { %20922 = vmatpush3.bf16.msra.mxu0 %v9274_v13  ;;  %23920 = vrcp.f32 %v13511_v27  ;;  %20923 = vmatprep.mubr.msk.bf16.mxu0 %vm24211_vm3, %v30340_v19  ;;  %30495 = vst [vmem:[#allocation85_spill] sm:$0xff] %v28580_v21 }
 0x901   : > { %v14050_v33 = vpack.c.bf16 %v13941_v12, %v13940_v60  ;;  %23922 = vrcp.f32 %v28231_v1  ;;  %20933 = vmatprep.subr.bf16.mxu0 %v30340_v19  ;;  %v13701_v1 = vsel %vm789_vm1, %v28580_v21, 0.0  ;;  %v28592_v60 = vpop.eup %23914  ;;  %v30500_v12 = vld [vmem:[#allocation193_spill] sm:$0xff]  ;;  %v13366_v22 = vmul.f32 1.442695, %v13123_v14  ;;  %v28610_v35 = vpop.xlane.xlu1 %13597 }
 0x902   : > { %13696 = vadd.xlane.f32.xlu0 %v13695_v53  ;;  %23924 = vpow2.f32 %v13354_v36  ;;  %30497 = vst [vmem:[#allocation19_spill] sm:$0xff] %v28592_v60  ;;  %v23917_v38 = vpop.eup %23916  ;;  %v13707_v57 = vsel %vm789_vm1, %v28592_v60, 0.0  ;;  %v22859_v36 = vunpack.i.h.bf16 %v30490_v9  ;;  %v13125_v27 = vsub.f32 %v30500_v12, %v28558_v47  ;;  %v30501_v53 = vld [vmem:[#allocation184_spill] sm:$0xff]  ;;  %v30507_v60 = vld [vmem:[#allocation97_spill] sm:$0xff] }
 0x903   : > { %20918 = vmatmul.mubr.msk.bf16.vlgmr.msra.gmra.mrb[180].mxu1 %vm789_vm1, %v14050_v33  ;;  %v13517_v44 = vpop.xlane.xlu0 %13516  ;;  %v28600_v26 = vpop.eup %23918  ;;  %v13942_v33 = vmul.f32 %v23917_v38, %v30501_v53  ;;  %v22897_v47 = vunpack.i.l.bf16 %v30504_v4 }
 0x904   : > { %20928 = vmatpush3.bf16.msra.mxu1 %v9275_v7  ;;  %23926 = vrcp.f32 %v13517_v44  ;;  %20929 = vmatprep.mubr.msk.bf16.mxu1 %vm24211_vm3, %v30340_v19  ;;  %30499 = vst [vmem:[#allocation165_spill] sm:$0xff] %v28600_v26  ;;  %v30502_v7 = vld [vmem:[#allocation61_spill] sm:$0xff]  ;;  %v13713_v9 = vsel %vm789_vm1, %v28600_v26, 0.0  ;;  %v9276_v53 = vpack.c.bf16 %v22864_v5, %v22859_v36 }
 0x905   : > { %20939 = vmatprep.subr.bf16.mxu1 %v30340_v19  ;;  %23928 = vpow2.f32 %v13358_v18 }
 0x906   : > { %13702 = vadd.xlane.f32.xlu0 %v13701_v1  ;;  %23930 = vpow2.f32 %v13362_v61  ;;  %v22892_v1 = vunpack.i.l.bf16 %v30503_v50  ;;  %v30505_v61 = vld [vmem:[#allocation41_spill] sm:$0xff] }
 0x907   : > { %v12983_v16 = vpop.xlane.xlu0 %12982  ;;  %23932 = vrcp.f32 %v28285_v3 }
 0x908   : > { %23934 = vpow2.f32 %v13366_v22  ;;  %v13127_v21 = vsub.f32 %v30507_v60, %v12983_v16  ;;  %v9277_v36 = vpack.c.bf16 %v22897_v47, %v22892_v1  ;;  %v28629_v60 = vpop.xlane.xlu1 %13603  ;;  %v22895_v47 = vunpack.i.h.bf16 %v30503_v50 }
 0x90a   : > { %13708 = vadd.xlane.f32.xlu0 %v13707_v57  ;;  %v23921_v13 = vpop.eup %23920  ;;  %v13370_v57 = vmul.f32 1.442695, %v13125_v27  ;;  %v13374_v5 = vmul.f32 1.442695, %v13127_v21  ;;  %v30508_v27 = vld [vmem:[#allocation89_spill] sm:$0xff] }
 0x90b   : > { %v12989_v48 = vpop.xlane.xlu0 %12988  ;;  %v23923_v30 = vpop.eup %23922  ;;  %v13943_v44 = vmul.f32 %v23921_v13, %v30502_v7  ;;  %v30506_v13 = vld [vmem:[#allocation84_spill] sm:$0xff] }
 0x90c   : > { %v28608_v18 = vpop.eup %23924  ;;  %v13944_v14 = vmul.f32 %v23923_v30, %v30505_v61 }
 0x90d   : > { %v14051_v38 = vpack.c.bf16 %v13943_v44, %v13942_v33  ;;  %v13719_v26 = vsel %vm789_vm1, %v28608_v18, 0.0  ;;  %v13129_v33 = vsub.f32 %v30508_v27, %v12989_v48  ;;  %v28641_v48 = vpop.xlane.xlu1 %13609 }
 0x90e   : > { %v23927_v2 = vpop.eup %23926  ;;  %13714 = vadd.xlane.f32.xlu0 %v13713_v9 }
 0x90f   : > { %v13945_v12 = vmul.f32 %v23927_v2, %v30506_v13  ;;  %v13523_v7 = vpop.xlane.xlu0 %13522  ;;  %20924 = vmatmul.mubr.msk.bf16.vlgmr.msra.gmra.mrb[212].mxu0 %vm789_vm1, %v14051_v38  ;;  %v28625_v30 = vpop.eup %23928  ;;  %v13378_v9 = vmul.f32 1.442695, %v13129_v33  ;;  %v22900_v38 = vunpack.i.h.bf16 %v30504_v4 }
 0x910   : > { %20934 = vmatpush3.bf16.msra.mxu0 %v9276_v53  ;;  %23936 = vrcp.f32 %v13523_v7  ;;  %20935 = vmatprep.mubr.msk.bf16.mxu0 %vm24211_vm3, %v30340_v19 }
 0x911   : > { %v14052_v3 = vpack.c.bf16 %v13945_v12, %v13944_v14  ;;  %23938 = vrcp.f32 %v28309_v32  ;;  %20945 = vmatprep.subr.bf16.mxu0 %v30340_v19  ;;  %v13725_v32 = vsel %vm789_vm1, %v28625_v30, 0.0  ;;  %v30509_v14 = vld [vmem:[#allocation15_spill] sm:$0xff] }
 0x912   : > { %13720 = vadd.xlane.f32.xlu0 %v13719_v26  ;;  %23940 = vpow2.f32 %v13370_v57  ;;  %v28638_v26 = vpop.eup %23930 }
 0x913   : > { %20930 = vmatmul.mubr.msk.bf16.vlgmr.msra.gmra.mrb[184].mxu1 %vm789_vm1, %v14052_v3  ;;  %v13529_v16 = vpop.xlane.xlu0 %13528  ;;  %v23933_v44 = vpop.eup %23932  ;;  %v13731_v2 = vsel %vm789_vm1, %v28638_v26, 0.0 }
 0x914   : > { %20940 = vmatpush3.bf16.msra.mxu1 %v9277_v36  ;;  %23942 = vrcp.f32 %v13529_v16  ;;  %20941 = vmatprep.mubr.msk.bf16.mxu1 %vm24211_vm3, %v30340_v19  ;;  %v28645_v1 = vpop.eup %23934  ;;  %v13946_v57 = vmul.f32 %v23933_v44, %v30509_v14  ;;  %v30510_v16 = vld [vmem:[#allocation120_spill] sm:$0xff] }
 0x915   : > { %20951 = vmatprep.subr.bf16.mxu1 %v30340_v19  ;;  %23944 = vpow2.f32 %v13374_v5  ;;  %v13737_v36 = vsel %vm789_vm1, %v28645_v1, 0.0  ;;  %v22928_v4 = vunpack.i.l.bf16 %v30510_v16  ;;  %v30511_v5 = vld [vmem:[#allocation122_spill] sm:$0xff] }
 0x916   : > { %13726 = vadd.xlane.f32.xlu0 %v13725_v32  ;;  %23946 = vpow2.f32 %v13378_v9  ;;  %v22933_v27 = vunpack.i.l.bf16 %v30511_v5  ;;  %v9278_v32 = vpack.c.bf16 %v22900_v38, %v22895_v47 }
 0x917   : > { %v12995_v22 = vpop.xlane.xlu0 %12994  ;;  %23948 = vrcp.f32 %v28357_v6 }
 0x918   : > { %v13131_v21 = vsub.f32 %v28045_v37, %v12995_v22  ;;  %v30512_v22 = vld [vmem:[#allocation29_spill] sm:$0xff] }
 0x91a   : > { %13732 = vadd.xlane.f32.xlu0 %v13731_v2  ;;  %v23937_v61 = vpop.eup %23936  ;;  %v13382_v53 = vmul.f32 1.442695, %v13131_v21 }
 0x91b   : > { %v13001_v13 = vpop.xlane.xlu0 %13000  ;;  %v23939_v12 = vpop.eup %23938  ;;  %v13947_v37 = vmul.f32 %v23937_v61, %v28012_v28 }
 0x91c   : > { %v13133_v7 = vsub.f32 %v28070_v56, %v13001_v13  ;;  %v28652_v3 = vpop.eup %23940  ;;  %v13948_v44 = vmul.f32 %v23939_v12, %v30512_v22  ;;  %v28660_v28 = vpop.xlane.xlu1 %13615  ;;  %23950 = vpow2.f32 %v13382_v53 }
 0x91d   : > { %v14053_v33 = vpack.c.bf16 %v13947_v37, %v13946_v57  ;;  %v13743_v2 = vsel %vm789_vm1, %v28652_v3, 0.0 }
 0x91e   : > { %v23943_v50 = vpop.eup %23942  ;;  %13738 = vadd.xlane.f32.xlu0 %v13737_v36  ;;  %v13386_v9 = vmul.f32 1.442695, %v13133_v7 }
 0x91f   : > { %v13949_v56 = vmul.f32 %v23943_v50, %v28037_v10  ;;  %v13535_v21 = vpop.xlane.xlu0 %13534  ;;  %20936 = vmatmul.mubr.msk.bf16.vlgmr.msra.gmra.mrb[216].mxu0 %vm789_vm1, %v14053_v33  ;;  %v28668_v47 = vpop.eup %23944  ;;  %v9279_v10 = vpack.c.bf16 %v22933_v27, %v22928_v4  ;;  %v22931_v50 = vunpack.i.h.bf16 %v30510_v16  ;;  %v22936_v4 = vunpack.i.h.bf16 %v30511_v5 }
 0x920   : > { %20946 = vmatpush3.bf16.msra.mxu0 %v9278_v32  ;;  %23952 = vrcp.f32 %v13535_v21  ;;  %20947 = vmatprep.mubr.msk.bf16.mxu0 %vm24211_vm3, %v30340_v19  ;;  %v28675_v38 = vpop.xlane.xlu1 %13621  ;;  %v13749_v14 = vsel %vm789_vm1, %v28668_v47, 0.0  ;;  %v30514_v21 = vld [vmem:[#allocation125_spill] sm:$0xff] }
 0x921   : > { %v14054_v61 = vpack.c.bf16 %v13949_v56, %v13948_v44  ;;  %23954 = vrcp.f32 %v28379_v55  ;;  %20957 = vmatprep.subr.bf16.mxu0 %v30340_v19  ;;  %v28680_v55 = vpop.eup %23946  ;;  %v22964_v5 = vunpack.i.l.bf16 %v30514_v21 }
 0x922   : > { %13744 = vadd.xlane.f32.xlu0 %v13743_v2  ;;  %23956 = vpow2.f32 %v13386_v9  ;;  %v23949_v12 = vpop.eup %23948  ;;  %v13755_v37 = vsel %vm789_vm1, %v28680_v55, 0.0  ;;  %v30515_v2 = vld [vmem:[#allocation127_spill] sm:$0xff] }
 0x923   : > { %20942 = vmatmul.mubr.msk.bf16.vlgmr.msra.gmra.mrb[188].mxu1 %vm789_vm1, %v14054_v61  ;;  %v13541_v6 = vpop.xlane.xlu0 %13540 }
 0x924   : > { %20952 = vmatpush3.bf16.msra.mxu1 %v9279_v10  ;;  %23958 = vrcp.f32 %v13541_v6  ;;  %20953 = vmatprep.mubr.msk.bf16.mxu1 %vm24211_vm3, %v30340_v19  ;;  %v28690_v27 = vpop.xlane.xlu1 %13627  ;;  %v30516_v10 = vld [vmem:[#allocation151_spill] sm:$0xff] }
 0x925   : > { %20963 = vmatprep.subr.bf16.mxu1 %v30340_v19  ;;  %23960 = vrcp.f32 %v28436_v20  ;;  %v22969_v20 = vunpack.i.l.bf16 %v30515_v2 }
 0x926   : > { %13750 = vadd.xlane.f32.xlu0 %v13749_v14  ;;  %v28685_v53 = vpop.eup %23950  ;;  %v9280_v14 = vpack.c.bf16 %v22936_v4, %v22931_v50  ;;  %v22967_v50 = vunpack.i.h.bf16 %v30514_v21  ;;  %v22972_v4 = vunpack.i.h.bf16 %v30515_v2 }
 0x927   : > { %v13007_v57 = vpop.xlane.xlu0 %13006  ;;  %v13761_v9 = vsel %vm789_vm1, %v28685_v53, 0.0 }
 0x928   : > { %v13135_v13 = vsub.f32 %v28127_v54, %v13007_v57  ;;  %v30513_v54 = vld [vmem:[#allocation40_spill] sm:$0xff] }
 0x929   : > { %v13950_v22 = vmul.f32 %v23949_v12, %v30513_v54 }
 0x92a   : > { %v13390_v7 = vmul.f32 1.442695, %v13135_v13  ;;  %13756 = vadd.xlane.f32.xlu0 %v13755_v37  ;;  %v23953_v36 = vpop.eup %23952  ;;  %v28704_v13 = vpop.xlane.xlu1 %13633 }
 0x92b   : > { %v13547_v33 = vpop.xlane.xlu0 %13546  ;;  %v23955_v32 = vpop.eup %23954  ;;  %v13951_v44 = vmul.f32 %v23953_v36, %v28094_v59 }
 0x92c   : > { %23962 = vpow2.f32 %v13390_v7  ;;  %v28694_v56 = vpop.eup %23956  ;;  %v13952_v6 = vmul.f32 %v23955_v32, %v30516_v10  ;;  %v30520_v10 = vld [vmem:[#allocation8_spill] sm:$0xff] }
 0x92d   : > { %23964 = vrcp.f32 %v13547_v33  ;;  %v14055_v61 = vpack.c.bf16 %v13951_v44, %v13950_v22  ;;  %v13767_v12 = vsel %vm789_vm1, %v28694_v56, 0.0  ;;  %v30517_v44 = vld [vmem:[#allocation34_spill] sm:$0xff] }
 0x92e   : > { %v23959_v16 = vpop.eup %23958  ;;  %23966 = vrcp.f32 %v28460_v43  ;;  %13762 = vadd.xlane.f32.xlu0 %v13761_v9  ;;  %v9281_v43 = vpack.c.bf16 %v22969_v20, %v22964_v5  ;;  %v28721_v33 = vpop.xlane.xlu1 %13639 }
 0x92f   : > { %v13953_v59 = vmul.f32 %v23959_v16, %v28119_v29  ;;  %v13553_v57 = vpop.xlane.xlu0 %13552  ;;  %20948 = vmatmul.mubr.msk.bf16.vlgmr.msra.gmra.mrb[220].mxu0 %vm789_vm1, %v14055_v61  ;;  %v23961_v7 = vpop.eup %23960  ;;  %v30519_v61 = vld [vmem:[#allocation119_spill] sm:$0xff] }
 0x930   : > { %23968 = vrcp.f32 %v13553_v57  ;;  %20958 = vmatpush3.bf16.msra.mxu0 %v9280_v14  ;;  %20959 = vmatprep.mubr.msk.bf16.mxu0 %vm24211_vm3, %v30340_v19  ;;  %v13954_v9 = vmul.f32 %v23961_v7, %v30517_v44  ;;  %v22909_v21 = vunpack.i.l.bf16 %v30519_v61  ;;  %v9282_v14 = vpack.c.bf16 %v22972_v4, %v22967_v50  ;;  %v30521_v7 = vld [vmem:[#allocation9_spill] sm:$0xff] }
 0x931   : > { %v14056_v37 = vpack.c.bf16 %v13953_v59, %v13952_v6  ;;  %23970 = vrcp.f32 %v28477_v41  ;;  %20969 = vmatprep.subr.bf16.mxu0 %v30340_v19 }
 0x932   : > { %13768 = vadd.xlane.f32.xlu0 %v13767_v12 }
 0x933   : > { %20954 = vmatmul.mubr.msk.bf16.vlgmr.msra.gmra.mrb[192].mxu1 %vm789_vm1, %v14056_v37  ;;  %v13559_v29 = vpop.xlane.xlu0 %13558 }
 0x934   : > { %20964 = vmatpush3.bf16.msra.mxu1 %v9281_v43  ;;  %23972 = vrcp.f32 %v13559_v29  ;;  %20965 = vmatprep.mubr.msk.bf16.mxu1 %vm24211_vm3, %v30340_v19  ;;  %v22912_v29 = vunpack.i.h.bf16 %v30519_v61 }
 0x935   : > { %20975 = vmatprep.subr.bf16.mxu1 %v30340_v19  ;;  %23974 = vrcp.f32 %v28496_v34  ;;  %v30518_v34 = vld [vmem:[#allocation118_spill] sm:$0xff] }
 0x936   : > { %v28716_v36 = vpop.eup %23962  ;;  %v22904_v20 = vunpack.i.l.bf16 %v30518_v34 }
 0x937   : > { %v23965_v41 = vpop.eup %23964  ;;  %v13565_v32 = vpop.xlane.xlu0 %13564  ;;  %v13773_v54 = vsel %vm789_vm1, %v28716_v36, 0.0 }
 0x938   : > { %v23967_v22 = vpop.eup %23966  ;;  %v13955_v16 = vmul.f32 %v23965_v41, %v28151_v46  ;;  %23976 = vrcp.f32 %v13565_v32  ;;  %13774 = vadd.xlane.f32.xlu0 %v13773_v54  ;;  %v28733_v46 = vpop.xlane.xlu1 %13645 }
 0x939   : > { %23978 = vrcp.f32 %v28518_v42  ;;  %v13956_v6 = vmul.f32 %v23967_v22, %v30520_v10  ;;  %v9283_v42 = vpack.c.bf16 %v22909_v21, %v22904_v20  ;;  %v30522_v22 = vld [vmem:[#allocation121_spill] sm:$0xff] }
 0x93a   : > { %v23969_v5 = vpop.eup %23968  ;;  %v14057_v2 = vpack.c.bf16 %v13955_v16, %v13954_v9  ;;  %v22940_v44 = vunpack.i.l.bf16 %v30522_v22  ;;  %v30523_v9 = vld [vmem:[#allocation123_spill] sm:$0xff] }
 0x93b   : > { %v13957_v59 = vmul.f32 %v23969_v5, %v28175_v11  ;;  %v13571_v57 = vpop.xlane.xlu0 %13570  ;;  %v23971_v12 = vpop.eup %23970  ;;  %v22907_v11 = vunpack.i.h.bf16 %v30518_v34  ;;  %v22945_v16 = vunpack.i.l.bf16 %v30523_v9 }
 0x93c   : > { %20960 = vmatmul.mubr.msk.bf16.vlgmr.msra.gmra.mrb[224].mxu0 %vm789_vm1, %v14057_v2  ;;  %23980 = vrcp.f32 %v13571_v57  ;;  %v13958_v41 = vmul.f32 %v23971_v12, %v30521_v7  ;;  %v28751_v34 = vpop.xlane.xlu1 %13651 }
 0x93d   : > { %20970 = vmatpush3.bf16.msra.mxu0 %v9282_v14  ;;  %v14058_v37 = vpack.c.bf16 %v13957_v59, %v13956_v6  ;;  %20971 = vmatprep.mubr.msk.bf16.mxu0 %vm24211_vm3, %v30340_v19  ;;  %23982 = vrcp.f32 %v28537_v17  ;;  %v9284_v61 = vpack.c.bf16 %v22912_v29, %v22907_v11  ;;  %v22943_v59 = vunpack.i.h.bf16 %v30522_v22  ;;  %v30525_v14 = vld [vmem:[#allocation55_spill] sm:$0xff] }
 0x93e   : > { %v23973_v43 = vpop.eup %23972  ;;  %20981 = vmatprep.subr.bf16.mxu0 %v30340_v19 }
 0x93f   : > { %v13959_v50 = vmul.f32 %v23973_v43, %v28198_v58  ;;  %20966 = vmatmul.mubr.msk.bf16.vlgmr.msra.gmra.mrb[196].mxu1 %vm789_vm1, %v14058_v37  ;;  %v13577_v4 = vpop.xlane.xlu0 %13576  ;;  %v23975_v32 = vpop.eup %23974  ;;  %v30524_v58 = vld [vmem:[#allocation22_spill] sm:$0xff] }
 0x940   : > { %20976 = vmatpush3.bf16.msra.mxu1 %v9283_v42  ;;  %23984 = vrcp.f32 %v13577_v4  ;;  %20977 = vmatprep.mubr.msk.bf16.mxu1 %vm24211_vm3, %v30340_v19  ;;  %v13960_v5 = vmul.f32 %v23975_v32, %v30524_v58 }
 0x941   : > { %v14059_v17 = vpack.c.bf16 %v13959_v50, %v13958_v41  ;;  %20987 = vmatprep.subr.bf16.mxu1 %v30340_v19  ;;  %23986 = vrcp.f32 %v28556_v62  ;;  %v9285_v62 = vpack.c.bf16 %v22945_v16, %v22940_v44  ;;  %v30526_v41 = vld [vmem:[#allocation128_spill] sm:$0xff]  ;;  %v30527_v50 = vld [vmem:[#allocation130_spill] sm:$0xff] }
 0x942   : > { %v23977_v54 = vpop.eup %23976  ;;  %v22981_v4 = vunpack.i.l.bf16 %v30527_v50 }
 0x943   : > { %v13961_v20 = vmul.f32 %v23977_v54, %v28218_v25  ;;  %v13583_v21 = vpop.xlane.xlu0 %13582  ;;  %v23979_v2 = vpop.eup %23978  ;;  %v22948_v25 = vunpack.i.h.bf16 %v30523_v9 }
 0x944   : > { %20972 = vmatmul.mubr.msk.bf16.vlgmr.msra.gmra.mrb[228].mxu0 %vm789_vm1, %v14059_v17  ;;  %23988 = vrcp.f32 %v13583_v21  ;;  %v13962_v57 = vmul.f32 %v23979_v2, %v30525_v14  ;;  %v30528_v17 = vld [vmem:[#allocation13_spill] sm:$0xff]  ;;  %v30529_v21 = vld [vmem:[#allocation72_spill] sm:$0xff] }
 0x945   : > { %20982 = vmatpush3.bf16.msra.mxu0 %v9284_v61  ;;  %v14060_v10 = vpack.c.bf16 %v13961_v20, %v13960_v5  ;;  %20983 = vmatprep.mubr.msk.bf16.mxu0 %vm24211_vm3, %v30340_v19  ;;  %23990 = vrcp.f32 %v28574_v24  ;;  %v28768_v24 = vpop.xlane.xlu1 %13657  ;;  %v9286_v9 = vpack.c.bf16 %v22948_v25, %v22943_v59  ;;  %v22984_v61 = vunpack.i.h.bf16 %v30527_v50  ;;  %v30530_v14 = vld [vmem:[#allocation133_spill] sm:$0xff] }
 0x946   : > { %v23981_v6 = vpop.eup %23980  ;;  %20993 = vmatprep.subr.bf16.mxu0 %v30340_v19  ;;  %v28764_v42 = vpop.f32.mrb[144].mxu1 }
 0x947   : > { %v13963_v12 = vmul.f32 %v23981_v6, %v28229_v63  ;;  %20978 = vmatmul.mubr.msk.bf16.vlgmr.msra.gmra.mrb[200].mxu1 %vm789_vm1, %v14060_v10  ;;  %v13589_v37 = vpop.xlane.xlu0 %13588  ;;  %v23983_v43 = vpop.eup %23982  ;;  %v22976_v63 = vunpack.i.l.bf16 %v30526_v41 }
 0x948   : > { %20988 = vmatpush3.bf16.msra.mxu1 %v9285_v62  ;;  %23992 = vrcp.f32 %v13589_v37  ;;  %20989 = vmatprep.mubr.msk.bf16.mxu1 %vm24211_vm3, %v30340_v19  ;;  %v20811_v11 = vpop.f32.mrb[145].mxu1  ;;  %v13964_v54 = vmul.f32 %v23983_v43, %v30528_v17 }
 0x949   : > { %v14061_v29 = vpack.c.bf16 %v13963_v12, %v13962_v57  ;;  %20999 = vmatprep.subr.bf16.mxu1 %v30340_v19  ;;  %23994 = vrcp.f32 %v28594_v31  ;;  %v28774_v32 = vpop.f32.mrb[146].mxu1  ;;  %v9287_v31 = vpack.c.bf16 %v22981_v4, %v22976_v63  ;;  %v28786_v10 = vpop.xlane.xlu1 %13663  ;;  %v23012_v57 = vunpack.i.l.bf16 %v30530_v14  ;;  %v30531_v12 = vld [vmem:[#allocation135_spill] sm:$0xff] }
 0x94a   : > { %v23985_v7 = vpop.eup %23984  ;;  %v20812_v44 = vpop.f32.mrb[147].mxu1  ;;  %v23017_v37 = vunpack.i.l.bf16 %v30531_v12  ;;  %v30533_v11 = vld [vmem:[#allocation103_spill] sm:$0xff] }
 0x94b   : > { %v13965_v22 = vmul.f32 %v23985_v7, %v28253_v40  ;;  %v13595_v16 = vpop.xlane.xlu0 %13594  ;;  %v23987_v58 = vpop.eup %23986  ;;  %v22979_v40 = vunpack.i.h.bf16 %v30526_v41  ;;  %v23015_v44 = vunpack.i.h.bf16 %v30530_v14  ;;  %v30537_v14 = vld [vmem:[#allocation126_spill] sm:$0xff] }
 0x94c   : > { %20984 = vmatmul.mubr.msk.bf16.vlgmr.msra.gmra.mrb[232].mxu0 %vm789_vm1, %v14061_v29  ;;  %23996 = vrcp.f32 %v13595_v16  ;;  %v13966_v2 = vmul.f32 %v23987_v58, %v30529_v21  ;;  %v9289_v58 = vpack.c.bf16 %v23017_v37, %v23012_v57  ;;  %v22957_v57 = vunpack.i.l.bf16 %v30537_v14  ;;  %v30538_v37 = vld [vmem:[#allocation63_spill] sm:$0xff] }
 0x94d   : > { %20994 = vmatpush3.bf16.msra.mxu0 %v9286_v9  ;;  %v14062_v5 = vpack.c.bf16 %v13965_v22, %v13964_v54  ;;  %20995 = vmatprep.mubr.msk.bf16.mxu0 %vm24211_vm3, %v30340_v19  ;;  %23998 = vrcp.f32 %v28610_v35  ;;  %v9288_v7 = vpack.c.bf16 %v22984_v61, %v22979_v40  ;;  %v28799_v4 = vpop.xlane.xlu1 %13669 }
 0x94e   : > { %v23989_v20 = vpop.eup %23988  ;;  %21005 = vmatprep.subr.bf16.mxu0 %v30340_v19 }
 0x94f   : > { %v13967_v6 = vmul.f32 %v23989_v20, %v28276_v39  ;;  %20990 = vmatmul.mubr.msk.bf16.vlgmr.msra.gmra.mrb[204].mxu1 %vm789_vm1, %v14062_v5  ;;  %v13601_v62 = vpop.xlane.xlu0 %13600  ;;  %v23991_v59 = vpop.eup %23990  ;;  %v30532_v39 = vld [vmem:[#allocation18_spill] sm:$0xff]  ;;  %v23020_v5 = vunpack.i.h.bf16 %v30531_v12 }
 0x950   : > { %21000 = vmatpush3.bf16.msra.mxu1 %v9287_v31  ;;  %24000 = vrcp.f32 %v13601_v62  ;;  %21001 = vmatprep.mubr.msk.bf16.mxu1 %vm24211_vm3, %v30340_v19  ;;  %v13968_v43 = vmul.f32 %v23991_v59, %v30532_v39  ;;  %v30535_v31 = vld [vmem:[#allocation12_spill] sm:$0xff] }
 0x951   : > { %v14063_v35 = vpack.c.bf16 %v13967_v6, %v13966_v2  ;;  %21011 = vmatprep.subr.bf16.mxu1 %v30340_v19  ;;  %24002 = vrcp.f32 %v28629_v60 }
 0x952   : > { %v23993_v25 = vpop.eup %23992  ;;  %v14177_v50 = vpop.f32.mrb[176].mxu0 }
 0x953   : > { %v13969_v29 = vmul.f32 %v23993_v25, %v30533_v11  ;;  %v13607_v41 = vpop.xlane.xlu0 %13606  ;;  %v23995_v63 = vpop.eup %23994  ;;  %v23153_v17 = vpack.i.bf16 %v14177_v50, %v28764_v42  ;;  %v30534_v42 = vld [vmem:[#allocation51_spill] sm:$0xff]  ;;  %v30536_v25 = vld [vmem:[#allocation124_spill] sm:$0xff] }
 0x954   : > { %20996 = vmatmul.mubr.msk.bf16.vlgmr.msra.gmra.mrb[236].mxu0 %vm789_vm1, %v14063_v35  ;;  %24004 = vrcp.f32 %v13607_v41  ;;  %v20817_v54 = vpop.f32.mrb[177].mxu0  ;;  %v13970_v20 = vmul.f32 %v23995_v63, %v30534_v42  ;;  %v28825_v63 = vpop.xlane.xlu1 %13675 }
 0x955   : > { %21006 = vmatpush3.bf16.msra.mxu0 %v9288_v7  ;;  %v14064_v22 = vpack.c.bf16 %v13969_v29, %v13968_v43  ;;  %21007 = vmatprep.mubr.msk.bf16.mxu0 %vm24211_vm3, %v30340_v19  ;;  %24006 = vrcp.f32 %v28641_v48  ;;  %v14180_v9 = vpop.f32.mrb[178].mxu0  ;;  %v30539_v43 = vld [vmem:[#allocation105_spill] sm:$0xff]  ;;  %v9290_v29 = vpack.c.bf16 %v23020_v5, %v23015_v44  ;;  %v22955_v54 = vunpack.i.h.bf16 %v30536_v25 }
 0x956   : > { %v23997_v60 = vpop.eup %23996  ;;  %v28806_v16 = vpop.f32.mrb[148].mxu1  ;;  %21017 = vmatprep.subr.bf16.mxu0 %v30340_v19  ;;  %v23155_v61 = vpack.i.bf16 %v14180_v9, %v28774_v32  ;;  %23154 = vxpose.xlu1.b32.start [1/2] (short) (narrow) %v23153_v17, 8  ;;  %v22952_v32 = vunpack.i.l.bf16 %v30536_v25  ;;  %v30541_v9 = vld [vmem:[#allocation78_spill] sm:$0xff] }
 0x957   : > { %v13971_v40 = vmul.f32 %v23997_v60, %v30535_v31  ;;  %v20818_v21 = vpop.f32.mrb[179].mxu0  ;;  %21002 = vmatmul.mubr.msk.bf16.vlgmr.msra.gmra.mrb[208].mxu1 %vm789_vm1, %v14064_v22  ;;  %v13613_v2 = vpop.xlane.xlu0 %13612  ;;  %v22960_v22 = vunpack.i.h.bf16 %v30537_v14  ;;  %v30540_v60 = vld [vmem:[#allocation57_spill] sm:$0xff] }
 0x958   : > { %v23999_v48 = vpop.eup %23998  ;;  %21012 = vmatpush3.bf16.msra.mxu1 %v9289_v58  ;;  %24008 = vrcp.f32 %v13613_v2  ;;  %v20823_v6 = vpop.f32.mrb[149].mxu1  ;;  %21013 = vmatprep.mubr.msk.bf16.mxu1 %vm24211_vm3, %v30340_v19  ;;  %v9291_v17 = vpack.c.bf16 %v22957_v57, %v22952_v32  ;;  %v30542_v31 = vld [vmem:[#allocation129_spill] sm:$0xff]  ;;  %v30544_v2 = vld [vmem:[#allocation194_spill] sm:$0xff] }
 0x959   : > { %v28816_v62 = vpop.f32.mrb[150].mxu1  ;;  %v14065_v59 = vpack.c.bf16 %v13971_v40, %v13970_v20  ;;  %21023 = vmatprep.subr.bf16.mxu1 %v30340_v19  ;;  %24010 = vrcp.f32 %v28660_v28  ;;  %v13972_v39 = vmul.f32 %v23999_v48, %v30538_v37  ;;  %v22988_v40 = vunpack.i.l.bf16 %v30542_v31  ;;  %v28843_v6 = vpop.xlane.xlu1 %13681 }
 0x95a   : > { %v24001_v35 = vpop.eup %24000  ;;  %v20824_v12 = vpop.f32.mrb[151].mxu1  ;;  %23156 = vxpose.xlu1.b32.end [2/2] (short) (narrow) %v23155_v61, 8  ;;  %v30543_v61 = vld [vmem:[#allocation131_spill] sm:$0xff]  ;;  %v9292_v25 = vpack.c.bf16 %v22960_v22, %v22955_v54 }
 0x95b   : > { %v13973_v11 = vmul.f32 %v24001_v35, %v30539_v43  ;;  %v13619_v7 = vpop.xlane.xlu0 %13618  ;;  %v24003_v41 = vpop.eup %24002  ;;  %v22993_v21 = vunpack.i.l.bf16 %v30543_v61  ;;  %v22991_v43 = vunpack.i.h.bf16 %v30542_v31 }
 0x95c   : > { %21008 = vmatmul.mubr.msk.bf16.vlgmr.msra.gmra.mrb[240].mxu0 %vm789_vm1, %v14065_v59  ;;  %24012 = vrcp.f32 %v13619_v7  ;;  %v13974_v44 = vmul.f32 %v24003_v41, %v30540_v60  ;;  %v30545_v59 = vld [vmem:[#allocation163_spill] sm:$0xff]  ;;  %v22996_v41 = vunpack.i.h.bf16 %v30543_v61  ;;  %v30550_v61 = vld [vmem:[#allocation100_spill] sm:$0xff] }
 0x95d   : > { %21018 = vmatpush3.bf16.msra.mxu0 %v9290_v29  ;;  %v14066_v50 = vpack.c.bf16 %v13973_v11, %v13972_v39  ;;  %21019 = vmatprep.mubr.msk.bf16.mxu0 %vm24211_vm3, %v30340_v19  ;;  %24014 = vrcp.f32 %v28675_v38  ;;  %v9293_v7 = vpack.c.bf16 %v22993_v21, %v22988_v40 }
 0x95e   : > { %v24005_v28 = vpop.eup %24004  ;;  %21029 = vmatprep.subr.bf16.mxu0 %v30340_v19 }
 0x95f   : > { %v13975_v58 = vmul.f32 %v24005_v28, %v30541_v9  ;;  %21014 = vmatmul.mubr.msk.bf16.vlgmr.msra.gmra.mrb[212].mxu1 %vm789_vm1, %v14066_v50  ;;  %v13625_v5 = vpop.xlane.xlu0 %13624  ;;  %v24007_v42 = vpop.eup %24006  ;;  %v30547_v28 = vld [vmem:[#allocation70_spill] sm:$0xff] }
 0x960   : > { %21024 = vmatpush3.bf16.msra.mxu1 %v9291_v17  ;;  %24016 = vrcp.f32 %v13625_v5  ;;  %21025 = vmatprep.mubr.msk.bf16.mxu1 %vm24211_vm3, %v30340_v19  ;;  %v13976_v48 = vmul.f32 %v24007_v42, %v30544_v2  ;;  %v28862_v9 = vpop.xlane.xlu1 %13687  ;;  %v30548_v42 = vld [vmem:[#allocation136_spill] sm:$0xff] }
 0x961   : > { %v14067_v38 = vpack.c.bf16 %v13975_v58, %v13974_v44  ;;  %21035 = vmatprep.subr.bf16.mxu1 %v30340_v19  ;;  %24018 = vrcp.f32 %v28690_v27 }
 0x962   : > { %v24009_v20 = vpop.eup %24008  ;;  %v14265_v57 = vpop.f32.mrb[180].mxu0 }
 0x963   : > { %v13977_v35 = vmul.f32 %v24009_v20, %v30545_v59  ;;  %v13631_v32 = vpop.xlane.xlu0 %13630  ;;  %v24011_v14 = vpop.eup %24010  ;;  %v23162_v12 = vpack.i.bf16 %v14265_v57, %v28806_v16  ;;  %v30546_v16 = vld [vmem:[#allocation195_spill] sm:$0xff]  ;;  %v30549_v20 = vld [vmem:[#allocation138_spill] sm:$0xff]  ;;  %v30551_v57 = vld [vmem:[#allocation157_spill] sm:$0xff] }
 0x964   : > { %21020 = vmatmul.mubr.msk.bf16.vlgmr.msra.gmra.mrb[244].mxu0 %vm789_vm1, %v14067_v38  ;;  %24020 = vrcp.f32 %v13631_v32  ;;  %v20829_v37 = vpop.f32.mrb[181].mxu0  ;;  %v13978_v50 = vmul.f32 %v24011_v14, %v30546_v16  ;;  %v23024_v38 = vunpack.i.l.bf16 %v30548_v42  ;;  %v23029_v31 = vunpack.i.l.bf16 %v30549_v20  ;;  %v30553_v16 = vld [vmem:[#allocation144_spill] sm:$0xff] }
 0x965   : > { %21030 = vmatpush3.bf16.msra.mxu0 %v9292_v25  ;;  %v14068_v39 = vpack.c.bf16 %v13977_v35, %v13976_v48  ;;  %21031 = vmatprep.mubr.msk.bf16.mxu0 %vm24211_vm3, %v30340_v19  ;;  %24022 = vrcp.f32 %v28704_v13  ;;  %v14268_v11 = vpop.f32.mrb[182].mxu0  ;;  %v9294_v48 = vpack.c.bf16 %v22996_v41, %v22991_v43  ;;  %v23032_v14 = vunpack.i.h.bf16 %v30549_v20  ;;  %v28880_v37 = vpop.xlane.xlu1 %13693 }
 0x966   : > { %v24013_v27 = vpop.eup %24012  ;;  %v28852_v29 = vpop.f32.mrb[152].mxu1  ;;  %21041 = vmatprep.subr.bf16.mxu0 %v30340_v19  ;;  %v23164_v54 = vpack.i.bf16 %v14268_v11, %v28816_v62  ;;  %23163 = vxpose.xlu0.b32.start [1/2] (short) (narrow) %v23162_v12, 8 }
 0x967   : > { %v13979_v17 = vmul.f32 %v24013_v27, %v30547_v28  ;;  %v20830_v22 = vpop.f32.mrb[183].mxu0  ;;  %21026 = vmatmul.mubr.msk.bf16.vlgmr.msra.gmra.mrb[216].mxu1 %vm789_vm1, %v14068_v39  ;;  %v13637_v60 = vpop.xlane.xlu0 %13636 }
 0x968   : > { %v24015_v13 = vpop.eup %24014  ;;  %21036 = vmatpush3.bf16.msra.mxu1 %v9293_v7  ;;  %24024 = vrcp.f32 %v13637_v60  ;;  %v20835_v44 = vpop.f32.mrb[153].mxu1  ;;  %21037 = vmatprep.mubr.msk.bf16.mxu1 %vm24211_vm3, %v30340_v19  ;;  %v30552_v7 = vld [vmem:[#allocation141_spill] sm:$0xff] }
 0x969   : > { %v28864_v58 = vpop.f32.mrb[154].mxu1  ;;  %v14069_v5 = vpack.c.bf16 %v13979_v17, %v13978_v50  ;;  %21047 = vmatprep.subr.bf16.mxu1 %v30340_v19  ;;  %24026 = vrcp.f32 %v28721_v33  ;;  %v13980_v21 = vmul.f32 %v24015_v13, %v30550_v61  ;;  %v9295_v33 = vpack.c.bf16 %v23029_v31, %v23024_v38  ;;  %v28893_v44 = vpop.xlane.xlu1 %13699 }
 0x96a   : > { %v24017_v62 = vpop.eup %24016  ;;  %v20836_v40 = vpop.f32.mrb[155].mxu1  ;;  %23165 = vxpose.xlu0.b32.end [2/2] (short) (narrow) %v23164_v54, 8  ;;  %v23060_v41 = vunpack.i.l.bf16 %v30552_v7  ;;  %v23065_v50 = vunpack.i.l.bf16 %v30553_v16 }
 0x96b   : > { %v13981_v2 = vmul.f32 %v24017_v62, %v28396_v8  ;;  %v13643_v59 = vpop.xlane.xlu0 %13642  ;;  %v24019_v35 = vpop.eup %24018  ;;  %v23027_v8 = vunpack.i.h.bf16 %v30548_v42  ;;  %v23068_v40 = vunpack.i.h.bf16 %v30553_v16 }
 0x96c   : > { %21032 = vmatmul.mubr.msk.bf16.vlgmr.msra.gmra.mrb[248].mxu0 %vm789_vm1, %v14069_v5  ;;  %24028 = vrcp.f32 %v13643_v59  ;;  %v13982_v12 = vmul.f32 %v24019_v35, %v30551_v57  ;;  %v9297_v31 = vpack.c.bf16 %v23065_v50, %v23060_v41 }
 0x96d   : > { %21042 = vmatpush3.bf16.msra.mxu0 %v9294_v48  ;;  %v14070_v25 = vpack.c.bf16 %v13981_v2, %v13980_v21  ;;  %21043 = vmatprep.mubr.msk.bf16.mxu0 %vm24211_vm3, %v30340_v19  ;;  %24030 = vrcp.f32 %v28733_v46  ;;  %v9296_v54 = vpack.c.bf16 %v23032_v14, %v23027_v8  ;;  %v30557_v8 = vld [vmem:[#allocation134_spill] sm:$0xff] }
 0x96e   : > { %v24021_v32 = vpop.eup %24020  ;;  %21053 = vmatprep.subr.bf16.mxu0 %v30340_v19  ;;  %v23005_v14 = vunpack.i.l.bf16 %v30557_v8  ;;  %v23008_v50 = vunpack.i.h.bf16 %v30557_v8  ;;  %v30565_v8 = vld [vmem:[#allocation66_spill] sm:$0xff] }
 0x96f   : > { %v13983_v39 = vmul.f32 %v24021_v32, %v28415_v45  ;;  %21038 = vmatmul.mubr.msk.bf16.vlgmr.msra.gmra.mrb[220].mxu1 %vm789_vm1, %v14070_v25  ;;  %v13649_v27 = vpop.xlane.xlu0 %13648  ;;  %v24023_v43 = vpop.eup %24022  ;;  %v30554_v45 = vld [vmem:[#allocation59_spill] sm:$0xff] }
 0x970   : > { %21048 = vmatpush3.bf16.msra.mxu1 %v9295_v33  ;;  %24032 = vrcp.f32 %v13649_v27  ;;  %21049 = vmatprep.mubr.msk.bf16.mxu1 %vm24211_vm3, %v30340_v19  ;;  %v13984_v28 = vmul.f32 %v24023_v43, %v30554_v45  ;;  %v30556_v33 = vld [vmem:[#allocation132_spill] sm:$0xff]  ;;  %v30559_v45 = vld [vmem:[#allocation158_spill] sm:$0xff] }
 0x971   : > { %v14071_v46 = vpack.c.bf16 %v13983_v39, %v13982_v12  ;;  %21059 = vmatprep.subr.bf16.mxu1 %v30340_v19  ;;  %24034 = vrcp.f32 %v28751_v34  ;;  %v30558_v12 = vld [vmem:[#allocation82_spill] sm:$0xff] }
 0x972   : > { %v24025_v11 = vpop.eup %24024  ;;  %v14353_v13 = vpop.f32.mrb[184].mxu0 }
 0x973   : > { %v13985_v17 = vmul.f32 %v24025_v11, %v28431_v51  ;;  %v13655_v22 = vpop.xlane.xlu0 %13654  ;;  %v24027_v60 = vpop.eup %24026  ;;  %v23171_v5 = vpack.i.bf16 %v14353_v13, %v28852_v29  ;;  %v23063_v51 = vunpack.i.h.bf16 %v30552_v7  ;;  %v30555_v29 = vld [vmem:[#allocation17_spill] sm:$0xff] }
 0x974   : > { %21044 = vmatmul.mubr.msk.bf16.vlgmr.msra.gmra.mrb[252].mxu0 %vm789_vm1, %v14071_v46  ;;  %24036 = vrcp.f32 %v13655_v22  ;;  %v20841_v62 = vpop.f32.mrb[185].mxu0  ;;  %v13986_v61 = vmul.f32 %v24027_v60, %v30555_v29  ;;  %v28919_v7 = vpop.xlane.xlu1 %13705  ;;  %v30560_v13 = vld [vmem:[#allocation137_spill] sm:$0xff] }
 0x975   : > { %21054 = vmatpush3.bf16.msra.mxu0 %v9296_v54  ;;  %v14072_v42 = vpack.c.bf16 %v13985_v17, %v13984_v28  ;;  %21055 = vmatprep.mubr.msk.bf16.mxu0 %vm24211_vm3, %v30340_v19  ;;  %24038 = vrcp.f32 %v28768_v24  ;;  %v14356_v38 = vpop.f32.mrb[186].mxu0  ;;  %v9298_v43 = vpack.c.bf16 %v23068_v40, %v23063_v51  ;;  %v30561_v62 = vld [vmem:[#allocation139_spill] sm:$0xff] }
 0x976   : > { %v24029_v34 = vpop.eup %24028  ;;  %v28900_v20 = vpop.f32.mrb[156].mxu1  ;;  %21065 = vmatprep.subr.bf16.mxu0 %v30340_v19  ;;  %v23173_v2 = vpack.i.bf16 %v14356_v38, %v28864_v58  ;;  %23172 = vxpose.xlu0.b32.start [1/2] (short) (narrow) %v23171_v5, 8  ;;  %v23000_v58 = vunpack.i.l.bf16 %v30556_v33  ;;  %v23036_v5 = vunpack.i.l.bf16 %v30560_v13  ;;  %v30563_v38 = vld [vmem:[#allocation102_spill] sm:$0xff] }
 0x977   : > { %v13987_v21 = vmul.f32 %v24029_v34, %v28444_v15  ;;  %v20842_v48 = vpop.f32.mrb[187].mxu0  ;;  %21050 = vmatmul.mubr.msk.bf16.vlgmr.msra.gmra.mrb[224].mxu1 %vm789_vm1, %v14072_v42  ;;  %v13661_v59 = vpop.xlane.xlu0 %13660  ;;  %v23041_v42 = vunpack.i.l.bf16 %v30561_v62 }
 0x978   : > { %v24031_v24 = vpop.eup %24030  ;;  %21060 = vmatpush3.bf16.msra.mxu1 %v9297_v31  ;;  %24040 = vrcp.f32 %v13661_v59  ;;  %v20847_v35 = vpop.f32.mrb[157].mxu1  ;;  %21061 = vmatprep.mubr.msk.bf16.mxu1 %vm24211_vm3, %v30340_v19  ;;  %v9299_v16 = vpack.c.bf16 %v23005_v14, %v23000_v58 }
 0x979   : > { %v14073_v25 = vpack.c.bf16 %v13987_v21, %v13986_v61  ;;  %v28910_v32 = vpop.f32.mrb[158].mxu1  ;;  %21071 = vmatprep.subr.bf16.mxu1 %v30340_v19  ;;  %24042 = vrcp.f32 %v28786_v10  ;;  %v13988_v39 = vmul.f32 %v24031_v24, %v30558_v12  ;;  %v28937_v51 = vpop.xlane.xlu1 %13711  ;;  %v23039_v24 = vunpack.i.h.bf16 %v30560_v13 }
 0x97a   : > { %v24033_v15 = vpop.eup %24032  ;;  %v20848_v57 = vpop.f32.mrb[159].mxu1  ;;  %23174 = vxpose.xlu0.b32.end [2/2] (short) (narrow) %v23173_v2, 8 }
 0x97b   : > { %v13989_v27 = vmul.f32 %v24033_v15, %v28456_v23  ;;  %v13667_v46 = vpop.xlane.xlu0 %13666  ;;  %v24035_v11 = vpop.eup %24034  ;;  %v23003_v23 = vunpack.i.h.bf16 %v30556_v33  ;;  %v9301_v15 = vpack.c.bf16 %v23041_v42, %v23036_v5  ;;  %v23044_v33 = vunpack.i.h.bf16 %v30561_v62  ;;  %v30569_v62 = vld [vmem:[#allocation94_spill] sm:$0xff] }
 0x97c   : > { %21056 = vmatmul.mubr.msk.bf16.vlgmr.msra.gmra.mrb[0].mxu0 %vm789_vm1, %v14073_v25  ;;  %24044 = vrcp.f32 %v13667_v46  ;;  %v13990_v28 = vmul.f32 %v24035_v11, %v30559_v45  ;;  %v30568_v45 = vld [vmem:[#allocation96_spill] sm:$0xff] }
 0x97d   : > { %21066 = vmatpush3.bf16.msra.mxu0 %v9298_v43  ;;  %v14074_v41 = vpack.c.bf16 %v13989_v27, %v13988_v39  ;;  %21067 = vmatprep.mubr.msk.bf16.mxu0 %vm24211_vm3, %v30340_v19  ;;  %24046 = vrcp.f32 %v28799_v4  ;;  %v9300_v40 = vpack.c.bf16 %v23008_v50, %v23003_v23  ;;  %v28956_v43 = vpop.xlane.xlu1 %13717 }
 0x97e   : > { %v24037_v10 = vpop.eup %24036  ;;  %21077 = vmatprep.subr.bf16.mxu0 %v30340_v19 }
 0x97f   : > { %v13991_v17 = vmul.f32 %v24037_v10, %v28474_v0  ;;  %21062 = vmatmul.mubr.msk.bf16.vlgmr.msra.gmra.mrb[228].mxu1 %vm789_vm1, %v14074_v41  ;;  %v13673_v54 = vpop.xlane.xlu0 %13672  ;;  %v24039_v22 = vpop.eup %24038  ;;  %v30562_v0 = vld [vmem:[#allocation58_spill] sm:$0xff] }
 0x980   : > { %21072 = vmatpush3.bf16.msra.mxu1 %v9299_v16  ;;  %24048 = vrcp.f32 %v13673_v54  ;;  %21073 = vmatprep.mubr.msk.bf16.mxu1 %vm24211_vm3, %v30340_v19  ;;  %v13992_v34 = vmul.f32 %v24039_v22, %v30562_v0  ;;  %v30566_v41 = vld [vmem:[#allocation146_spill] sm:$0xff]  ;;  %v30567_v16 = vld [vmem:[#allocation149_spill] sm:$0xff]  ;;  %v9302_v54 = vpack.c.bf16 %v23044_v33, %v23039_v24 }
 0x981   : > { %v14075_v4 = vpack.c.bf16 %v13991_v17, %v13990_v28  ;;  %21083 = vmatprep.subr.bf16.mxu1 %v30340_v19  ;;  %24050 = vrcp.f32 %v28825_v63  ;;  %v23072_v10 = vunpack.i.l.bf16 %v30566_v41  ;;  %v23077_v23 = vunpack.i.l.bf16 %v30567_v16  ;;  %v28974_v0 = vpop.xlane.xlu1 %13723  ;;  %v30574_v24 = vld [vmem:[#allocation177_spill] sm:$0xff] }
 0x982   : > { %v24041_v60 = vpop.eup %24040  ;;  %v14441_v21 = vpop.f32.mrb[188].mxu0  ;;  %v23080_v5 = vunpack.i.h.bf16 %v30567_v16 }
 0x983   : > { %v13993_v31 = vmul.f32 %v24041_v60, %v30563_v38  ;;  %v13679_v29 = vpop.xlane.xlu0 %13678  ;;  %v24043_v61 = vpop.eup %24042  ;;  %v23180_v2 = vpack.i.bf16 %v14441_v21, %v28900_v20  ;;  %v30564_v20 = vld [vmem:[#allocation23_spill] sm:$0xff] }
 0x984   : > { %21068 = vmatmul.mubr.msk.bf16.vlgmr.msra.gmra.mrb[4].mxu0 %vm789_vm1, %v14075_v4  ;;  %24052 = vrcp.f32 %v13679_v29  ;;  %v20853_v48 = vpop.f32.mrb[189].mxu0  ;;  %v13994_v58 = vmul.f32 %v24043_v61, %v30564_v20  ;;  %v30571_v61 = vld [vmem:[#allocation153_spill] sm:$0xff] }
 0x985   : > { %21078 = vmatpush3.bf16.msra.mxu0 %v9300_v40  ;;  %v14076_v59 = vpack.c.bf16 %v13993_v31, %v13992_v34  ;;  %21079 = vmatprep.mubr.msk.bf16.mxu0 %vm24211_vm3, %v30340_v19  ;;  %24054 = vrcp.f32 %v28843_v6  ;;  %v14444_v35 = vpop.f32.mrb[190].mxu0  ;;  %v30570_v34 = vld [vmem:[#allocation172_spill] sm:$0xff]  ;;  %v23108_v21 = vunpack.i.l.bf16 %v30571_v61 }
 0x986   : > { %v24045_v63 = vpop.eup %24044  ;;  %v28946_v25 = vpop.f32.mrb[160].mxu1  ;;  %21089 = vmatprep.subr.bf16.mxu0 %v30340_v19  ;;  %v23182_v57 = vpack.i.bf16 %v14444_v35, %v28910_v32  ;;  %23181 = vxpose.xlu1.b32.start [1/2] (short) (narrow) %v23180_v2, 8  ;;  %v30572_v2 = vld [vmem:[#allocation156_spill] sm:$0xff] }
 0x987   : > { %v13995_v14 = vmul.f32 %v24045_v63, %v30565_v8  ;;  %v20854_v12 = vpop.f32.mrb[191].mxu0  ;;  %21074 = vmatmul.mubr.msk.bf16.vlgmr.msra.gmra.mrb[232].mxu1 %vm789_vm1, %v14076_v59  ;;  %v13685_v39 = vpop.xlane.xlu0 %13684  ;;  %v23113_v48 = vunpack.i.l.bf16 %v30572_v2  ;;  %v30573_v59 = vld [vmem:[#allocation62_spill] sm:$0xff] }
 0x988   : > { %v24047_v6 = vpop.eup %24046  ;;  %21084 = vmatpush3.bf16.msra.mxu1 %v9301_v15  ;;  %24056 = vrcp.f32 %v13685_v39  ;;  %v20859_v27 = vpop.f32.mrb[161].mxu1  ;;  %21085 = vmatprep.mubr.msk.bf16.mxu1 %vm24211_vm3, %v30340_v19  ;;  %v23111_v39 = vunpack.i.h.bf16 %v30571_v61  ;;  %v30580_v61 = vld [vmem:[#allocation90_spill] sm:$0xff] }
 0x989   : > { %v14077_v46 = vpack.c.bf16 %v13995_v14, %v13994_v58  ;;  %v28958_v11 = vpop.f32.mrb[162].mxu1  ;;  %21095 = vmatprep.subr.bf16.mxu1 %v30340_v19  ;;  %24058 = vrcp.f32 %v28862_v9  ;;  %v13996_v28 = vmul.f32 %v24047_v6, %v30568_v45  ;;  %v9303_v9 = vpack.c.bf16 %v23077_v23, %v23072_v10  ;;  %v28987_v8 = vpop.xlane.xlu1 %13729  ;;  %v30576_v10 = vld [vmem:[#allocation104_spill] sm:$0xff] }
 0x98a   : > { %v24049_v32 = vpop.eup %24048  ;;  %v20860_v50 = vpop.f32.mrb[163].mxu1  ;;  %23183 = vxpose.xlu1.b32.end [2/2] (short) (narrow) %v23182_v57, 8 }
 0x98b   : > { %v13997_v17 = vmul.f32 %v24049_v32, %v28510_v52  ;;  %v13691_v22 = vpop.xlane.xlu0 %13690  ;;  %v24051_v4 = vpop.eup %24050  ;;  %v23075_v52 = vunpack.i.h.bf16 %v30566_v41  ;;  %v23116_v32 = vunpack.i.h.bf16 %v30572_v2  ;;  %v30581_v2 = vld [vmem:[#allocation85_spill] sm:$0xff] }
 0x98c   : > { %21080 = vmatmul.mubr.msk.bf16.vlgmr.msra.gmra.mrb[8].mxu0 %vm789_vm1, %v14077_v46  ;;  %24060 = vrcp.f32 %v13691_v22  ;;  %v13998_v42 = vmul.f32 %v24051_v4, %v30569_v62  ;;  %v9305_v46 = vpack.c.bf16 %v23113_v48, %v23108_v21  ;;  %v30577_v4 = vld [vmem:[#allocation140_spill] sm:$0xff] }
 0x98d   : > { %21090 = vmatpush3.bf16.msra.mxu0 %v9302_v54  ;;  %v14078_v60 = vpack.c.bf16 %v13997_v17, %v13996_v28  ;;  %21091 = vmatprep.mubr.msk.bf16.mxu0 %vm24211_vm3, %v30340_v19  ;;  %24062 = vrcp.f32 %v28880_v37  ;;  %v9304_v15 = vpack.c.bf16 %v23080_v5, %v23075_v52  ;;  %v30579_v52 = vld [vmem:[#allocation38_spill] sm:$0xff] }
 0x98e   : > { %v24053_v13 = vpop.eup %24052  ;;  %21101 = vmatprep.subr.bf16.mxu0 %v30340_v19 }
 0x98f   : > { %v13999_v38 = vmul.f32 %v24053_v13, %v30570_v34  ;;  %21086 = vmatmul.mubr.msk.bf16.vlgmr.msra.gmra.mrb[236].mxu1 %vm789_vm1, %v14078_v60  ;;  %v13697_v31 = vpop.xlane.xlu0 %13696  ;;  %v24055_v40 = vpop.eup %24054  ;;  %v30578_v60 = vld [vmem:[#allocation143_spill] sm:$0xff] }
 0x990   : > { %21096 = vmatpush3.bf16.msra.mxu1 %v9303_v9  ;;  %24064 = vrcp.f32 %v13697_v31  ;;  %21097 = vmatprep.mubr.msk.bf16.mxu1 %vm24211_vm3, %v30340_v19  ;;  %v14000_v63 = vmul.f32 %v24055_v40, %v30573_v59  ;;  %v23053_v13 = vunpack.i.l.bf16 %v30578_v60  ;;  %v13736_v31 = vpop.xlane.xlu1 %13735 }
 0x991   : > { %v14079_v37 = vpack.c.bf16 %v13999_v38, %v13998_v42  ;;  %21107 = vmatprep.subr.bf16.mxu1 %v30340_v19  ;;  %24066 = vrcp.f32 %v28893_v44  ;;  %v9306_v42 = vpack.c.bf16 %v23116_v32, %v23111_v39 }
 0x992   : > { %v24057_v29 = vpop.eup %24056  ;;  %v14529_v58 = vpop.f32.mrb[192].mxu0 }
 0x993   : > { %v14001_v35 = vmul.f32 %v24057_v29, %v30574_v24  ;;  %v13703_v33 = vpop.xlane.xlu0 %13702  ;;  %v24059_v20 = vpop.eup %24058  ;;  %v23189_v14 = vpack.i.bf16 %v14529_v58, %v28946_v25  ;;  %v30575_v25 = vld [vmem:[#allocation160_spill] sm:$0xff]  ;;  %v23056_v29 = vunpack.i.h.bf16 %v30578_v60  ;;  %v30584_v58 = vld [vmem:[#allocation161_spill] sm:$0xff] }
 0x994   : > { %21092 = vmatmul.mubr.msk.bf16.vlgmr.msra.gmra.mrb[12].mxu0 %vm789_vm1, %v14079_v37  ;;  %24068 = vrcp.f32 %v13703_v33  ;;  %v20865_v57 = vpop.f32.mrb[193].mxu0  ;;  %v14002_v41 = vmul.f32 %v24059_v20, %v30575_v25  ;;  %v30583_v33 = vld [vmem:[#allocation150_spill] sm:$0xff] }
 0x995   : > { %21102 = vmatpush3.bf16.msra.mxu0 %v9304_v15  ;;  %v14080_v12 = vpack.c.bf16 %v14001_v35, %v14000_v63  ;;  %21103 = vmatprep.mubr.msk.bf16.mxu0 %vm24211_vm3, %v30340_v19  ;;  %24070 = vrcp.f32 %v28919_v7  ;;  %v14532_v6 = vpop.f32.mrb[194].mxu0  ;;  %v30582_v35 = vld [vmem:[#allocation147_spill] sm:$0xff]  ;;  %v23089_v20 = vunpack.i.l.bf16 %v30583_v33  ;;  %v13742_v57 = vpop.xlane.xlu1 %13741 }
 0x996   : > { %v24061_v44 = vpop.eup %24060  ;;  %v28994_v27 = vpop.f32.mrb[164].mxu1  ;;  %21113 = vmatprep.subr.bf16.mxu0 %v30340_v19  ;;  %v23191_v23 = vpack.i.bf16 %v14532_v6, %v28958_v11  ;;  %23190 = vxpose.xlu0.b32.start [1/2] (short) (narrow) %v23189_v14, 8  ;;  %v23048_v11 = vunpack.i.l.bf16 %v30577_v4  ;;  %v23084_v15 = vunpack.i.l.bf16 %v30582_v35 }
 0x997   : > { %v14003_v16 = vmul.f32 %v24061_v44, %v30576_v10  ;;  %v20866_v50 = vpop.f32.mrb[195].mxu0  ;;  %21098 = vmatmul.mubr.msk.bf16.vlgmr.msra.gmra.mrb[240].mxu1 %vm789_vm1, %v14080_v12  ;;  %v13709_v45 = vpop.xlane.xlu0 %13708  ;;  %v30585_v12 = vld [vmem:[#allocation19_spill] sm:$0xff] }
 0x998   : > { %v24063_v7 = vpop.eup %24062  ;;  %21108 = vmatpush3.bf16.msra.mxu1 %v9305_v46  ;;  %24072 = vrcp.f32 %v13709_v45  ;;  %v20871_v28 = vpop.f32.mrb[165].mxu1  ;;  %21109 = vmatprep.mubr.msk.bf16.mxu1 %vm24211_vm3, %v30340_v19  ;;  %v23087_v50 = vunpack.i.h.bf16 %v30582_v35  ;;  %v23092_v45 = vunpack.i.h.bf16 %v30583_v33 }
 0x999   : > { %v14081_v17 = vpack.c.bf16 %v14003_v16, %v14002_v41  ;;  %v29004_v54 = vpop.f32.mrb[166].mxu1  ;;  %21119 = vmatprep.subr.bf16.mxu1 %v30340_v19  ;;  %24074 = vrcp.f32 %v28937_v51  ;;  %v14004_v5 = vmul.f32 %v24063_v7, %v30579_v52  ;;  %v9307_v51 = vpack.c.bf16 %v23053_v13, %v23048_v11  ;;  %v30586_v7 = vld [vmem:[#allocation76_spill] sm:$0xff]  ;;  %v13748_v13 = vpop.xlane.xlu1 %13747 }
 0x99a   : > { %v24065_v22 = vpop.eup %24064  ;;  %v20872_v9 = vpop.f32.mrb[167].mxu1  ;;  %23192 = vxpose.xlu0.b32.end [2/2] (short) (narrow) %v23191_v23, 8  ;;  %v9309_v23 = vpack.c.bf16 %v23089_v20, %v23084_v15 }
 0x99b   : > { %v14005_v62 = vmul.f32 %v24065_v22, %v28562_v49  ;;  %v13715_v34 = vpop.xlane.xlu0 %13714  ;;  %v24067_v38 = vpop.eup %24066  ;;  %v23051_v49 = vunpack.i.h.bf16 %v30577_v4 }
 0x99c   : > { %21104 = vmatmul.mubr.msk.bf16.vlgmr.msra.gmra.mrb[16].mxu0 %vm789_vm1, %v14081_v17  ;;  %24076 = vrcp.f32 %v13715_v34  ;;  %v14006_v21 = vmul.f32 %v24067_v38, %v30580_v61  ;;  %v30587_v17 = vld [vmem:[#allocation165_spill] sm:$0xff]  ;;  %v30589_v34 = vld [vmem:[#allocation68_spill] sm:$0xff] }
 0x99d   : > { %21114 = vmatpush3.bf16.msra.mxu0 %v9306_v42  ;;  %v14082_v40 = vpack.c.bf16 %v14005_v62, %v14004_v5  ;;  %21115 = vmatprep.mubr.msk.bf16.mxu0 %vm24211_vm3, %v30340_v19  ;;  %24078 = vrcp.f32 %v28956_v43  ;;  %v9308_v39 = vpack.c.bf16 %v23056_v29, %v23051_v49  ;;  %v30588_v62 = vld [vmem:[#allocation67_spill] sm:$0xff]  ;;  %v23125_v38 = vunpack.i.l.bf16 %v30589_v34 }
 0x99e   : > { %v24069_v37 = vpop.eup %24068  ;;  %21125 = vmatprep.subr.bf16.mxu0 %v30340_v19  ;;  %v23120_v42 = vunpack.i.l.bf16 %v30588_v62  ;;  %v9310_v29 = vpack.c.bf16 %v23092_v45, %v23087_v50 }
 0x99f   : > { %v14007_v48 = vmul.f32 %v24069_v37, %v30581_v2  ;;  %21110 = vmatmul.mubr.msk.bf16.vlgmr.msra.gmra.mrb[244].mxu1 %vm789_vm1, %v14082_v40  ;;  %v13721_v59 = vpop.xlane.xlu0 %13720  ;;  %v24071_v63 = vpop.eup %24070  ;;  %v30590_v37 = vld [vmem:[#allocation87_spill] sm:$0xff] }
 0x9a0   : > { %21120 = vmatpush3.bf16.msra.mxu1 %v9307_v51  ;;  %24080 = vrcp.f32 %v13721_v59  ;;  %21121 = vmatprep.mubr.msk.bf16.mxu1 %vm24211_vm3, %v30340_v19  ;;  %v14008_v14 = vmul.f32 %v24071_v63, %v30584_v58  ;;  %v23123_v59 = vunpack.i.h.bf16 %v30588_v62  ;;  %v30591_v63 = vld [vmem:[#allocation159_spill] sm:$0xff] }
 0x9a1   : > { %v14083_v43 = vpack.c.bf16 %v14007_v48, %v14006_v21  ;;  %21131 = vmatprep.subr.bf16.mxu1 %v30340_v19  ;;  %24082 = vrcp.f32 %v28974_v0  ;;  %v9311_v48 = vpack.c.bf16 %v23125_v38, %v23120_v42 }
 0x9a2   : > { %v24073_v24 = vpop.eup %24072  ;;  %v29030_v32 = vpop.f32.mrb[196].mxu0 }
 0x9a3   : > { %v14009_v44 = vmul.f32 %v24073_v24, %v30585_v12  ;;  %v13727_v6 = vpop.xlane.xlu0 %13726  ;;  %v24075_v46 = vpop.eup %24074  ;;  %v30593_v12 = vld [vmem:[#allocation162_spill] sm:$0xff] }
 0x9a4   : > { %21116 = vmatmul.mubr.msk.bf16.vlgmr.msra.gmra.mrb[20].mxu0 %vm789_vm1, %v14083_v43  ;;  %24084 = vrcp.f32 %v13727_v6  ;;  %v20877_v25 = vpop.f32.mrb[197].mxu0  ;;  %v14010_v28 = vmul.f32 %v24075_v46, %v30586_v7  ;;  %v13754_v24 = vpop.xlane.xlu1 %13753 }
 0x9a5   : > { %21126 = vmatpush3.bf16.msra.mxu0 %v9308_v39  ;;  %v14084_v41 = vpack.c.bf16 %v14009_v44, %v14008_v14  ;;  %21127 = vmatprep.mubr.msk.bf16.mxu0 %vm24211_vm3, %v30340_v19  ;;  %24086 = vrcp.f32 %v28987_v8  ;;  %v29036_v10 = vpop.f32.mrb[198].mxu0  ;;  %v30592_v14 = vld [vmem:[#allocation64_spill] sm:$0xff]  ;;  %v23149_v44 = vunpack.i.l.bf16 %v30593_v12 }
 0x9a6   : > { %v24077_v0 = vpop.eup %24076  ;;  %v29038_v16 = vpop.f32.mrb[168].mxu1  ;;  %21137 = vmatprep.subr.bf16.mxu0 %v30340_v19 }
 0x9a7   : > { %v14011_v22 = vmul.f32 %v24077_v0, %v30587_v17  ;;  %v20878_v4 = vpop.f32.mrb[199].mxu0  ;;  %21122 = vmatmul.mubr.msk.bf16.vlgmr.msra.gmra.mrb[248].mxu1 %vm789_vm1, %v14084_v41  ;;  %v13733_v11 = vpop.xlane.xlu0 %13732  ;;  %v23147_v17 = vunpack.i.h.bf16 %v30592_v14 }
 0x9a8   : > { %v24079_v8 = vpop.eup %24078  ;;  %21132 = vmatpush3.bf16.msra.mxu1 %v9309_v23  ;;  %24088 = vrcp.f32 %v13733_v11  ;;  %v20883_v60 = vpop.f32.mrb[169].mxu1  ;;  %21133 = vmatprep.mubr.msk.bf16.mxu1 %vm24211_vm3, %v30340_v19 }
 0x9a9   : > { %24090 = vrcp.f32 %v13736_v31  ;;  %v14085_v9 = vpack.c.bf16 %v14011_v22, %v14010_v28  ;;  %v29048_v52 = vpop.f32.mrb[170].mxu1  ;;  %21143 = vmatprep.subr.bf16.mxu1 %v30340_v19  ;;  %v14012_v51 = vmul.f32 %v24079_v8, %v30590_v37  ;;  %v13760_v23 = vpop.xlane.xlu1 %13759  ;;  %v30595_v22 = vld [vmem:[#allocation30_spill] sm:$0xff]  ;;  %v23152_v60 = vunpack.i.h.bf16 %v30593_v12 }
 0x9aa   : > { %v24081_v5 = vpop.eup %24080  ;;  %v20884_v40 = vpop.f32.mrb[171].mxu1 }
 0x9ab   : > { %v14013_v49 = vmul.f32 %v24081_v5, %v28608_v18  ;;  %v13739_v61 = vpop.xlane.xlu0 %13738  ;;  %v24083_v21 = vpop.eup %24082  ;;  %v23128_v18 = vunpack.i.h.bf16 %v30589_v34 }
 0x9ac   : > { %21128 = vmatmul.mubr.msk.bf16.vlgmr.msra.gmra.mrb[24].mxu0 %vm789_vm1, %v14085_v9  ;;  %24092 = vrcp.f32 %v13739_v61  ;;  %v14014_v43 = vmul.f32 %v24083_v21, %v30591_v63  ;;  %v30598_v61 = vld [vmem:[#allocation98_spill] sm:$0xff] }
 0x9ad   : > { %21138 = vmatpush3.bf16.msra.mxu0 %v9310_v29  ;;  %v14086_v31 = vpack.c.bf16 %v14013_v49, %v14012_v51  ;;  %21139 = vmatprep.mubr.msk.bf16.mxu0 %vm24211_vm3, %v30340_v19  ;;  %24094 = vrcp.f32 %v13742_v57  ;;  %v23144_v57 = vunpack.i.l.bf16 %v30592_v14  ;;  %v9312_v25 = vpack.c.bf16 %v23128_v18, %v23123_v59  ;;  %v30597_v51 = vld [vmem:[#allocation155_spill] sm:$0xff] }
 0x9ae   : > { %v24085_v2 = vpop.eup %24084  ;;  %21149 = vmatprep.subr.bf16.mxu0 %v30340_v19 }
 0x9af   : > { %v14015_v35 = vmul.f32 %v24085_v2, %v28625_v30  ;;  %21134 = vmatmul.mubr.msk.bf16.vlgmr.msra.gmra.mrb[252].mxu1 %vm789_vm1, %v14086_v31  ;;  %v13745_v15 = vpop.xlane.xlu0 %13744  ;;  %v24087_v33 = vpop.eup %24086  ;;  %v30594_v30 = vld [vmem:[#allocation50_spill] sm:$0xff]  ;;  %v9313_v8 = vpack.c.bf16 %v23149_v44, %v23144_v57  ;;  %v30600_v44 = vld [vmem:[#allocation80_spill] sm:$0xff] }
 0x9b0   : > { %21144 = vmatpush3.bf16.msra.mxu1 %v9311_v48  ;;  %24096 = vrcp.f32 %v13745_v15  ;;  %21145 = vmatprep.mubr.msk.bf16.mxu1 %vm24211_vm3, %v30340_v19  ;;  %v14016_v6 = vmul.f32 %v24087_v33, %v30594_v30  ;;  %v13766_v31 = vpop.xlane.xlu1 %13765  ;;  %v9314_v48 = vpack.c.bf16 %v23152_v60, %v23147_v17  ;;  %v30601_v30 = vld [vmem:[#allocation65_spill] sm:$0xff]  ;;  %v30603_v60 = vld [vmem:[#allocation164_spill] sm:$0xff] }
 0x9b1   : > { %v14087_v20 = vpack.c.bf16 %v14015_v35, %v14014_v43  ;;  %21155 = vmatprep.subr.bf16.mxu1 %v30340_v19  ;;  %24098 = vrcp.f32 %v13748_v13  ;;  %v30599_v35 = vld [vmem:[#allocation168_spill] sm:$0xff] }
 0x9b2   : > { %v24089_v58 = vpop.eup %24088 }
 0x9b3   : > { %v24091_v39 = vpop.eup %24090  ;;  %v14017_v46 = vmul.f32 %v24089_v58, %v28638_v26  ;;  %v13751_v41 = vpop.xlane.xlu0 %13750 }
 0x9b4   : > { %v14705_v0 = vpop.f32.mrb[200].mxu0  ;;  %21140 = vmatmul.mubr.msk.bf16.vlgmr.msra.gmra.mrb[28].mxu0 %vm789_vm1, %v14087_v20  ;;  %24100 = vrcp.f32 %v13751_v41  ;;  %v14018_v26 = vmul.f32 %v24091_v39, %v30595_v22  ;;  %v13772_v14 = vpop.xlane.xlu1 %13771  ;;  %v23132_v39 = vunpack.i.l.bf16 %v30600_v44 }
 0x9b5   : > { %v14088_v50 = vpack.c.bf16 %v14017_v46, %v14016_v6  ;;  %v23198_v45 = vpack.i.bf16 %v14705_v0, %v29038_v16  ;;  %v20889_v7 = vpop.f32.mrb[201].mxu0  ;;  %21150 = vmatpush3.bf16.msra.mxu0 %v9312_v25  ;;  %21151 = vmatprep.mubr.msk.bf16.mxu0 %vm24211_vm3, %v30340_v19  ;;  %24102 = vrcp.f32 %v13754_v24  ;;  %v23137_v6 = vunpack.i.l.bf16 %v30601_v30  ;;  %v30602_v46 = vld [vmem:[#allocation170_spill] sm:$0xff] }
 0x9b6   : > { %v24093_v28 = vpop.eup %24092  ;;  %v14708_v4 = vpop.f32.mrb[202].mxu0  ;;  %21161 = vmatprep.subr.bf16.mxu0 %v30340_v19 }
 0x9b7   : > { %v14749_v11 = vpop.f32.mrb[172].mxu1  ;;  %v14019_v16 = vmul.f32 %v24093_v28, %v28645_v1  ;;  %v23200_v13 = vpack.i.bf16 %v14708_v4, %v29048_v52  ;;  %v20890_v9 = vpop.f32.mrb[203].mxu0  ;;  %23199 = vxpose.xlu1.b32.start [1/2] (short) (narrow) %v23198_v45, 8  ;;  %21146 = vmatmul.mubr.msk.bf16.vlgmr.msra.gmra.mrb[0].mxu1 %vm789_vm1, %v14088_v50  ;;  %v30596_v52 = vld [vmem:[#allocation152_spill] sm:$0xff] }
 0x9b8   : > { %v23207_v5 = vpack.i.bf16 %v14749_v11, %v28994_v27  ;;  %v13757_v62 = vpop.xlane.xlu0 %13756  ;;  %v24095_v42 = vpop.eup %24094  ;;  %21156 = vmatpush3.bf16.msra.mxu1 %v9313_v8  ;;  %21157 = vmatprep.mubr.msk.bf16.mxu1 %vm24211_vm3, %v30340_v19  ;;  %v23096_v37 = vunpack.i.l.bf16 %v30596_v52  ;;  %v23101_v27 = vunpack.i.l.bf16 %v30597_v51  ;;  %v9317_v11 = vpack.c.bf16 %v23137_v6, %v23132_v39 }
 0x9b9   : > { %24104 = vrcp.f32 %v13757_v62  ;;  %v20895_v34 = vpop.f32.mrb[173].mxu1  ;;  %v14089_v38 = vpack.c.bf16 %v14019_v16, %v14018_v26  ;;  %21167 = vmatprep.subr.bf16.mxu1 %v30340_v19  ;;  %v14020_v21 = vmul.f32 %v24095_v42, %v30598_v61  ;;  %v23140_v8 = vunpack.i.h.bf16 %v30601_v30 }
 0x9ba   : > { %v14752_v40 = vpop.f32.mrb[174].mxu1  ;;  %23208 = vxpose.xlu0.b32.start [1/2] (short) (narrow) %v23207_v5, 8  ;;  %v24097_v1 = vpop.eup %24096  ;;  %24106 = vrcp.f32 %v13760_v23  ;;  %v9315_v24 = vpack.c.bf16 %v23101_v27, %v23096_v37  ;;  %v30605_v27 = vld [vmem:[#allocation21_spill] sm:$0xff] }
 0x9bb   : > { %v23209_v49 = vpack.i.bf16 %v14752_v40, %v29004_v54  ;;  %v20896_v29 = vpop.f32.mrb[175].mxu1  ;;  %v14021_v2 = vmul.f32 %v24097_v1, %v28652_v3  ;;  %23201 = vxpose.xlu1.b32.end [2/2] (short) (narrow) %v23200_v13, 8  ;;  %v24099_v18 = vpop.eup %24098  ;;  %v23099_v3 = vunpack.i.h.bf16 %v30596_v52  ;;  %v23104_v54 = vunpack.i.h.bf16 %v30597_v51 }
 0x9bc   : > { %v13763_v59 = vpop.xlane.xlu0 %13762  ;;  %21152 = vmatmul.mubr.msk.bf16.vlgmr.msra.gmra.mrb[32].mxu0 %vm789_vm1, %v14089_v38  ;;  %v14022_v15 = vmul.f32 %v24099_v18, %v30599_v35  ;;  %v30604_v38 = vld [vmem:[#allocation32_spill] sm:$0xff] }
 0x9bd   : > { %24108 = vrcp.f32 %v13763_v59  ;;  %v14090_v63 = vpack.c.bf16 %v14021_v2, %v14020_v21  ;;  %21162 = vmatpush3.bf16.msra.mxu0 %v9314_v48  ;;  %21163 = vmatprep.mubr.msk.bf16.mxu0 %vm24211_vm3, %v30340_v19  ;;  %v9316_v0 = vpack.c.bf16 %v23104_v54, %v23099_v3 }
 0x9be   : > { %23210 = vxpose.xlu0.b32.end [2/2] (short) (narrow) %v23209_v49, 8  ;;  %v24101_v43 = vpop.eup %24100  ;;  %24110 = vrcp.f32 %v13766_v31  ;;  %21173 = vmatprep.subr.bf16.mxu0 %v30340_v19 }
 0x9bf   : > { %v14023_v33 = vmul.f32 %v24101_v43, %v28668_v47  ;;  %21158 = vmatmul.mubr.msk.bf16.vlgmr.msra.gmra.mrb[4].mxu1 %vm789_vm1, %v14090_v63  ;;  %v24103_v58 = vpop.eup %24102 }
 0x9c0   : > { %v13769_v20 = vpop.xlane.xlu0 %13768  ;;  %21168 = vmatpush3.bf16.msra.mxu1 %v9315_v24  ;;  %21169 = vmatprep.mubr.msk.bf16.mxu1 %vm24211_vm3, %v30340_v19  ;;  %v14024_v47 = vmul.f32 %v24103_v58, %v30602_v46 }
 0x9c1   : > { %24112 = vrcp.f32 %v13769_v20  ;;  %v14091_v57 = vpack.c.bf16 %v14023_v33, %v14022_v15  ;;  %21179 = vmatprep.subr.bf16.mxu1 %v30340_v19 }
 0x9c2   : > { %v14793_v41 = vpop.f32.mrb[204].mxu0  ;;  %24114 = vrcp.f32 %v13772_v14 }
 0x9c3   : > { %v24105_v12 = vpop.eup %24104  ;;  %v23216_v50 = vpack.i.bf16 %v14793_v41, %v29030_v32  ;;  %v20901_v45 = vpop.f32.mrb[205].mxu0  ;;  %v23135_v32 = vunpack.i.h.bf16 %v30600_v44 }
 0x9c4   : > { %v14025_v25 = vmul.f32 %v24105_v12, %v28680_v55  ;;  %v24107_v23 = vpop.eup %24106  ;;  %21164 = vmatmul.mubr.msk.bf16.vlgmr.msra.gmra.mrb[36].mxu0 %vm789_vm1, %v14091_v57  ;;  %v14796_v28 = vpop.f32.mrb[206].mxu0 }
 0x9c5   : > { %21174 = vmatpush3.bf16.msra.mxu0 %v9316_v0  ;;  %v13775_v17 = vpop.xlane.xlu0 %13774  ;;  %21175 = vmatprep.mubr.msk.bf16.mxu0 %vm24211_vm3, %v30340_v19  ;;  %v23218_v26 = vpack.i.bf16 %v14796_v28, %v29036_v10  ;;  %v20902_v55 = vpop.f32.mrb[207].mxu0  ;;  %v14026_v16 = vmul.f32 %v24107_v23, %v30603_v60  ;;  %v9318_v52 = vpack.c.bf16 %v23140_v8, %v23135_v32 }
 0x9c6   : > { %v14092_v7 = vpack.c.bf16 %v14025_v25, %v14024_v47  ;;  %24116 = vrcp.f32 %v13775_v17  ;;  %23217 = vxpose.xlu1.b32.start [1/2] (short) (narrow) %v23216_v50, 8  ;;  %v14837_v4 = vpop.f32.mrb[176].mxu1  ;;  %21185 = vmatprep.subr.bf16.mxu0 %v30340_v19 }
 0x9c7   : > { %v24109_v22 = vpop.eup %24108  ;;  %v20907_v9 = vpop.f32.mrb[177].mxu1 }
 0x9c8   : > { %v14027_v13 = vmul.f32 %v24109_v22, %v28685_v53  ;;  %21170 = vmatmul.mubr.msk.bf16.vlgmr.msra.gmra.mrb[8].mxu1 %vm789_vm1, %v14092_v7  ;;  %v24111_v5 = vpop.eup %24110  ;;  %v14840_v10 = vpop.f32.mrb[178].mxu1 }
 0x9c9   : > { %21180 = vmatpush3.bf16.msra.mxu1 %v9317_v11  ;;  %21181 = vmatprep.mubr.msk.bf16.mxu1 %vm24211_vm3, %v30340_v19  ;;  %v20908_v42 = vpop.f32.mrb[179].mxu1  ;;  %v14028_v40 = vmul.f32 %v24111_v5, %v30604_v38 }
 0x9ca   : > { %v14093_v62 = vpack.c.bf16 %v14027_v13, %v14026_v16  ;;  %23219 = vxpose.xlu1.b32.end [2/2] (short) (narrow) %v23218_v26, 8 }
 0x9cb   : > { %v24113_v34 = vpop.eup %24112 }
 0x9cc   : > { %v14029_v1 = vmul.f32 %v24113_v34, %v28694_v56  ;;  %21176 = vmatmul.mubr.msk.bf16.vlgmr.msra.gmra.mrb[40].mxu0 %vm789_vm1, %v14093_v62  ;;  %v24115_v37 = vpop.eup %24114 }
 0x9cd   : > { %21186 = vmatpush3.bf16.msra.mxu0 %v9318_v52  ;;  %21187 = vmatprep.mubr.msk.bf16.mxu0 %vm24211_vm3, %v30340_v19  ;;  %v14030_v49 = vmul.f32 %v24115_v37, %v30605_v27 }
 0x9ce   : > { %v14094_v53 = vpack.c.bf16 %v14029_v1, %v14028_v40 }
 0x9d0   : > { %21182 = vmatmul.mubr.msk.bf16.vlgmr.msra.gmra.mrb[12].mxu1 %vm789_vm1, %v14094_v53  ;;  %v24117_v51 = vpop.eup %24116 }
 0x9d1   : > { %v14031_v29 = vmul.f32 %v24117_v51, %v28716_v36 }
 0x9d2   : > { %v14881_v21 = vpop.f32.mrb[208].mxu0 }
 0x9d3   : > { %v14095_v61 = vpack.c.bf16 %v14031_v29, %v14030_v49  ;;  %v20913_v31 = vpop.f32.mrb[209].mxu0 }
 0x9d4   : > { %v14884_v56 = vpop.f32.mrb[210].mxu0 }
 0x9d5   : > { %21188 = vmatmul.mubr.msk.bf16.vlgmr.msra.gmra.mrb[44].mxu0 %vm789_vm1, %v14095_v61  ;;  %v20914_v2 = vpop.f32.mrb[211].mxu0 }
 0x9d6   : > { %v14925_v48 = vpop.f32.mrb[180].mxu1  ;;  %v23157_v18 = vpop.trf.xlu1 }
 0x9d7   : > { %v20919_v59 = vpop.f32.mrb[181].mxu1  ;;  %v23161_v13 = vunpack.i.h.bf16 %v23157_v18 }
 0x9d8   : > { %v14928_v63 = vpop.f32.mrb[182].mxu1 }
 0x9d9   : > { %v20920_v19 = vpop.f32.mrb[183].mxu1 }
 0x9e2   : > { %v14969_v43 = vpop.f32.mrb[212].mxu0 }
 0x9e3   : > { %v20925_v24 = vpop.f32.mrb[213].mxu0 }
 0x9e4   : > { %v14972_v3 = vpop.f32.mrb[214].mxu0 }
 0x9e5   : > { %v20926_v54 = vpop.f32.mrb[215].mxu0 }
 0x9e6   : > { %v15013_v35 = vpop.f32.mrb[184].mxu1  ;;  %v23166_v36 = vpop.trf.xlu0 }
 0x9e7   : > { %v23225_v15 = vpack.i.bf16 %v15013_v35, %v14837_v4  ;;  %v20931_v33 = vpop.f32.mrb[185].mxu1  ;;  %v23158_v4 = vunpack.i.l.bf16 %v23157_v18  ;;  %v23170_v1 = vunpack.i.h.bf16 %v23166_v36 }
 0x9e8   : > { %v15016_v20 = vpop.f32.mrb[186].mxu1 }
 0x9e9   : > { %v23227_v58 = vpack.i.bf16 %v15016_v20, %v14840_v10  ;;  %23226 = vxpose.xlu0.b32.start [1/2] (short) (narrow) %v23225_v15, 8  ;;  %v20932_v14 = vpop.f32.mrb[187].mxu1  ;;  %v23167_v10 = vunpack.i.l.bf16 %v23166_v36 }
 0x9ed   : > { %23228 = vxpose.xlu0.b32.end [2/2] (short) (narrow) %v23227_v58, 8 }
 0x9f2   : > { %v15057_v57 = vpop.f32.mrb[216].mxu0 }
 0x9f3   : > { %v23234_v12 = vpack.i.bf16 %v15057_v57, %v14881_v21  ;;  %v20937_v44 = vpop.f32.mrb[217].mxu0 }
 0x9f4   : > { %v15060_v39 = vpop.f32.mrb[218].mxu0 }
 0x9f5   : > { %v23236_v30 = vpack.i.bf16 %v15060_v39, %v14884_v56  ;;  %v20938_v6 = vpop.f32.mrb[219].mxu0  ;;  %23235 = vxpose.xlu1.b32.start [1/2] (short) (narrow) %v23234_v12, 8 }
 0x9f6   : > { %v15101_v46 = vpop.f32.mrb[188].mxu1  ;;  %v23175_v41 = vpop.trf.xlu0 }
 0x9f7   : > { %v23243_v47 = vpack.i.bf16 %v15101_v46, %v14925_v48  ;;  %v20943_v25 = vpop.f32.mrb[189].mxu1  ;;  %v23176_v11 = vunpack.i.l.bf16 %v23175_v41  ;;  %v23179_v9 = vunpack.i.h.bf16 %v23175_v41 }
 0x9f8   : > { %v15104_v0 = vpop.f32.mrb[190].mxu1 }
 0x9f9   : > { %v23245_v23 = vpack.i.bf16 %v15104_v0, %v14928_v63  ;;  %23244 = vxpose.xlu0.b32.start [1/2] (short) (narrow) %v23243_v47, 8  ;;  %v20944_v50 = vpop.f32.mrb[191].mxu1  ;;  %23237 = vxpose.xlu1.b32.end [2/2] (short) (narrow) %v23236_v30, 8  ;;  %v23261_v5 = vpack.i.bf16 %v23176_v11, %v23158_v4  ;;  %v23263_v42 = vpack.i.bf16 %v23179_v9, %v23161_v13 }
 0x9fd   : > { %23246 = vxpose.xlu0.b32.end [2/2] (short) (narrow) %v23245_v23, 8 }
 0xa02   : > { %v15145_v45 = vpop.f32.mrb[220].mxu0 }
 0xa03   : > { %v23252_v7 = vpack.i.bf16 %v15145_v45, %v14969_v43  ;;  %v20949_v28 = vpop.f32.mrb[221].mxu0 }
 0xa04   : > { %v15148_v17 = vpop.f32.mrb[222].mxu0 }
 0xa05   : > { %v23254_v22 = vpack.i.bf16 %v15148_v17, %v14972_v3  ;;  %v20950_v26 = vpop.f32.mrb[223].mxu0  ;;  %23253 = vxpose.xlu1.b32.start [1/2] (short) (narrow) %v23252_v7, 8  ;;  %v23604_v17 = vld [vmem:[%s29298_s6] sm:$0xff]  }
 0xa06   : > { %v15189_v55 = vpop.f32.mrb[192].mxu1  ;;  %v23184_v8 = vpop.trf.xlu1  ;;  %21191 = vmatprep.subr.bf16.mxu1 %v23604_v17 }
 0xa07   : > { %v20955_v32 = vpop.f32.mrb[193].mxu1  ;;  %v23185_v62 = vunpack.i.l.bf16 %v23184_v8  ;;  %v23188_v37 = vunpack.i.h.bf16 %v23184_v8  ;;  %21192 = vmatpush3.bf16.msra.mxu1 %v23604_v17 }
 0xa08   : > { %v15192_v60 = vpop.f32.mrb[194].mxu1 }
 0xa09   : > { %v20956_v16 = vpop.f32.mrb[195].mxu1  ;;  %23255 = vxpose.xlu1.b32.end [2/2] (short) (narrow) %v23254_v22, 8  ;;  %v23265_v51 = vpack.i.bf16 %v23185_v62, %v23167_v10  ;;  %v23267_v61 = vpack.i.bf16 %v23188_v37, %v23170_v1  ;;  %v23605_v22 = vld [vmem:[%s29298_s6 + $0x8] sm:$0xff]  }
 0xa0a   : > { %21193 = vmatprep.subr.bf16.mxu1 %v23605_v22 }
 0xa0b   : > { %21194 = vmatpush3.bf16.msra.mxu1 %v23605_v22 }
 0xa0d   : > { %23262 = vxpose.xlu1.b32.start [1/4] (short) (narrow) %v23261_v5, 16 }
 0xa0f   : > { %v15233_v34 = vpop.f32.mrb[224].mxu0 }
 0xa10   : > { %v20961_v38 = vpop.f32.mrb[225].mxu0 }
 0xa11   : > { %v15236_v40 = vpop.f32.mrb[226].mxu0  ;;  %23264 = vxpose.xlu1.b32.cont [2/4] (short) (narrow) %v23263_v42, 16 }
 0xa12   : > { %v20962_v52 = vpop.f32.mrb[227].mxu0  ;;  %v15277_v53 = vpop.f32.mrb[196].mxu1 }
 0xa13   : > { %v20967_v27 = vpop.f32.mrb[197].mxu1 }
 0xa14   : > { %v15280_v49 = vpop.f32.mrb[198].mxu1 }
 0xa15   : > { %v20968_v29 = vpop.f32.mrb[199].mxu1  ;;  %23266 = vxpose.xlu1.b32.cont [3/4] (short) (narrow) %v23265_v51, 16 }
 0xa16   : > { %v29129_v31 = vpop.trf.xlu0 }
 0xa17   : > { %v15321_v21 = vpop.f32.mrb[228].mxu0  ;;  %v23194_v8 = vunpack.i.l.bf16 %v29129_v31  ;;  %v23197_v16 = vunpack.i.h.bf16 %v29129_v31 }
 0xa18   : > { %v20973_v56 = vpop.f32.mrb[229].mxu0 }
 0xa19   : > { %v15324_v2 = vpop.f32.mrb[230].mxu0  ;;  %23268 = vxpose.xlu1.b32.end [4/4] (short) (narrow) %v23267_v61, 16 }
 0xa1a   : > { %v20974_v48 = vpop.f32.mrb[231].mxu0  ;;  %v15365_v59 = vpop.f32.mrb[200].mxu1 }
 0xa1b   : > { %v23279_v18 = vpack.i.bf16 %v15365_v59, %v15189_v55  ;;  %v20979_v63 = vpop.f32.mrb[201].mxu1 }
 0xa1c   : > { %v15368_v19 = vpop.f32.mrb[202].mxu1 }
 0xa1d   : > { %v23281_v43 = vpack.i.bf16 %v15368_v19, %v15192_v60  ;;  %23280 = vxpose.xlu0.b32.start [1/2] (short) (narrow) %v23279_v18, 8  ;;  %v20980_v24 = vpop.f32.mrb[203].mxu1 }
 0xa1f   : > { %v15409_v3 = vpop.f32.mrb[232].mxu0 }
 0xa20   : > { %v23288_v54 = vpack.i.bf16 %v15409_v3, %v15233_v34  ;;  %v20985_v35 = vpop.f32.mrb[233].mxu0 }
 0xa21   : > { %v15412_v15 = vpop.f32.mrb[234].mxu0  ;;  %23282 = vxpose.xlu0.b32.end [2/2] (short) (narrow) %v23281_v43, 8 }
 0xa22   : > { %v23290_v33 = vpack.i.bf16 %v15412_v15, %v15236_v40  ;;  %v20986_v36 = vpop.f32.mrb[235].mxu0  ;;  %23289 = vxpose.xlu1.b32.start [1/2] (short) (narrow) %v23288_v54, 8  ;;  %v15453_v20 = vpop.f32.mrb[204].mxu1 }
 0xa23   : > { %v23297_v58 = vpack.i.bf16 %v15453_v20, %v15277_v53  ;;  %v20991_v14 = vpop.f32.mrb[205].mxu1 }
 0xa24   : > { %v15456_v57 = vpop.f32.mrb[206].mxu1 }
 0xa25   : > { %v23299_v12 = vpack.i.bf16 %v15456_v57, %v15280_v49  ;;  %23298 = vxpose.xlu0.b32.start [1/2] (short) (narrow) %v23297_v58, 8  ;;  %v20992_v44 = vpop.f32.mrb[207].mxu1 }
 0xa26   : > { %23291 = vxpose.xlu1.b32.end [2/2] (short) (narrow) %v23290_v33, 8 }
 0xa27   : > { %v15497_v39 = vpop.f32.mrb[236].mxu0 }
 0xa28   : > { %v23306_v30 = vpack.i.bf16 %v15497_v39, %v15321_v21  ;;  %v20997_v6 = vpop.f32.mrb[237].mxu0 }
 0xa29   : > { %v15500_v46 = vpop.f32.mrb[238].mxu0  ;;  %23300 = vxpose.xlu0.b32.end [2/2] (short) (narrow) %v23299_v12, 8 }
 0xa2a   : > { %v23308_v47 = vpack.i.bf16 %v15500_v46, %v15324_v2  ;;  %v20998_v25 = vpop.f32.mrb[239].mxu0  ;;  %23307 = vxpose.xlu1.b32.start [1/2] (short) (narrow) %v23306_v30, 8  ;;  %v15541_v41 = vpop.f32.mrb[208].mxu1 }
 0xa2b   : > { %v21003_v0 = vpop.f32.mrb[209].mxu1 }
 0xa2c   : > { %v15544_v23 = vpop.f32.mrb[210].mxu1 }
 0xa2d   : > { %v21004_v50 = vpop.f32.mrb[211].mxu1 }
 0xa2e   : > { %23309 = vxpose.xlu1.b32.end [2/2] (short) (narrow) %v23308_v47, 8 }
 0xa2f   : > { %v29131_v45 = vpop.f32.mrb[240].mxu0 }
 0xa30   : > { %v21009_v7 = vpop.f32.mrb[241].mxu0 }
 0xa31   : > { %v29133_v28 = vpop.f32.mrb[242].mxu0 }
 0xa32   : > { %v21010_v26 = vpop.f32.mrb[243].mxu0  ;;  %v15629_v55 = vpop.f32.mrb[212].mxu1 }
 0xa33   : > { %v21015_v4 = vpop.f32.mrb[213].mxu1 }
 0xa34   : > { %v15632_v11 = vpop.f32.mrb[214].mxu1 }
 0xa35   : > { %v21016_v32 = vpop.f32.mrb[215].mxu1 }
 0xa37   : > { %v15673_v60 = vpop.f32.mrb[244].mxu0  ;;  %v23202_v13 = vpop.trf.xlu1 }
 0xa38   : > { %v21021_v9 = vpop.f32.mrb[245].mxu0  ;;  %v23206_v5 = vunpack.i.h.bf16 %v23202_v13  ;;  %v23203_v10 = vunpack.i.l.bf16 %v23202_v13 }
 0xa39   : > { %v15676_v62 = vpop.f32.mrb[246].mxu0 }
 0xa3a   : > { %v23211_v42 = vpop.trf.xlu0  ;;  %v21022_v34 = vpop.f32.mrb[247].mxu0  ;;  %v23315_v40 = vpack.i.bf16 %v23203_v10, %v23194_v8  ;;  %v23317_v37 = vpack.i.bf16 %v23206_v5, %v23197_v16 }
 0xa3b   : > { %v15717_v38 = vpop.f32.mrb[216].mxu1 }
 0xa3c   : > { %v23333_v1 = vpack.i.bf16 %v15717_v38, %v15541_v41  ;;  %v21027_v52 = vpop.f32.mrb[217].mxu1  ;;  %23316 = vxpose.xlu1.b32.start [1/4] (short) (narrow) %v23315_v40, 16 }
 0xa3d   : > { %v15720_v53 = vpop.f32.mrb[218].mxu1 }
 0xa3e   : > { %v23335_v51 = vpack.i.bf16 %v15720_v53, %v15544_v23  ;;  %23334 = vxpose.xlu0.b32.start [1/2] (short) (narrow) %v23333_v1, 8  ;;  %v21028_v27 = vpop.f32.mrb[219].mxu1 }
 0xa3f   : > { %v15761_v49 = vpop.f32.mrb[248].mxu0 }
 0xa40   : > { %v23342_v29 = vpack.i.bf16 %v15761_v49, %v29131_v45  ;;  %v21033_v61 = vpop.f32.mrb[249].mxu0  ;;  %23318 = vxpose.xlu1.b32.cont [2/4] (short) (narrow) %v23317_v37, 16 }
 0xa41   : > { %v15764_v21 = vpop.f32.mrb[250].mxu0 }
 0xa42   : > { %23336 = vxpose.xlu0.b32.end [2/2] (short) (narrow) %v23335_v51, 8  ;;  %v23344_v31 = vpack.i.bf16 %v15764_v21, %v29133_v28  ;;  %v21034_v56 = vpop.f32.mrb[251].mxu0  ;;  %v15805_v2 = vpop.f32.mrb[220].mxu1 }
 0xa43   : > { %v23351_v48 = vpack.i.bf16 %v15805_v2, %v15629_v55  ;;  %v21039_v59 = vpop.f32.mrb[221].mxu1 }
 0xa44   : > { %v15808_v18 = vpop.f32.mrb[222].mxu1  ;;  %23320 = vxpose.xlu1.b32.cont [3/4] (short) (narrow) %v23211_v42, 16 }
 0xa45   : > { %v23353_v63 = vpack.i.bf16 %v15808_v18, %v15632_v11  ;;  %v21040_v19 = vpop.f32.mrb[223].mxu1 }
 0xa46   : > { %23352 = vxpose.xlu0.b32.start [1/2] (short) (narrow) %v23351_v48, 8  ;;  %v23220_v43 = vpop.trf.xlu1 }
 0xa47   : > { %v15849_v24 = vpop.f32.mrb[252].mxu0 }
 0xa48   : > { %v23360_v3 = vpack.i.bf16 %v15849_v24, %v15673_v60  ;;  %v21045_v54 = vpop.f32.mrb[253].mxu0  ;;  %23322 = vxpose.xlu1.b32.end [4/4] (short) (narrow) %v23220_v43, 16 }
 0xa49   : > { %v15852_v35 = vpop.f32.mrb[254].mxu0 }
 0xa4a   : > { %23354 = vxpose.xlu0.b32.end [2/2] (short) (narrow) %v23353_v63, 8  ;;  %v23362_v15 = vpack.i.bf16 %v15852_v35, %v15676_v62  ;;  %v21046_v33 = vpop.f32.mrb[255].mxu0  ;;  %v15893_v36 = vpop.f32.mrb[224].mxu1 }
 0xa4b   : > { %v21051_v20 = vpop.f32.mrb[225].mxu1 }
 0xa4c   : > { %v15896_v58 = vpop.f32.mrb[226].mxu1  ;;  %23343 = vxpose.xlu1.b32.start [1/2] (short) (narrow) %v23342_v29, 8 }
 0xa4d   : > { %v21052_v14 = vpop.f32.mrb[227].mxu1 }
 0xa4f   : > { %v15937_v57 = vpop.f32.mrb[0].mxu0 }
 0xa50   : > { %v21057_v12 = vpop.f32.mrb[1].mxu0  ;;  %23345 = vxpose.xlu1.b32.end [2/2] (short) (narrow) %v23344_v31, 8 }
 0xa51   : > { %v15940_v44 = vpop.f32.mrb[2].mxu0 }
 0xa52   : > { %v21058_v39 = vpop.f32.mrb[3].mxu0  ;;  %v15981_v30 = vpop.f32.mrb[228].mxu1 }
 0xa53   : > { %v21063_v6 = vpop.f32.mrb[229].mxu1 }
 0xa54   : > { %v15984_v46 = vpop.f32.mrb[230].mxu1  ;;  %23361 = vxpose.xlu1.b32.start [1/2] (short) (narrow) %v23360_v3, 8 }
 0xa55   : > { %v21064_v47 = vpop.f32.mrb[231].mxu1 }
 0xa57   : > { %v29145_v25 = vpop.f32.mrb[4].mxu0 }
 0xa58   : > { %v21069_v41 = vpop.f32.mrb[5].mxu0  ;;  %23363 = vxpose.xlu1.b32.end [2/2] (short) (narrow) %v23362_v15, 8 }
 0xa59   : > { %v29147_v0 = vpop.f32.mrb[6].mxu0 }
 0xa5a   : > { %v21070_v23 = vpop.f32.mrb[7].mxu0  ;;  %v16069_v50 = vpop.f32.mrb[232].mxu1 }
 0xa5b   : > { %v23387_v45 = vpack.i.bf16 %v16069_v50, %v15893_v36  ;;  %v21075_v7 = vpop.f32.mrb[233].mxu1 }
 0xa5c   : > { %v16072_v28 = vpop.f32.mrb[234].mxu1 }
 0xa5d   : > { %v23389_v17 = vpack.i.bf16 %v16072_v28, %v15896_v58  ;;  %23388 = vxpose.xlu0.b32.start [1/2] (short) (narrow) %v23387_v45, 8  ;;  %v21076_v22 = vpop.f32.mrb[235].mxu1 }
 0xa5f   : > { %v16113_v26 = vpop.f32.mrb[8].mxu0 }
 0xa60   : > { %v23396_v55 = vpack.i.bf16 %v16113_v26, %v15937_v57  ;;  %v21081_v4 = vpop.f32.mrb[9].mxu0 }
 0xa61   : > { %v16116_v11 = vpop.f32.mrb[10].mxu0  ;;  %23390 = vxpose.xlu0.b32.end [2/2] (short) (narrow) %v23389_v17, 8 }
 0xa62   : > { %v23398_v32 = vpack.i.bf16 %v16116_v11, %v15940_v44  ;;  %v21082_v8 = vpop.f32.mrb[11].mxu0  ;;  %v16157_v60 = vpop.f32.mrb[236].mxu1 }
 0xa63   : > { %v23405_v16 = vpack.i.bf16 %v16157_v60, %v15981_v30  ;;  %v21087_v13 = vpop.f32.mrb[237].mxu1 }
 0xa64   : > { %v16160_v9 = vpop.f32.mrb[238].mxu1 }
 0xa65   : > { %v23407_v5 = vpack.i.bf16 %v16160_v9, %v15984_v46  ;;  %23397 = vxpose.xlu0.b32.start [1/2] (short) (narrow) %v23396_v55, 8  ;;  %v21088_v10 = vpop.f32.mrb[239].mxu1 }
 0xa67   : > { %v29149_v62 = vpop.f32.mrb[12].mxu0 }
 0xa68   : > { %v23414_v42 = vpack.i.bf16 %v29149_v62, %v29145_v25  ;;  %v21093_v34 = vpop.f32.mrb[13].mxu0 }
 0xa69   : > { %v29153_v38 = vpop.f32.mrb[14].mxu0  ;;  %23399 = vxpose.xlu0.b32.end [2/2] (short) (narrow) %v23398_v32, 8  ;;  %v23229_v40 = vpop.trf.xlu0 }
 0xa6a   : > { %v23416_v1 = vpack.i.bf16 %v29153_v38, %v29147_v0  ;;  %v21094_v52 = vpop.f32.mrb[15].mxu0  ;;  %v16245_v53 = vpop.f32.mrb[240].mxu1  ;;  %23370 = vxpose.xlu1.b32.start [1/4] (short) (narrow) %v23229_v40, 16 }
 0xa6b   : > { %v21099_v37 = vpop.f32.mrb[241].mxu1 }
 0xa6c   : > { %v16248_v51 = vpop.f32.mrb[242].mxu1 }
 0xa6d   : > { %23406 = vxpose.xlu0.b32.start [1/2] (short) (narrow) %v23405_v16, 8  ;;  %v21100_v27 = vpop.f32.mrb[243].mxu1 }
 0xa6f   : > { %v16289_v49 = vpop.f32.mrb[16].mxu0 }
 0xa70   : > { %v21105_v29 = vpop.f32.mrb[17].mxu0 }
 0xa71   : > { %v16292_v61 = vpop.f32.mrb[18].mxu0  ;;  %23408 = vxpose.xlu0.b32.end [2/2] (short) (narrow) %v23407_v5, 8 }
 0xa72   : > { %v21106_v21 = vpop.f32.mrb[19].mxu0  ;;  %v16333_v31 = vpop.f32.mrb[244].mxu1 }
 0xa73   : > { %v21111_v56 = vpop.f32.mrb[245].mxu1 }
 0xa74   : > { %v16336_v2 = vpop.f32.mrb[246].mxu1 }
 0xa75   : > { %v21112_v48 = vpop.f32.mrb[247].mxu1  ;;  %v23238_v59 = vpop.trf.xlu1 }
 0xa76   : > { %23372 = vxpose.xlu1.b32.cont [2/4] (short) (narrow) %v23238_v59, 16 }
 0xa77   : > { %v16377_v18 = vpop.f32.mrb[20].mxu0 }
 0xa78   : > { %v21117_v63 = vpop.f32.mrb[21].mxu0 }
 0xa79   : > { %v29157_v19 = vpop.f32.mrb[22].mxu0  ;;  %v23247_v43 = vpop.trf.xlu0 }
 0xa7a   : > { %v21118_v24 = vpop.f32.mrb[23].mxu0  ;;  %v16421_v3 = vpop.f32.mrb[248].mxu1  ;;  %23374 = vxpose.xlu1.b32.cont [3/4] (short) (narrow) %v23247_v43, 16 }
 0xa7b   : > { %v23423_v54 = vpack.i.bf16 %v16421_v3, %v16245_v53  ;;  %v21123_v35 = vpop.f32.mrb[249].mxu1 }
 0xa7c   : > { %v16424_v15 = vpop.f32.mrb[250].mxu1 }
 0xa7d   : > { %v23425_v33 = vpack.i.bf16 %v16424_v15, %v16248_v51  ;;  %23424 = vxpose.xlu0.b32.start [1/2] (short) (narrow) %v23423_v54, 8  ;;  %v21124_v36 = vpop.f32.mrb[251].mxu1 }
 0xa7f   : > { %v16465_v20 = vpop.f32.mrb[24].mxu0 }
 0xa80   : > { %v23432_v58 = vpack.i.bf16 %v16465_v20, %v16289_v49  ;;  %v21129_v14 = vpop.f32.mrb[25].mxu0 }
 0xa81   : > { %v16468_v57 = vpop.f32.mrb[26].mxu0  ;;  %23426 = vxpose.xlu0.b32.end [2/2] (short) (narrow) %v23425_v33, 8 }
 0xa82   : > { %v23434_v12 = vpack.i.bf16 %v16468_v57, %v16292_v61  ;;  %v21130_v44 = vpop.f32.mrb[27].mxu0  ;;  %v16509_v39 = vpop.f32.mrb[252].mxu1 }
 0xa83   : > { %v23441_v30 = vpack.i.bf16 %v16509_v39, %v16333_v31  ;;  %v21135_v6 = vpop.f32.mrb[253].mxu1 }
 0xa84   : > { %v16512_v46 = vpop.f32.mrb[254].mxu1 }
 0xa85   : > { %v23443_v47 = vpack.i.bf16 %v16512_v46, %v16336_v2  ;;  %23433 = vxpose.xlu0.b32.start [1/2] (short) (narrow) %v23432_v58, 8  ;;  %v21136_v41 = vpop.f32.mrb[255].mxu1  ;;  %v23256_v23 = vpop.trf.xlu1 }
 0xa86   : > { %23376 = vxpose.xlu1.b32.end [4/4] (short) (narrow) %v23256_v23, 16 }
 0xa87   : > { %v16553_v50 = vpop.f32.mrb[28].mxu0 }
 0xa88   : > { %v23450_v45 = vpack.i.bf16 %v16553_v50, %v16377_v18  ;;  %v21141_v7 = vpop.f32.mrb[29].mxu0 }
 0xa89   : > { %v16556_v28 = vpop.f32.mrb[30].mxu0  ;;  %23435 = vxpose.xlu0.b32.end [2/2] (short) (narrow) %v23434_v12, 8 }
 0xa8a   : > { %v23452_v17 = vpack.i.bf16 %v16556_v28, %v29157_v19  ;;  %v21142_v22 = vpop.f32.mrb[31].mxu0  ;;  %v16597_v26 = vpop.f32.mrb[0].mxu1  ;;  %23415 = vxpose.xlu1.b32.start [1/2] (short) (narrow) %v23414_v42, 8 }
 0xa8b   : > { %v21147_v55 = vpop.f32.mrb[1].mxu1 }
 0xa8c   : > { %v16600_v4 = vpop.f32.mrb[2].mxu1 }
 0xa8d   : > { %23442 = vxpose.xlu0.b32.start [1/2] (short) (narrow) %v23441_v30, 8  ;;  %v21148_v11 = vpop.f32.mrb[3].mxu1  ;;  %v23269_v32 = vpop.trf.xlu1 }
 0xa8e   : > { %v23273_v5 = vunpack.i.h.bf16 %v23269_v32  ;;  %v23270_v10 = vunpack.i.l.bf16 %v23269_v32  ;;  %23417 = vxpose.xlu1.b32.end [2/2] (short) (narrow) %v23416_v1, 8 }
 0xa8f   : > { %v16641_v8 = vpop.f32.mrb[32].mxu0 }
 0xa90   : > { %v21153_v60 = vpop.f32.mrb[33].mxu0 }
 0xa91   : > { %v16644_v16 = vpop.f32.mrb[34].mxu0  ;;  %23444 = vxpose.xlu0.b32.end [2/2] (short) (narrow) %v23443_v47, 8  ;;  %v23274_v40 = vpop.trf.xlu1 }
 0xa92   : > { %v21154_v13 = vpop.f32.mrb[35].mxu0  ;;  %v16685_v9 = vpop.f32.mrb[4].mxu1  ;;  %v23278_v53 = vunpack.i.h.bf16 %v23274_v40  ;;  %v23275_v37 = vunpack.i.l.bf16 %v23274_v40  ;;  %23451 = vxpose.xlu1.b32.start [1/2] (short) (narrow) %v23450_v45, 8 }
 0xa93   : > { %v21159_v34 = vpop.f32.mrb[5].mxu1 }
 0xa94   : > { %v16688_v52 = vpop.f32.mrb[6].mxu1  ;;  %v19473_v27 = vpack.c.bf16 %v23278_v53, %v23273_v5  ;;  %v19472_v25 = vpack.c.bf16 %v23275_v37, %v23270_v10 }
 0xa95   : > { %v21160_v51 = vpop.f32.mrb[7].mxu1 }
 0xa96   : > { %21195 = vmatprep.mubr.msk.bf16.mxu1 %vm468_vm0, %v19472_v25  ;;  %23453 = vxpose.xlu1.b32.end [2/2] (short) (narrow) %v23452_v17, 8 }
 0xa97   : > { %v16729_v62 = vpop.f32.mrb[36].mxu0  ;;  %21196 = vmatmul.mubr.msk.bf16.vlgmr.msra.gmra.mrb[16].mxu1 %vm468_vm0, %v19473_v27 }
 0xa98   : > { %v21165_v42 = vpop.f32.mrb[37].mxu0 }
 0xa99   : > { %v16732_v49 = vpop.f32.mrb[38].mxu0 }
 0xa9a   : > { %v21166_v29 = vpop.f32.mrb[39].mxu0 }
 0xa9b   : > { %v16773_v61 = vpop.f32.mrb[8].mxu1 }
 0xa9c   : > { %v23459_v0 = vpack.i.bf16 %v16773_v61, %v16597_v26  ;;  %v21171_v38 = vpop.f32.mrb[9].mxu1 }
 0xa9d   : > { %v16776_v1 = vpop.f32.mrb[10].mxu1  ;;  %v23283_v56 = vpop.trf.xlu0 }
 0xa9e   : > { %v23461_v21 = vpack.i.bf16 %v16776_v1, %v16600_v4  ;;  %23460 = vxpose.xlu0.b32.start [1/2] (short) (narrow) %v23459_v0, 8  ;;  %v21172_v31 = vpop.f32.mrb[11].mxu1 }
 0xa9f   : > { %v16817_v2 = vpop.f32.mrb[40].mxu0 }
 0xaa0   : > { %v23468_v48 = vpack.i.bf16 %v16817_v2, %v16641_v8  ;;  %v21177_v59 = vpop.f32.mrb[41].mxu0 }
 0xaa1   : > { %v16820_v18 = vpop.f32.mrb[42].mxu0 }
 0xaa2   : > { %23462 = vxpose.xlu0.b32.end [2/2] (short) (narrow) %v23461_v21, 8  ;;  %v23470_v63 = vpack.i.bf16 %v16820_v18, %v16644_v16  ;;  %v21178_v19 = vpop.f32.mrb[43].mxu0  ;;  %v23292_v54 = vpop.trf.xlu1 }
 0xaa3   : > { %v16861_v43 = vpop.f32.mrb[12].mxu1  ;;  %v29180_v19 = vld [vmem:[%s29299_s7] ss:$0 sm:$0xff] }
 0xaa4   : > { %v23477_v24 = vpack.i.bf16 %v16861_v43, %v16685_v9  ;;  %v21183_v3 = vpop.f32.mrb[13].mxu1 }
 0xaa5   : > { %v16864_v35 = vpop.f32.mrb[14].mxu1  ;;  %v23301_v36 = vpop.trf.xlu0 }
 0xaa6   : > { %v23479_v15 = vpack.i.bf16 %v16864_v35, %v16688_v52  ;;  %23469 = vxpose.xlu0.b32.start [1/2] (short) (narrow) %v23468_v48, 8  ;;  %v21184_v33 = vpop.f32.mrb[15].mxu1 }
 0xaa8   : > { %v16905_v20 = vpop.f32.mrb[44].mxu0 }
 0xaa9   : > { %v23504_v58 = vpack.i.bf16 %v16905_v20, %v16729_v62  ;;  %v21189_v14 = vpop.f32.mrb[45].mxu0 }
 0xaaa   : > { %23471 = vxpose.xlu0.b32.end [2/2] (short) (narrow) %v23470_v63, 8  ;;  %v16908_v57 = vpop.f32.mrb[46].mxu0  ;;  %v23310_v12 = vpop.trf.xlu1 }
 0xaab   : > { %v23506_v44 = vpack.i.bf16 %v16908_v57, %v16732_v49  ;;  %v21190_v39 = vpop.f32.mrb[47].mxu0  ;;  %23505 = vxpose.xlu1.b32.start [1/2] (short) (narrow) %v23504_v58, 8 }
 0xaae   : > { %23478 = vxpose.xlu0.b32.start [1/2] (short) (narrow) %v23477_v24, 8 }
 0xaaf   : > { %23507 = vxpose.xlu1.b32.end [2/2] (short) (narrow) %v23506_v44, 8 }
 0xab2   : > { %23480 = vxpose.xlu0.b32.end [2/2] (short) (narrow) %v23479_v15, 8 }
 0xab6   : > { %23487 = vxpose.xlu0.b32.start [1/4] (short) (narrow) %v23283_v56, 16 }
 0xaba   : > { %23489 = vxpose.xlu0.b32.cont [2/4] (short) (narrow) %v23292_v54, 16 }
 0xabc   : > { %v23323_v6 = vpop.trf.xlu1 }
 0xabd   : > { %v23327_v46 = vunpack.i.h.bf16 %v23323_v6  ;;  %v23324_v47 = vunpack.i.l.bf16 %v23323_v6 }
 0xabe   : > { %v23337_v30 = vpop.trf.xlu0  ;;  %23491 = vxpose.xlu0.b32.cont [3/4] (short) (narrow) %v23301_v36, 16 }
 0xabf   : > { %23514 = vxpose.xlu1.b32.start [1/4] (short) (narrow) %v23337_v30, 16 }
 0xac0   : > { %v23328_v41 = vpop.trf.xlu1 }
 0xac1   : > { %v23332_v23 = vunpack.i.h.bf16 %v23328_v41  ;;  %v23329_v50 = vunpack.i.l.bf16 %v23328_v41 }
 0xac2   : > { %23493 = vxpose.xlu0.b32.end [4/4] (short) (narrow) %v23310_v12, 16 }
 0xac3   : > { %v19475_v7 = vpack.c.bf16 %v23332_v23, %v23327_v46  ;;  %v19474_v28 = vpack.c.bf16 %v23329_v50, %v23324_v47 }
 0xac5   : > { %21199 = vmatprep.mubr.msk.bf16.mxu1 %vm468_vm0, %v19474_v28 }
 0xac6   : > { %v23355_v45 = vpop.trf.xlu0  ;;  %21200 = vmatmul.mubr.msk.bf16.gmra.mrb[20].mxu1 %vm468_vm0, %v19475_v7 }
 0xacc   : > { %v23346_v17 = vpop.trf.xlu1 }
 0xacd   : > { %23516 = vxpose.xlu1.b32.cont [2/4] (short) (narrow) %v23346_v17, 16 }
 0xad1   : > { %23518 = vxpose.xlu1.b32.cont [3/4] (short) (narrow) %v23355_v45, 16 }
 0xad4   : > { %v23364_v22 = vpop.trf.xlu1 }
 0xad5   : > { %23520 = vxpose.xlu1.b32.end [4/4] (short) (narrow) %v23364_v22, 16 }
 0xadd   : > { %v23391_v26 = vpop.trf.xlu0 }
 0xade   : > { %23532 = vxpose.xlu0.b32.start [1/4] (short) (narrow) %v23391_v26, 16 }
 0xae5   : > { %v23400_v55 = vpop.trf.xlu0 }
 0xae6   : > { %23534 = vxpose.xlu0.b32.cont [2/4] (short) (narrow) %v23400_v55, 16 }
 0xaed   : > { %v23409_v4 = vpop.trf.xlu0 }
 0xaee   : > { %23536 = vxpose.xlu0.b32.cont [3/4] (short) (narrow) %v23409_v4, 16 }
 0xafa   : > { %v23377_v32 = vpop.trf.xlu1 }
 0xafb   : > { %v23381_v8 = vunpack.i.h.bf16 %v23377_v32  ;;  %v23378_v60 = vunpack.i.l.bf16 %v23377_v32 }
 0xafd   : > { %v23427_v11 = vpop.trf.xlu0 }
 0xafe   : > { %v23382_v16 = vpop.trf.xlu1  ;;  %23550 = vxpose.xlu1.b32.start [1/4] (short) (narrow) %v23427_v11, 16 }
 0xaff   : > { %v23386_v13 = vunpack.i.h.bf16 %v23382_v16  ;;  %v23383_v9 = vunpack.i.l.bf16 %v23382_v16 }
 0xb01   : > { %v19477_v10 = vpack.c.bf16 %v23386_v13, %v23381_v8  ;;  %v19476_v34 = vpack.c.bf16 %v23383_v9, %v23378_v60 }
 0xb03   : > { %21203 = vmatprep.mubr.msk.bf16.mxu1 %vm468_vm0, %v19476_v34 }
 0xb04   : > { %21204 = vmatmul.mubr.msk.bf16.gmra.mrb[24].mxu1 %vm468_vm0, %v19477_v10 }
 0xb05   : > { %v23436_v5 = vpop.trf.xlu0 }
 0xb06   : > { %23552 = vxpose.xlu1.b32.cont [2/4] (short) (narrow) %v23436_v5, 16 }
 0xb0a   : > { %v23418_v52 = vpop.trf.xlu1 }
 0xb0b   : > { %23538 = vxpose.xlu0.b32.end [4/4] (short) (narrow) %v23418_v52, 16 }
 0xb0d   : > { %v23445_v40 = vpop.trf.xlu0 }
 0xb0e   : > { %23554 = vxpose.xlu1.b32.cont [3/4] (short) (narrow) %v23445_v40, 16 }
 0xb12   : > { %v23454_v53 = vpop.trf.xlu1 }
 0xb13   : > { %23556 = vxpose.xlu1.b32.end [4/4] (short) (narrow) %v23454_v53, 16 }
 0xb1e   : > { %v23463_v37 = vpop.trf.xlu0 }
 0xb1f   : > { %23568 = vxpose.xlu0.b32.start [1/4] (short) (narrow) %v23463_v37, 16 }
 0xb26   : > { %v23472_v51 = vpop.trf.xlu0 }
 0xb27   : > { %23570 = vxpose.xlu0.b32.cont [2/4] (short) (narrow) %v23472_v51, 16 }
 0xb2b   : > { %v23508_v27 = vpop.trf.xlu1 }
 0xb2e   : > { %v23481_v25 = vpop.trf.xlu0 }
 0xb2f   : > { %23572 = vxpose.xlu0.b32.cont [3/4] (short) (narrow) %v23481_v25, 16 }
 0xb33   : > { %23574 = vxpose.xlu0.b32.end [4/4] (short) (narrow) %v23508_v27, 16 }
 0xb36   : > { %v23494_v62 = vpop.trf.xlu0 }
 0xb37   : > { %v23498_v42 = vunpack.i.h.bf16 %v23494_v62  ;;  %v23495_v49 = vunpack.i.l.bf16 %v23494_v62 }
 0xb3a   : > { %v23499_v29 = vpop.trf.xlu0 }
 0xb3b   : > { %v23503_v61 = vunpack.i.h.bf16 %v23499_v29  ;;  %v23500_v0 = vunpack.i.l.bf16 %v23499_v29 }
 0xb3d   : > { %v19479_v38 = vpack.c.bf16 %v23503_v61, %v23498_v42  ;;  %v19478_v1 = vpack.c.bf16 %v23500_v0, %v23495_v49 }
 0xb3f   : > { %21207 = vmatprep.mubr.msk.bf16.mxu1 %vm468_vm0, %v19478_v1 }
 0xb40   : > { %21208 = vmatmul.mubr.msk.bf16.gmra.mrb[28].mxu1 %vm468_vm0, %v19479_v38 }
 0xb49   : > { %v23521_v21 = vpop.trf.xlu1 }
 0xb4a   : > { %v23525_v31 = vunpack.i.h.bf16 %v23521_v21  ;;  %v23522_v56 = vunpack.i.l.bf16 %v23521_v21 }
 0xb4d   : > { %v23526_v2 = vpop.trf.xlu1 }
 0xb4e   : > { %v23530_v48 = vunpack.i.h.bf16 %v23526_v2  ;;  %v23527_v59 = vunpack.i.l.bf16 %v23526_v2 }
 0xb50   : > { %v19481_v18 = vpack.c.bf16 %v23530_v48, %v23525_v31  ;;  %v19480_v63 = vpack.c.bf16 %v23527_v59, %v23522_v56 }
 0xb52   : > { %21211 = vmatprep.mubr.msk.bf16.mxu1 %vm468_vm0, %v19480_v63 }
 0xb53   : > { %21212 = vmatmul.mubr.msk.bf16.gmra.mrb[32].mxu1 %vm468_vm0, %v19481_v18 }
 0xb6a   : > { %v21197_v43 = vpop.f32.mrb[16].mxu1 }
 0xb6b   : > { %v19602_v24 = vadd.f32 %v21197_v43, %v29180_v19  ;;  %v19593_v3 = vpop.f32.mrb[17].mxu1 }
 0xb6c   : > { %v19594_v54 = vadd.f32 %v29180_v19, %v19593_v3  ;;  %v21198_v35 = vpop.f32.mrb[18].mxu1 }
 0xb6d   : > { %19722 = vst.msk [vmem:[%s29185_s28 + $0x10] sm:$0xff] %vm468_vm0, %v19602_v24  ;;  %v19605_v15 = vadd.f32 %v21198_v35, %v29180_v19  ;;  %v19596_v33 = vpop.f32.mrb[19].mxu1 }
 0xb6e   : > { %19720 = vst.msk [vmem:[%s29185_s28] sm:$0xff] %vm468_vm0, %v19594_v54  ;;  %v19597_v36 = vadd.f32 %v29180_v19, %v19596_v33 }
 0xb6f   : > { %19723 = vst.msk [vmem:[%s29185_s28 + $0x18] sm:$0xff] %vm468_vm0, %v19605_v15 }
 0xb70   : > { %19721 = vst.msk [vmem:[%s29185_s28 + $0x8] sm:$0xff] %vm468_vm0, %v19597_v36 }
 0xb7f   : > { %v23539_v20 = vpop.trf.xlu0 }
 0xb80   : > { %v23543_v58 = vunpack.i.h.bf16 %v23539_v20  ;;  %v23540_v14 = vunpack.i.l.bf16 %v23539_v20 }
 0xb83   : > { %v23544_v57 = vpop.trf.xlu0 }
 0xb84   : > { %v23548_v12 = vunpack.i.h.bf16 %v23544_v57  ;;  %v23545_v44 = vunpack.i.l.bf16 %v23544_v57 }
 0xb86   : > { %v19483_v39 = vpack.c.bf16 %v23548_v12, %v23543_v58  ;;  %v19482_v30 = vpack.c.bf16 %v23545_v44, %v23540_v14 }
 0xb87   : > { %v23557_v6 = vpop.trf.xlu1 }
 0xb88   : > { %21215 = vmatprep.mubr.msk.bf16.mxu1 %vm468_vm0, %v19482_v30  ;;  %v23561_v46 = vunpack.i.h.bf16 %v23557_v6  ;;  %v23558_v47 = vunpack.i.l.bf16 %v23557_v6 }
 0xb89   : > { %21216 = vmatmul.mubr.msk.bf16.gmra.mrb[36].mxu1 %vm468_vm0, %v19483_v39 }
 0xb8b   : > { %v23562_v41 = vpop.trf.xlu1 }
 0xb8c   : > { %v23566_v23 = vunpack.i.h.bf16 %v23562_v41  ;;  %v23563_v50 = vunpack.i.l.bf16 %v23562_v41 }
 0xb8e   : > { %v19484_v45 = vpack.c.bf16 %v23563_v50, %v23558_v47  ;;  %v19485_v7 = vpack.c.bf16 %v23566_v23, %v23561_v46 }
 0xb90   : > { %21219 = vmatprep.mubr.msk.bf16.mxu1 %vm468_vm0, %v19484_v45 }
 0xb91   : > { %21220 = vmatmul.mubr.msk.bf16.gmra.mrb[40].mxu1 %vm468_vm0, %v19485_v7 }
 0xb99   : > { %v21201_v28 = vpop.f32.mrb[20].mxu1 }
 0xb9a   : > { %v19618_v17 = vadd.f32 %v21201_v28, %v29180_v19  ;;  %v19609_v22 = vpop.f32.mrb[21].mxu1 }
 0xb9b   : > { %v19610_v26 = vadd.f32 %v29180_v19, %v19609_v22  ;;  %v21202_v55 = vpop.f32.mrb[22].mxu1 }
 0xb9c   : > { %19726 = vst.msk [vmem:[%s29185_s28 + $0x30] sm:$0xff] %vm468_vm0, %v19618_v17  ;;  %v19621_v4 = vadd.f32 %v21202_v55, %v29180_v19  ;;  %v19612_v11 = vpop.f32.mrb[23].mxu1 }
 0xb9d   : > { %19724 = vst.msk [vmem:[%s29185_s28 + $0x20] sm:$0xff] %vm468_vm0, %v19610_v26  ;;  %v19613_v32 = vadd.f32 %v29180_v19, %v19612_v11 }
 0xb9e   : > { %19727 = vst.msk [vmem:[%s29185_s28 + $0x38] sm:$0xff] %vm468_vm0, %v19621_v4 }
 0xb9f   : > { %19725 = vst.msk [vmem:[%s29185_s28 + $0x28] sm:$0xff] %vm468_vm0, %v19613_v32 }
 0xba7   : > { %v23575_v8 = vpop.trf.xlu0 }
 0xba8   : > { %v23579_v60 = vunpack.i.h.bf16 %v23575_v8  ;;  %v23576_v16 = vunpack.i.l.bf16 %v23575_v8 }
 0xbab   : > { %v23580_v13 = vpop.trf.xlu0 }
 0xbac   : > { %v23584_v9 = vunpack.i.h.bf16 %v23580_v13  ;;  %v23581_v5 = vunpack.i.l.bf16 %v23580_v13 }
 0xbae   : > { %v19486_v10 = vpack.c.bf16 %v23581_v5, %v23576_v16  ;;  %v19487_v34 = vpack.c.bf16 %v23584_v9, %v23579_v60 }
 0xbb0   : > { %21223 = vmatprep.mubr.msk.bf16.mxu1 %vm468_vm0, %v19486_v10 }
 0xbb1   : > { %21224 = vmatmul.mubr.msk.bf16.gmra.mrb[44].mxu1 %vm468_vm0, %v19487_v34 }
 0xbd7   : > { %v21205_v40 = vpop.f32.mrb[24].mxu1 }
 0xbd8   : > { %v19634_v52 = vadd.f32 %v21205_v40, %v29180_v19  ;;  %v19625_v53 = vpop.f32.mrb[25].mxu1 }
 0xbd9   : > { %v19626_v37 = vadd.f32 %v29180_v19, %v19625_v53  ;;  %v21206_v51 = vpop.f32.mrb[26].mxu1 }
 0xbda   : > { %19730 = vst.msk [vmem:[%s29185_s28 + $0x50] sm:$0xff] %vm468_vm0, %v19634_v52  ;;  %v19637_v27 = vadd.f32 %v21206_v51, %v29180_v19  ;;  %v19628_v25 = vpop.f32.mrb[27].mxu1 }
 0xbdb   : > { %19728 = vst.msk [vmem:[%s29185_s28 + $0x40] sm:$0xff] %vm468_vm0, %v19626_v37  ;;  %v19629_v62 = vadd.f32 %v29180_v19, %v19628_v25 }
 0xbdc   : > { %19731 = vst.msk [vmem:[%s29185_s28 + $0x58] sm:$0xff] %vm468_vm0, %v19637_v27 }
 0xbdd   : > { %19729 = vst.msk [vmem:[%s29185_s28 + $0x48] sm:$0xff] %vm468_vm0, %v19629_v62 }
 0xc13   : > { %v21209_v42 = vpop.f32.mrb[28].mxu1 }
 0xc14   : > { %v19650_v49 = vadd.f32 %v21209_v42, %v29180_v19  ;;  %v19641_v29 = vpop.f32.mrb[29].mxu1 }
 0xc15   : > { %v19642_v61 = vadd.f32 %v29180_v19, %v19641_v29  ;;  %v21210_v0 = vpop.f32.mrb[30].mxu1 }
 0xc16   : > { %19734 = vst.msk [vmem:[%s29185_s28 + $0x70] sm:$0xff] %vm468_vm0, %v19650_v49  ;;  %v19653_v38 = vadd.f32 %v21210_v0, %v29180_v19  ;;  %v19644_v1 = vpop.f32.mrb[31].mxu1 }
 0xc17   : > { %19732 = vst.msk [vmem:[%s29185_s28 + $0x60] sm:$0xff] %vm468_vm0, %v19642_v61  ;;  %v19645_v21 = vadd.f32 %v29180_v19, %v19644_v1 }
 0xc18   : > { %19735 = vst.msk [vmem:[%s29185_s28 + $0x78] sm:$0xff] %vm468_vm0, %v19653_v38 }
 0xc19   : > { %19733 = vst.msk [vmem:[%s29185_s28 + $0x68] sm:$0xff] %vm468_vm0, %v19645_v21 }
 0xc26   : > { %v21213_v31 = vpop.f32.mrb[32].mxu1 }
 0xc27   : > { %v19666_v56 = vadd.f32 %v21213_v31, %v29180_v19  ;;  %v19657_v2 = vpop.f32.mrb[33].mxu1 }
 0xc28   : > { %v19658_v48 = vadd.f32 %v29180_v19, %v19657_v2  ;;  %v21214_v59 = vpop.f32.mrb[34].mxu1 }
 0xc29   : > { %19738 = vst.msk [vmem:[%s29185_s28 + $0x90] sm:$0xff] %vm468_vm0, %v19666_v56  ;;  %v19669_v18 = vadd.f32 %v21214_v59, %v29180_v19  ;;  %v19660_v63 = vpop.f32.mrb[35].mxu1 }
 0xc2a   : > { %19736 = vst.msk [vmem:[%s29185_s28 + $0x80] sm:$0xff] %vm468_vm0, %v19658_v48  ;;  %v19661_v43 = vadd.f32 %v29180_v19, %v19660_v63 }
 0xc2b   : > { %19739 = vst.msk [vmem:[%s29185_s28 + $0x98] sm:$0xff] %vm468_vm0, %v19669_v18 }
 0xc2c   : > { %19737 = vst.msk [vmem:[%s29185_s28 + $0x88] sm:$0xff] %vm468_vm0, %v19661_v43 }
 0xc5c   : > { %v21217_v24 = vpop.f32.mrb[36].mxu1 }
 0xc5d   : > { %v19682_v3 = vadd.f32 %v21217_v24, %v29180_v19  ;;  %v19673_v54 = vpop.f32.mrb[37].mxu1 }
 0xc5e   : > { %v19674_v35 = vadd.f32 %v29180_v19, %v19673_v54  ;;  %v21218_v15 = vpop.f32.mrb[38].mxu1 }
 0xc5f   : > { %19742 = vst.msk [vmem:[%s29185_s28 + $0xb0] sm:$0xff] %vm468_vm0, %v19682_v3  ;;  %v19685_v33 = vadd.f32 %v21218_v15, %v29180_v19  ;;  %v19676_v36 = vpop.f32.mrb[39].mxu1 }
 0xc60   : > { %19740 = vst.msk [vmem:[%s29185_s28 + $0xa0] sm:$0xff] %vm468_vm0, %v19674_v35  ;;  %v19677_v20 = vadd.f32 %v29180_v19, %v19676_v36 }
 0xc61   : > { %19743 = vst.msk [vmem:[%s29185_s28 + $0xb8] sm:$0xff] %vm468_vm0, %v19685_v33 }
 0xc62   : > { %19741 = vst.msk [vmem:[%s29185_s28 + $0xa8] sm:$0xff] %vm468_vm0, %v19677_v20 }
 0xc64   : > { %v21221_v58 = vpop.f32.mrb[40].mxu1 }
 0xc65   : > { %v19698_v14 = vadd.f32 %v21221_v58, %v29180_v19  ;;  %v19689_v57 = vpop.f32.mrb[41].mxu1 }
 0xc66   : > { %v19690_v12 = vadd.f32 %v29180_v19, %v19689_v57  ;;  %v21222_v44 = vpop.f32.mrb[42].mxu1 }
 0xc67   : > { %19746 = vst.msk [vmem:[%s29185_s28 + $0xd0] sm:$0xff] %vm468_vm0, %v19698_v14  ;;  %v19701_v39 = vadd.f32 %v21222_v44, %v29180_v19  ;;  %v19692_v30 = vpop.f32.mrb[43].mxu1 }
 0xc68   : > { %19744 = vst.msk [vmem:[%s29185_s28 + $0xc0] sm:$0xff] %vm468_vm0, %v19690_v12  ;;  %v19693_v6 = vadd.f32 %v29180_v19, %v19692_v30 }
 0xc69   : > { %19747 = vst.msk [vmem:[%s29185_s28 + $0xd8] sm:$0xff] %vm468_vm0, %v19701_v39 }
 0xc6a   : > { %19745 = vst.msk [vmem:[%s29185_s28 + $0xc8] sm:$0xff] %vm468_vm0, %v19693_v6 }
 0xc84   : > { %v21225_v46 = vpop.f32.mrb[44].mxu1 }
 0xc85   : > { %v19714_v47 = vadd.f32 %v21225_v46, %v29180_v19  ;;  %v19705_v41 = vpop.f32.mrb[45].mxu1 }
 0xc86   : > { %v19706_v23 = vadd.f32 %v29180_v19, %v19705_v41  ;;  %v21226_v50 = vpop.f32.mrb[46].mxu1 }
 0xc87   : > { %19750 = vst.msk [vmem:[%s29185_s28 + $0xf0] sm:$0xff] %vm468_vm0, %v19714_v47  ;;  %v19717_v45 = vadd.f32 %v21226_v50, %v29180_v19  ;;  %v19708_v7 = vpop.f32.mrb[47].mxu1 }
 0xc88   : > { %19748 = vst.msk [vmem:[%s29185_s28 + $0xe0] sm:$0xff] %vm468_vm0, %v19706_v23  ;;  %v19709_v28 = vadd.f32 %v29180_v19, %v19708_v7 }
 0xc89   : > { %19751 = vst.msk [vmem:[%s29185_s28 + $0xf8] sm:$0xff] %vm468_vm0, %v19717_v45 }
 0xc8a   : > { %19749 = vst.msk [vmem:[%s29185_s28 + $0xe8] sm:$0xff] %vm468_vm0, %v19709_v28 }
 0xc8b PF: > { %s20_s27 = sadd.s32 1, %s24201_s27  }
 0xc8c   : > { %p17_p5 = scmp.ge.s32.totalorder %s20_s27, 4  }
 0xc8e   :  { %19 = sbr.rel (!%p17_p5) target bundleno = 2 (0x2), region = 91 }
 0xc95   :  { %19774 = vsyncpa [#allocation3], 1 }
 0xc96   :  { %19776 = vsyncpa [#allocation3 + $0x1], 1 }
 0xc97   :  { %19777 = vsyncpa [#allocation5], 1 }

</bundles_post_ra>
